<compile_context>
chip_gen: v5e
topology: v5e:2x2
jax: 0.10.0
libtpu: 0.0.40
codegen_flags: <defaults>
</compile_context>

<pallas_src>
import jax
import jax.numpy as jnp
from jax.experimental import pallas as pl
from jax.experimental.pallas import tpu as pltpu

NEG_SLOPE = 0.01
INPUT_FZ = 133 * 2      # 266
INPUT_PAD = 384         # 266 rounded up to 3*128 (lane-aligned K for upscale)
HIDDEN = 1024
OUTPUT_FZ = 133 * 3     # 399
OUTPUT_PAD = 512        # 399 rounded up to 4*128 (lane-dense N for pose3d)

_VMEM = pl.BlockSpec(memory_space=pltpu.MemorySpace.VMEM)
_HBM = pl.BlockSpec(memory_space=pl.ANY)
_COMPILER_PARAMS = pltpu.CompilerParams(vmem_limit_bytes=32 * 1024 * 1024)


def _leaky(x):
    return jnp.where(x >= 0, x, x * NEG_SLOPE)


# ---------------------------------------------------------------------------
# Kernel 1: the spec module `lifter_res_block` (fused L1 + LeakyReLU + L2 +
# LeakyReLU + residual add; weights streamed bf16 from HBM, both DMAs issued
# up-front so W2's copy overlaps the first matmul).
# ---------------------------------------------------------------------------
def res_block_kernel(x_ref, w_hbm, b_ref, o_ref, wbuf, sem):
    # Fire both weight DMAs back-to-back at entry.
    cps = [pltpu.make_async_copy(w_hbm.at[i], wbuf.at[i], sem.at[i])
           for i in range(2)]
    for cp in cps:
        cp.start()

    x = x_ref[...]                       # f32 (B, H)
    b_all = b_ref[...]                   # f32 (2, H)

    cps[0].wait()
    h = _leaky(
        jnp.dot(x.astype(jnp.bfloat16), wbuf[0],
                preferred_element_type=jnp.float32) + b_all[0:1, :])
    cps[1].wait()
    h = _leaky(
        jnp.dot(h.astype(jnp.bfloat16), wbuf[1],
                preferred_element_type=jnp.float32) + b_all[1:2, :])
    o_ref[...] = h + x                   # residual add, no outer activation


def pack_res_block_params(w1, b1, w2, b2):
    """Pack once outside the hot path: (2,H,H) bf16 weights + (2,H) f32 biases."""
    w_all = jnp.stack([w1, w2]).astype(jnp.bfloat16)
    b_all = jnp.stack([b1, b2]).astype(jnp.float32)
    return w_all, b_all


def lifter_res_block_forward(x, packed):
    """x: (B, H) f32; packed = pack_res_block_params(...)."""
    w_all, b_all = packed
    B, H = x.shape
    cost = pl.CostEstimate(
        flops=2 * 2 * B * H * H,
        transcendentals=0,
        bytes_accessed=w_all.size * 2 + b_all.size * 4 + 2 * B * H * 4,
    )
    return pl.pallas_call(
        res_block_kernel,
        out_shape=jax.ShapeDtypeStruct((B, H), jnp.float32),
        in_specs=[_VMEM, _HBM, _VMEM],
        out_specs=_VMEM,
        scratch_shapes=[
            pltpu.VMEM((2, H, H), jnp.bfloat16),
            pltpu.SemaphoreType.DMA((2,)),
        ],
        compiler_params=_COMPILER_PARAMS,
        cost_estimate=cost,
    )(x, w_all, b_all)


# ---------------------------------------------------------------------------
# Kernel 2: fused full model forward (upscale -> 3x [res block + LeakyReLU]
# -> pose3d) in ONE pallas_call.  All 8 weight DMAs are queued at entry;
# activations live in registers between layers.
# ---------------------------------------------------------------------------
def fused_model_kernel(x_ref, wup_hbm, wmid_hbm, wout_hbm, bmain_ref, bout_ref,
                       o_ref, wup_buf, wmid_buf, wout_buf, sem, xin_ref):
    n_mid = wmid_hbm.shape[0]            # 6 hidden-layer weights

    # Queue every weight DMA back-to-back; each layer waits only on its own sem.
    up_cp = pltpu.make_async_copy(wup_hbm, wup_buf, sem.at[0])
    mid_cps = [pltpu.make_async_copy(wmid_hbm.at[i], wmid_buf.at[i], sem.at[1 + i])
               for i in range(n_mid)]
    out_cp = pltpu.make_async_copy(wout_hbm, wout_buf, sem.at[1 + n_mid])
    up_cp.start()
    for cp in mid_cps:
        cp.start()
    out_cp.start()

    # In-kernel zero-pad of the (B, 266) input to lane-aligned K = 384.
    # (Padded weight rows 266:384 are zero too, so the result is exact.)
    xin_ref[...] = jnp.zeros_like(xin_ref)
    xin_ref[:, :INPUT_FZ] = x_ref[...]

    bmain = bmain_ref[...]               # (7, HIDDEN) f32

    # --- upscale: plain Linear (no activation in the parent model) ---
    up_cp.wait()
    act = jnp.dot(xin_ref[...].astype(jnp.bfloat16), wup_buf[...],
                  preferred_element_type=jnp.float32) + bmain[0:1, :]

    # --- 3x lifter_res_block, each followed by the parent model's LeakyReLU ---
    for blk in range(3):
        res = act
        mid_cps[2 * blk].wait()
        h = _leaky(jnp.dot(act.astype(jnp.bfloat16), wmid_buf[2 * blk],
                           preferred_element_type=jnp.float32)
                   + bmain[1 + 2 * blk:2 + 2 * blk, :])
        mid_cps[2 * blk + 1].wait()
        h = _leaky(jnp.dot(h.astype(jnp.bfloat16), wmid_buf[2 * blk + 1],
                           preferred_element_type=jnp.float32)
                   + bmain[2 + 2 * blk:3 + 2 * blk, :])
        act = _leaky(h + res)            # outer LeakyReLU (parent model)

    # --- pose3d: plain Linear, lane-dense padded output ---
    out_cp.wait()
    o_ref[...] = jnp.dot(act.astype(jnp.bfloat16), wout_buf[...],
                         preferred_element_type=jnp.float32) + bout_ref[...]


def pack_model_params(params):
    """Pack weights once: slim upscale/pose3d tiles, bf16 weights, f32 biases."""
    w_up, b_up = params["upscale"]
    mids, mid_b = [], []
    for i in range(3):
        (w1, b1), (w2, b2) = params[f"res_{i + 1}"]
        mids += [w1, w2]
        mid_b += [b1, b2]
    w_out, b_out = params["pose3d"]

    # upscale: zero-pad K 266 -> 384 only (0.75 MiB bf16 instead of 2 MiB)
    w_up_p = jnp.zeros((INPUT_PAD, HIDDEN), jnp.bfloat16)
    w_up_p = w_up_p.at[:INPUT_FZ, :].set(w_up.astype(jnp.bfloat16))
    # six hidden-layer weights: (6, H, H) bf16
    w_mid = jnp.stack(mids).astype(jnp.bfloat16)
    # pose3d: zero-pad N 399 -> 512 only (1 MiB bf16 instead of 2 MiB)
    w_out_p = jnp.zeros((HIDDEN, OUTPUT_PAD), jnp.bfloat16)
    w_out_p = w_out_p.at[:, :OUTPUT_FZ].set(w_out.astype(jnp.bfloat16))

    b_main = jnp.stack([b_up] + mid_b).astype(jnp.float32)            # (7, H)
    b_out_p = jnp.zeros((1, OUTPUT_PAD), jnp.float32)
    b_out_p = b_out_p.at[0, :OUTPUT_FZ].set(b_out.astype(jnp.float32))
    return w_up_p, w_mid, w_out_p, b_main, b_out_p


def model_forward(packed, p2d):
    w_up, w_mid, w_out, b_main, b_out = packed
    B = p2d.shape[0]
    bytes_accessed = ((w_up.size + w_mid.size + w_out.size) * 2
                      + (b_main.size + b_out.size) * 4
                      + (p2d.size + B * OUTPUT_PAD) * 4)
    flops = 2 * B * (INPUT_PAD * HIDDEN + 6 * HIDDEN * HIDDEN + HIDDEN * OUTPUT_PAD)
    out = pl.pallas_call(
        fused_model_kernel,
        out_shape=jax.ShapeDtypeStruct((B, OUTPUT_PAD), jnp.float32),
        in_specs=[_VMEM, _HBM, _HBM, _HBM, _VMEM, _VMEM],
        out_specs=_VMEM,
        scratch_shapes=[
            pltpu.VMEM((INPUT_PAD, HIDDEN), jnp.bfloat16),     # upscale weight
            pltpu.VMEM((6, HIDDEN, HIDDEN), jnp.bfloat16),     # hidden weights
            pltpu.VMEM((HIDDEN, OUTPUT_PAD), jnp.bfloat16),    # pose3d weight
            pltpu.SemaphoreType.DMA((8,)),
            pltpu.VMEM((B, INPUT_PAD), jnp.float32),           # padded input
        ],
        compiler_params=_COMPILER_PARAMS,
        cost_estimate=pl.CostEstimate(flops=flops, transcendentals=0,
                                      bytes_accessed=bytes_accessed),
    )(p2d, w_up, w_mid, w_out, b_main, b_out)
    return out[:, :OUTPUT_FZ]                                  # slice lane padding


# ---------------------------------------------------------------------------
# Parameter construction (PyTorch-style uniform init; weights stored bf16)
# ---------------------------------------------------------------------------
def _init_linear(key, fan_in, fan_out):
    kw, kb = jax.random.split(key)
    bound = 1.0 / jnp.sqrt(jnp.float32(fan_in))
    w = jax.random.uniform(kw, (fan_in, fan_out), jnp.float32, -bound, bound)
    b = jax.random.uniform(kb, (fan_out,), jnp.float32, -bound, bound)
    return w.astype(jnp.bfloat16), b


def init_params(key):
    keys = jax.random.split(key, 8)
    params = {"upscale": _init_linear(keys[0], INPUT_FZ, HIDDEN)}
    for i in range(3):
        l1 = _init_linear(keys[1 + 2 * i], HIDDEN, HIDDEN)
        l2 = _init_linear(keys[2 + 2 * i], HIDDEN, HIDDEN)
        params[f"res_{i + 1}"] = (l1, l2)
    params["pose3d"] = _init_linear(keys[7], HIDDEN, OUTPUT_FZ)
    return params


# ---------------------------------------------------------------------------
# Pure-JAX references (mirror the kernel numerics: bf16 operands, f32 accum)
# ---------------------------------------------------------------------------
def _linear_ref(x, w_bf16, b):
    return jnp.dot(x.astype(jnp.bfloat16), w_bf16,
                   preferred_element_type=jnp.float32) + b


def res_block_reference(x, w1, b1, w2, b2):
    h = _leaky(_linear_ref(x, w1, b1))
    h = _leaky(_linear_ref(h, w2, b2))
    return h + x


def model_reference(params, p2d):
    w_up, b_up = params["upscale"]
    x = _linear_ref(p2d, w_up, b_up)
    for i in range(3):
        (w1, b1), (w2, b2) = params[f"res_{i + 1}"]
        x = _leaky(res_block_reference(x, w1, b1, w2, b2))
    w_out, b_out = params["pose3d"]
    return _linear_ref(x, w_out, b_out)


if __name__ == "__main__":
    key = jax.random.PRNGKey(0)
    k_params, k_x, k_p2d = jax.random.split(key, 3)

    batch = 8
    params = init_params(k_params)

    # --- standalone lifter_res_block (the spec module) ---
    (w1, b1), (w2, b2) = params["res_1"]
    packed_blk = pack_res_block_params(w1, b1, w2, b2)   # pack ONCE, reuse per call
    x = jax.random.normal(k_x, (batch, HIDDEN), dtype=jnp.float32)
    out_blk = jax.block_until_ready(lifter_res_block_forward(x, packed_blk))
    ref_blk = jax.block_until_ready(res_block_reference(x, w1, b1, w2, b2))
    assert out_blk.shape == (batch, HIDDEN), out_blk.shape
    assert jnp.allclose(out_blk, ref_blk, atol=5e-3, rtol=5e-3), (
        float(jnp.max(jnp.abs(out_blk - ref_blk)))
    )

    # --- fused full-model forward (single pallas_call) ---
    p2d = jax.random.normal(k_p2d, (batch, INPUT_FZ), dtype=jnp.float32)
    packed = pack_model_params(params)
    out = jax.block_until_ready(model_forward(packed, p2d))
    ref = jax.block_until_ready(model_reference(params, p2d))
    assert out.shape == (batch, OUTPUT_FZ), out.shape
    assert jnp.allclose(out, ref, atol=5e-3, rtol=5e-3), (
        float(jnp.max(jnp.abs(out - ref)))
    )

    print("KERNEL_OK")
</pallas_src>

<mosaic_0001>
module attributes {stable_mosaic.version = 11 : i64} {
  func.func @res_block_kernel(%arg0: memref<8x1024xf32, #tpu.memory_space<vmem>>, %arg1: memref<2x1024x1024xbf16, #tpu.memory_space<any>>, %arg2: memref<2x1024xf32, #tpu.memory_space<vmem>>, %arg3: memref<8x1024xf32, #tpu.memory_space<vmem>>, %arg4: memref<2x1024x1024xbf16, #tpu.memory_space<vmem>>, %arg5: memref<2x!tpu.dma_semaphore, #tpu.memory_space<semaphore_mem>>) attributes {dimension_semantics = [], scalar_prefetch = 0 : i64, scratch_operands = 2 : i64, tpu.core_type = #tpu.core_type<tc>} {
    %c0_i32 = arith.constant 0 : i32
    %c0_i32_0 = arith.constant 0 : i32
    %c0_i32_1 = arith.constant 0 : i32
    %c0_i32_2 = arith.constant 0 : i32
    %c0_i32_3 = arith.constant 0 : i32
    %0 = tpu.memref_slice %arg1[%c0_i32, %c0_i32_2, %c0_i32_3] : memref<2x1024x1024xbf16, #tpu.memory_space<any>> -> memref<1x1024x1024xbf16, #tpu.memory_space<any>>
    %1 = tpu.memref_squeeze %0 : memref<1x1024x1024xbf16, #tpu.memory_space<any>> -> memref<1024x1024xbf16, #tpu.memory_space<any>>
    %c0_i32_4 = arith.constant 0 : i32
    %c0_i32_5 = arith.constant 0 : i32
    %2 = tpu.memref_slice %arg4[%c0_i32_0, %c0_i32_4, %c0_i32_5] : memref<2x1024x1024xbf16, #tpu.memory_space<vmem>> -> memref<1x1024x1024xbf16, #tpu.memory_space<vmem>>
    %3 = tpu.memref_squeeze %2 : memref<1x1024x1024xbf16, #tpu.memory_space<vmem>> -> memref<1024x1024xbf16, #tpu.memory_space<vmem>>
    %4 = tpu.memref_slice %arg5[%c0_i32_1] : memref<2x!tpu.dma_semaphore, #tpu.memory_space<semaphore_mem>> -> memref<1x!tpu.dma_semaphore, #tpu.memory_space<semaphore_mem>>
    %5 = tpu.memref_squeeze %4 : memref<1x!tpu.dma_semaphore, #tpu.memory_space<semaphore_mem>> -> memref<!tpu.dma_semaphore, #tpu.memory_space<semaphore_mem>>
    tpu.enqueue_dma source(%1 : memref<1024x1024xbf16, #tpu.memory_space<any>>) target(%3 : memref<1024x1024xbf16, #tpu.memory_space<vmem>>) target_semaphore(%5 : memref<!tpu.dma_semaphore, #tpu.memory_space<semaphore_mem>>)
    %c1_i32 = arith.constant 1 : i32
    %c1_i32_6 = arith.constant 1 : i32
    %c1_i32_7 = arith.constant 1 : i32
    %c0_i32_8 = arith.constant 0 : i32
    %c0_i32_9 = arith.constant 0 : i32
    %6 = tpu.memref_slice %arg1[%c1_i32, %c0_i32_8, %c0_i32_9] : memref<2x1024x1024xbf16, #tpu.memory_space<any>> -> memref<1x1024x1024xbf16, #tpu.memory_space<any>>
    %7 = tpu.memref_squeeze %6 : memref<1x1024x1024xbf16, #tpu.memory_space<any>> -> memref<1024x1024xbf16, #tpu.memory_space<any>>
    %c0_i32_10 = arith.constant 0 : i32
    %c0_i32_11 = arith.constant 0 : i32
    %8 = tpu.memref_slice %arg4[%c1_i32_6, %c0_i32_10, %c0_i32_11] : memref<2x1024x1024xbf16, #tpu.memory_space<vmem>> -> memref<1x1024x1024xbf16, #tpu.memory_space<vmem>>
    %9 = tpu.memref_squeeze %8 : memref<1x1024x1024xbf16, #tpu.memory_space<vmem>> -> memref<1024x1024xbf16, #tpu.memory_space<vmem>>
    %10 = tpu.memref_slice %arg5[%c1_i32_7] : memref<2x!tpu.dma_semaphore, #tpu.memory_space<semaphore_mem>> -> memref<1x!tpu.dma_semaphore, #tpu.memory_space<semaphore_mem>>
    %11 = tpu.memref_squeeze %10 : memref<1x!tpu.dma_semaphore, #tpu.memory_space<semaphore_mem>> -> memref<!tpu.dma_semaphore, #tpu.memory_space<semaphore_mem>>
    tpu.enqueue_dma source(%7 : memref<1024x1024xbf16, #tpu.memory_space<any>>) target(%9 : memref<1024x1024xbf16, #tpu.memory_space<vmem>>) target_semaphore(%11 : memref<!tpu.dma_semaphore, #tpu.memory_space<semaphore_mem>>)
    %c0 = arith.constant 0 : index
    %c0_12 = arith.constant 0 : index
    %12 = vector.load %arg0[%c0, %c0_12] : memref<8x1024xf32, #tpu.memory_space<vmem>>, vector<8x1024xf32>
    %c0_13 = arith.constant 0 : index
    %c0_14 = arith.constant 0 : index
    %13 = vector.load %arg2[%c0_13, %c0_14] : memref<2x1024xf32, #tpu.memory_space<vmem>>, vector<2x1024xf32>
    %c0_i32_15 = arith.constant 0 : i32
    %c0_i32_16 = arith.constant 0 : i32
    %c0_i32_17 = arith.constant 0 : i32
    %c0_i32_18 = arith.constant 0 : i32
    %c0_i32_19 = arith.constant 0 : i32
    %14 = tpu.memref_slice %arg1[%c0_i32_15, %c0_i32_18, %c0_i32_19] : memref<2x1024x1024xbf16, #tpu.memory_space<any>> -> memref<1x1024x1024xbf16, #tpu.memory_space<any>>
    %15 = tpu.memref_squeeze %14 : memref<1x1024x1024xbf16, #tpu.memory_space<any>> -> memref<1024x1024xbf16, #tpu.memory_space<any>>
    %c0_i32_20 = arith.constant 0 : i32
    %c0_i32_21 = arith.constant 0 : i32
    %16 = tpu.memref_slice %arg4[%c0_i32_16, %c0_i32_20, %c0_i32_21] : memref<2x1024x1024xbf16, #tpu.memory_space<vmem>> -> memref<1x1024x1024xbf16, #tpu.memory_space<vmem>>
    %17 = tpu.memref_squeeze %16 : memref<1x1024x1024xbf16, #tpu.memory_space<vmem>> -> memref<1024x1024xbf16, #tpu.memory_space<vmem>>
    %18 = tpu.memref_slice %arg5[%c0_i32_17] : memref<2x!tpu.dma_semaphore, #tpu.memory_space<semaphore_mem>> -> memref<1x!tpu.dma_semaphore, #tpu.memory_space<semaphore_mem>>
    %19 = tpu.memref_squeeze %18 : memref<1x!tpu.dma_semaphore, #tpu.memory_space<semaphore_mem>> -> memref<!tpu.dma_semaphore, #tpu.memory_space<semaphore_mem>>
    tpu.wait_dma2 semaphore(%19 : memref<!tpu.dma_semaphore, #tpu.memory_space<semaphore_mem>>) src(%15 : memref<1024x1024xbf16, #tpu.memory_space<any>>) dst(%17 : memref<1024x1024xbf16, #tpu.memory_space<vmem>>)
    %20 = arith.truncf %12 : vector<8x1024xf32> to vector<8x1024xbf16>
    %c0_22 = arith.constant 0 : index
    %c0_23 = arith.constant 0 : index
    %c0_24 = arith.constant 0 : index
    %21 = vector.load %arg4[%c0_22, %c0_23, %c0_24] : memref<2x1024x1024xbf16, #tpu.memory_space<vmem>>, vector<1x1024x1024xbf16>
    %22 = vector.shape_cast %21 : vector<1x1024x1024xbf16> to vector<1024x1024xbf16>
    %cst = arith.constant dense<0.000000e+00> : vector<8x1024xf32>
    %23 = tpu.matmul %20, %22, %cst {dimension_numbers = #tpu.dot_dimension_numbers<[1], [0], [0], [1], [0, 0, 1, 1], [], []>} : vector<8x1024xbf16>, vector<1024x1024xbf16>, vector<8x1024xf32> -> vector<8x1024xf32>
    %24 = vector.extract_strided_slice %13 {offsets = [0, 0], sizes = [1, 1024], strides = [1, 1]} : vector<2x1024xf32> to vector<1x1024xf32>
    %25 = vector.broadcast %24 : vector<1x1024xf32> to vector<8x1024xf32>
    %26 = arith.addf %23, %25 : vector<8x1024xf32>
    %cst_25 = arith.constant 0.000000e+00 : f32
    %27 = vector.broadcast %cst_25 : f32 to vector<8x1024xf32>
    %28 = arith.cmpf oge, %26, %27 : vector<8x1024xf32>
    %cst_26 = arith.constant 0.00999999977 : f32
    %29 = vector.broadcast %cst_26 : f32 to vector<8x1024xf32>
    %30 = arith.mulf %26, %29 : vector<8x1024xf32>
    %31 = arith.select %28, %26, %30 : vector<8x1024xi1>, vector<8x1024xf32>
    %c1_i32_27 = arith.constant 1 : i32
    %c1_i32_28 = arith.constant 1 : i32
    %c1_i32_29 = arith.constant 1 : i32
    %c0_i32_30 = arith.constant 0 : i32
    %c0_i32_31 = arith.constant 0 : i32
    %32 = tpu.memref_slice %arg1[%c1_i32_27, %c0_i32_30, %c0_i32_31] : memref<2x1024x1024xbf16, #tpu.memory_space<any>> -> memref<1x1024x1024xbf16, #tpu.memory_space<any>>
    %33 = tpu.memref_squeeze %32 : memref<1x1024x1024xbf16, #tpu.memory_space<any>> -> memref<1024x1024xbf16, #tpu.memory_space<any>>
    %c0_i32_32 = arith.constant 0 : i32
    %c0_i32_33 = arith.constant 0 : i32
    %34 = tpu.memref_slice %arg4[%c1_i32_28, %c0_i32_32, %c0_i32_33] : memref<2x1024x1024xbf16, #tpu.memory_space<vmem>> -> memref<1x1024x1024xbf16, #tpu.memory_space<vmem>>
    %35 = tpu.memref_squeeze %34 : memref<1x1024x1024xbf16, #tpu.memory_space<vmem>> -> memref<1024x1024xbf16, #tpu.memory_space<vmem>>
    %36 = tpu.memref_slice %arg5[%c1_i32_29] : memref<2x!tpu.dma_semaphore, #tpu.memory_space<semaphore_mem>> -> memref<1x!tpu.dma_semaphore, #tpu.memory_space<semaphore_mem>>
    %37 = tpu.memref_squeeze %36 : memref<1x!tpu.dma_semaphore, #tpu.memory_space<semaphore_mem>> -> memref<!tpu.dma_semaphore, #tpu.memory_space<semaphore_mem>>
    tpu.wait_dma2 semaphore(%37 : memref<!tpu.dma_semaphore, #tpu.memory_space<semaphore_mem>>) src(%33 : memref<1024x1024xbf16, #tpu.memory_space<any>>) dst(%35 : memref<1024x1024xbf16, #tpu.memory_space<vmem>>)
    %38 = arith.truncf %31 : vector<8x1024xf32> to vector<8x1024xbf16>
    %c1 = arith.constant 1 : index
    %c0_34 = arith.constant 0 : index
    %c0_35 = arith.constant 0 : index
    %39 = vector.load %arg4[%c1, %c0_34, %c0_35] : memref<2x1024x1024xbf16, #tpu.memory_space<vmem>>, vector<1x1024x1024xbf16>
    %40 = vector.shape_cast %39 : vector<1x1024x1024xbf16> to vector<1024x1024xbf16>
    %cst_36 = arith.constant dense<0.000000e+00> : vector<8x1024xf32>
    %41 = tpu.matmul %38, %40, %cst_36 {dimension_numbers = #tpu.dot_dimension_numbers<[1], [0], [0], [1], [0, 0, 1, 1], [], []>} : vector<8x1024xbf16>, vector<1024x1024xbf16>, vector<8x1024xf32> -> vector<8x1024xf32>
    %42 = vector.extract_strided_slice %13 {offsets = [1, 0], sizes = [1, 1024], strides = [1, 1]} : vector<2x1024xf32> to vector<1x1024xf32>
    %43 = vector.broadcast %42 : vector<1x1024xf32> to vector<8x1024xf32>
    %44 = arith.addf %41, %43 : vector<8x1024xf32>
    %cst_37 = arith.constant 0.000000e+00 : f32
    %45 = vector.broadcast %cst_37 : f32 to vector<8x1024xf32>
    %46 = arith.cmpf oge, %44, %45 : vector<8x1024xf32>
    %cst_38 = arith.constant 0.00999999977 : f32
    %47 = vector.broadcast %cst_38 : f32 to vector<8x1024xf32>
    %48 = arith.mulf %44, %47 : vector<8x1024xf32>
    %49 = arith.select %46, %44, %48 : vector<8x1024xi1>, vector<8x1024xf32>
    %50 = arith.addf %49, %12 : vector<8x1024xf32>
    %c0_39 = arith.constant 0 : index
    %c0_40 = arith.constant 0 : index
    %51 = vector.load %arg3[%c0_39, %c0_40] : memref<8x1024xf32, #tpu.memory_space<vmem>>, vector<8x1024xf32>
    tpu.vector_store %arg3[%c0_39, %c0_40], %50 {strides = array<i32>} : memref<8x1024xf32, #tpu.memory_space<vmem>>, vector<8x1024xf32>,
    return
  }
}

</mosaic_0001>

<bundles_post_ra>
// kernel: tpu_custom_call.1
= control target key start
LH: loop header
LB: loop body
LE: loop exit
PB: predicated region body
PF: predicated region fallthrough
CT: control target
= control target key end

     0   :  { %8 = vsyncpa [#allocation5], 0  ;;  %s13685_s0 = inlined_call_operand.hbm [shape: f32[8,1024], index: 0, kind: input, shape index: {}]   ;;  %s13686_s1 = inlined_call_operand.hbm [shape: bf16[2,1024,1024], index: 1, kind: input, shape index: {}]   ;;  %s13687_s2 = inlined_call_operand.hbm [shape: f32[2,1024], index: 2, kind: input, shape index: {}]   ;;  %s13688_s3 = inlined_call_operand.hbm [shape: f32[8,1024], index: 3, kind: output, shape index: {}]  }
   0x1   :  { %9 = vsyncpa [#allocation8], 0 }
   0x2   :  { %10 = vsyncpa [#allocation6], 0  ;;  %s16_s14 = sshll.u32 %s13685_s0, 4  ;;  %s13312_s15 = smov [#allocation4]   ;;  %s17_s14 = int_to_ptr.hbm [resolvable:$true] %s16_s14 }
   0x3   :  { %s18_s16 = sshll.u32 %s13312_s15, 4  ;;  %s27_s19 = sshll.u32 %s13687_s2, 4  ;;  %s19_s16 = int_to_ptr.vmem [resolvable:$true] %s18_s16  ;;  %s28_s19 = int_to_ptr.hbm [resolvable:$true] %s27_s19 }
   0x4   :  { %21 = dma.hbm_to_vmem [thread:$0]  %s17_s14, 1024, %s19_s16, [#allocation5]  }
   0x5   :  { %s13313_s20 = smov [#allocation7]  }
   0x6   :  { %s29_s21 = sshll.u32 %s13313_s20, 4  ;;  %s30_s21 = int_to_ptr.vmem [resolvable:$true] %s29_s21 }
   0x7   :  { %32 = dma.hbm_to_vmem [thread:$0]  %s28_s19, 256, %s30_s21, [#allocation8]  }
   0x8   :  { %13302 = dma.done.wait [#allocation5], 1024  }
   0x9   :  { %13303 = vsyncadd [#allocation5], 4294966272 }
   0xa   :  { %13304 = dma.done.wait [#allocation8], 256  }
   0xb   :  { %13305 = vsyncadd [#allocation8], 4294967040  ;;  %s48_s23 = sshll.u32 %s13686_s1, 4  ;;  %s13314_s24 = smov [#allocation2]   ;;  %v13349_v0 = vld [vmem:[#allocation4] sm:$0xff]  ;;  %v13351_v1 = vld [vmem:[#allocation4 + $0x8] sm:$0xff]  ;;  %s49_s23 = int_to_ptr.hbm [resolvable:$true] %s48_s23 }
   0xc   :  { %s50_s25 = sshll.u32 %s13314_s24, 4  ;;  %s54_s27 = scalar_lea.hbm %s13686_s1, 4096  ;;  %v13353_v2 = vld [vmem:[#allocation4 + $0x10] sm:$0xff]  ;;  %v13355_v3 = vld [vmem:[#allocation4 + $0x18] sm:$0xff]  ;;  %v13357_v4 = vld [vmem:[#allocation4 + $0x20] sm:$0xff]  ;;  %s51_s25 = int_to_ptr.vmem [resolvable:$true] %s50_s25 }
   0xd   :  { %53 = dma.hbm_to_vmem [thread:$0]  %s49_s23, 65536, %s51_s25, [#allocation3]  ;;  %v13359_v5 = vld [vmem:[#allocation4 + $0x28] sm:$0xff]  ;;  %v13361_v6 = vld [vmem:[#allocation4 + $0x30] sm:$0xff]  ;;  %v13363_v7 = vld [vmem:[#allocation4 + $0x38] sm:$0xff] }
   0xe   :  { %s64_s28 = sshll.u32 %s54_s27, 4  ;;  %s13315_s29 = smov [#allocation2 + $0x1000]   ;;  %v13365_v8 = vld [vmem:[#allocation7] sm:$0xff]  ;;  %v13367_v9 = vld [vmem:[#allocation7 + $0x8] sm:$0xff]  ;;  %s65_s28 = int_to_ptr.hbm [resolvable:$true] %s64_s28 }
   0xf   :  { %s66_s30 = sshll.u32 %s13315_s29, 4  ;;  %s67_s30 = int_to_ptr.vmem [resolvable:$true] %s66_s30 }
  0x10   :  { %69 = dma.hbm_to_vmem [thread:$0]  %s65_s28, 65536, %s67_s30, [#allocation3 + $0x1] }
  0x11   :  { %13306 = dma.done.wait [#allocation3], 65536 }
  0x12   :  { %13307 = vsyncadd [#allocation3], 4294901760  ;;  %v8281_v10 = vld [vmem:[#allocation2 + $0x1c0] sm:$0xf] }
  0x13   :  { %v12213_v11 = vld [vmem:[#allocation2 + $0x1dc] sm:$0xf0] }
  0x14   :  { %v8537_v12 = vld [vmem:[#allocation2 + $0x3c0] sm:$0xf]  ;;  %v8282_v13 = vor.u32 %v12213_v11, %v8281_v10 }
  0x15   :  { %v12277_v14 = vld [vmem:[#allocation2 + $0x3dc] sm:$0xf0] }
  0x16   :  { %v8793_v15 = vld [vmem:[#allocation2 + $0x5c0] sm:$0xf]  ;;  %v8538_v17 = vor.u32 %v12277_v14, %v8537_v12  ;;  %3190 = vmatpush.bf16.msra.mxu0 %v8282_v13 }
  0x17   :  { %v12341_v16 = vld [vmem:[#allocation2 + $0x5dc] sm:$0xf0] }
  0x18   :  { %v8794_v18 = vor.u32 %v12341_v16, %v8793_v15  ;;  %v9049_v19 = vld [vmem:[#allocation2 + $0x7c0] sm:$0xf]  ;;  %3203 = vmatpush.bf16.msra.mxu1 %v8538_v17 }
  0x19   :  { %v12405_v20 = vld [vmem:[#allocation2 + $0x7dc] sm:$0xf0] }
  0x1a   :  { %v8249_v21 = vld [vmem:[#allocation2 + $0x180] sm:$0xf]  ;;  %v9050_v22 = vor.u32 %v12405_v20, %v9049_v19  ;;  %3216 = vmatpush.bf16.msra.mxu2 %v8794_v18 }
  0x1b   :  { %v12205_v23 = vld [vmem:[#allocation2 + $0x19c] sm:$0xf0] }
  0x1c   :  { %v8505_v24 = vld [vmem:[#allocation2 + $0x380] sm:$0xf]  ;;  %v8250_v26 = vor.u32 %v12205_v23, %v8249_v21  ;;  %3229 = vmatpush.bf16.msra.mxu3 %v9050_v22 }
  0x1d   :  { %v12269_v25 = vld [vmem:[#allocation2 + $0x39c] sm:$0xf0] }
  0x1e   :  { %v8506_v27 = vor.u32 %v12269_v25, %v8505_v24  ;;  %v8761_v28 = vld [vmem:[#allocation2 + $0x580] sm:$0xf]  ;;  %3191 = vmatpush.bf16.msra.mxu0 %v8250_v26 }
  0x1f   :  { %v12333_v29 = vld [vmem:[#allocation2 + $0x59c] sm:$0xf0] }
  0x20   :  { %v9017_v30 = vld [vmem:[#allocation2 + $0x780] sm:$0xf]  ;;  %v8762_v31 = vor.u32 %v12333_v29, %v8761_v28  ;;  %3204 = vmatpush.bf16.msra.mxu1 %v8506_v27 }
  0x21   :  { %v12397_v32 = vld [vmem:[#allocation2 + $0x79c] sm:$0xf0] }
  0x22   :  { %v8217_v33 = vld [vmem:[#allocation2 + $0x140] sm:$0xf]  ;;  %v9018_v35 = vor.u32 %v12397_v32, %v9017_v30  ;;  %3217 = vmatpush.bf16.msra.mxu2 %v8762_v31 }
  0x23   :  { %v12197_v34 = vld [vmem:[#allocation2 + $0x15c] sm:$0xf0] }
  0x24   :  { %v8473_v36 = vld [vmem:[#allocation2 + $0x340] sm:$0xf]  ;;  %v8218_v39 = vor.u32 %v12197_v34, %v8217_v33  ;;  %3230 = vmatpush.bf16.msra.mxu3 %v9018_v35 }
  0x25   :  { %v12261_v37 = vld [vmem:[#allocation2 + $0x35c] sm:$0xf0] }
  0x26   :  { %v8729_v38 = vld [vmem:[#allocation2 + $0x540] sm:$0xf]  ;;  %v8474_v43 = vor.u32 %v12261_v37, %v8473_v36  ;;  %3192 = vmatpush.bf16.msra.mxu0 %v8218_v39 }
  0x27   :  { %v12325_v40 = vld [vmem:[#allocation2 + $0x55c] sm:$0xf0] }
  0x28   :  { %v8985_v41 = vld [vmem:[#allocation2 + $0x740] sm:$0xf]  ;;  %v8730_v44 = vor.u32 %v12325_v40, %v8729_v38  ;;  %3205 = vmatpush.bf16.msra.mxu1 %v8474_v43 }
  0x29   :  { %v12389_v42 = vld [vmem:[#allocation2 + $0x75c] sm:$0xf0] }
  0x2a   :  { %v8185_v45 = vld [vmem:[#allocation2 + $0x100] sm:$0xf]  ;;  %v8986_v48 = vor.u32 %v12389_v42, %v8985_v41  ;;  %3218 = vmatpush.bf16.msra.mxu2 %v8730_v44 }
  0x2b   :  { %v12189_v46 = vld [vmem:[#allocation2 + $0x11c] sm:$0xf0] }
  0x2c   :  { %v8441_v47 = vld [vmem:[#allocation2 + $0x300] sm:$0xf]  ;;  %v8186_v54 = vor.u32 %v12189_v46, %v8185_v45  ;;  %3231 = vmatpush.bf16.msra.mxu3 %v8986_v48 }
  0x2d   :  { %v12253_v49 = vld [vmem:[#allocation2 + $0x31c] sm:$0xf0] }
  0x2e   :  { %v8697_v50 = vld [vmem:[#allocation2 + $0x500] sm:$0xf]  ;;  %v8442_v55 = vor.u32 %v12253_v49, %v8441_v47  ;;  %3193 = vmatpush.bf16.msra.mxu0 %v8186_v54 }
  0x2f   :  { %v12317_v51 = vld [vmem:[#allocation2 + $0x51c] sm:$0xf0] }
  0x30   :  { %v8953_v52 = vld [vmem:[#allocation2 + $0x700] sm:$0xf]  ;;  %v8698_v56 = vor.u32 %v12317_v51, %v8697_v50  ;;  %3206 = vmatpush.bf16.msra.mxu1 %v8442_v55 }
  0x31   :  { %v12381_v53 = vld [vmem:[#allocation2 + $0x71c] sm:$0xf0] }
  0x32   :  { %v8153_v57 = vld [vmem:[#allocation2 + $0xc0] sm:$0xf]  ;;  %v8954_v60 = vor.u32 %v12381_v53, %v8953_v52  ;;  %3219 = vmatpush.bf16.msra.mxu2 %v8698_v56 }
  0x33   :  { %v12181_v58 = vld [vmem:[#allocation2 + $0xdc] sm:$0xf0] }
  0x34   :  { %v8409_v59 = vld [vmem:[#allocation2 + $0x2c0] sm:$0xf]  ;;  %v8154_v12 = vor.u32 %v12181_v58, %v8153_v57  ;;  %3232 = vmatpush.bf16.msra.mxu3 %v8954_v60 }
  0x35   :  { %v12245_v61 = vld [vmem:[#allocation2 + $0x2dc] sm:$0xf0] }
  0x36   :  { %v8665_v62 = vld [vmem:[#allocation2 + $0x4c0] sm:$0xf]  ;;  %v8410_v13 = vor.u32 %v12245_v61, %v8409_v59  ;;  %3194 = vmatpush.bf16.msra.mxu0 %v8154_v12 }
  0x37   :  { %v12309_v63 = vld [vmem:[#allocation2 + $0x4dc] sm:$0xf0] }
  0x38   :  { %v8921_v10 = vld [vmem:[#allocation2 + $0x6c0] sm:$0xf]  ;;  %v8666_v14 = vor.u32 %v12309_v63, %v8665_v62  ;;  %3207 = vmatpush.bf16.msra.mxu1 %v8410_v13 }
  0x39   :  { %v12373_v11 = vld [vmem:[#allocation2 + $0x6dc] sm:$0xf0] }
  0x3a   :  { %v8121_v15 = vld [vmem:[#allocation2 + $0x80] sm:$0xf]  ;;  %v8922_v18 = vor.u32 %v12373_v11, %v8921_v10  ;;  %3220 = vmatpush.bf16.msra.mxu2 %v8666_v14 }
  0x3b   :  { %v12173_v16 = vld [vmem:[#allocation2 + $0x9c] sm:$0xf0] }
  0x3c   :  { %v8377_v17 = vld [vmem:[#allocation2 + $0x280] sm:$0xf]  ;;  %v8122_v24 = vor.u32 %v12173_v16, %v8121_v15  ;;  %3233 = vmatpush.bf16.msra.mxu3 %v8922_v18  ;;  %v13371_v16 = vpack.c.bf16 %v13353_v2, %v13353_v2 }
  0x3d   :  { %v12237_v19 = vld [vmem:[#allocation2 + $0x29c] sm:$0xf0] }
  0x3e   :  { %v8633_v20 = vld [vmem:[#allocation2 + $0x480] sm:$0xf]  ;;  %v8378_v25 = vor.u32 %v12237_v19, %v8377_v17  ;;  %3195 = vmatpush.bf16.msra.mxu0 %v8122_v24  ;;  %v13375_v19 = vpack.c.bf16 %v13349_v0, %v13349_v0 }
  0x3f   :  { %v12301_v21 = vld [vmem:[#allocation2 + $0x49c] sm:$0xf0] }
  0x40   :  { %v8889_v22 = vld [vmem:[#allocation2 + $0x680] sm:$0xf]  ;;  %v8634_v26 = vor.u32 %v12301_v21, %v8633_v20  ;;  %3208 = vmatpush.bf16.msra.mxu1 %v8378_v25  ;;  %v13379_v20 = vpack.c.bf16 %v13355_v3, %v13355_v3 }
  0x41   :  { %v12365_v23 = vld [vmem:[#allocation2 + $0x69c] sm:$0xf0] }
  0x42   :  { %v8089_v27 = vld [vmem:[#allocation2 + $0x40] sm:$0xf]  ;;  %v8890_v30 = vor.u32 %v12365_v23, %v8889_v22  ;;  %3221 = vmatpush.bf16.msra.mxu2 %v8634_v26  ;;  %v13383_v22 = vpack.c.bf16 %v13351_v1, %v13351_v1 }
  0x43   :  { %v12165_v28 = vld [vmem:[#allocation2 + $0x5c] sm:$0xf0] }
  0x44   :  { %v8345_v29 = vld [vmem:[#allocation2 + $0x240] sm:$0xf]  ;;  %v8090_v36 = vor.u32 %v12165_v28, %v8089_v27  ;;  %3234 = vmatpush.bf16.msra.mxu3 %v8890_v30 }
  0x45   :  { %v12229_v31 = vld [vmem:[#allocation2 + $0x25c] sm:$0xf0] }
  0x46   :  { %v8601_v32 = vld [vmem:[#allocation2 + $0x440] sm:$0xf]  ;;  %v8346_v39 = vor.u32 %v12229_v31, %v8345_v29  ;;  %3196 = vmatpush.bf16.msra.mxu0 %v8090_v36 }
  0x47   :  { %v12293_v33 = vld [vmem:[#allocation2 + $0x45c] sm:$0xf0] }
  0x48   :  { %v8857_v34 = vld [vmem:[#allocation2 + $0x640] sm:$0xf]  ;;  %v8602_v40 = vor.u32 %v12293_v33, %v8601_v32  ;;  %3209 = vmatpush.bf16.msra.mxu1 %v8346_v39 }
  0x49   :  { %v12357_v35 = vld [vmem:[#allocation2 + $0x65c] sm:$0xf0] }
  0x4a   :  { %v8057_v37 = vld [vmem:[#allocation2] sm:$0xf]  ;;  %v8858_v44 = vor.u32 %v12357_v35, %v8857_v34  ;;  %3222 = vmatpush.bf16.msra.mxu2 %v8602_v40 }
  0x4b   :  { %v12157_v38 = vld [vmem:[#allocation2 + $0x1c] sm:$0xf0] }
  0x4c   :  { %v8313_v41 = vld [vmem:[#allocation2 + $0x200] sm:$0xf]  ;;  %v8058_v51 = vor.u32 %v12157_v38, %v8057_v37  ;;  %3235 = vmatpush.bf16.msra.mxu3 %v8858_v44 }
  0x4d   :  { %v12221_v42 = vld [vmem:[#allocation2 + $0x21c] sm:$0xf0] }
  0x4e   :  { %v8569_v43 = vld [vmem:[#allocation2 + $0x400] sm:$0xf]  ;;  %v8314_v55 = vor.u32 %v12221_v42, %v8313_v41  ;;  %3197 = vmatpush.bf16.msra.mxu0 %v8058_v51 }
  0x4f   :  { %v12285_v45 = vld [vmem:[#allocation2 + $0x41c] sm:$0xf0] }
  0x50   :  { %v8825_v46 = vld [vmem:[#allocation2 + $0x600] sm:$0xf]  ;;  %v8570_v56 = vor.u32 %v12285_v45, %v8569_v43  ;;  %3210 = vmatpush.bf16.msra.mxu1 %v8314_v55 }
  0x51   :  { %v12349_v47 = vld [vmem:[#allocation2 + $0x61c] sm:$0xf0]  ;;  %3198 = vmatmul.bf16.vlgmr.msra.gmra.mxu0 %v13375_v19 }
  0x52   :  { %v9305_v48 = vld [vmem:[#allocation2 + $0x9c0] sm:$0xf]  ;;  %v8826_v59 = vor.u32 %v12349_v47, %v8825_v46  ;;  %3223 = vmatpush.bf16.msra.mxu2 %v8570_v56 }
  0x53   :  { %v12469_v49 = vld [vmem:[#allocation2 + $0x9dc] sm:$0xf0]  ;;  %3211 = vmatmul.bf16.vlgmr.msra.gmra.mxu1 %v13383_v22 }
  0x54   :  { %v9561_v50 = vld [vmem:[#allocation2 + $0xbc0] sm:$0xf]  ;;  %v9306_v60 = vor.u32 %v12469_v49, %v9305_v48  ;;  %3236 = vmatpush.bf16.msra.mxu3 %v8826_v59 }
  0x55   :  { %v12533_v52 = vld [vmem:[#allocation2 + $0xbdc] sm:$0xf0]  ;;  %3224 = vmatmul.bf16.vlgmr.msra.gmra.mxu2 %v13371_v16 }
  0x56   :  { %v9817_v53 = vld [vmem:[#allocation2 + $0xdc0] sm:$0xf]  ;;  %v9562_v61 = vor.u32 %v12533_v52, %v9561_v50  ;;  %3242 = vmatpush.bf16.msrb.mxu0 %v9306_v60 }
  0x57   :  { %v12597_v54 = vld [vmem:[#allocation2 + $0xddc] sm:$0xf0]  ;;  %3237 = vmatmul.bf16.vlgmr.msra.gmra.mxu3 %v13379_v20 }
  0x58   :  { %v10073_v57 = vld [vmem:[#allocation2 + $0xfc0] sm:$0xf]  ;;  %v9818_v62 = vor.u32 %v12597_v54, %v9817_v53  ;;  %3255 = vmatpush.bf16.msrb.mxu1 %v9562_v61 }
  0x59   :  { %v12661_v58 = vld [vmem:[#allocation2 + $0xfdc] sm:$0xf0] }
  0x5a   :  { %v9273_v63 = vld [vmem:[#allocation2 + $0x980] sm:$0xf]  ;;  %v10074_v12 = vor.u32 %v12661_v58, %v10073_v57  ;;  %3268 = vmatpush.bf16.msrb.mxu2 %v9818_v62 }
  0x5b   :  { %v12461_v10 = vld [vmem:[#allocation2 + $0x99c] sm:$0xf0] }
  0x5c   :  { %v9529_v11 = vld [vmem:[#allocation2 + $0xb80] sm:$0xf]  ;;  %v9274_v21 = vor.u32 %v12461_v10, %v9273_v63  ;;  %3281 = vmatpush.bf16.msrb.mxu3 %v10074_v12 }
  0x5d   :  { %v12525_v13 = vld [vmem:[#allocation2 + $0xb9c] sm:$0xf0] }
  0x5e   :  { %v9785_v14 = vld [vmem:[#allocation2 + $0xd80] sm:$0xf]  ;;  %v9530_v23 = vor.u32 %v12525_v13, %v9529_v11  ;;  %3243 = vmatpush.bf16.msrb.mxu0 %v9274_v21 }
  0x5f   :  { %v12589_v15 = vld [vmem:[#allocation2 + $0xd9c] sm:$0xf0] }
  0x60   :  { %v10041_v17 = vld [vmem:[#allocation2 + $0xf80] sm:$0xf]  ;;  %v9786_v24 = vor.u32 %v12589_v15, %v9785_v14  ;;  %3256 = vmatpush.bf16.msrb.mxu1 %v9530_v23 }
  0x61   :  { %v12653_v18 = vld [vmem:[#allocation2 + $0xf9c] sm:$0xf0] }
  0x62   :  { %v9241_v25 = vld [vmem:[#allocation2 + $0x940] sm:$0xf]  ;;  %v10042_v28 = vor.u32 %v12653_v18, %v10041_v17  ;;  %3269 = vmatpush.bf16.msrb.mxu2 %v9786_v24 }
  0x63   :  { %v12453_v26 = vld [vmem:[#allocation2 + $0x95c] sm:$0xf0] }
  0x64   :  { %v9497_v27 = vld [vmem:[#allocation2 + $0xb40] sm:$0xf]  ;;  %v9242_v34 = vor.u32 %v12453_v26, %v9241_v25  ;;  %3282 = vmatpush.bf16.msrb.mxu3 %v10042_v28 }
  0x65   :  { %v12517_v29 = vld [vmem:[#allocation2 + $0xb5c] sm:$0xf0] }
  0x66   :  { %v9753_v30 = vld [vmem:[#allocation2 + $0xd40] sm:$0xf]  ;;  %v9498_v35 = vor.u32 %v12517_v29, %v9497_v27  ;;  %3244 = vmatpush.bf16.msrb.mxu0 %v9242_v34 }
  0x67   :  { %v12581_v31 = vld [vmem:[#allocation2 + $0xd5c] sm:$0xf0] }
  0x68   :  { %v10009_v32 = vld [vmem:[#allocation2 + $0xf40] sm:$0xf]  ;;  %v9754_v36 = vor.u32 %v12581_v31, %v9753_v30  ;;  %3257 = vmatpush.bf16.msrb.mxu1 %v9498_v35 }
  0x69   :  { %v12645_v33 = vld [vmem:[#allocation2 + $0xf5c] sm:$0xf0] }
  0x6a   :  { %v9209_v37 = vld [vmem:[#allocation2 + $0x900] sm:$0xf]  ;;  %v10010_v40 = vor.u32 %v12645_v33, %v10009_v32  ;;  %3270 = vmatpush.bf16.msrb.mxu2 %v9754_v36 }
  0x6b   :  { %v12445_v38 = vld [vmem:[#allocation2 + $0x91c] sm:$0xf0] }
  0x6c   :  { %v9465_v39 = vld [vmem:[#allocation2 + $0xb00] sm:$0xf]  ;;  %v9210_v46 = vor.u32 %v12445_v38, %v9209_v37  ;;  %3283 = vmatpush.bf16.msrb.mxu3 %v10010_v40 }
  0x6d   :  { %v12509_v41 = vld [vmem:[#allocation2 + $0xb1c] sm:$0xf0] }
  0x6e   :  { %v9721_v42 = vld [vmem:[#allocation2 + $0xd00] sm:$0xf]  ;;  %v9466_v47 = vor.u32 %v12509_v41, %v9465_v39  ;;  %3245 = vmatpush.bf16.msrb.mxu0 %v9210_v46  ;;  %v12273_v46 = vld [vmem:[#allocation2 + $0x3c4] sm:$0xf] }
  0x6f   :  { %v12573_v43 = vld [vmem:[#allocation2 + $0xd1c] sm:$0xf0] }
  0x70   :  { %v9977_v44 = vld [vmem:[#allocation2 + $0xf00] sm:$0xf]  ;;  %v9722_v48 = vor.u32 %v12573_v43, %v9721_v42  ;;  %3258 = vmatpush.bf16.msrb.mxu1 %v9466_v47 }
  0x71   :  { %v12637_v45 = vld [vmem:[#allocation2 + $0xf1c] sm:$0xf0] }
  0x72   :  { %v9177_v49 = vld [vmem:[#allocation2 + $0x8c0] sm:$0xf]  ;;  %v9978_v52 = vor.u32 %v12637_v45, %v9977_v44  ;;  %3271 = vmatpush.bf16.msrb.mxu2 %v9722_v48  ;;  %v12209_v44 = vld [vmem:[#allocation2 + $0x1c4] sm:$0xf] }
  0x73   :  { %v12437_v50 = vld [vmem:[#allocation2 + $0x8dc] sm:$0xf0]  ;;  %v8283_v45 = vld [vmem:[#allocation2 + $0x1e0] sm:$0xf0] }
  0x74   :  { %v9433_v51 = vld [vmem:[#allocation2 + $0xac0] sm:$0xf]  ;;  %v9178_v58 = vor.u32 %v12437_v50, %v9177_v49  ;;  %3284 = vmatpush.bf16.msrb.mxu3 %v9978_v52  ;;  %v8539_v48 = vld [vmem:[#allocation2 + $0x3e0] sm:$0xf0] }
  0x75   :  { %v12501_v53 = vld [vmem:[#allocation2 + $0xadc] sm:$0xf0]  ;;  %v12337_v49 = vld [vmem:[#allocation2 + $0x5c4] sm:$0xf] }
  0x76   :  { %v9689_v54 = vld [vmem:[#allocation2 + $0xcc0] sm:$0xf]  ;;  %v9434_v59 = vor.u32 %v12501_v53, %v9433_v51  ;;  %3246 = vmatpush.bf16.msrb.mxu0 %v9178_v58  ;;  %v8795_v50 = vld [vmem:[#allocation2 + $0x5e0] sm:$0xf0] }
  0x77   :  { %v12565_v55 = vld [vmem:[#allocation2 + $0xcdc] sm:$0xf0]  ;;  %v12401_v53 = vld [vmem:[#allocation2 + $0x7c4] sm:$0xf]  ;;  %v8798_v58 = vor.u32 %v12337_v49, %v8795_v50 }
  0x78   :  { %v9945_v56 = vld [vmem:[#allocation2 + $0xec0] sm:$0xf]  ;;  %v9690_v60 = vor.u32 %v12565_v55, %v9689_v54  ;;  %3259 = vmatpush.bf16.msrb.mxu1 %v9434_v59  ;;  %v9051_v54 = vld [vmem:[#allocation2 + $0x7e0] sm:$0xf0] }
  0x79   :  { %v12629_v57 = vld [vmem:[#allocation2 + $0xedc] sm:$0xf0]  ;;  %v12201_v59 = vld [vmem:[#allocation2 + $0x184] sm:$0xf] }
  0x7a   :  { %v9145_v61 = vld [vmem:[#allocation2 + $0x880] sm:$0xf]  ;;  %v9946_v10 = vor.u32 %v12629_v57, %v9945_v56  ;;  %3272 = vmatpush.bf16.msrb.mxu2 %v9690_v60  ;;  %v8286_v56 = vor.u32 %v12209_v44, %v8283_v45  ;;  %v8542_v57 = vor.u32 %v12273_v46, %v8539_v48  ;;  %v8251_v60 = vld [vmem:[#allocation2 + $0x1a0] sm:$0xf0] }
  0x7b   :  { %v12429_v62 = vld [vmem:[#allocation2 + $0x89c] sm:$0xf0]  ;;  %v12377_v44 = vld [vmem:[#allocation2 + $0x704] sm:$0xf] }
  0x7c   :  { %v9401_v63 = vld [vmem:[#allocation2 + $0xa80] sm:$0xf]  ;;  %v9146_v17 = vor.u32 %v12429_v62, %v9145_v61  ;;  %3285 = vmatpush.bf16.msrb.mxu3 %v9946_v10  ;;  %v12265_v61 = vld [vmem:[#allocation2 + $0x384] sm:$0xf]  ;;  %v9054_v62 = vor.u32 %v12401_v53, %v9051_v54 }
  0x7d   :  { %v12493_v11 = vld [vmem:[#allocation2 + $0xa9c] sm:$0xf0]  ;;  %v8507_v10 = vld [vmem:[#allocation2 + $0x3a0] sm:$0xf0] }
  0x7e   :  { %v9657_v12 = vld [vmem:[#allocation2 + $0xc80] sm:$0xf]  ;;  %v9402_v18 = vor.u32 %v12493_v11, %v9401_v63  ;;  %3247 = vmatpush.bf16.msrb.mxu0 %v9146_v17  ;;  %v13391_v63 = vpack.c.bf16 %v13361_v6, %v13361_v6  ;;  %v12329_v11 = vld [vmem:[#allocation2 + $0x584] sm:$0xf]  ;;  %v13399_v17 = vpack.c.bf16 %v13363_v7, %v13363_v7 }
  0x7f   :  { %v12557_v13 = vld [vmem:[#allocation2 + $0xc9c] sm:$0xf0]  ;;  %v8955_v45 = vld [vmem:[#allocation2 + $0x720] sm:$0xf0] }
  0x80   :  { %v9913_v14 = vld [vmem:[#allocation2 + $0xe80] sm:$0xf]  ;;  %v9658_v21 = vor.u32 %v12557_v13, %v9657_v12  ;;  %3260 = vmatpush.bf16.msrb.mxu1 %v9402_v18  ;;  %v8763_v12 = vld [vmem:[#allocation2 + $0x5a0] sm:$0xf0]  ;;  %v8254_v18 = vor.u32 %v12201_v59, %v8251_v60 }
  0x81   :  { %v12621_v15 = vld [vmem:[#allocation2 + $0xe9c] sm:$0xf0]  ;;  %v12393_v13 = vld [vmem:[#allocation2 + $0x784] sm:$0xf] }
  0x82   :  { %v9113_v23 = vld [vmem:[#allocation2 + $0x840] sm:$0xf]  ;;  %v9914_v26 = vor.u32 %v12621_v15, %v9913_v14  ;;  %3273 = vmatpush.bf16.msrb.mxu2 %v9658_v21  ;;  %v9019_v14 = vld [vmem:[#allocation2 + $0x7a0] sm:$0xf0]  ;;  %v13395_v15 = vpack.c.bf16 %v13357_v4, %v13357_v4  ;;  %v13403_v21 = vpack.c.bf16 %v13359_v5, %v13359_v5 }
  0x83   :  { %v12421_v24 = vld [vmem:[#allocation2 + $0x85c] sm:$0xf0]  ;;  %v12177_v49 = vld [vmem:[#allocation2 + $0xc4] sm:$0xf] }
  0x84   :  { %v9369_v25 = vld [vmem:[#allocation2 + $0xa40] sm:$0xf]  ;;  %v9114_v32 = vor.u32 %v12421_v24, %v9113_v23  ;;  %3286 = vmatpush.bf16.msrb.mxu3 %v9914_v26  ;;  %v8510_v23 = vor.u32 %v12265_v61, %v8507_v10  ;;  %v8766_v24 = vor.u32 %v12329_v11, %v8763_v12  ;;  %v8219_v26 = vld [vmem:[#allocation2 + $0x160] sm:$0xf0] }
  0x85   :  { %v12485_v27 = vld [vmem:[#allocation2 + $0xa5c] sm:$0xf0]  ;;  %v8155_v50 = vld [vmem:[#allocation2 + $0xe0] sm:$0xf0] }
  0x86   :  { %v9625_v28 = vld [vmem:[#allocation2 + $0xc40] sm:$0xf]  ;;  %v9370_v35 = vor.u32 %v12485_v27, %v9369_v25  ;;  %3248 = vmatpush.bf16.msrb.mxu0 %v9114_v32  ;;  %v12193_v25 = vld [vmem:[#allocation2 + $0x144] sm:$0xf] }
  0x87   :  { %v12549_v29 = vld [vmem:[#allocation2 + $0xc5c] sm:$0xf0]  ;;  %v12257_v27 = vld [vmem:[#allocation2 + $0x344] sm:$0xf] }
  0x88   :  { %v9881_v30 = vld [vmem:[#allocation2 + $0xe40] sm:$0xf]  ;;  %v9626_v36 = vor.u32 %v12549_v29, %v9625_v28  ;;  %3261 = vmatpush.bf16.msrb.mxu1 %v9370_v35  ;;  %v9022_v28 = vor.u32 %v12393_v13, %v9019_v14  ;;  %v8475_v29 = vld [vmem:[#allocation2 + $0x360] sm:$0xf0] }
  0x89   :  { %v12613_v31 = vld [vmem:[#allocation2 + $0xe5c] sm:$0xf0]  ;;  %v12385_v32 = vld [vmem:[#allocation2 + $0x744] sm:$0xf]  ;;  %v8478_v35 = vor.u32 %v12257_v27, %v8475_v29 }
  0x8a   :  { %v9081_v33 = vld [vmem:[#allocation2 + $0x800] sm:$0xf]  ;;  %v9882_v40 = vor.u32 %v12613_v31, %v9881_v30  ;;  %3274 = vmatpush.bf16.msrb.mxu2 %v9626_v36  ;;  %v12321_v30 = vld [vmem:[#allocation2 + $0x544] sm:$0xf] }
  0x8b   :  { %v12413_v34 = vld [vmem:[#allocation2 + $0x81c] sm:$0xf0]  ;;  %v8731_v31 = vld [vmem:[#allocation2 + $0x560] sm:$0xf0] }
  0x8c   :  { %v9337_v37 = vld [vmem:[#allocation2 + $0xa00] sm:$0xf]  ;;  %v9082_v47 = vor.u32 %v12413_v34, %v9081_v33  ;;  %3287 = vmatpush.bf16.msrb.mxu3 %v9882_v40  ;;  %v8987_v33 = vld [vmem:[#allocation2 + $0x760] sm:$0xf0]  ;;  %v8222_v34 = vor.u32 %v12193_v25, %v8219_v26  ;;  %v8734_v36 = vor.u32 %v12321_v30, %v8731_v31 }
  0x8d   :  { %v12477_v38 = vld [vmem:[#allocation2 + $0xa1c] sm:$0xf0]  ;;  %v8990_v40 = vor.u32 %v12385_v32, %v8987_v33  ;;  %v8411_v53 = vld [vmem:[#allocation2 + $0x2e0] sm:$0xf0] }
  0x8e   :  { %v9593_v39 = vld [vmem:[#allocation2 + $0xc00] sm:$0xf]  ;;  %v9338_v51 = vor.u32 %v12477_v38, %v9337_v37  ;;  %3249 = vmatpush.bf16.msrb.mxu0 %v9082_v47  ;;  %v12185_v37 = vld [vmem:[#allocation2 + $0x104] sm:$0xf] }
  0x8f   :  { %v12541_v41 = vld [vmem:[#allocation2 + $0xc1c] sm:$0xf0]  ;;  %v8187_v38 = vld [vmem:[#allocation2 + $0x120] sm:$0xf0] }
  0x90   :  { %v9849_v42 = vld [vmem:[#allocation2 + $0xe00] sm:$0xf]  ;;  %v9594_v52 = vor.u32 %v12541_v41, %v9593_v39  ;;  %3262 = vmatpush.bf16.msrb.mxu1 %v9338_v51  ;;  %v12249_v39 = vld [vmem:[#allocation2 + $0x304] sm:$0xf]  ;;  %v8190_v46 = vor.u32 %v12185_v37, %v8187_v38 }
  0x91   :  { %v12605_v43 = vld [vmem:[#allocation2 + $0xe1c] sm:$0xf0]  ;;  %3250 = vmatmul.bf16.vlgmr.msrb.gmra.mxu0 %v13395_v15  ;;  %v8443_v41 = vld [vmem:[#allocation2 + $0x320] sm:$0xf0] }
  0x92   :  { %v9850_v55 = vor.u32 %v12605_v43, %v9849_v42  ;;  %3275 = vmatpush.bf16.msrb.mxu2 %v9594_v52  ;;  %3294 = vmatpush.bf16.msra.mxu0 %v8286_v56  ;;  %v12313_v42 = vld [vmem:[#allocation2 + $0x504] sm:$0xf]  ;;  %v8446_v47 = vor.u32 %v12249_v39, %v8443_v41  ;;  %v8958_v52 = vor.u32 %v12377_v44, %v8955_v45 }
  0x93   :  { %3263 = vmatmul.bf16.vlgmr.msrb.gmra.mxu1 %v13403_v21  ;;  %v8699_v43 = vld [vmem:[#allocation2 + $0x520] sm:$0xf0] }
  0x94   :  { %3288 = vmatpush.bf16.msrb.mxu3 %v9850_v55  ;;  %3307 = vmatpush.bf16.msra.mxu1 %v8542_v57  ;;  %v8702_v48 = vor.u32 %v12313_v42, %v8699_v43  ;;  %v12241_v51 = vld [vmem:[#allocation2 + $0x2c4] sm:$0xf] }
  0x95   :  { %3276 = vmatmul.bf16.vlgmr.msrb.gmra.mxu2 %v13391_v63  ;;  %v12305_v54 = vld [vmem:[#allocation2 + $0x4c4] sm:$0xf]  ;;  %v8414_v59 = vor.u32 %v12241_v51, %v8411_v53 }
  0x96   :  { %3320 = vmatpush.bf16.msra.mxu2 %v8798_v58  ;;  %3295 = vmatpush.bf16.msra.mxu0 %v8254_v18  ;;  %v8667_v55 = vld [vmem:[#allocation2 + $0x4e0] sm:$0xf0]  ;;  %v8158_v58 = vor.u32 %v12177_v49, %v8155_v50 }
  0x97   :  { %3289 = vmatmul.bf16.vlgmr.msrb.gmra.mxu3 %v13399_v17  ;;  %v12369_v56 = vld [vmem:[#allocation2 + $0x6c4] sm:$0xf]  ;;  %v8670_v60 = vor.u32 %v12305_v54, %v8667_v55 }
  0x98   :  { %3333 = vmatpush.bf16.msra.mxu3 %v9054_v62  ;;  %3308 = vmatpush.bf16.msra.mxu1 %v8510_v23  ;;  %v8923_v57 = vld [vmem:[#allocation2 + $0x6e0] sm:$0xf0] }
  0x99   :  { %v12169_v61 = vld [vmem:[#allocation2 + $0x84] sm:$0xf]  ;;  %v8926_v11 = vor.u32 %v12369_v56, %v8923_v57 }
  0x9a   :  { %3321 = vmatpush.bf16.msra.mxu2 %v8766_v24  ;;  %3296 = vmatpush.bf16.msra.mxu0 %v8222_v34  ;;  %v8123_v62 = vld [vmem:[#allocation2 + $0xa0] sm:$0xf0] }
  0x9b   :  { %v12233_v10 = vld [vmem:[#allocation2 + $0x284] sm:$0xf]  ;;  %v8126_v24 = vor.u32 %v12169_v61, %v8123_v62 }
  0x9c   :  { %3334 = vmatpush.bf16.msra.mxu3 %v9022_v28  ;;  %3309 = vmatpush.bf16.msra.mxu1 %v8478_v35  ;;  %v8379_v12 = vld [vmem:[#allocation2 + $0x2a0] sm:$0xf0] }
  0x9d   :  { %v12297_v13 = vld [vmem:[#allocation2 + $0x484] sm:$0xf]  ;;  %v8382_v25 = vor.u32 %v12233_v10, %v8379_v12 }
  0x9e   :  { %3322 = vmatpush.bf16.msra.mxu2 %v8734_v36  ;;  %3297 = vmatpush.bf16.msra.mxu0 %v8190_v46  ;;  %v8635_v14 = vld [vmem:[#allocation2 + $0x4a0] sm:$0xf0] }
  0x9f   :  { %v12361_v18 = vld [vmem:[#allocation2 + $0x684] sm:$0xf]  ;;  %v8638_v26 = vor.u32 %v12297_v13, %v8635_v14 }
  0xa0   :  { %3335 = vmatpush.bf16.msra.mxu3 %v8990_v40  ;;  %3310 = vmatpush.bf16.msra.mxu1 %v8446_v47  ;;  %v8891_v23 = vld [vmem:[#allocation2 + $0x6a0] sm:$0xf0] }
  0xa1   :  { %v12161_v27 = vld [vmem:[#allocation2 + $0x44] sm:$0xf]  ;;  %v8894_v30 = vor.u32 %v12361_v18, %v8891_v23 }
  0xa2   :  { %3323 = vmatpush.bf16.msra.mxu2 %v8702_v48  ;;  %3298 = vmatpush.bf16.msra.mxu0 %v8158_v58  ;;  %v8091_v28 = vld [vmem:[#allocation2 + $0x60] sm:$0xf0] }
  0xa3   :  { %v12225_v29 = vld [vmem:[#allocation2 + $0x244] sm:$0xf]  ;;  %v8094_v36 = vor.u32 %v12161_v27, %v8091_v28 }
  0xa4   :  { %3336 = vmatpush.bf16.msra.mxu3 %v8958_v52  ;;  %3311 = vmatpush.bf16.msra.mxu1 %v8414_v59  ;;  %v8347_v31 = vld [vmem:[#allocation2 + $0x260] sm:$0xf0] }
  0xa5   :  { %v12289_v32 = vld [vmem:[#allocation2 + $0x444] sm:$0xf]  ;;  %v8350_v39 = vor.u32 %v12225_v29, %v8347_v31 }
  0xa6   :  { %3324 = vmatpush.bf16.msra.mxu2 %v8670_v60  ;;  %v8603_v33 = vld [vmem:[#allocation2 + $0x460] sm:$0xf0]  ;;  %3299 = vmatpush.bf16.msra.mxu0 %v8126_v24 }
  0xa7   :  { %v12353_v34 = vld [vmem:[#allocation2 + $0x644] sm:$0xf]  ;;  %v8606_v40 = vor.u32 %v12289_v32, %v8603_v33 }
  0xa8   :  { %3337 = vmatpush.bf16.msra.mxu3 %v8926_v11  ;;  %v8859_v35 = vld [vmem:[#allocation2 + $0x660] sm:$0xf0]  ;;  %3312 = vmatpush.bf16.msra.mxu1 %v8382_v25 }
  0xa9   :  { %v12153_v37 = vld [vmem:[#allocation2 + $0x4] sm:$0xf]  ;;  %v8862_v44 = vor.u32 %v12353_v34, %v8859_v35 }
  0xaa   :  { %v8059_v38 = vld [vmem:[#allocation2 + $0x20] sm:$0xf0]  ;;  %3325 = vmatpush.bf16.msra.mxu2 %v8638_v26  ;;  %3300 = vmatpush.bf16.msra.mxu0 %v8094_v36 }
  0xab   :  { %v12217_v41 = vld [vmem:[#allocation2 + $0x204] sm:$0xf]  ;;  %v8062_v51 = vor.u32 %v12153_v37, %v8059_v38 }
  0xac   :  { %v8315_v42 = vld [vmem:[#allocation2 + $0x220] sm:$0xf0]  ;;  %3338 = vmatpush.bf16.msra.mxu3 %v8894_v30  ;;  %3313 = vmatpush.bf16.msra.mxu1 %v8350_v39 }
  0xad   :  { %v12281_v43 = vld [vmem:[#allocation2 + $0x404] sm:$0xf]  ;;  %v8318_v55 = vor.u32 %v12217_v41, %v8315_v42 }
  0xae   :  { %v8571_v45 = vld [vmem:[#allocation2 + $0x420] sm:$0xf0]  ;;  %3326 = vmatpush.bf16.msra.mxu2 %v8606_v40  ;;  %3301 = vmatpush.bf16.msra.mxu0 %v8062_v51 }
  0xaf   :  { %v12345_v46 = vld [vmem:[#allocation2 + $0x604] sm:$0xf]  ;;  %v8574_v56 = vor.u32 %v12281_v43, %v8571_v45 }
  0xb0   :  { %v8827_v47 = vld [vmem:[#allocation2 + $0x620] sm:$0xf0]  ;;  %3339 = vmatpush.bf16.msra.mxu3 %v8862_v44  ;;  %3314 = vmatpush.bf16.msra.mxu1 %v8318_v55 }
  0xb1   :  { %v12465_v48 = vld [vmem:[#allocation2 + $0x9c4] sm:$0xf]  ;;  %v8830_v59 = vor.u32 %v12345_v46, %v8827_v47  ;;  %3302 = vmatmul.bf16.vlgmr.msra.gmra.mxu0 %v13375_v19 }
  0xb2   :  { %v9307_v49 = vld [vmem:[#allocation2 + $0x9e0] sm:$0xf0]  ;;  %3327 = vmatpush.bf16.msra.mxu2 %v8574_v56 }
  0xb3   :  { %v12529_v50 = vld [vmem:[#allocation2 + $0xbc4] sm:$0xf]  ;;  %v9310_v60 = vor.u32 %v12465_v48, %v9307_v49  ;;  %3315 = vmatmul.bf16.vlgmr.msra.gmra.mxu1 %v13383_v22 }
  0xb4   :  { %v9563_v52 = vld [vmem:[#allocation2 + $0xbe0] sm:$0xf0]  ;;  %3340 = vmatpush.bf16.msra.mxu3 %v8830_v59 }
  0xb5   :  { %v12593_v53 = vld [vmem:[#allocation2 + $0xdc4] sm:$0xf]  ;;  %v9566_v61 = vor.u32 %v12529_v50, %v9563_v52  ;;  %3346 = vmatpush.bf16.msrb.mxu0 %v9310_v60  ;;  %3328 = vmatmul.bf16.vlgmr.msra.gmra.mxu2 %v13371_v16 }
  0xb6   :  { %v9819_v54 = vld [vmem:[#allocation2 + $0xde0] sm:$0xf0] }
  0xb7   :  { %v12657_v57 = vld [vmem:[#allocation2 + $0xfc4] sm:$0xf]  ;;  %v9822_v62 = vor.u32 %v12593_v53, %v9819_v54  ;;  %3359 = vmatpush.bf16.msrb.mxu1 %v9566_v61  ;;  %3341 = vmatmul.bf16.vlgmr.msra.gmra.mxu3 %v13379_v20 }
  0xb8   :  { %v10075_v58 = vld [vmem:[#allocation2 + $0xfe0] sm:$0xf0] }
  0xb9   :  { %v12457_v10 = vld [vmem:[#allocation2 + $0x984] sm:$0xf]  ;;  %v10078_v13 = vor.u32 %v12657_v57, %v10075_v58  ;;  %3372 = vmatpush.bf16.msrb.mxu2 %v9822_v62 }
  0xba   :  { %v9275_v11 = vld [vmem:[#allocation2 + $0x9a0] sm:$0xf0] }
  0xbb   :  { %v12521_v12 = vld [vmem:[#allocation2 + $0xb84] sm:$0xf]  ;;  %v9278_v26 = vor.u32 %v12457_v10, %v9275_v11  ;;  %3385 = vmatpush.bf16.msrb.mxu3 %v10078_v13 }
  0xbc   :  { %v9531_v14 = vld [vmem:[#allocation2 + $0xba0] sm:$0xf0] }
  0xbd   :  { %v12585_v18 = vld [vmem:[#allocation2 + $0xd84] sm:$0xf]  ;;  %v9534_v27 = vor.u32 %v12521_v12, %v9531_v14  ;;  %3347 = vmatpush.bf16.msrb.mxu0 %v9278_v26 }
  0xbe   :  { %v9787_v23 = vld [vmem:[#allocation2 + $0xda0] sm:$0xf0] }
  0xbf   :  { %v12649_v24 = vld [vmem:[#allocation2 + $0xf84] sm:$0xf]  ;;  %v9790_v28 = vor.u32 %v12585_v18, %v9787_v23  ;;  %3360 = vmatpush.bf16.msrb.mxu1 %v9534_v27 }
  0xc0   :  { %v10043_v25 = vld [vmem:[#allocation2 + $0xfa0] sm:$0xf0] }
  0xc1   :  { %v12449_v29 = vld [vmem:[#allocation2 + $0x944] sm:$0xf]  ;;  %v10046_v32 = vor.u32 %v12649_v24, %v10043_v25  ;;  %3373 = vmatpush.bf16.msrb.mxu2 %v9790_v28 }
  0xc2   :  { %v9243_v30 = vld [vmem:[#allocation2 + $0x960] sm:$0xf0] }
  0xc3   :  { %v12513_v31 = vld [vmem:[#allocation2 + $0xb44] sm:$0xf]  ;;  %v9246_v38 = vor.u32 %v12449_v29, %v9243_v30  ;;  %3386 = vmatpush.bf16.msrb.mxu3 %v10046_v32 }
  0xc4   :  { %v9499_v33 = vld [vmem:[#allocation2 + $0xb60] sm:$0xf0] }
  0xc5   :  { %v12577_v34 = vld [vmem:[#allocation2 + $0xd44] sm:$0xf]  ;;  %v9502_v39 = vor.u32 %v12513_v31, %v9499_v33  ;;  %3348 = vmatpush.bf16.msrb.mxu0 %v9246_v38 }
  0xc6   :  { %v9755_v35 = vld [vmem:[#allocation2 + $0xd60] sm:$0xf0] }
  0xc7   :  { %v12641_v36 = vld [vmem:[#allocation2 + $0xf44] sm:$0xf]  ;;  %v9758_v40 = vor.u32 %v12577_v34, %v9755_v35  ;;  %3361 = vmatpush.bf16.msrb.mxu1 %v9502_v39 }
  0xc8   :  { %v10011_v37 = vld [vmem:[#allocation2 + $0xf60] sm:$0xf0] }
  0xc9   :  { %v12441_v41 = vld [vmem:[#allocation2 + $0x904] sm:$0xf]  ;;  %v10014_v44 = vor.u32 %v12641_v36, %v10011_v37  ;;  %3374 = vmatpush.bf16.msrb.mxu2 %v9758_v40 }
  0xca   :  { %v9211_v42 = vld [vmem:[#allocation2 + $0x920] sm:$0xf0] }
  0xcb   :  { %v12505_v43 = vld [vmem:[#allocation2 + $0xb04] sm:$0xf]  ;;  %v9214_v50 = vor.u32 %v12441_v41, %v9211_v42  ;;  %3387 = vmatpush.bf16.msrb.mxu3 %v10014_v44 }
  0xcc   :  { %v9467_v45 = vld [vmem:[#allocation2 + $0xb20] sm:$0xf0] }
  0xcd   :  { %v12569_v46 = vld [vmem:[#allocation2 + $0xd04] sm:$0xf]  ;;  %v9470_v51 = vor.u32 %v12505_v43, %v9467_v45  ;;  %3349 = vmatpush.bf16.msrb.mxu0 %v9214_v50 }
  0xce   :  { %v9723_v47 = vld [vmem:[#allocation2 + $0xd20] sm:$0xf0] }
  0xcf   :  { %v12633_v48 = vld [vmem:[#allocation2 + $0xf04] sm:$0xf]  ;;  %v9726_v52 = vor.u32 %v12569_v46, %v9723_v47  ;;  %3362 = vmatpush.bf16.msrb.mxu1 %v9470_v51 }
  0xd0   :  { %v9979_v49 = vld [vmem:[#allocation2 + $0xf20] sm:$0xf0] }
  0xd1   :  { %v12433_v53 = vld [vmem:[#allocation2 + $0x8c4] sm:$0xf]  ;;  %v9982_v56 = vor.u32 %v12633_v48, %v9979_v49  ;;  %3375 = vmatpush.bf16.msrb.mxu2 %v9726_v52  ;;  %v8289_v52 = vld [vmem:[#allocation2 + $0x1c8] sm:$0xf] }
  0xd2   :  { %v9179_v54 = vld [vmem:[#allocation2 + $0x8e0] sm:$0xf0] }
  0xd3   :  { %v12497_v55 = vld [vmem:[#allocation2 + $0xac4] sm:$0xf]  ;;  %v9182_v62 = vor.u32 %v12433_v53, %v9179_v54  ;;  %3388 = vmatpush.bf16.msrb.mxu3 %v9982_v56  ;;  %v12214_v53 = vld [vmem:[#allocation2 + $0x1e4] sm:$0xf0] }
  0xd4   :  { %v9435_v57 = vld [vmem:[#allocation2 + $0xae0] sm:$0xf0]  ;;  %v8545_v54 = vld [vmem:[#allocation2 + $0x3c8] sm:$0xf] }
  0xd5   :  { %v12561_v58 = vld [vmem:[#allocation2 + $0xcc4] sm:$0xf]  ;;  %v9438_v10 = vor.u32 %v12497_v55, %v9435_v57  ;;  %3350 = vmatpush.bf16.msrb.mxu0 %v9182_v62  ;;  %v12278_v56 = vld [vmem:[#allocation2 + $0x3e4] sm:$0xf0] }
  0xd6   :  { %v9691_v59 = vld [vmem:[#allocation2 + $0xce0] sm:$0xf0]  ;;  %v8801_v57 = vld [vmem:[#allocation2 + $0x5c8] sm:$0xf] }
  0xd7   :  { %v12625_v60 = vld [vmem:[#allocation2 + $0xec4] sm:$0xf]  ;;  %v9694_v11 = vor.u32 %v12561_v58, %v9691_v59  ;;  %3363 = vmatpush.bf16.msrb.mxu1 %v9438_v10  ;;  %v12342_v58 = vld [vmem:[#allocation2 + $0x5e4] sm:$0xf0] }
  0xd8   :  { %v9947_v61 = vld [vmem:[#allocation2 + $0xee0] sm:$0xf0]  ;;  %v12406_v62 = vld [vmem:[#allocation2 + $0x7e4] sm:$0xf0] }
  0xd9   :  { %v12425_v12 = vld [vmem:[#allocation2 + $0x884] sm:$0xf]  ;;  %v9950_v18 = vor.u32 %v12625_v60, %v9947_v61  ;;  %3376 = vmatpush.bf16.msrb.mxu2 %v9694_v11  ;;  %v9057_v61 = vld [vmem:[#allocation2 + $0x7c8] sm:$0xf]  ;;  %v8290_v11 = vor.u32 %v12214_v53, %v8289_v52 }
  0xda   :  { %v9147_v13 = vld [vmem:[#allocation2 + $0x8a0] sm:$0xf0]  ;;  %v8961_v52 = vld [vmem:[#allocation2 + $0x708] sm:$0xf] }
  0xdb   :  { %v12489_v14 = vld [vmem:[#allocation2 + $0xa84] sm:$0xf]  ;;  %v9150_v28 = vor.u32 %v12425_v12, %v9147_v13  ;;  %3389 = vmatpush.bf16.msrb.mxu3 %v9950_v18  ;;  %v8546_v12 = vor.u32 %v12278_v56, %v8545_v54  ;;  %v8802_v13 = vor.u32 %v12342_v58, %v8801_v57  ;;  %v12206_v18 = vld [vmem:[#allocation2 + $0x1a4] sm:$0xf0] }
  0xdc   :  { %v9403_v23 = vld [vmem:[#allocation2 + $0xaa0] sm:$0xf0]  ;;  %v12382_v53 = vld [vmem:[#allocation2 + $0x724] sm:$0xf0] }
  0xdd   :  { %v12553_v24 = vld [vmem:[#allocation2 + $0xc84] sm:$0xf]  ;;  %v9406_v29 = vor.u32 %v12489_v14, %v9403_v23  ;;  %3351 = vmatpush.bf16.msrb.mxu0 %v9150_v28  ;;  %v8257_v14 = vld [vmem:[#allocation2 + $0x188] sm:$0xf] }
  0xde   :  { %v9659_v25 = vld [vmem:[#allocation2 + $0xca0] sm:$0xf0]  ;;  %v8513_v23 = vld [vmem:[#allocation2 + $0x388] sm:$0xf] }
  0xdf   :  { %v12617_v26 = vld [vmem:[#allocation2 + $0xe84] sm:$0xf]  ;;  %v9662_v30 = vor.u32 %v12553_v24, %v9659_v25  ;;  %3364 = vmatpush.bf16.msrb.mxu1 %v9406_v29  ;;  %v9058_v24 = vor.u32 %v12406_v62, %v9057_v61  ;;  %v12270_v25 = vld [vmem:[#allocation2 + $0x3a4] sm:$0xf0] }
  0xe0   :  { %v9915_v27 = vld [vmem:[#allocation2 + $0xea0] sm:$0xf0]  ;;  %v9025_v28 = vld [vmem:[#allocation2 + $0x788] sm:$0xf] }
  0xe1   :  { %v12417_v31 = vld [vmem:[#allocation2 + $0x844] sm:$0xf]  ;;  %v9918_v34 = vor.u32 %v12617_v26, %v9915_v27  ;;  %3377 = vmatpush.bf16.msrb.mxu2 %v9662_v30  ;;  %v8769_v26 = vld [vmem:[#allocation2 + $0x588] sm:$0xf]  ;;  %v8258_v30 = vor.u32 %v12206_v18, %v8257_v14 }
  0xe2   :  { %v9115_v32 = vld [vmem:[#allocation2 + $0x860] sm:$0xf0]  ;;  %v12334_v27 = vld [vmem:[#allocation2 + $0x5a4] sm:$0xf0] }
  0xe3   :  { %v12481_v33 = vld [vmem:[#allocation2 + $0xa44] sm:$0xf]  ;;  %v9118_v40 = vor.u32 %v12417_v31, %v9115_v32  ;;  %3390 = vmatpush.bf16.msrb.mxu3 %v9918_v34  ;;  %v12398_v29 = vld [vmem:[#allocation2 + $0x7a4] sm:$0xf0]  ;;  %v8514_v31 = vor.u32 %v12270_v25, %v8513_v23  ;;  %v8770_v32 = vor.u32 %v12334_v27, %v8769_v26 }
  0xe4   :  { %v9371_v35 = vld [vmem:[#allocation2 + $0xa60] sm:$0xf0]  ;;  %v12198_v34 = vld [vmem:[#allocation2 + $0x164] sm:$0xf0] }
  0xe5   :  { %v12545_v36 = vld [vmem:[#allocation2 + $0xc44] sm:$0xf]  ;;  %v9374_v43 = vor.u32 %v12481_v33, %v9371_v35  ;;  %3352 = vmatpush.bf16.msrb.mxu0 %v9118_v40  ;;  %v8225_v33 = vld [vmem:[#allocation2 + $0x148] sm:$0xf] }
  0xe6   :  { %v9627_v37 = vld [vmem:[#allocation2 + $0xc60] sm:$0xf0]  ;;  %v8481_v35 = vld [vmem:[#allocation2 + $0x348] sm:$0xf] }
  0xe7   :  { %v12609_v38 = vld [vmem:[#allocation2 + $0xe44] sm:$0xf]  ;;  %v9630_v44 = vor.u32 %v12545_v36, %v9627_v37  ;;  %3365 = vmatpush.bf16.msrb.mxu1 %v9374_v43  ;;  %v9026_v36 = vor.u32 %v12398_v29, %v9025_v28  ;;  %v12262_v37 = vld [vmem:[#allocation2 + $0x364] sm:$0xf0] }
  0xe8   :  { %v9883_v39 = vld [vmem:[#allocation2 + $0xe60] sm:$0xf0]  ;;  %v8993_v40 = vld [vmem:[#allocation2 + $0x748] sm:$0xf]  ;;  %v8482_v43 = vor.u32 %v12262_v37, %v8481_v35 }
  0xe9   :  { %v12409_v41 = vld [vmem:[#allocation2 + $0x804] sm:$0xf]  ;;  %v9886_v48 = vor.u32 %v12609_v38, %v9883_v39  ;;  %3378 = vmatpush.bf16.msrb.mxu2 %v9630_v44  ;;  %v8737_v38 = vld [vmem:[#allocation2 + $0x548] sm:$0xf] }
  0xea   :  { %v9083_v42 = vld [vmem:[#allocation2 + $0x820] sm:$0xf0]  ;;  %v12326_v39 = vld [vmem:[#allocation2 + $0x564] sm:$0xf0] }
  0xeb   :  { %v12473_v45 = vld [vmem:[#allocation2 + $0xa04] sm:$0xf]  ;;  %v9086_v55 = vor.u32 %v12409_v41, %v9083_v42  ;;  %3391 = vmatpush.bf16.msrb.mxu3 %v9886_v48  ;;  %v12390_v41 = vld [vmem:[#allocation2 + $0x764] sm:$0xf0]  ;;  %v8226_v42 = vor.u32 %v12198_v34, %v8225_v33  ;;  %v8738_v44 = vor.u32 %v12326_v39, %v8737_v38 }
  0xec   :  { %v9339_v46 = vld [vmem:[#allocation2 + $0xa20] sm:$0xf0]  ;;  %v8994_v48 = vor.u32 %v12390_v41, %v8993_v40  ;;  %v8161_v57 = vld [vmem:[#allocation2 + $0xc8] sm:$0xf] }
  0xed   :  { %v12537_v47 = vld [vmem:[#allocation2 + $0xc04] sm:$0xf]  ;;  %v9342_v59 = vor.u32 %v12473_v45, %v9339_v46  ;;  %3353 = vmatpush.bf16.msrb.mxu0 %v9086_v55  ;;  %v8193_v45 = vld [vmem:[#allocation2 + $0x108] sm:$0xf] }
  0xee   :  { %v9595_v49 = vld [vmem:[#allocation2 + $0xc20] sm:$0xf0]  ;;  %v12190_v46 = vld [vmem:[#allocation2 + $0x124] sm:$0xf0] }
  0xef   :  { %v12601_v50 = vld [vmem:[#allocation2 + $0xe04] sm:$0xf]  ;;  %v9598_v60 = vor.u32 %v12537_v47, %v9595_v49  ;;  %3366 = vmatpush.bf16.msrb.mxu1 %v9342_v59  ;;  %v8449_v47 = vld [vmem:[#allocation2 + $0x308] sm:$0xf]  ;;  %v8194_v54 = vor.u32 %v12190_v46, %v8193_v45 }
  0xf0   :  { %v9851_v51 = vld [vmem:[#allocation2 + $0xe20] sm:$0xf0]  ;;  %3354 = vmatmul.bf16.vlgmr.msrb.gmra.mxu0 %v13395_v15  ;;  %v12254_v49 = vld [vmem:[#allocation2 + $0x324] sm:$0xf0] }
  0xf1   :  { %v9854_v10 = vor.u32 %v12601_v50, %v9851_v51  ;;  %3379 = vmatpush.bf16.msrb.mxu2 %v9598_v60  ;;  %3398 = vmatpush.bf16.msra.mxu0 %v8290_v11  ;;  %v8705_v50 = vld [vmem:[#allocation2 + $0x508] sm:$0xf]  ;;  %v8450_v55 = vor.u32 %v12254_v49, %v8449_v47  ;;  %v8962_v60 = vor.u32 %v12382_v53, %v8961_v52 }
  0xf2   :  { %3367 = vmatmul.bf16.vlgmr.msrb.gmra.mxu1 %v13403_v21  ;;  %v12318_v51 = vld [vmem:[#allocation2 + $0x524] sm:$0xf0] }
  0xf3   :  { %3392 = vmatpush.bf16.msrb.mxu3 %v9854_v10  ;;  %3411 = vmatpush.bf16.msra.mxu1 %v8546_v12  ;;  %v8706_v56 = vor.u32 %v12318_v51, %v8705_v50  ;;  %v12182_v58 = vld [vmem:[#allocation2 + $0xe4] sm:$0xf0] }
  0xf4   :  { %3380 = vmatmul.bf16.vlgmr.msrb.gmra.mxu2 %v13391_v63  ;;  %v8417_v59 = vld [vmem:[#allocation2 + $0x2c8] sm:$0xf] }
  0xf5   :  { %3424 = vmatpush.bf16.msra.mxu2 %v8802_v13  ;;  %3399 = vmatpush.bf16.msra.mxu0 %v8258_v30  ;;  %v12246_v61 = vld [vmem:[#allocation2 + $0x2e4] sm:$0xf0]  ;;  %v8162_v13 = vor.u32 %v12182_v58, %v8161_v57 }
  0xf6   :  { %3393 = vmatmul.bf16.vlgmr.msrb.gmra.mxu3 %v13399_v17  ;;  %v8673_v62 = vld [vmem:[#allocation2 + $0x4c8] sm:$0xf]  ;;  %v8418_v14 = vor.u32 %v12246_v61, %v8417_v59 }
  0xf7   :  { %3437 = vmatpush.bf16.msra.mxu3 %v9058_v24  ;;  %3412 = vmatpush.bf16.msra.mxu1 %v8514_v31  ;;  %v12310_v10 = vld [vmem:[#allocation2 + $0x4e4] sm:$0xf0] }
  0xf8   :  { %v8929_v11 = vld [vmem:[#allocation2 + $0x6c8] sm:$0xf]  ;;  %v8674_v18 = vor.u32 %v12310_v10, %v8673_v62 }
  0xf9   :  { %3425 = vmatpush.bf16.msra.mxu2 %v8770_v32  ;;  %3400 = vmatpush.bf16.msra.mxu0 %v8226_v42  ;;  %v12374_v12 = vld [vmem:[#allocation2 + $0x6e4] sm:$0xf0] }
  0xfa   :  { %v8129_v23 = vld [vmem:[#allocation2 + $0x88] sm:$0xf]  ;;  %v8930_v26 = vor.u32 %v12374_v12, %v8929_v11 }
  0xfb   :  { %3438 = vmatpush.bf16.msra.mxu3 %v9026_v36  ;;  %3413 = vmatpush.bf16.msra.mxu1 %v8482_v43  ;;  %v12174_v24 = vld [vmem:[#allocation2 + $0xa4] sm:$0xf0] }
  0xfc   :  { %v8385_v25 = vld [vmem:[#allocation2 + $0x288] sm:$0xf]  ;;  %v8130_v32 = vor.u32 %v12174_v24, %v8129_v23 }
  0xfd   :  { %3426 = vmatpush.bf16.msra.mxu2 %v8738_v44  ;;  %3401 = vmatpush.bf16.msra.mxu0 %v8194_v54  ;;  %v12238_v27 = vld [vmem:[#allocation2 + $0x2a4] sm:$0xf0] }
  0xfe   :  { %v8641_v28 = vld [vmem:[#allocation2 + $0x488] sm:$0xf]  ;;  %v8386_v33 = vor.u32 %v12238_v27, %v8385_v25 }
  0xff   :  { %3439 = vmatpush.bf16.msra.mxu3 %v8994_v48  ;;  %3414 = vmatpush.bf16.msra.mxu1 %v8450_v55  ;;  %v12302_v29 = vld [vmem:[#allocation2 + $0x4a4] sm:$0xf0] }
 0x100   :  { %v8897_v30 = vld [vmem:[#allocation2 + $0x688] sm:$0xf]  ;;  %v8642_v34 = vor.u32 %v12302_v29, %v8641_v28 }
 0x101   :  { %3427 = vmatpush.bf16.msra.mxu2 %v8706_v56  ;;  %v12366_v31 = vld [vmem:[#allocation2 + $0x6a4] sm:$0xf0]  ;;  %3402 = vmatpush.bf16.msra.mxu0 %v8162_v13 }
 0x102   :  { %v8097_v35 = vld [vmem:[#allocation2 + $0x48] sm:$0xf]  ;;  %v8898_v38 = vor.u32 %v12366_v31, %v8897_v30 }
 0x103   :  { %3440 = vmatpush.bf16.msra.mxu3 %v8962_v60  ;;  %3415 = vmatpush.bf16.msra.mxu1 %v8418_v14  ;;  %v12166_v36 = vld [vmem:[#allocation2 + $0x64] sm:$0xf0] }
 0x104   :  { %v8353_v37 = vld [vmem:[#allocation2 + $0x248] sm:$0xf]  ;;  %v8098_v44 = vor.u32 %v12166_v36, %v8097_v35 }
 0x105   :  { %3428 = vmatpush.bf16.msra.mxu2 %v8674_v18  ;;  %v12230_v39 = vld [vmem:[#allocation2 + $0x264] sm:$0xf0]  ;;  %3403 = vmatpush.bf16.msra.mxu0 %v8130_v32 }
 0x106   :  { %v8609_v40 = vld [vmem:[#allocation2 + $0x448] sm:$0xf]  ;;  %v8354_v47 = vor.u32 %v12230_v39, %v8353_v37 }
 0x107   :  { %3441 = vmatpush.bf16.msra.mxu3 %v8930_v26  ;;  %v12294_v41 = vld [vmem:[#allocation2 + $0x464] sm:$0xf0]  ;;  %3416 = vmatpush.bf16.msra.mxu1 %v8386_v33 }
 0x108   :  { %v8865_v42 = vld [vmem:[#allocation2 + $0x648] sm:$0xf]  ;;  %v8610_v48 = vor.u32 %v12294_v41, %v8609_v40  ;;  %v606_v40 = vperm.slane %v13365_v8, 0 }
 0x109   :  { %v12358_v43 = vld [vmem:[#allocation2 + $0x664] sm:$0xf0]  ;;  %3429 = vmatpush.bf16.msra.mxu2 %v8642_v34  ;;  %3404 = vmatpush.bf16.msra.mxu0 %v8098_v44 }
 0x10a   :  { %v8065_v45 = vld [vmem:[#allocation2 + $0x8] sm:$0xf]  ;;  %v8866_v52 = vor.u32 %v12358_v43, %v8865_v42 }
 0x10b   :  { %v12158_v46 = vld [vmem:[#allocation2 + $0x24] sm:$0xf0]  ;;  %3442 = vmatpush.bf16.msra.mxu3 %v8898_v38  ;;  %3417 = vmatpush.bf16.msra.mxu1 %v8354_v47 }
 0x10c   :  { %v8321_v49 = vld [vmem:[#allocation2 + $0x208] sm:$0xf]  ;;  %v8066_v59 = vor.u32 %v12158_v46, %v8065_v45 }
 0x10d   :  { %v12222_v50 = vld [vmem:[#allocation2 + $0x224] sm:$0xf0]  ;;  %3430 = vmatpush.bf16.msra.mxu2 %v8610_v48 }
 0x10e   :  { %v8577_v51 = vld [vmem:[#allocation2 + $0x408] sm:$0xf]  ;;  %v8322_v10 = vor.u32 %v12222_v50, %v8321_v49  ;;  %3405 = vmatpush.bf16.msra.mxu0 %v8066_v59 }
 0x10f   :  { %v12286_v53 = vld [vmem:[#allocation2 + $0x424] sm:$0xf0]  ;;  %3443 = vmatpush.bf16.msra.mxu3 %v8866_v52 }
 0x110   :  { %v8833_v54 = vld [vmem:[#allocation2 + $0x608] sm:$0xf]  ;;  %v8578_v11 = vor.u32 %v12286_v53, %v8577_v51  ;;  %3418 = vmatpush.bf16.msra.mxu1 %v8322_v10  ;;  %v622_v53 = vperm.slane %v606_v40, 0 }
 0x111   :  { %v12350_v55 = vld [vmem:[#allocation2 + $0x624] sm:$0xf0]  ;;  %3406 = vmatmul.bf16.vlgmr.msra.gmra.mxu0 %v13375_v19 }
 0x112   :  { %v9313_v56 = vld [vmem:[#allocation2 + $0x9c8] sm:$0xf]  ;;  %v8834_v14 = vor.u32 %v12350_v55, %v8833_v54  ;;  %3431 = vmatpush.bf16.msra.mxu2 %v8578_v11 }
 0x113   :  { %v12470_v57 = vld [vmem:[#allocation2 + $0x9e4] sm:$0xf0]  ;;  %3419 = vmatmul.bf16.vlgmr.msra.gmra.mxu1 %v13383_v22 }
 0x114   :  { %v9569_v58 = vld [vmem:[#allocation2 + $0xbc8] sm:$0xf]  ;;  %v9314_v18 = vor.u32 %v12470_v57, %v9313_v56  ;;  %3444 = vmatpush.bf16.msra.mxu3 %v8834_v14 }
 0x115   :  { %v12534_v60 = vld [vmem:[#allocation2 + $0xbe4] sm:$0xf0]  ;;  %3432 = vmatmul.bf16.vlgmr.msra.gmra.mxu2 %v13371_v16 }
 0x116   :  { %v9825_v61 = vld [vmem:[#allocation2 + $0xdc8] sm:$0xf]  ;;  %v9570_v23 = vor.u32 %v12534_v60, %v9569_v58  ;;  %3450 = vmatpush.bf16.msrb.mxu0 %v9314_v18  ;;  %v3212_v18 = vpop.f32.mrf.mxu1 }
 0x117   :  { %v12598_v62 = vld [vmem:[#allocation2 + $0xde4] sm:$0xf0]  ;;  %3445 = vmatmul.bf16.vlgmr.msra.gmra.mxu3 %v13379_v20 }
 0x118   :  { %v10081_v12 = vld [vmem:[#allocation2 + $0xfc8] sm:$0xf]  ;;  %v9826_v24 = vor.u32 %v12598_v62, %v9825_v61  ;;  %3463 = vmatpush.bf16.msrb.mxu1 %v9570_v23  ;;  %v3199_v61 = vpop.f32.mrf.mxu0 }
 0x119   :  { %v12662_v13 = vld [vmem:[#allocation2 + $0xfe4] sm:$0xf0]  ;;  %v3200_v14 = vadd.f32 %v3199_v61, %v622_v53 }
 0x11a   :  { %v9281_v25 = vld [vmem:[#allocation2 + $0x988] sm:$0xf]  ;;  %v10082_v28 = vor.u32 %v12662_v13, %v10081_v12  ;;  %3476 = vmatpush.bf16.msrb.mxu2 %v9826_v24 }
 0x11b   :  { %v12462_v26 = vld [vmem:[#allocation2 + $0x9a4] sm:$0xf0] }
 0x11c   :  { %v9537_v27 = vld [vmem:[#allocation2 + $0xb88] sm:$0xf]  ;;  %v9282_v34 = vor.u32 %v12462_v26, %v9281_v25  ;;  %3489 = vmatpush.bf16.msrb.mxu3 %v10082_v28 }
 0x11d   :  { %v12526_v29 = vld [vmem:[#allocation2 + $0xba4] sm:$0xf0] }
 0x11e   :  { %v9793_v30 = vld [vmem:[#allocation2 + $0xd88] sm:$0xf]  ;;  %v9538_v36 = vor.u32 %v12526_v29, %v9537_v27  ;;  %3451 = vmatpush.bf16.msrb.mxu0 %v9282_v34  ;;  %v3213_v29 = vadd.f32 %v3212_v18, %v3200_v14  ;;  %v3214_v53 = vpop.f32.mrf.mxu1 }
 0x11f   :  { %v12590_v31 = vld [vmem:[#allocation2 + $0xda4] sm:$0xf0] }
 0x120   :  { %v10049_v32 = vld [vmem:[#allocation2 + $0xf88] sm:$0xf]  ;;  %v9794_v37 = vor.u32 %v12590_v31, %v9793_v30  ;;  %3464 = vmatpush.bf16.msrb.mxu1 %v9538_v36  ;;  %v3225_v36 = vpop.f32.mrf.mxu2 }
 0x121   :  { %v12654_v33 = vld [vmem:[#allocation2 + $0xfa4] sm:$0xf0] }
 0x122   :  { %v9249_v35 = vld [vmem:[#allocation2 + $0x948] sm:$0xf]  ;;  %v10050_v41 = vor.u32 %v12654_v33, %v10049_v32  ;;  %3477 = vmatpush.bf16.msrb.mxu2 %v9794_v37 }
 0x123   :  { %v12454_v38 = vld [vmem:[#allocation2 + $0x964] sm:$0xf0] }
 0x124   :  { %v9505_v39 = vld [vmem:[#allocation2 + $0xb48] sm:$0xf]  ;;  %v9250_v47 = vor.u32 %v12454_v38, %v9249_v35  ;;  %3490 = vmatpush.bf16.msrb.mxu3 %v10050_v41  ;;  %v3226_v41 = vadd.f32 %v3225_v36, %v3213_v29  ;;  %v8291_v29 = vld [vmem:[#allocation2 + $0x1e8] sm:$0xf0] }
 0x125   :  { %v12518_v42 = vld [vmem:[#allocation2 + $0xb64] sm:$0xf0] }
 0x126   :  { %v9761_v43 = vld [vmem:[#allocation2 + $0xd48] sm:$0xf]  ;;  %v9506_v49 = vor.u32 %v12518_v42, %v9505_v39  ;;  %3452 = vmatpush.bf16.msrb.mxu0 %v9250_v47  ;;  %v3238_v42 = vpop.f32.mrf.mxu3  ;;  %v3201_v47 = vpop.f32.mrf.mxu0 }
 0x127   :  { %v12582_v44 = vld [vmem:[#allocation2 + $0xd64] sm:$0xf0] }
 0x128   :  { %v10017_v45 = vld [vmem:[#allocation2 + $0xf48] sm:$0xf]  ;;  %v9762_v50 = vor.u32 %v12582_v44, %v9761_v43  ;;  %3465 = vmatpush.bf16.msrb.mxu1 %v9506_v49  ;;  %v3227_v18 = vpop.f32.mrf.mxu2 }
 0x129   :  { %v12646_v46 = vld [vmem:[#allocation2 + $0xf64] sm:$0xf0]  ;;  %v12186_v18 = vld [vmem:[#allocation2 + $0x10c] sm:$0xf] }
 0x12a   :  { %v9217_v48 = vld [vmem:[#allocation2 + $0x908] sm:$0xf]  ;;  %v10018_v54 = vor.u32 %v12646_v46, %v10017_v45  ;;  %3478 = vmatpush.bf16.msrb.mxu2 %v9762_v50  ;;  %v13422_v46 = vadd.f32 %v3238_v42, %v3226_v41 }
 0x12b   :  { %v12446_v51 = vld [vmem:[#allocation2 + $0x924] sm:$0xf0] }
 0x12c   :  { %v9473_v52 = vld [vmem:[#allocation2 + $0xb08] sm:$0xf]  ;;  %v9218_v60 = vor.u32 %v12446_v51, %v9217_v48  ;;  %3491 = vmatpush.bf16.msrb.mxu3 %v10018_v54 }
 0x12d   :  { %v12510_v55 = vld [vmem:[#allocation2 + $0xb24] sm:$0xf0] }
 0x12e   :  { %v9729_v56 = vld [vmem:[#allocation2 + $0xd08] sm:$0xf]  ;;  %v9474_v62 = vor.u32 %v12510_v55, %v9473_v52  ;;  %3453 = vmatpush.bf16.msrb.mxu0 %v9218_v60 }
 0x12f   :  { %v12574_v57 = vld [vmem:[#allocation2 + $0xd24] sm:$0xf0] }
 0x130   :  { %v9985_v58 = vld [vmem:[#allocation2 + $0xf08] sm:$0xf]  ;;  %v9730_v10 = vor.u32 %v12574_v57, %v9729_v56  ;;  %3466 = vmatpush.bf16.msrb.mxu1 %v9474_v62 }
 0x131   :  { %v12638_v59 = vld [vmem:[#allocation2 + $0xf24] sm:$0xf0] }
 0x132   :  { %v9185_v11 = vld [vmem:[#allocation2 + $0x8c8] sm:$0xf]  ;;  %v9986_v23 = vor.u32 %v12638_v59, %v9985_v58  ;;  %3479 = vmatpush.bf16.msrb.mxu2 %v9730_v10 }
 0x133   :  { %v12438_v12 = vld [vmem:[#allocation2 + $0x8e4] sm:$0xf0] }
 0x134   :  { %v9441_v13 = vld [vmem:[#allocation2 + $0xac8] sm:$0xf]  ;;  %v9186_v30 = vor.u32 %v12438_v12, %v9185_v11  ;;  %3492 = vmatpush.bf16.msrb.mxu3 %v9986_v23 }
 0x135   :  { %v12502_v24 = vld [vmem:[#allocation2 + $0xae4] sm:$0xf0] }
 0x136   :  { %v9697_v25 = vld [vmem:[#allocation2 + $0xcc8] sm:$0xf]  ;;  %v9442_v31 = vor.u32 %v12502_v24, %v9441_v13  ;;  %3454 = vmatpush.bf16.msrb.mxu0 %v9186_v30  ;;  %v12274_v30 = vld [vmem:[#allocation2 + $0x3cc] sm:$0xf] }
 0x137   :  { %v12566_v26 = vld [vmem:[#allocation2 + $0xce4] sm:$0xf0] }
 0x138   :  { %v9953_v27 = vld [vmem:[#allocation2 + $0xec8] sm:$0xf]  ;;  %v9698_v32 = vor.u32 %v12566_v26, %v9697_v25  ;;  %3467 = vmatpush.bf16.msrb.mxu1 %v9442_v31 }
 0x139   :  { %v12630_v28 = vld [vmem:[#allocation2 + $0xee4] sm:$0xf0] }
 0x13a   :  { %v9153_v33 = vld [vmem:[#allocation2 + $0x888] sm:$0xf]  ;;  %v9954_v37 = vor.u32 %v12630_v28, %v9953_v27  ;;  %3480 = vmatpush.bf16.msrb.mxu2 %v9698_v32  ;;  %v3240_v27 = vpop.f32.mrf.mxu3  ;;  %v12210_v28 = vld [vmem:[#allocation2 + $0x1cc] sm:$0xf] }
 0x13b   :  { %v12430_v34 = vld [vmem:[#allocation2 + $0x8a4] sm:$0xf0]  ;;  %v8547_v32 = vld [vmem:[#allocation2 + $0x3e8] sm:$0xf0] }
 0x13c   :  { %v9409_v35 = vld [vmem:[#allocation2 + $0xa88] sm:$0xf]  ;;  %v9154_v45 = vor.u32 %v12430_v34, %v9153_v33  ;;  %3493 = vmatpush.bf16.msrb.mxu3 %v9954_v37  ;;  %v12338_v33 = vld [vmem:[#allocation2 + $0x5cc] sm:$0xf]  ;;  %v8550_v41 = vor.u32 %v12274_v30, %v8547_v32  ;;  %v3251_v32 = vpop.f32.mrf.mxu0 }
 0x13d   :  { %v12494_v38 = vld [vmem:[#allocation2 + $0xaa4] sm:$0xf0]  ;;  %v8803_v34 = vld [vmem:[#allocation2 + $0x5e8] sm:$0xf0] }
 0x13e   :  { %v9665_v39 = vld [vmem:[#allocation2 + $0xc88] sm:$0xf]  ;;  %v9410_v48 = vor.u32 %v12494_v38, %v9409_v35  ;;  %3455 = vmatpush.bf16.msrb.mxu0 %v9154_v45  ;;  %v12402_v37 = vld [vmem:[#allocation2 + $0x7cc] sm:$0xf]  ;;  %v8806_v42 = vor.u32 %v12338_v33, %v8803_v34 }
 0x13f   :  { %v12558_v40 = vld [vmem:[#allocation2 + $0xca4] sm:$0xf0]  ;;  %v9059_v38 = vld [vmem:[#allocation2 + $0x7e8] sm:$0xf0] }
 0x140   :  { %v9921_v43 = vld [vmem:[#allocation2 + $0xe88] sm:$0xf]  ;;  %v9666_v49 = vor.u32 %v12558_v40, %v9665_v39  ;;  %3468 = vmatpush.bf16.msrb.mxu1 %v9410_v48  ;;  %v8294_v40 = vor.u32 %v12210_v28, %v8291_v29  ;;  %v12266_v45 = vld [vmem:[#allocation2 + $0x38c] sm:$0xf]  ;;  %v9062_v47 = vor.u32 %v12402_v37, %v9059_v38 }
 0x141   :  { %v12622_v44 = vld [vmem:[#allocation2 + $0xea4] sm:$0xf0]  ;;  %v8515_v48 = vld [vmem:[#allocation2 + $0x3a8] sm:$0xf0] }
 0x142   :  { %v9121_v50 = vld [vmem:[#allocation2 + $0x848] sm:$0xf]  ;;  %v9922_v54 = vor.u32 %v12622_v44, %v9921_v43  ;;  %3481 = vmatpush.bf16.msrb.mxu2 %v9666_v49  ;;  %v12202_v43 = vld [vmem:[#allocation2 + $0x18c] sm:$0xf] }
 0x143   :  { %v12422_v51 = vld [vmem:[#allocation2 + $0x864] sm:$0xf0]  ;;  %v8259_v44 = vld [vmem:[#allocation2 + $0x1a8] sm:$0xf0] }
 0x144   :  { %v9377_v52 = vld [vmem:[#allocation2 + $0xa48] sm:$0xf]  ;;  %v9122_v60 = vor.u32 %v12422_v51, %v9121_v50  ;;  %3494 = vmatpush.bf16.msrb.mxu3 %v9922_v54  ;;  %v12330_v49 = vld [vmem:[#allocation2 + $0x58c] sm:$0xf]  ;;  %v8262_v53 = vor.u32 %v12202_v43, %v8259_v44  ;;  %v8518_v54 = vor.u32 %v12266_v45, %v8515_v48 }
 0x145   :  { %v12486_v55 = vld [vmem:[#allocation2 + $0xa64] sm:$0xf0]  ;;  %v8771_v50 = vld [vmem:[#allocation2 + $0x5a8] sm:$0xf0] }
 0x146   :  { %v9633_v56 = vld [vmem:[#allocation2 + $0xc48] sm:$0xf]  ;;  %v9378_v10 = vor.u32 %v12486_v55, %v9377_v52  ;;  %3456 = vmatpush.bf16.msrb.mxu0 %v9122_v60  ;;  %v12394_v51 = vld [vmem:[#allocation2 + $0x78c] sm:$0xf]  ;;  %v8774_v55 = vor.u32 %v12330_v49, %v8771_v50 }
 0x147   :  { %v12550_v57 = vld [vmem:[#allocation2 + $0xc64] sm:$0xf0]  ;;  %v9027_v52 = vld [vmem:[#allocation2 + $0x7a8] sm:$0xf0] }
 0x148   :  { %v9889_v58 = vld [vmem:[#allocation2 + $0xe48] sm:$0xf]  ;;  %v9634_v11 = vor.u32 %v12550_v57, %v9633_v56  ;;  %3469 = vmatpush.bf16.msrb.mxu1 %v9378_v10  ;;  %v12194_v56 = vld [vmem:[#allocation2 + $0x14c] sm:$0xf] }
 0x149   :  { %v12614_v59 = vld [vmem:[#allocation2 + $0xe64] sm:$0xf0]  ;;  %v8227_v57 = vld [vmem:[#allocation2 + $0x168] sm:$0xf0] }
 0x14a   :  { %v9089_v61 = vld [vmem:[#allocation2 + $0x808] sm:$0xf]  ;;  %v9890_v23 = vor.u32 %v12614_v59, %v9889_v58  ;;  %3482 = vmatpush.bf16.msrb.mxu2 %v9634_v11  ;;  %v12258_v58 = vld [vmem:[#allocation2 + $0x34c] sm:$0xf]  ;;  %v9030_v59 = vor.u32 %v12394_v51, %v9027_v52  ;;  %v3277_v51 = vpop.f32.mrf.mxu2 }
 0x14b   :  { %v12414_v62 = vld [vmem:[#allocation2 + $0x824] sm:$0xf0]  ;;  %v8483_v60 = vld [vmem:[#allocation2 + $0x368] sm:$0xf0] }
 0x14c   :  { %v9345_v12 = vld [vmem:[#allocation2 + $0xa08] sm:$0xf]  ;;  %v9090_v31 = vor.u32 %v12414_v62, %v9089_v61  ;;  %3495 = vmatpush.bf16.msrb.mxu3 %v9890_v23  ;;  %v12322_v61 = vld [vmem:[#allocation2 + $0x54c] sm:$0xf] }
 0x14d   :  { %v12478_v13 = vld [vmem:[#allocation2 + $0xa24] sm:$0xf0]  ;;  %v8739_v62 = vld [vmem:[#allocation2 + $0x568] sm:$0xf0] }
 0x14e   :  { %v9601_v14 = vld [vmem:[#allocation2 + $0xc08] sm:$0xf]  ;;  %v9346_v35 = vor.u32 %v12478_v13, %v9345_v12  ;;  %3457 = vmatpush.bf16.msrb.mxu0 %v9090_v31  ;;  %v12386_v10 = vld [vmem:[#allocation2 + $0x74c] sm:$0xf]  ;;  %v8230_v12 = vor.u32 %v12194_v56, %v8227_v57  ;;  %v8486_v13 = vor.u32 %v12258_v58, %v8483_v60 }
 0x14f   :  { %v12542_v24 = vld [vmem:[#allocation2 + $0xc24] sm:$0xf0]  ;;  %v8995_v11 = vld [vmem:[#allocation2 + $0x768] sm:$0xf0] }
 0x150   :  { %v9857_v25 = vld [vmem:[#allocation2 + $0xe08] sm:$0xf]  ;;  %v9602_v36 = vor.u32 %v12542_v24, %v9601_v14  ;;  %3470 = vmatpush.bf16.msrb.mxu1 %v9346_v35  ;;  %v8742_v14 = vor.u32 %v12322_v61, %v8739_v62  ;;  %v8195_v23 = vld [vmem:[#allocation2 + $0x128] sm:$0xf0]  ;;  %v3252_v35 = vadd.f32 %v3251_v32, %v13422_v46 }
 0x151   :  { %v12606_v26 = vld [vmem:[#allocation2 + $0xe24] sm:$0xf0]  ;;  %3458 = vmatmul.bf16.vlgmr.msrb.gmra.mxu0 %v13395_v15  ;;  %v12250_v24 = vld [vmem:[#allocation2 + $0x30c] sm:$0xf]  ;;  %v8198_v31 = vor.u32 %v12186_v18, %v8195_v23 }
 0x152   :  { %v9858_v39 = vor.u32 %v12606_v26, %v9857_v25  ;;  %3483 = vmatpush.bf16.msrb.mxu2 %v9602_v36  ;;  %3502 = vmatpush.bf16.msra.mxu0 %v8294_v40  ;;  %v8998_v25 = vor.u32 %v12386_v10, %v8995_v11  ;;  %v8451_v26 = vld [vmem:[#allocation2 + $0x328] sm:$0xf0] }
 0x153   :  { %3471 = vmatmul.bf16.vlgmr.msrb.gmra.mxu1 %v13403_v21  ;;  %v12314_v27 = vld [vmem:[#allocation2 + $0x50c] sm:$0xf]  ;;  %v8454_v33 = vor.u32 %v12250_v24, %v8451_v26 }
 0x154   :  { %3496 = vmatpush.bf16.msrb.mxu3 %v9858_v39  ;;  %3515 = vmatpush.bf16.msra.mxu1 %v8550_v41  ;;  %v8707_v28 = vld [vmem:[#allocation2 + $0x528] sm:$0xf0]  ;;  %v3264_v39 = vpop.f32.mrf.mxu1 }
 0x155   :  { %3484 = vmatmul.bf16.vlgmr.msrb.gmra.mxu2 %v13391_v63  ;;  %v12378_v29 = vld [vmem:[#allocation2 + $0x70c] sm:$0xf]  ;;  %v8710_v34 = vor.u32 %v12314_v27, %v8707_v28 }
 0x156   :  { %3528 = vmatpush.bf16.msra.mxu2 %v8806_v42  ;;  %3503 = vmatpush.bf16.msra.mxu0 %v8262_v53  ;;  %v8963_v30 = vld [vmem:[#allocation2 + $0x728] sm:$0xf0] }
 0x157   :  { %3497 = vmatmul.bf16.vlgmr.msrb.gmra.mxu3 %v13399_v17  ;;  %v12178_v36 = vld [vmem:[#allocation2 + $0xcc] sm:$0xf]  ;;  %v8966_v40 = vor.u32 %v12378_v29, %v8963_v30 }
 0x158   :  { %3541 = vmatpush.bf16.msra.mxu3 %v9062_v47  ;;  %3516 = vmatpush.bf16.msra.mxu1 %v8518_v54  ;;  %v8163_v37 = vld [vmem:[#allocation2 + $0xe8] sm:$0xf0]  ;;  %v3265_v47 = vadd.f32 %v3264_v39, %v3252_v35 }
 0x159   :  { %v12242_v38 = vld [vmem:[#allocation2 + $0x2cc] sm:$0xf]  ;;  %v8166_v48 = vor.u32 %v12178_v36, %v8163_v37 }
 0x15a   :  { %3529 = vmatpush.bf16.msra.mxu2 %v8774_v55  ;;  %3504 = vmatpush.bf16.msra.mxu0 %v8230_v12  ;;  %v8419_v41 = vld [vmem:[#allocation2 + $0x2e8] sm:$0xf0]  ;;  %v3278_v55 = vadd.f32 %v3277_v51, %v3265_v47 }
 0x15b   :  { %v12306_v42 = vld [vmem:[#allocation2 + $0x4cc] sm:$0xf]  ;;  %v8422_v49 = vor.u32 %v12242_v38, %v8419_v41  ;;  %v3279_v41 = vpop.f32.mrf.mxu2 }
 0x15c   :  { %3542 = vmatpush.bf16.msra.mxu3 %v9030_v59  ;;  %3517 = vmatpush.bf16.msra.mxu1 %v8486_v13  ;;  %v8675_v43 = vld [vmem:[#allocation2 + $0x4e8] sm:$0xf0]  ;;  %v3290_v59 = vpop.f32.mrf.mxu3  ;;  %v3253_v13 = vpop.f32.mrf.mxu0 }
 0x15d   :  { %v12370_v44 = vld [vmem:[#allocation2 + $0x6cc] sm:$0xf]  ;;  %v8678_v50 = vor.u32 %v12306_v42, %v8675_v43  ;;  %v3291_v10 = vadd.f32 %v3290_v59, %v3278_v55  ;;  %v3266_v26 = vpop.f32.mrf.mxu1 }
 0x15e   :  { %3530 = vmatpush.bf16.msra.mxu2 %v8742_v14  ;;  %v8931_v45 = vld [vmem:[#allocation2 + $0x6e8] sm:$0xf0]  ;;  %3505 = vmatpush.bf16.msra.mxu0 %v8198_v31 }
 0x15f   :  { %v12170_v46 = vld [vmem:[#allocation2 + $0x8c] sm:$0xf]  ;;  %v8934_v54 = vor.u32 %v12370_v44, %v8931_v45  ;;  %vm4022_vm0 = vcmp.ge.f32.partialorder %v3291_v10, 0.0  ;;  %v4030_v28 = vmul.f32 0.01, %v3291_v10 }
 0x160   :  { %3543 = vmatpush.bf16.msra.mxu3 %v8998_v25  ;;  %3518 = vmatpush.bf16.msra.mxu1 %v8454_v33  ;;  %v8131_v52 = vld [vmem:[#allocation2 + $0xa8] sm:$0xf0] }
 0x161   :  { %v12234_v53 = vld [vmem:[#allocation2 + $0x28c] sm:$0xf]  ;;  %v8134_v62 = vor.u32 %v12170_v46, %v8131_v52  ;;  %v13429_v32 = vsel %vm4022_vm0, %v3291_v10, %v4030_v28 }
 0x162   :  { %3531 = vmatpush.bf16.msra.mxu2 %v8710_v34  ;;  %v8387_v56 = vld [vmem:[#allocation2 + $0x2a8] sm:$0xf0]  ;;  %3506 = vmatpush.bf16.msra.mxu0 %v8166_v48 }
 0x163   :  { %v12298_v57 = vld [vmem:[#allocation2 + $0x48c] sm:$0xf]  ;;  %v8390_v14 = vor.u32 %v12234_v53, %v8387_v56 }
 0x164   :  { %3544 = vmatpush.bf16.msra.mxu3 %v8966_v40  ;;  %v8643_v58 = vld [vmem:[#allocation2 + $0x4a8] sm:$0xf0]  ;;  %3519 = vmatpush.bf16.msra.mxu1 %v8422_v49  ;;  %v3292_v47 = vpop.f32.mrf.mxu3 }
 0x165   :  { %v12362_v60 = vld [vmem:[#allocation2 + $0x68c] sm:$0xf]  ;;  %v8646_v18 = vor.u32 %v12298_v57, %v8643_v58 }
 0x166   :  { %v8899_v61 = vld [vmem:[#allocation2 + $0x6a8] sm:$0xf0]  ;;  %3532 = vmatpush.bf16.msra.mxu2 %v8678_v50  ;;  %3507 = vmatpush.bf16.msra.mxu0 %v8134_v62 }
 0x167   :  { %v12162_v11 = vld [vmem:[#allocation2 + $0x4c] sm:$0xf]  ;;  %v8902_v27 = vor.u32 %v12362_v60, %v8899_v61 }
 0x168   :  { %v8099_v12 = vld [vmem:[#allocation2 + $0x68] sm:$0xf0]  ;;  %3545 = vmatpush.bf16.msra.mxu3 %v8934_v54  ;;  %3520 = vmatpush.bf16.msra.mxu1 %v8390_v14 }
 0x169   :  { %v12226_v23 = vld [vmem:[#allocation2 + $0x24c] sm:$0xf]  ;;  %v8102_v33 = vor.u32 %v12162_v11, %v8099_v12 }
 0x16a   :  { %v8355_v24 = vld [vmem:[#allocation2 + $0x268] sm:$0xf0]  ;;  %3533 = vmatpush.bf16.msra.mxu2 %v8646_v18 }
 0x16b   :  { %v12290_v25 = vld [vmem:[#allocation2 + $0x44c] sm:$0xf]  ;;  %v8358_v36 = vor.u32 %v12226_v23, %v8355_v24  ;;  %3508 = vmatpush.bf16.msra.mxu0 %v8102_v33 }
 0x16c   :  { %v8611_v29 = vld [vmem:[#allocation2 + $0x468] sm:$0xf0]  ;;  %3546 = vmatpush.bf16.msra.mxu3 %v8902_v27 }
 0x16d   :  { %v12354_v30 = vld [vmem:[#allocation2 + $0x64c] sm:$0xf]  ;;  %v8614_v37 = vor.u32 %v12290_v25, %v8611_v29  ;;  %3521 = vmatpush.bf16.msra.mxu1 %v8358_v36 }
 0x16e   :  { %v8867_v31 = vld [vmem:[#allocation2 + $0x668] sm:$0xf0] }
 0x16f   :  { %v12154_v34 = vld [vmem:[#allocation2 + $0xc] sm:$0xf]  ;;  %v8870_v42 = vor.u32 %v12354_v30, %v8867_v31  ;;  %3534 = vmatpush.bf16.msra.mxu2 %v8614_v37  ;;  %v607_v31 = vperm.slane %v13365_v8, 2 }
 0x170   :  { %v8067_v35 = vld [vmem:[#allocation2 + $0x28] sm:$0xf0] }
 0x171   :  { %v12218_v38 = vld [vmem:[#allocation2 + $0x20c] sm:$0xf]  ;;  %v8070_v51 = vor.u32 %v12154_v34, %v8067_v35  ;;  %3547 = vmatpush.bf16.msra.mxu3 %v8870_v42 }
 0x172   :  { %v8323_v39 = vld [vmem:[#allocation2 + $0x228] sm:$0xf0] }
 0x173   :  { %v12282_v40 = vld [vmem:[#allocation2 + $0x40c] sm:$0xf]  ;;  %v8326_v54 = vor.u32 %v12218_v38, %v8323_v39  ;;  %3509 = vmatpush.bf16.msra.mxu0 %v8070_v51 }
 0x174   :  { %v8579_v43 = vld [vmem:[#allocation2 + $0x428] sm:$0xf0] }
 0x175   :  { %v12346_v44 = vld [vmem:[#allocation2 + $0x60c] sm:$0xf]  ;;  %v8582_v55 = vor.u32 %v12282_v40, %v8579_v43  ;;  %3522 = vmatpush.bf16.msra.mxu1 %v8326_v54 }
 0x176   :  { %v8835_v45 = vld [vmem:[#allocation2 + $0x628] sm:$0xf0]  ;;  %3510 = vmatmul.bf16.vlgmr.msra.gmra.mxu0 %v13375_v19 }
 0x177   :  { %v12466_v48 = vld [vmem:[#allocation2 + $0x9cc] sm:$0xf]  ;;  %v8838_v58 = vor.u32 %v12346_v44, %v8835_v45  ;;  %3535 = vmatpush.bf16.msra.mxu2 %v8582_v55  ;;  %v623_v45 = vperm.slane %v607_v31, 0 }
 0x178   :  { %v9315_v49 = vld [vmem:[#allocation2 + $0x9e8] sm:$0xf0]  ;;  %3523 = vmatmul.bf16.vlgmr.msra.gmra.mxu1 %v13383_v22 }
 0x179   :  { %v12530_v50 = vld [vmem:[#allocation2 + $0xbcc] sm:$0xf]  ;;  %v9318_v59 = vor.u32 %v12466_v48, %v9315_v49  ;;  %3548 = vmatpush.bf16.msra.mxu3 %v8838_v58 }
 0x17a   :  { %v9571_v46 = vld [vmem:[#allocation2 + $0xbe8] sm:$0xf0]  ;;  %3536 = vmatmul.bf16.vlgmr.msra.gmra.mxu2 %v13371_v16 }
 0x17b   :  { %v12594_v52 = vld [vmem:[#allocation2 + $0xdcc] sm:$0xf]  ;;  %v9574_v60 = vor.u32 %v12530_v50, %v9571_v46  ;;  %3554 = vmatpush.bf16.msrb.mxu0 %v9318_v59 }
 0x17c   :  { %v9827_v53 = vld [vmem:[#allocation2 + $0xde8] sm:$0xf0]  ;;  %3549 = vmatmul.bf16.vlgmr.msra.gmra.mxu3 %v13379_v20 }
 0x17d   :  { %v12658_v56 = vld [vmem:[#allocation2 + $0xfcc] sm:$0xf]  ;;  %v9830_v61 = vor.u32 %v12594_v52, %v9827_v53  ;;  %3567 = vmatpush.bf16.msrb.mxu1 %v9574_v60  ;;  %v3303_v53 = vpop.f32.mrf.mxu0  ;;  %v3316_v60 = vpop.f32.mrf.mxu1 }
 0x17e   :  { %v10083_v57 = vld [vmem:[#allocation2 + $0xfe8] sm:$0xf0]  ;;  %v3304_v59 = vadd.f32 %v3303_v53, %v623_v45 }
 0x17f   :  { %v12458_v62 = vld [vmem:[#allocation2 + $0x98c] sm:$0xf]  ;;  %v10086_v12 = vor.u32 %v12658_v56, %v10083_v57  ;;  %3580 = vmatpush.bf16.msrb.mxu2 %v9830_v61 }
 0x180   :  { %v9283_v10 = vld [vmem:[#allocation2 + $0x9a8] sm:$0xf0] }
 0x181   :  { %v12522_v11 = vld [vmem:[#allocation2 + $0xb8c] sm:$0xf]  ;;  %v9286_v25 = vor.u32 %v12458_v62, %v9283_v10  ;;  %3593 = vmatpush.bf16.msrb.mxu3 %v10086_v12 }
 0x182   :  { %v9539_v13 = vld [vmem:[#allocation2 + $0xba8] sm:$0xf0] }
 0x183   :  { %v12586_v14 = vld [vmem:[#allocation2 + $0xd8c] sm:$0xf]  ;;  %v9542_v27 = vor.u32 %v12522_v11, %v9539_v13  ;;  %3555 = vmatpush.bf16.msrb.mxu0 %v9286_v25 }
 0x184   :  { %v9795_v18 = vld [vmem:[#allocation2 + $0xda8] sm:$0xf0] }
 0x185   :  { %v12650_v23 = vld [vmem:[#allocation2 + $0xf8c] sm:$0xf]  ;;  %v9798_v28 = vor.u32 %v12586_v14, %v9795_v18  ;;  %3568 = vmatpush.bf16.msrb.mxu1 %v9542_v27  ;;  %v3317_v14 = vadd.f32 %v3316_v60, %v3304_v59 }
 0x186   :  { %v10051_v24 = vld [vmem:[#allocation2 + $0xfa8] sm:$0xf0] }
 0x187   :  { %v12450_v26 = vld [vmem:[#allocation2 + $0x94c] sm:$0xf]  ;;  %v10054_v33 = vor.u32 %v12650_v23, %v10051_v24  ;;  %3581 = vmatpush.bf16.msrb.mxu2 %v9798_v28  ;;  %v3329_v28 = vpop.f32.mrf.mxu2 }
 0x188   :  { %v9251_v29 = vld [vmem:[#allocation2 + $0x968] sm:$0xf0] }
 0x189   :  { %v12514_v30 = vld [vmem:[#allocation2 + $0xb4c] sm:$0xf]  ;;  %v9254_v39 = vor.u32 %v12450_v26, %v9251_v29  ;;  %3594 = vmatpush.bf16.msrb.mxu3 %v10054_v33 }
 0x18a   :  { %v9507_v34 = vld [vmem:[#allocation2 + $0xb68] sm:$0xf0] }
 0x18b   :  { %v12578_v35 = vld [vmem:[#allocation2 + $0xd4c] sm:$0xf]  ;;  %v9510_v41 = vor.u32 %v12514_v30, %v9507_v34  ;;  %3556 = vmatpush.bf16.msrb.mxu0 %v9254_v39  ;;  %v3330_v34 = vadd.f32 %v3329_v28, %v3317_v14  ;;  %v8297_v14 = vld [vmem:[#allocation2 + $0x1d0] sm:$0xf] }
 0x18c   :  { %v9763_v36 = vld [vmem:[#allocation2 + $0xd68] sm:$0xf0] }
 0x18d   :  { %v12642_v37 = vld [vmem:[#allocation2 + $0xf4c] sm:$0xf]  ;;  %v9766_v42 = vor.u32 %v12578_v35, %v9763_v36  ;;  %3569 = vmatpush.bf16.msrb.mxu1 %v9510_v41  ;;  %v3342_v35 = vpop.f32.mrf.mxu3 }
 0x18e   :  { %v10019_v38 = vld [vmem:[#allocation2 + $0xf68] sm:$0xf0]  ;;  %v13436_v39 = vadd.f32 %v3342_v35, %v3330_v34 }
 0x18f   :  { %v12442_v40 = vld [vmem:[#allocation2 + $0x90c] sm:$0xf]  ;;  %v10022_v47 = vor.u32 %v12642_v37, %v10019_v38  ;;  %3582 = vmatpush.bf16.msrb.mxu2 %v9766_v42 }
 0x190   :  { %v9219_v43 = vld [vmem:[#allocation2 + $0x928] sm:$0xf0] }
 0x191   :  { %v12506_v44 = vld [vmem:[#allocation2 + $0xb0c] sm:$0xf]  ;;  %v9222_v52 = vor.u32 %v12442_v40, %v9219_v43  ;;  %3595 = vmatpush.bf16.msrb.mxu3 %v10022_v47  ;;  %v3305_v40 = vpop.f32.mrf.mxu0  ;;  %v3318_v47 = vpop.f32.mrf.mxu1 }
 0x192   :  { %v9475_v48 = vld [vmem:[#allocation2 + $0xb28] sm:$0xf0]  ;;  %v8521_v40 = vld [vmem:[#allocation2 + $0x390] sm:$0xf] }
 0x193   :  { %v12570_v49 = vld [vmem:[#allocation2 + $0xd0c] sm:$0xf]  ;;  %v9478_v54 = vor.u32 %v12506_v44, %v9475_v48  ;;  %3557 = vmatpush.bf16.msrb.mxu0 %v9222_v52  ;;  %v12399_v47 = vld [vmem:[#allocation2 + $0x7ac] sm:$0xf0] }
 0x194   :  { %v9731_v50 = vld [vmem:[#allocation2 + $0xd28] sm:$0xf0] }
 0x195   :  { %v12634_v51 = vld [vmem:[#allocation2 + $0xf0c] sm:$0xf]  ;;  %v9734_v55 = vor.u32 %v12570_v49, %v9731_v50  ;;  %3570 = vmatpush.bf16.msrb.mxu1 %v9478_v54 }
 0x196   :  { %v9987_v46 = vld [vmem:[#allocation2 + $0xf28] sm:$0xf0] }
 0x197   :  { %v12434_v56 = vld [vmem:[#allocation2 + $0x8cc] sm:$0xf]  ;;  %v9990_v61 = vor.u32 %v12634_v51, %v9987_v46  ;;  %3583 = vmatpush.bf16.msrb.mxu2 %v9734_v55 }
 0x198   :  { %v9187_v57 = vld [vmem:[#allocation2 + $0x8e8] sm:$0xf0] }
 0x199   :  { %v12498_v58 = vld [vmem:[#allocation2 + $0xacc] sm:$0xf]  ;;  %v9190_v18 = vor.u32 %v12434_v56, %v9187_v57  ;;  %3596 = vmatpush.bf16.msrb.mxu3 %v9990_v61  ;;  %v3331_v61 = vpop.f32.mrf.mxu2 }
 0x19a   :  { %v9443_v62 = vld [vmem:[#allocation2 + $0xae8] sm:$0xf0] }
 0x19b   :  { %v12562_v10 = vld [vmem:[#allocation2 + $0xccc] sm:$0xf]  ;;  %v9446_v23 = vor.u32 %v12498_v58, %v9443_v62  ;;  %3558 = vmatpush.bf16.msrb.mxu0 %v9190_v18  ;;  %v12215_v18 = vld [vmem:[#allocation2 + $0x1ec] sm:$0xf0] }
 0x19c   :  { %v9699_v11 = vld [vmem:[#allocation2 + $0xce8] sm:$0xf0]  ;;  %v8298_v34 = vor.u32 %v12215_v18, %v8297_v14  ;;  %v8713_v14 = vld [vmem:[#allocation2 + $0x510] sm:$0xf] }
 0x19d   :  { %v12626_v12 = vld [vmem:[#allocation2 + $0xecc] sm:$0xf]  ;;  %v9702_v24 = vor.u32 %v12562_v10, %v9699_v11  ;;  %3571 = vmatpush.bf16.msrb.mxu1 %v9446_v23  ;;  %v8553_v23 = vld [vmem:[#allocation2 + $0x3d0] sm:$0xf] }
 0x19e   :  { %v9955_v13 = vld [vmem:[#allocation2 + $0xee8] sm:$0xf0]  ;;  %v12319_v18 = vld [vmem:[#allocation2 + $0x52c] sm:$0xf0] }
 0x19f   :  { %v12426_v25 = vld [vmem:[#allocation2 + $0x88c] sm:$0xf]  ;;  %v9958_v29 = vor.u32 %v12626_v12, %v9955_v13  ;;  %3584 = vmatpush.bf16.msrb.mxu2 %v9702_v24  ;;  %v3344_v13 = vpop.f32.mrf.mxu3 }
 0x1a0   :  { %v9155_v26 = vld [vmem:[#allocation2 + $0x8a8] sm:$0xf0]  ;;  %v12255_v13 = vld [vmem:[#allocation2 + $0x32c] sm:$0xf0] }
 0x1a1   :  { %v12490_v27 = vld [vmem:[#allocation2 + $0xa8c] sm:$0xf]  ;;  %v9158_v38 = vor.u32 %v12426_v25, %v9155_v26  ;;  %3597 = vmatpush.bf16.msrb.mxu3 %v9958_v29  ;;  %v12279_v25 = vld [vmem:[#allocation2 + $0x3ec] sm:$0xf0] }
 0x1a2   :  { %v9411_v30 = vld [vmem:[#allocation2 + $0xaa8] sm:$0xf0]  ;;  %v8809_v26 = vld [vmem:[#allocation2 + $0x5d0] sm:$0xf]  ;;  %v8554_v35 = vor.u32 %v12279_v25, %v8553_v23 }
 0x1a3   :  { %v12554_v31 = vld [vmem:[#allocation2 + $0xc8c] sm:$0xf]  ;;  %v9414_v41 = vor.u32 %v12490_v27, %v9411_v30  ;;  %3559 = vmatpush.bf16.msrb.mxu0 %v9158_v38  ;;  %v12343_v27 = vld [vmem:[#allocation2 + $0x5ec] sm:$0xf0] }
 0x1a4   :  { %v9667_v33 = vld [vmem:[#allocation2 + $0xca8] sm:$0xf0]  ;;  %v9065_v30 = vld [vmem:[#allocation2 + $0x7d0] sm:$0xf] }
 0x1a5   :  { %v12618_v36 = vld [vmem:[#allocation2 + $0xe8c] sm:$0xf]  ;;  %v9670_v42 = vor.u32 %v12554_v31, %v9667_v33  ;;  %3572 = vmatpush.bf16.msrb.mxu1 %v9414_v41  ;;  %v12407_v31 = vld [vmem:[#allocation2 + $0x7ec] sm:$0xf0] }
 0x1a6   :  { %v9923_v37 = vld [vmem:[#allocation2 + $0xea8] sm:$0xf0]  ;;  %v12207_v38 = vld [vmem:[#allocation2 + $0x1ac] sm:$0xf0]  ;;  %v9066_v41 = vor.u32 %v12407_v31, %v9065_v30 }
 0x1a7   :  { %v12418_v43 = vld [vmem:[#allocation2 + $0x84c] sm:$0xf]  ;;  %v9926_v48 = vor.u32 %v12618_v36, %v9923_v37  ;;  %3585 = vmatpush.bf16.msrb.mxu2 %v9670_v42  ;;  %v8810_v36 = vor.u32 %v12343_v27, %v8809_v26  ;;  %v8265_v37 = vld [vmem:[#allocation2 + $0x190] sm:$0xf]  ;;  %v3355_v26 = vpop.f32.mrf.mxu0 }
 0x1a8   :  { %v9123_v44 = vld [vmem:[#allocation2 + $0x868] sm:$0xf0]  ;;  %v12271_v42 = vld [vmem:[#allocation2 + $0x3ac] sm:$0xf0] }
 0x1a9   :  { %v12482_v45 = vld [vmem:[#allocation2 + $0xa4c] sm:$0xf]  ;;  %v9126_v53 = vor.u32 %v12418_v43, %v9123_v44  ;;  %3598 = vmatpush.bf16.msrb.mxu3 %v9926_v48  ;;  %v8777_v43 = vld [vmem:[#allocation2 + $0x590] sm:$0xf]  ;;  %v8266_v48 = vor.u32 %v12207_v38, %v8265_v37 }
 0x1aa   :  { %v9379_v49 = vld [vmem:[#allocation2 + $0xa68] sm:$0xf0]  ;;  %v12335_v44 = vld [vmem:[#allocation2 + $0x5ac] sm:$0xf0] }
 0x1ab   :  { %v12546_v50 = vld [vmem:[#allocation2 + $0xc4c] sm:$0xf]  ;;  %v9382_v56 = vor.u32 %v12482_v45, %v9379_v49  ;;  %3560 = vmatpush.bf16.msrb.mxu0 %v9126_v53  ;;  %v9033_v45 = vld [vmem:[#allocation2 + $0x790] sm:$0xf]  ;;  %v8522_v49 = vor.u32 %v12271_v42, %v8521_v40 }
 0x1ac   :  { %v9635_v51 = vld [vmem:[#allocation2 + $0xc68] sm:$0xf0]  ;;  %v9034_v53 = vor.u32 %v12399_v47, %v9033_v45  ;;  %v8969_v23 = vld [vmem:[#allocation2 + $0x710] sm:$0xf]  ;;  %v3381_v47 = vpop.f32.mrf.mxu2 }
 0x1ad   :  { %v12610_v46 = vld [vmem:[#allocation2 + $0xe4c] sm:$0xf]  ;;  %v9638_v57 = vor.u32 %v12546_v50, %v9635_v51  ;;  %3573 = vmatpush.bf16.msrb.mxu1 %v9382_v56  ;;  %v8778_v50 = vor.u32 %v12335_v44, %v8777_v43  ;;  %v8233_v51 = vld [vmem:[#allocation2 + $0x150] sm:$0xf] }
 0x1ae   :  { %v9891_v52 = vld [vmem:[#allocation2 + $0xe68] sm:$0xf0]  ;;  %v12327_v56 = vld [vmem:[#allocation2 + $0x56c] sm:$0xf0] }
 0x1af   :  { %v12410_v54 = vld [vmem:[#allocation2 + $0x80c] sm:$0xf]  ;;  %v9894_v62 = vor.u32 %v12610_v46, %v9891_v52  ;;  %3586 = vmatpush.bf16.msrb.mxu2 %v9638_v57  ;;  %v12199_v46 = vld [vmem:[#allocation2 + $0x16c] sm:$0xf0] }
 0x1b0   :  { %v9091_v55 = vld [vmem:[#allocation2 + $0x828] sm:$0xf0]  ;;  %v8489_v52 = vld [vmem:[#allocation2 + $0x350] sm:$0xf] }
 0x1b1   :  { %v12474_v58 = vld [vmem:[#allocation2 + $0xa0c] sm:$0xf]  ;;  %v9094_v24 = vor.u32 %v12410_v54, %v9091_v55  ;;  %3599 = vmatpush.bf16.msrb.mxu3 %v9894_v62  ;;  %v12263_v54 = vld [vmem:[#allocation2 + $0x36c] sm:$0xf0] }
 0x1b2   :  { %v9347_v59 = vld [vmem:[#allocation2 + $0xa28] sm:$0xf0]  ;;  %v8745_v55 = vld [vmem:[#allocation2 + $0x550] sm:$0xf] }
 0x1b3   :  { %v12538_v60 = vld [vmem:[#allocation2 + $0xc0c] sm:$0xf]  ;;  %v9350_v28 = vor.u32 %v12474_v58, %v9347_v59  ;;  %3561 = vmatpush.bf16.msrb.mxu0 %v9094_v24  ;;  %v9001_v57 = vld [vmem:[#allocation2 + $0x750] sm:$0xf]  ;;  %v8234_v59 = vor.u32 %v12199_v46, %v8233_v51  ;;  %v8746_v61 = vor.u32 %v12327_v56, %v8745_v55 }
 0x1b4   :  { %v9603_v10 = vld [vmem:[#allocation2 + $0xc28] sm:$0xf0]  ;;  %v12391_v58 = vld [vmem:[#allocation2 + $0x76c] sm:$0xf0] }
 0x1b5   :  { %v12602_v11 = vld [vmem:[#allocation2 + $0xe0c] sm:$0xf]  ;;  %v9606_v29 = vor.u32 %v12538_v60, %v9603_v10  ;;  %3574 = vmatpush.bf16.msrb.mxu1 %v9350_v28  ;;  %v8490_v60 = vor.u32 %v12263_v54, %v8489_v52  ;;  %v8201_v62 = vld [vmem:[#allocation2 + $0x110] sm:$0xf]  ;;  %v8714_v28 = vor.u32 %v12319_v18, %v8713_v14  ;;  %v3394_v54 = vpop.f32.mrf.mxu3 }
 0x1b6   :  { %v9859_v12 = vld [vmem:[#allocation2 + $0xe28] sm:$0xf0]  ;;  %3562 = vmatmul.bf16.vlgmr.msrb.gmra.mxu0 %v13395_v15  ;;  %v12191_v10 = vld [vmem:[#allocation2 + $0x12c] sm:$0xf0] }
 0x1b7   :  { %v9862_v33 = vor.u32 %v12602_v11, %v9859_v12  ;;  %3587 = vmatpush.bf16.msrb.mxu2 %v9606_v29  ;;  %3606 = vmatpush.bf16.msra.mxu0 %v8298_v34  ;;  %v8457_v11 = vld [vmem:[#allocation2 + $0x310] sm:$0xf]  ;;  %v9002_v12 = vor.u32 %v12391_v58, %v9001_v57  ;;  %v8202_v25 = vor.u32 %v12191_v10, %v8201_v62  ;;  %v3368_v34 = vpop.f32.mrf.mxu1 }
 0x1b8   :  { %3575 = vmatmul.bf16.vlgmr.msrb.gmra.mxu1 %v13403_v21  ;;  %v12383_v24 = vld [vmem:[#allocation2 + $0x72c] sm:$0xf0]  ;;  %v8458_v27 = vor.u32 %v12255_v13, %v8457_v11  ;;  %v3356_v29 = vadd.f32 %v3355_v26, %v13436_v39 }
 0x1b9   :  { %3600 = vmatpush.bf16.msrb.mxu3 %v9862_v33  ;;  %3619 = vmatpush.bf16.msra.mxu1 %v8554_v35  ;;  %v8169_v30 = vld [vmem:[#allocation2 + $0xd0] sm:$0xf]  ;;  %v8970_v35 = vor.u32 %v12383_v24, %v8969_v23 }
 0x1ba   :  { %3588 = vmatmul.bf16.vlgmr.msrb.gmra.mxu2 %v13391_v63  ;;  %v12183_v31 = vld [vmem:[#allocation2 + $0xec] sm:$0xf0]  ;;  %v3369_v42 = vadd.f32 %v3368_v34, %v3356_v29 }
 0x1bb   :  { %3632 = vmatpush.bf16.msra.mxu2 %v8810_v36  ;;  %3607 = vmatpush.bf16.msra.mxu0 %v8266_v48  ;;  %v8425_v33 = vld [vmem:[#allocation2 + $0x2d0] sm:$0xf]  ;;  %v8170_v43 = vor.u32 %v12183_v31, %v8169_v30 }
 0x1bc   :  { %3601 = vmatmul.bf16.vlgmr.msrb.gmra.mxu3 %v13399_v17  ;;  %v12247_v36 = vld [vmem:[#allocation2 + $0x2ec] sm:$0xf0]  ;;  %v3382_v51 = vadd.f32 %v3381_v47, %v3369_v42 }
 0x1bd   :  { %3645 = vmatpush.bf16.msra.mxu3 %v9066_v41  ;;  %3620 = vmatpush.bf16.msra.mxu1 %v8522_v49  ;;  %v8681_v37 = vld [vmem:[#allocation2 + $0x4d0] sm:$0xf]  ;;  %v8426_v44 = vor.u32 %v12247_v36, %v8425_v33 }
 0x1be   :  { %v12311_v38 = vld [vmem:[#allocation2 + $0x4ec] sm:$0xf0]  ;;  %v3395_v58 = vadd.f32 %v3394_v54, %v3382_v51 }
 0x1bf   :  { %3633 = vmatpush.bf16.msra.mxu2 %v8778_v50  ;;  %3608 = vmatpush.bf16.msra.mxu0 %v8234_v59  ;;  %v8937_v40 = vld [vmem:[#allocation2 + $0x6d0] sm:$0xf]  ;;  %v8682_v45 = vor.u32 %v12311_v38, %v8681_v37  ;;  %v3370_v14 = vpop.f32.mrf.mxu1  ;;  %v3383_v37 = vpop.f32.mrf.mxu2 }
 0x1c0   :  { %v12375_v41 = vld [vmem:[#allocation2 + $0x6ec] sm:$0xf0]  ;;  %vm4023_vm1 = vcmp.ge.f32.partialorder %v3395_v58, 0.0  ;;  %v4031_v23 = vmul.f32 0.01, %v3395_v58 }
 0x1c1   :  { %3646 = vmatpush.bf16.msra.mxu3 %v9034_v53  ;;  %3621 = vmatpush.bf16.msra.mxu1 %v8490_v60  ;;  %v8137_v39 = vld [vmem:[#allocation2 + $0x90] sm:$0xf]  ;;  %v8938_v50 = vor.u32 %v12375_v41, %v8937_v40 }
 0x1c2   :  { %v12175_v48 = vld [vmem:[#allocation2 + $0xac] sm:$0xf0] }
 0x1c3   :  { %3634 = vmatpush.bf16.msra.mxu2 %v8746_v61  ;;  %3609 = vmatpush.bf16.msra.mxu0 %v8202_v25  ;;  %v8393_v49 = vld [vmem:[#allocation2 + $0x290] sm:$0xf]  ;;  %v8138_v57 = vor.u32 %v12175_v48, %v8137_v39  ;;  %v3357_v61 = vpop.f32.mrf.mxu0 }
 0x1c4   :  { %v12239_v46 = vld [vmem:[#allocation2 + $0x2ac] sm:$0xf0] }
 0x1c5   :  { %3647 = vmatpush.bf16.msra.mxu3 %v9002_v12  ;;  %3622 = vmatpush.bf16.msra.mxu1 %v8458_v27  ;;  %v8649_v52 = vld [vmem:[#allocation2 + $0x490] sm:$0xf]  ;;  %v8394_v62 = vor.u32 %v12239_v46, %v8393_v49  ;;  %v13443_v27 = vsel %vm4023_vm1, %v3395_v58, %v4031_v23 }
 0x1c6   :  { %v12303_v53 = vld [vmem:[#allocation2 + $0x4ac] sm:$0xf0] }
 0x1c7   :  { %3635 = vmatpush.bf16.msra.mxu2 %v8714_v28  ;;  %v8905_v55 = vld [vmem:[#allocation2 + $0x690] sm:$0xf]  ;;  %3610 = vmatpush.bf16.msra.mxu0 %v8170_v43  ;;  %v8650_v10 = vor.u32 %v12303_v53, %v8649_v52  ;;  %v3396_v43 = vpop.f32.mrf.mxu3 }
 0x1c8   :  { %v12367_v56 = vld [vmem:[#allocation2 + $0x6ac] sm:$0xf0] }
 0x1c9   :  { %3648 = vmatpush.bf16.msra.mxu3 %v8970_v35  ;;  %v8105_v59 = vld [vmem:[#allocation2 + $0x50] sm:$0xf]  ;;  %3623 = vmatpush.bf16.msra.mxu1 %v8426_v44  ;;  %v8906_v18 = vor.u32 %v12367_v56, %v8905_v55 }
 0x1ca   :  { %v12167_v60 = vld [vmem:[#allocation2 + $0x6c] sm:$0xf0] }
 0x1cb   :  { %3636 = vmatpush.bf16.msra.mxu2 %v8682_v45  ;;  %v8361_v11 = vld [vmem:[#allocation2 + $0x250] sm:$0xf]  ;;  %3611 = vmatpush.bf16.msra.mxu0 %v8138_v57  ;;  %v8106_v28 = vor.u32 %v12167_v60, %v8105_v59 }
 0x1cc   :  { %v12231_v12 = vld [vmem:[#allocation2 + $0x26c] sm:$0xf0] }
 0x1cd   :  { %v8617_v13 = vld [vmem:[#allocation2 + $0x450] sm:$0xf]  ;;  %3649 = vmatpush.bf16.msra.mxu3 %v8938_v50  ;;  %3624 = vmatpush.bf16.msra.mxu1 %v8394_v62  ;;  %v8362_v31 = vor.u32 %v12231_v12, %v8361_v11 }
 0x1ce   :  { %v12295_v24 = vld [vmem:[#allocation2 + $0x46c] sm:$0xf0] }
 0x1cf   :  { %v8873_v25 = vld [vmem:[#allocation2 + $0x650] sm:$0xf]  ;;  %3637 = vmatpush.bf16.msra.mxu2 %v8650_v10  ;;  %v8618_v33 = vor.u32 %v12295_v24, %v8617_v13  ;;  %3612 = vmatpush.bf16.msra.mxu0 %v8106_v28  ;;  %v608_v28 = vperm.slane %v13365_v8, 4 }
 0x1d0   :  { %v12359_v26 = vld [vmem:[#allocation2 + $0x66c] sm:$0xf0] }
 0x1d1   :  { %v8073_v29 = vld [vmem:[#allocation2 + $0x10] sm:$0xf]  ;;  %3650 = vmatpush.bf16.msra.mxu3 %v8906_v18  ;;  %v8874_v38 = vor.u32 %v12359_v26, %v8873_v25  ;;  %3625 = vmatpush.bf16.msra.mxu1 %v8362_v31  ;;  %v624_v43 = vperm.slane %v608_v28, 0 }
 0x1d2   :  { %v12159_v30 = vld [vmem:[#allocation2 + $0x2c] sm:$0xf0] }
 0x1d3   :  { %v8329_v34 = vld [vmem:[#allocation2 + $0x210] sm:$0xf]  ;;  %v8074_v39 = vor.u32 %v12159_v30, %v8073_v29  ;;  %3638 = vmatpush.bf16.msra.mxu2 %v8618_v33 }
 0x1d4   :  { %v12223_v35 = vld [vmem:[#allocation2 + $0x22c] sm:$0xf0] }
 0x1d5   :  { %v8585_v36 = vld [vmem:[#allocation2 + $0x410] sm:$0xf]  ;;  %v8330_v51 = vor.u32 %v12223_v35, %v8329_v34  ;;  %3651 = vmatpush.bf16.msra.mxu3 %v8874_v38  ;;  %3613 = vmatpush.bf16.msra.mxu0 %v8074_v39 }
 0x1d6   :  { %v12287_v40 = vld [vmem:[#allocation2 + $0x42c] sm:$0xf0] }
 0x1d7   :  { %v8841_v41 = vld [vmem:[#allocation2 + $0x610] sm:$0xf]  ;;  %v8586_v46 = vor.u32 %v12287_v40, %v8585_v36  ;;  %3626 = vmatpush.bf16.msra.mxu1 %v8330_v51  ;;  %v3407_v51 = vpop.f32.mrf.mxu0 }
 0x1d8   :  { %v12351_v42 = vld [vmem:[#allocation2 + $0x62c] sm:$0xf0]  ;;  %3614 = vmatmul.bf16.vlgmr.msra.gmra.mxu0 %v13375_v19 }
 0x1d9   :  { %v9321_v44 = vld [vmem:[#allocation2 + $0x9d0] sm:$0xf]  ;;  %v8842_v54 = vor.u32 %v12351_v42, %v8841_v41  ;;  %3639 = vmatpush.bf16.msra.mxu2 %v8586_v46 }
 0x1da   :  { %v12471_v45 = vld [vmem:[#allocation2 + $0x9ec] sm:$0xf0]  ;;  %3627 = vmatmul.bf16.vlgmr.msra.gmra.mxu1 %v13383_v22 }
 0x1db   :  { %v9577_v47 = vld [vmem:[#allocation2 + $0xbd0] sm:$0xf]  ;;  %v9322_v55 = vor.u32 %v12471_v45, %v9321_v44  ;;  %3652 = vmatpush.bf16.msra.mxu3 %v8842_v54 }
 0x1dc   :  { %v12535_v48 = vld [vmem:[#allocation2 + $0xbec] sm:$0xf0]  ;;  %3640 = vmatmul.bf16.vlgmr.msra.gmra.mxu2 %v13371_v16 }
 0x1dd   :  { %v9833_v49 = vld [vmem:[#allocation2 + $0xdd0] sm:$0xf]  ;;  %v9578_v56 = vor.u32 %v12535_v48, %v9577_v47  ;;  %3658 = vmatpush.bf16.msrb.mxu0 %v9322_v55 }
 0x1de   :  { %v12599_v50 = vld [vmem:[#allocation2 + $0xdec] sm:$0xf0]  ;;  %3653 = vmatmul.bf16.vlgmr.msra.gmra.mxu3 %v13379_v20 }
 0x1df   :  { %v10089_v52 = vld [vmem:[#allocation2 + $0xfd0] sm:$0xf]  ;;  %v9834_v57 = vor.u32 %v12599_v50, %v9833_v49  ;;  %3671 = vmatpush.bf16.msrb.mxu1 %v9578_v56  ;;  %v3408_v56 = vadd.f32 %v3407_v51, %v624_v43 }
 0x1e0   :  { %v12663_v53 = vld [vmem:[#allocation2 + $0xfec] sm:$0xf0] }
 0x1e1   :  { %v9289_v58 = vld [vmem:[#allocation2 + $0x990] sm:$0xf]  ;;  %v10090_v61 = vor.u32 %v12663_v53, %v10089_v52  ;;  %3684 = vmatpush.bf16.msrb.mxu2 %v9834_v57  ;;  %v3420_v57 = vpop.f32.mrf.mxu1 }
 0x1e2   :  { %v12463_v59 = vld [vmem:[#allocation2 + $0x9ac] sm:$0xf0] }
 0x1e3   :  { %v9545_v60 = vld [vmem:[#allocation2 + $0xb90] sm:$0xf]  ;;  %v9290_v14 = vor.u32 %v12463_v59, %v9289_v58  ;;  %3697 = vmatpush.bf16.msrb.mxu3 %v10090_v61 }
 0x1e4   :  { %v12527_v62 = vld [vmem:[#allocation2 + $0xbac] sm:$0xf0] }
 0x1e5   :  { %v9801_v10 = vld [vmem:[#allocation2 + $0xd90] sm:$0xf]  ;;  %v9546_v23 = vor.u32 %v12527_v62, %v9545_v60  ;;  %3659 = vmatpush.bf16.msrb.mxu0 %v9290_v14 }
 0x1e6   :  { %v12591_v11 = vld [vmem:[#allocation2 + $0xdac] sm:$0xf0] }
 0x1e7   :  { %v10057_v12 = vld [vmem:[#allocation2 + $0xf90] sm:$0xf]  ;;  %v9802_v24 = vor.u32 %v12591_v11, %v9801_v10  ;;  %3672 = vmatpush.bf16.msrb.mxu1 %v9546_v23  ;;  %v3421_v11 = vadd.f32 %v3420_v57, %v3408_v56 }
 0x1e8   :  { %v12655_v13 = vld [vmem:[#allocation2 + $0xfac] sm:$0xf0] }
 0x1e9   :  { %v9257_v18 = vld [vmem:[#allocation2 + $0x950] sm:$0xf]  ;;  %v10058_v29 = vor.u32 %v12655_v13, %v10057_v12  ;;  %3685 = vmatpush.bf16.msrb.mxu2 %v9802_v24 }
 0x1ea   :  { %v12455_v25 = vld [vmem:[#allocation2 + $0x96c] sm:$0xf0] }
 0x1eb   :  { %v9513_v26 = vld [vmem:[#allocation2 + $0xb50] sm:$0xf]  ;;  %v9258_v36 = vor.u32 %v12455_v25, %v9257_v18  ;;  %3698 = vmatpush.bf16.msrb.mxu3 %v10058_v29  ;;  %v3433_v25 = vpop.f32.mrf.mxu2 }
 0x1ec   :  { %v12519_v30 = vld [vmem:[#allocation2 + $0xb6c] sm:$0xf0] }
 0x1ed   :  { %v9769_v31 = vld [vmem:[#allocation2 + $0xd50] sm:$0xf]  ;;  %v9514_v38 = vor.u32 %v12519_v30, %v9513_v26  ;;  %3660 = vmatpush.bf16.msrb.mxu0 %v9258_v36 }
 0x1ee   :  { %v12583_v33 = vld [vmem:[#allocation2 + $0xd6c] sm:$0xf0] }
 0x1ef   :  { %v10025_v34 = vld [vmem:[#allocation2 + $0xf50] sm:$0xf]  ;;  %v9770_v40 = vor.u32 %v12583_v33, %v9769_v31  ;;  %3673 = vmatpush.bf16.msrb.mxu1 %v9514_v38  ;;  %v3434_v31 = vadd.f32 %v3433_v25, %v3421_v11  ;;  %v3446_v33 = vpop.f32.mrf.mxu3  ;;  %v3409_v38 = vpop.f32.mrf.mxu0  ;;  %v8811_v25 = vld [vmem:[#allocation2 + $0x5f0] sm:$0xf0] }
 0x1f0   :  { %v12647_v35 = vld [vmem:[#allocation2 + $0xf6c] sm:$0xf0]  ;;  %v8267_v38 = vld [vmem:[#allocation2 + $0x1b0] sm:$0xf0] }
 0x1f1   :  { %v9225_v37 = vld [vmem:[#allocation2 + $0x910] sm:$0xf]  ;;  %v10026_v44 = vor.u32 %v12647_v35, %v10025_v34  ;;  %3686 = vmatpush.bf16.msrb.mxu2 %v9770_v40 }
 0x1f2   :  { %v12447_v41 = vld [vmem:[#allocation2 + $0x92c] sm:$0xf0] }
 0x1f3   :  { %v9481_v42 = vld [vmem:[#allocation2 + $0xb10] sm:$0xf]  ;;  %v9226_v50 = vor.u32 %v12447_v41, %v9225_v37  ;;  %3699 = vmatpush.bf16.msrb.mxu3 %v10026_v44  ;;  %v13450_v37 = vadd.f32 %v3446_v33, %v3434_v31 }
 0x1f4   :  { %v12511_v45 = vld [vmem:[#allocation2 + $0xb2c] sm:$0xf0] }
 0x1f5   :  { %v9737_v47 = vld [vmem:[#allocation2 + $0xd10] sm:$0xf]  ;;  %v9482_v46 = vor.u32 %v12511_v45, %v9481_v42  ;;  %3661 = vmatpush.bf16.msrb.mxu0 %v9226_v50  ;;  %v3422_v45 = vpop.f32.mrf.mxu1 }
 0x1f6   :  { %v12575_v39 = vld [vmem:[#allocation2 + $0xd2c] sm:$0xf0]  ;;  %v12395_v45 = vld [vmem:[#allocation2 + $0x794] sm:$0xf] }
 0x1f7   :  { %v9993_v48 = vld [vmem:[#allocation2 + $0xf10] sm:$0xf]  ;;  %v9738_v52 = vor.u32 %v12575_v39, %v9737_v47  ;;  %3674 = vmatpush.bf16.msrb.mxu1 %v9482_v46  ;;  %v3448_v11 = vpop.f32.mrf.mxu3 }
 0x1f8   :  { %v12639_v49 = vld [vmem:[#allocation2 + $0xf2c] sm:$0xf0] }
 0x1f9   :  { %v9193_v53 = vld [vmem:[#allocation2 + $0x8d0] sm:$0xf]  ;;  %v9994_v58 = vor.u32 %v12639_v49, %v9993_v48  ;;  %3687 = vmatpush.bf16.msrb.mxu2 %v9738_v52 }
 0x1fa   :  { %v12439_v54 = vld [vmem:[#allocation2 + $0x8ec] sm:$0xf0] }
 0x1fb   :  { %v9449_v55 = vld [vmem:[#allocation2 + $0xad0] sm:$0xf]  ;;  %v9194_v12 = vor.u32 %v12439_v54, %v9193_v53  ;;  %3700 = vmatpush.bf16.msrb.mxu3 %v9994_v58 }
 0x1fc   :  { %v12503_v59 = vld [vmem:[#allocation2 + $0xaec] sm:$0xf0] }
 0x1fd   :  { %v9705_v60 = vld [vmem:[#allocation2 + $0xcd0] sm:$0xf]  ;;  %v9450_v13 = vor.u32 %v12503_v59, %v9449_v55  ;;  %3662 = vmatpush.bf16.msrb.mxu0 %v9194_v12  ;;  %v3435_v59 = vpop.f32.mrf.mxu2  ;;  %v12211_v12 = vld [vmem:[#allocation2 + $0x1d4] sm:$0xf] }
 0x1fe   :  { %v12567_v61 = vld [vmem:[#allocation2 + $0xcec] sm:$0xf0] }
 0x1ff   :  { %v9961_v62 = vld [vmem:[#allocation2 + $0xed0] sm:$0xf]  ;;  %v9706_v14 = vor.u32 %v12567_v61, %v9705_v60  ;;  %3675 = vmatpush.bf16.msrb.mxu1 %v9450_v13  ;;  %v8299_v13 = vld [vmem:[#allocation2 + $0x1f0] sm:$0xf0] }
 0x200   :  { %v12631_v10 = vld [vmem:[#allocation2 + $0xeec] sm:$0xf0]  ;;  %v8302_v33 = vor.u32 %v12211_v12, %v8299_v13  ;;  %v8459_v12 = vld [vmem:[#allocation2 + $0x330] sm:$0xf0] }
 0x201   :  { %v9161_v18 = vld [vmem:[#allocation2 + $0x890] sm:$0xf]  ;;  %v9962_v26 = vor.u32 %v12631_v10, %v9961_v62  ;;  %3688 = vmatpush.bf16.msrb.mxu2 %v9706_v14  ;;  %v12275_v14 = vld [vmem:[#allocation2 + $0x3d4] sm:$0xf] }
 0x202   :  { %v12431_v23 = vld [vmem:[#allocation2 + $0x8ac] sm:$0xf0]  ;;  %v12315_v13 = vld [vmem:[#allocation2 + $0x514] sm:$0xf] }
 0x203   :  { %v9417_v24 = vld [vmem:[#allocation2 + $0xa90] sm:$0xf]  ;;  %v9162_v36 = vor.u32 %v12431_v23, %v9161_v18  ;;  %3701 = vmatpush.bf16.msrb.mxu3 %v9962_v26  ;;  %v8555_v23 = vld [vmem:[#allocation2 + $0x3f0] sm:$0xf0] }
 0x204   :  { %v12495_v28 = vld [vmem:[#allocation2 + $0xaac] sm:$0xf0] }
 0x205   :  { %v9673_v29 = vld [vmem:[#allocation2 + $0xc90] sm:$0xf]  ;;  %v9418_v40 = vor.u32 %v12495_v28, %v9417_v24  ;;  %3663 = vmatpush.bf16.msrb.mxu0 %v9162_v36  ;;  %v12339_v24 = vld [vmem:[#allocation2 + $0x5d4] sm:$0xf] }
 0x206   :  { %v12559_v30 = vld [vmem:[#allocation2 + $0xcac] sm:$0xf0]  ;;  %v12203_v36 = vld [vmem:[#allocation2 + $0x194] sm:$0xf] }
 0x207   :  { %v9929_v34 = vld [vmem:[#allocation2 + $0xe90] sm:$0xf]  ;;  %v9674_v41 = vor.u32 %v12559_v30, %v9673_v29  ;;  %3676 = vmatpush.bf16.msrb.mxu1 %v9418_v40  ;;  %v12403_v29 = vld [vmem:[#allocation2 + $0x7d4] sm:$0xf] }
 0x208   :  { %v12623_v35 = vld [vmem:[#allocation2 + $0xeac] sm:$0xf0]  ;;  %v9067_v30 = vld [vmem:[#allocation2 + $0x7f0] sm:$0xf0] }
 0x209   :  { %v9129_v42 = vld [vmem:[#allocation2 + $0x850] sm:$0xf]  ;;  %v9930_v47 = vor.u32 %v12623_v35, %v9929_v34  ;;  %3689 = vmatpush.bf16.msrb.mxu2 %v9674_v41  ;;  %v8558_v34 = vor.u32 %v12275_v14, %v8555_v23  ;;  %v8814_v35 = vor.u32 %v12339_v24, %v8811_v25  ;;  %v12267_v40 = vld [vmem:[#allocation2 + $0x394] sm:$0xf]  ;;  %v9070_v41 = vor.u32 %v12403_v29, %v9067_v30  ;;  %v3459_v25 = vpop.f32.mrf.mxu0 }
 0x20a   :  { %v12423_v43 = vld [vmem:[#allocation2 + $0x86c] sm:$0xf0]  ;;  %v8715_v14 = vld [vmem:[#allocation2 + $0x530] sm:$0xf0]  ;;  %v3460_v29 = vadd.f32 %v3459_v25, %v13450_v37 }
 0x20b   :  { %v9385_v44 = vld [vmem:[#allocation2 + $0xa50] sm:$0xf]  ;;  %v9130_v46 = vor.u32 %v12423_v43, %v9129_v42  ;;  %3702 = vmatpush.bf16.msrb.mxu3 %v9930_v47  ;;  %v8523_v42 = vld [vmem:[#allocation2 + $0x3b0] sm:$0xf0] }
 0x20c   :  { %v12487_v39 = vld [vmem:[#allocation2 + $0xa6c] sm:$0xf0]  ;;  %v12331_v43 = vld [vmem:[#allocation2 + $0x594] sm:$0xf] }
 0x20d   :  { %v9641_v48 = vld [vmem:[#allocation2 + $0xc50] sm:$0xf]  ;;  %v9386_v54 = vor.u32 %v12487_v39, %v9385_v44  ;;  %3664 = vmatpush.bf16.msrb.mxu0 %v9130_v46  ;;  %v8779_v44 = vld [vmem:[#allocation2 + $0x5b0] sm:$0xf0]  ;;  %v8270_v39 = vor.u32 %v12203_v36, %v8267_v38 }
 0x20e   :  { %v12551_v49 = vld [vmem:[#allocation2 + $0xc6c] sm:$0xf0]  ;;  %v9035_v47 = vld [vmem:[#allocation2 + $0x7b0] sm:$0xf0] }
 0x20f   :  { %v9897_v50 = vld [vmem:[#allocation2 + $0xe50] sm:$0xf]  ;;  %v9642_v55 = vor.u32 %v12551_v49, %v9641_v48  ;;  %3677 = vmatpush.bf16.msrb.mxu1 %v9386_v54  ;;  %v8526_v48 = vor.u32 %v12267_v40, %v8523_v42  ;;  %v8782_v49 = vor.u32 %v12331_v43, %v8779_v44  ;;  %v12259_v46 = vld [vmem:[#allocation2 + $0x354] sm:$0xf] }
 0x210   :  { %v12615_v51 = vld [vmem:[#allocation2 + $0xe6c] sm:$0xf0]  ;;  %v12323_v54 = vld [vmem:[#allocation2 + $0x554] sm:$0xf] }
 0x211   :  { %v9097_v52 = vld [vmem:[#allocation2 + $0x810] sm:$0xf]  ;;  %v9898_v60 = vor.u32 %v12615_v51, %v9897_v50  ;;  %3690 = vmatpush.bf16.msrb.mxu2 %v9642_v55  ;;  %v12195_v50 = vld [vmem:[#allocation2 + $0x154] sm:$0xf] }
 0x212   :  { %v12415_v53 = vld [vmem:[#allocation2 + $0x82c] sm:$0xf0]  ;;  %v8235_v51 = vld [vmem:[#allocation2 + $0x170] sm:$0xf0] }
 0x213   :  { %v9353_v56 = vld [vmem:[#allocation2 + $0xa10] sm:$0xf]  ;;  %v9098_v18 = vor.u32 %v12415_v53, %v9097_v52  ;;  %3703 = vmatpush.bf16.msrb.mxu3 %v9898_v60  ;;  %v9038_v52 = vor.u32 %v12395_v45, %v9035_v47  ;;  %v8491_v53 = vld [vmem:[#allocation2 + $0x370] sm:$0xf0] }
 0x214   :  { %v12479_v57 = vld [vmem:[#allocation2 + $0xa2c] sm:$0xf0]  ;;  %v8747_v55 = vld [vmem:[#allocation2 + $0x570] sm:$0xf0]  ;;  %v8494_v59 = vor.u32 %v12259_v46, %v8491_v53 }
 0x215   :  { %v9609_v58 = vld [vmem:[#allocation2 + $0xc10] sm:$0xf]  ;;  %v9354_v26 = vor.u32 %v12479_v57, %v9353_v56  ;;  %3665 = vmatpush.bf16.msrb.mxu0 %v9098_v18  ;;  %v12387_v56 = vld [vmem:[#allocation2 + $0x754] sm:$0xf]  ;;  %v8750_v60 = vor.u32 %v12323_v54, %v8747_v55  ;;  %v3498_v54 = vpop.f32.mrf.mxu3 }
 0x216   :  { %v12543_v61 = vld [vmem:[#allocation2 + $0xc2c] sm:$0xf0]  ;;  %v9003_v57 = vld [vmem:[#allocation2 + $0x770] sm:$0xf0] }
 0x217   :  { %v9865_v62 = vld [vmem:[#allocation2 + $0xe10] sm:$0xf]  ;;  %v9610_v28 = vor.u32 %v12543_v61, %v9609_v58  ;;  %3678 = vmatpush.bf16.msrb.mxu1 %v9354_v26  ;;  %v8238_v58 = vor.u32 %v12195_v50, %v8235_v51  ;;  %v12187_v61 = vld [vmem:[#allocation2 + $0x114] sm:$0xf]  ;;  %v9006_v11 = vor.u32 %v12387_v56, %v9003_v57 }
 0x218   :  { %v12607_v10 = vld [vmem:[#allocation2 + $0xe2c] sm:$0xf0]  ;;  %3666 = vmatmul.bf16.vlgmr.msrb.gmra.mxu0 %v13395_v15  ;;  %v12379_v18 = vld [vmem:[#allocation2 + $0x714] sm:$0xf] }
 0x219   :  { %v9866_v31 = vor.u32 %v12607_v10, %v9865_v62  ;;  %3691 = vmatpush.bf16.msrb.mxu2 %v9610_v28  ;;  %3710 = vmatpush.bf16.msra.mxu0 %v8302_v33  ;;  %v8203_v62 = vld [vmem:[#allocation2 + $0x130] sm:$0xf0]  ;;  %v8718_v28 = vor.u32 %v12315_v13, %v8715_v14 }
 0x21a   :  { %3679 = vmatmul.bf16.vlgmr.msrb.gmra.mxu1 %v13403_v21  ;;  %v12251_v10 = vld [vmem:[#allocation2 + $0x314] sm:$0xf]  ;;  %v8206_v24 = vor.u32 %v12187_v61, %v8203_v62  ;;  %v3461_v61 = vpop.f32.mrf.mxu0 }
 0x21b   :  { %3704 = vmatpush.bf16.msrb.mxu3 %v9866_v31  ;;  %3723 = vmatpush.bf16.msra.mxu1 %v8558_v34  ;;  %v8971_v23 = vld [vmem:[#allocation2 + $0x730] sm:$0xf0]  ;;  %v8462_v26 = vor.u32 %v12251_v10, %v8459_v12  ;;  %v3472_v34 = vpop.f32.mrf.mxu1 }
 0x21c   :  { %3692 = vmatmul.bf16.vlgmr.msrb.gmra.mxu2 %v13391_v63  ;;  %v12179_v30 = vld [vmem:[#allocation2 + $0xd4] sm:$0xf]  ;;  %v3473_v43 = vadd.f32 %v3472_v34, %v3460_v29 }
 0x21d   :  { %3736 = vmatpush.bf16.msra.mxu2 %v8814_v35  ;;  %3711 = vmatpush.bf16.msra.mxu0 %v8270_v39  ;;  %v8171_v31 = vld [vmem:[#allocation2 + $0xf0] sm:$0xf0]  ;;  %v8974_v35 = vor.u32 %v12379_v18, %v8971_v23  ;;  %v3485_v39 = vpop.f32.mrf.mxu2 }
 0x21e   :  { %3705 = vmatmul.bf16.vlgmr.msrb.gmra.mxu3 %v13399_v17  ;;  %v12243_v33 = vld [vmem:[#allocation2 + $0x2d4] sm:$0xf]  ;;  %v8174_v44 = vor.u32 %v12179_v30, %v8171_v31  ;;  %v3486_v51 = vadd.f32 %v3485_v39, %v3473_v43 }
 0x21f   :  { %3749 = vmatpush.bf16.msra.mxu3 %v9070_v41  ;;  %3724 = vmatpush.bf16.msra.mxu1 %v8526_v48  ;;  %v8427_v36 = vld [vmem:[#allocation2 + $0x2f0] sm:$0xf0] }
 0x220   :  { %v12307_v38 = vld [vmem:[#allocation2 + $0x4d4] sm:$0xf]  ;;  %v8430_v45 = vor.u32 %v12243_v33, %v8427_v36 }
 0x221   :  { %3737 = vmatpush.bf16.msra.mxu2 %v8782_v49  ;;  %3712 = vmatpush.bf16.msra.mxu0 %v8238_v58  ;;  %v8683_v40 = vld [vmem:[#allocation2 + $0x4f0] sm:$0xf0]  ;;  %v3499_v58 = vadd.f32 %v3498_v54, %v3486_v51 }
 0x222   :  { %v12371_v41 = vld [vmem:[#allocation2 + $0x6d4] sm:$0xf]  ;;  %v8686_v47 = vor.u32 %v12307_v38, %v8683_v40 }
 0x223   :  { %3750 = vmatpush.bf16.msra.mxu3 %v9038_v52  ;;  %3725 = vmatpush.bf16.msra.mxu1 %v8494_v59  ;;  %v8939_v42 = vld [vmem:[#allocation2 + $0x6f0] sm:$0xf0]  ;;  %v3474_v14 = vpop.f32.mrf.mxu1  ;;  %vm4024_vm2 = vcmp.ge.f32.partialorder %v3499_v58, 0.0  ;;  %v4032_v23 = vmul.f32 0.01, %v3499_v58 }
 0x224   :  { %v12171_v37 = vld [vmem:[#allocation2 + $0x94] sm:$0xf]  ;;  %v8942_v50 = vor.u32 %v12371_v41, %v8939_v42 }
 0x225   :  { %3738 = vmatpush.bf16.msra.mxu2 %v8750_v60  ;;  %3713 = vmatpush.bf16.msra.mxu0 %v8206_v24  ;;  %v8139_v48 = vld [vmem:[#allocation2 + $0xb0] sm:$0xf0]  ;;  %v3487_v40 = vpop.f32.mrf.mxu2 }
 0x226   :  { %v12235_v49 = vld [vmem:[#allocation2 + $0x294] sm:$0xf]  ;;  %v8142_v57 = vor.u32 %v12171_v37, %v8139_v48 }
 0x227   :  { %3751 = vmatpush.bf16.msra.mxu3 %v9006_v11  ;;  %3726 = vmatpush.bf16.msra.mxu1 %v8462_v26  ;;  %v8395_v46 = vld [vmem:[#allocation2 + $0x2b0] sm:$0xf0] }
 0x228   :  { %v12299_v52 = vld [vmem:[#allocation2 + $0x494] sm:$0xf]  ;;  %v8398_v62 = vor.u32 %v12235_v49, %v8395_v46 }
 0x229   :  { %3739 = vmatpush.bf16.msra.mxu2 %v8718_v28  ;;  %v8651_v53 = vld [vmem:[#allocation2 + $0x4b0] sm:$0xf0]  ;;  %3714 = vmatpush.bf16.msra.mxu0 %v8174_v44  ;;  %v13457_v28 = vsel %vm4024_vm2, %v3499_v58, %v4032_v23 }
 0x22a   :  { %v12363_v55 = vld [vmem:[#allocation2 + $0x694] sm:$0xf]  ;;  %v8654_v10 = vor.u32 %v12299_v52, %v8651_v53 }
 0x22b   :  { %3752 = vmatpush.bf16.msra.mxu3 %v8974_v35  ;;  %v8907_v56 = vld [vmem:[#allocation2 + $0x6b0] sm:$0xf0]  ;;  %3727 = vmatpush.bf16.msra.mxu1 %v8430_v45  ;;  %v3500_v45 = vpop.f32.mrf.mxu3 }
 0x22c   :  { %v12163_v59 = vld [vmem:[#allocation2 + $0x54] sm:$0xf]  ;;  %v8910_v18 = vor.u32 %v12363_v55, %v8907_v56 }
 0x22d   :  { %v8107_v60 = vld [vmem:[#allocation2 + $0x70] sm:$0xf0]  ;;  %3740 = vmatpush.bf16.msra.mxu2 %v8686_v47  ;;  %3715 = vmatpush.bf16.msra.mxu0 %v8142_v57 }
 0x22e   :  { %v12227_v11 = vld [vmem:[#allocation2 + $0x254] sm:$0xf]  ;;  %v8110_v29 = vor.u32 %v12163_v59, %v8107_v60 }
 0x22f   :  { %v8363_v12 = vld [vmem:[#allocation2 + $0x270] sm:$0xf0]  ;;  %3753 = vmatpush.bf16.msra.mxu3 %v8942_v50  ;;  %3728 = vmatpush.bf16.msra.mxu1 %v8398_v62 }
 0x230   :  { %v12291_v13 = vld [vmem:[#allocation2 + $0x454] sm:$0xf]  ;;  %v8366_v33 = vor.u32 %v12227_v11, %v8363_v12 }
 0x231   :  { %v8619_v24 = vld [vmem:[#allocation2 + $0x470] sm:$0xf0]  ;;  %3741 = vmatpush.bf16.msra.mxu2 %v8654_v10  ;;  %3716 = vmatpush.bf16.msra.mxu0 %v8110_v29 }
 0x232   :  { %v12355_v25 = vld [vmem:[#allocation2 + $0x654] sm:$0xf]  ;;  %v8622_v34 = vor.u32 %v12291_v13, %v8619_v24 }
 0x233   :  { %v8875_v26 = vld [vmem:[#allocation2 + $0x670] sm:$0xf0]  ;;  %3754 = vmatpush.bf16.msra.mxu3 %v8910_v18  ;;  %3729 = vmatpush.bf16.msra.mxu1 %v8366_v33 }
 0x234   :  { %v12155_v30 = vld [vmem:[#allocation2 + $0x14] sm:$0xf]  ;;  %v8878_v41 = vor.u32 %v12355_v25, %v8875_v26 }
 0x235   :  { %v8075_v31 = vld [vmem:[#allocation2 + $0x30] sm:$0xf0]  ;;  %3742 = vmatpush.bf16.msra.mxu2 %v8622_v34 }
 0x236   :  { %v12219_v35 = vld [vmem:[#allocation2 + $0x214] sm:$0xf]  ;;  %v8078_v48 = vor.u32 %v12155_v30, %v8075_v31  ;;  %v609_v30 = vperm.slane %v13365_v8, 6 }
 0x237   :  { %v8331_v36 = vld [vmem:[#allocation2 + $0x230] sm:$0xf0]  ;;  %3755 = vmatpush.bf16.msra.mxu3 %v8878_v41 }
 0x238   :  { %v12283_v38 = vld [vmem:[#allocation2 + $0x414] sm:$0xf]  ;;  %v8334_v46 = vor.u32 %v12219_v35, %v8331_v36  ;;  %3717 = vmatpush.bf16.msra.mxu0 %v8078_v48 }
 0x239   :  { %v8587_v42 = vld [vmem:[#allocation2 + $0x430] sm:$0xf0] }
 0x23a   :  { %v12347_v43 = vld [vmem:[#allocation2 + $0x614] sm:$0xf]  ;;  %v8590_v52 = vor.u32 %v12283_v38, %v8587_v42  ;;  %3730 = vmatpush.bf16.msra.mxu1 %v8334_v46 }
 0x23b   :  { %v8843_v44 = vld [vmem:[#allocation2 + $0x630] sm:$0xf0]  ;;  %3718 = vmatmul.bf16.vlgmr.msra.gmra.mxu0 %v13375_v19 }
 0x23c   :  { %v12467_v47 = vld [vmem:[#allocation2 + $0x9d4] sm:$0xf]  ;;  %v8846_v55 = vor.u32 %v12347_v43, %v8843_v44  ;;  %3743 = vmatpush.bf16.msra.mxu2 %v8590_v52  ;;  %v3511_v52 = vpop.f32.mrf.mxu0 }
 0x23d   :  { %v9323_v39 = vld [vmem:[#allocation2 + $0x9f0] sm:$0xf0]  ;;  %3731 = vmatmul.bf16.vlgmr.msra.gmra.mxu1 %v13383_v22 }
 0x23e   :  { %v12531_v37 = vld [vmem:[#allocation2 + $0xbd4] sm:$0xf]  ;;  %v9326_v56 = vor.u32 %v12467_v47, %v9323_v39  ;;  %3756 = vmatpush.bf16.msra.mxu3 %v8846_v55  ;;  %v625_v47 = vperm.slane %v609_v30, 0 }
 0x23f   :  { %v9579_v49 = vld [vmem:[#allocation2 + $0xbf0] sm:$0xf0]  ;;  %3744 = vmatmul.bf16.vlgmr.msra.gmra.mxu2 %v13371_v16 }
 0x240   :  { %v12595_v50 = vld [vmem:[#allocation2 + $0xdd4] sm:$0xf]  ;;  %v9582_v57 = vor.u32 %v12531_v37, %v9579_v49  ;;  %3762 = vmatpush.bf16.msrb.mxu0 %v9326_v56 }
 0x241   :  { %v9835_v51 = vld [vmem:[#allocation2 + $0xdf0] sm:$0xf0]  ;;  %3757 = vmatmul.bf16.vlgmr.msra.gmra.mxu3 %v13379_v20 }
 0x242   :  { %v12659_v53 = vld [vmem:[#allocation2 + $0xfd4] sm:$0xf]  ;;  %v9838_v58 = vor.u32 %v12595_v50, %v9835_v51  ;;  %3775 = vmatpush.bf16.msrb.mxu1 %v9582_v57 }
 0x243   :  { %v10091_v54 = vld [vmem:[#allocation2 + $0xff0] sm:$0xf0] }
 0x244   :  { %v12459_v59 = vld [vmem:[#allocation2 + $0x994] sm:$0xf]  ;;  %v10094_v62 = vor.u32 %v12659_v53, %v10091_v54  ;;  %3788 = vmatpush.bf16.msrb.mxu2 %v9838_v58  ;;  %v3512_v58 = vadd.f32 %v3511_v52, %v625_v47 }
 0x245   :  { %v9291_v60 = vld [vmem:[#allocation2 + $0x9b0] sm:$0xf0] }
 0x246   :  { %v12523_v61 = vld [vmem:[#allocation2 + $0xb94] sm:$0xf]  ;;  %v9294_v18 = vor.u32 %v12459_v59, %v9291_v60  ;;  %3801 = vmatpush.bf16.msrb.mxu3 %v10094_v62  ;;  %v3524_v59 = vpop.f32.mrf.mxu1 }
 0x247   :  { %v9547_v10 = vld [vmem:[#allocation2 + $0xbb0] sm:$0xf0] }
 0x248   :  { %v12587_v11 = vld [vmem:[#allocation2 + $0xd94] sm:$0xf]  ;;  %v9550_v24 = vor.u32 %v12523_v61, %v9547_v10  ;;  %3763 = vmatpush.bf16.msrb.mxu0 %v9294_v18 }
 0x249   :  { %v9803_v12 = vld [vmem:[#allocation2 + $0xdb0] sm:$0xf0] }
 0x24a   :  { %v12651_v13 = vld [vmem:[#allocation2 + $0xf94] sm:$0xf]  ;;  %v9806_v25 = vor.u32 %v12587_v11, %v9803_v12  ;;  %3776 = vmatpush.bf16.msrb.mxu1 %v9550_v24 }
 0x24b   :  { %v10059_v14 = vld [vmem:[#allocation2 + $0xfb0] sm:$0xf0] }
 0x24c   :  { %v12451_v23 = vld [vmem:[#allocation2 + $0x954] sm:$0xf]  ;;  %v10062_v31 = vor.u32 %v12651_v13, %v10059_v14  ;;  %3789 = vmatpush.bf16.msrb.mxu2 %v9806_v25  ;;  %v3525_v13 = vadd.f32 %v3524_v59, %v3512_v58 }
 0x24d   :  { %v9259_v26 = vld [vmem:[#allocation2 + $0x970] sm:$0xf0] }
 0x24e   :  { %v12515_v29 = vld [vmem:[#allocation2 + $0xb54] sm:$0xf]  ;;  %v9262_v40 = vor.u32 %v12451_v23, %v9259_v26  ;;  %3802 = vmatpush.bf16.msrb.mxu3 %v10062_v31 }
 0x24f   :  { %v9515_v33 = vld [vmem:[#allocation2 + $0xb70] sm:$0xf0] }
 0x250   :  { %v12579_v34 = vld [vmem:[#allocation2 + $0xd54] sm:$0xf]  ;;  %v9518_v42 = vor.u32 %v12515_v29, %v9515_v33  ;;  %3764 = vmatpush.bf16.msrb.mxu0 %v9262_v40  ;;  %v3537_v29 = vpop.f32.mrf.mxu2 }
 0x251   :  { %v9771_v35 = vld [vmem:[#allocation2 + $0xd70] sm:$0xf0] }
 0x252   :  { %v12643_v36 = vld [vmem:[#allocation2 + $0xf54] sm:$0xf]  ;;  %v9774_v43 = vor.u32 %v12579_v34, %v9771_v35  ;;  %3777 = vmatpush.bf16.msrb.mxu1 %v9518_v42  ;;  %v3538_v35 = vadd.f32 %v3537_v29, %v3525_v13  ;;  %v8817_v29 = vld [vmem:[#allocation2 + $0x5d8] sm:$0xf] }
 0x253   :  { %v10027_v38 = vld [vmem:[#allocation2 + $0xf70] sm:$0xf0] }
 0x254   :  { %v12443_v41 = vld [vmem:[#allocation2 + $0x914] sm:$0xf]  ;;  %v10030_v39 = vor.u32 %v12643_v36, %v10027_v38  ;;  %3790 = vmatpush.bf16.msrb.mxu2 %v9774_v43  ;;  %v3550_v36 = vpop.f32.mrf.mxu3  ;;  %v3513_v43 = vpop.f32.mrf.mxu0 }
 0x255   :  { %v9227_v44 = vld [vmem:[#allocation2 + $0x930] sm:$0xf0]  ;;  %v13464_v42 = vadd.f32 %v3550_v36, %v3538_v35  ;;  %v12408_v35 = vld [vmem:[#allocation2 + $0x7f4] sm:$0xf0] }
 0x256   :  { %v12507_v45 = vld [vmem:[#allocation2 + $0xb14] sm:$0xf]  ;;  %v9230_v46 = vor.u32 %v12443_v41, %v9227_v44  ;;  %3803 = vmatpush.bf16.msrb.mxu3 %v10030_v39  ;;  %v8273_v43 = vld [vmem:[#allocation2 + $0x198] sm:$0xf] }
 0x257   :  { %v9483_v37 = vld [vmem:[#allocation2 + $0xb30] sm:$0xf0] }
 0x258   :  { %v12571_v48 = vld [vmem:[#allocation2 + $0xd14] sm:$0xf]  ;;  %v9486_v53 = vor.u32 %v12507_v45, %v9483_v37  ;;  %3765 = vmatpush.bf16.msrb.mxu0 %v9230_v46 }
 0x259   :  { %v9739_v49 = vld [vmem:[#allocation2 + $0xd30] sm:$0xf0] }
 0x25a   :  { %v12635_v50 = vld [vmem:[#allocation2 + $0xf14] sm:$0xf]  ;;  %v9742_v54 = vor.u32 %v12571_v48, %v9739_v49  ;;  %3778 = vmatpush.bf16.msrb.mxu1 %v9486_v53  ;;  %v3526_v48 = vpop.f32.mrf.mxu1 }
 0x25b   :  { %v9995_v51 = vld [vmem:[#allocation2 + $0xf30] sm:$0xf0]  ;;  %v12336_v48 = vld [vmem:[#allocation2 + $0x5b4] sm:$0xf0] }
 0x25c   :  { %v12435_v55 = vld [vmem:[#allocation2 + $0x8d4] sm:$0xf]  ;;  %v9998_v60 = vor.u32 %v12635_v50, %v9995_v51  ;;  %3791 = vmatpush.bf16.msrb.mxu2 %v9742_v54 }
 0x25d   :  { %v9195_v56 = vld [vmem:[#allocation2 + $0x8f0] sm:$0xf0] }
 0x25e   :  { %v12499_v57 = vld [vmem:[#allocation2 + $0xad4] sm:$0xf]  ;;  %v9198_v14 = vor.u32 %v12435_v55, %v9195_v56  ;;  %3804 = vmatpush.bf16.msrb.mxu3 %v9998_v60 }
 0x25f   :  { %v9451_v61 = vld [vmem:[#allocation2 + $0xaf0] sm:$0xf0] }
 0x260   :  { %v12563_v62 = vld [vmem:[#allocation2 + $0xcd4] sm:$0xf]  ;;  %v9454_v18 = vor.u32 %v12499_v57, %v9451_v61  ;;  %3766 = vmatpush.bf16.msrb.mxu0 %v9198_v14  ;;  %v3552_v14 = vpop.f32.mrf.mxu3 }
 0x261   :  { %v9707_v10 = vld [vmem:[#allocation2 + $0xcf0] sm:$0xf0]  ;;  %v8465_v14 = vld [vmem:[#allocation2 + $0x318] sm:$0xf] }
 0x262   :  { %v12627_v11 = vld [vmem:[#allocation2 + $0xed4] sm:$0xf]  ;;  %v9710_v23 = vor.u32 %v12563_v62, %v9707_v10  ;;  %3779 = vmatpush.bf16.msrb.mxu1 %v9454_v18  ;;  %v3539_v62 = vpop.f32.mrf.mxu2  ;;  %v8305_v18 = vld [vmem:[#allocation2 + $0x1d8] sm:$0xf] }
 0x263   :  { %v9963_v12 = vld [vmem:[#allocation2 + $0xef0] sm:$0xf0] }
 0x264   :  { %v12427_v24 = vld [vmem:[#allocation2 + $0x894] sm:$0xf]  ;;  %v9966_v30 = vor.u32 %v12627_v11, %v9963_v12  ;;  %3792 = vmatpush.bf16.msrb.mxu2 %v9710_v23  ;;  %v12216_v23 = vld [vmem:[#allocation2 + $0x1f4] sm:$0xf0] }
 0x265   :  { %v9163_v25 = vld [vmem:[#allocation2 + $0x8b0] sm:$0xf0] }
 0x266   :  { %v12491_v26 = vld [vmem:[#allocation2 + $0xa94] sm:$0xf]  ;;  %v9166_v41 = vor.u32 %v12427_v24, %v9163_v25  ;;  %3805 = vmatpush.bf16.msrb.mxu3 %v9966_v30  ;;  %v8561_v24 = vld [vmem:[#allocation2 + $0x3d8] sm:$0xf] }
 0x267   :  { %v9419_v31 = vld [vmem:[#allocation2 + $0xab0] sm:$0xf0]  ;;  %v12344_v30 = vld [vmem:[#allocation2 + $0x5f4] sm:$0xf0] }
 0x268   :  { %v12555_v33 = vld [vmem:[#allocation2 + $0xc94] sm:$0xf]  ;;  %v9422_v44 = vor.u32 %v12491_v26, %v9419_v31  ;;  %3767 = vmatpush.bf16.msrb.mxu0 %v9166_v41  ;;  %v12280_v26 = vld [vmem:[#allocation2 + $0x3f4] sm:$0xf0]  ;;  %v8818_v41 = vor.u32 %v12344_v30, %v8817_v29 }
 0x269   :  { %v9675_v34 = vld [vmem:[#allocation2 + $0xcb0] sm:$0xf0]  ;;  %v12384_v29 = vld [vmem:[#allocation2 + $0x734] sm:$0xf0] }
 0x26a   :  { %v12619_v38 = vld [vmem:[#allocation2 + $0xe94] sm:$0xf]  ;;  %v9678_v45 = vor.u32 %v12555_v33, %v9675_v34  ;;  %3780 = vmatpush.bf16.msrb.mxu1 %v9422_v44  ;;  %v9073_v34 = vld [vmem:[#allocation2 + $0x7d8] sm:$0xf] }
 0x26b   :  { %v9931_v40 = vld [vmem:[#allocation2 + $0xeb0] sm:$0xf0]  ;;  %v12208_v44 = vld [vmem:[#allocation2 + $0x1b4] sm:$0xf0] }
 0x26c   :  { %v12419_v47 = vld [vmem:[#allocation2 + $0x854] sm:$0xf]  ;;  %v9934_v49 = vor.u32 %v12619_v38, %v9931_v40  ;;  %3793 = vmatpush.bf16.msrb.mxu2 %v9678_v45  ;;  %v8306_v38 = vor.u32 %v12216_v23, %v8305_v18  ;;  %v8562_v40 = vor.u32 %v12280_v26, %v8561_v24  ;;  %v8529_v45 = vld [vmem:[#allocation2 + $0x398] sm:$0xf] }
 0x26d   :  { %v9131_v39 = vld [vmem:[#allocation2 + $0x870] sm:$0xf0]  ;;  %v12256_v23 = vld [vmem:[#allocation2 + $0x334] sm:$0xf0] }
 0x26e   :  { %v12483_v37 = vld [vmem:[#allocation2 + $0xa54] sm:$0xf]  ;;  %v9134_v54 = vor.u32 %v12419_v47, %v9131_v39  ;;  %3806 = vmatpush.bf16.msrb.mxu3 %v9934_v49  ;;  %v9074_v47 = vor.u32 %v12408_v35, %v9073_v34  ;;  %v12272_v39 = vld [vmem:[#allocation2 + $0x3b4] sm:$0xf0] }
 0x26f   :  { %v9387_v50 = vld [vmem:[#allocation2 + $0xa70] sm:$0xf0]  ;;  %v9041_v49 = vld [vmem:[#allocation2 + $0x798] sm:$0xf] }
 0x270   :  { %v12547_v51 = vld [vmem:[#allocation2 + $0xc54] sm:$0xf]  ;;  %v9390_v57 = vor.u32 %v12483_v37, %v9387_v50  ;;  %3768 = vmatpush.bf16.msrb.mxu0 %v9134_v54  ;;  %v8785_v37 = vld [vmem:[#allocation2 + $0x598] sm:$0xf] }
 0x271   :  { %v9643_v46 = vld [vmem:[#allocation2 + $0xc70] sm:$0xf0]  ;;  %v12400_v50 = vld [vmem:[#allocation2 + $0x7b4] sm:$0xf0] }
 0x272   :  { %v12611_v52 = vld [vmem:[#allocation2 + $0xe54] sm:$0xf]  ;;  %v9646_v58 = vor.u32 %v12547_v51, %v9643_v46  ;;  %3781 = vmatpush.bf16.msrb.mxu1 %v9390_v57  ;;  %v8274_v51 = vor.u32 %v12208_v44, %v8273_v43  ;;  %v8530_v46 = vor.u32 %v12272_v39, %v8529_v45  ;;  %v12200_v54 = vld [vmem:[#allocation2 + $0x174] sm:$0xf0] }
 0x273   :  { %v9899_v53 = vld [vmem:[#allocation2 + $0xe70] sm:$0xf0]  ;;  %v12264_v57 = vld [vmem:[#allocation2 + $0x374] sm:$0xf0] }
 0x274   :  { %v12411_v55 = vld [vmem:[#allocation2 + $0x814] sm:$0xf]  ;;  %v9902_v10 = vor.u32 %v12611_v52, %v9899_v53  ;;  %3794 = vmatpush.bf16.msrb.mxu2 %v9646_v58  ;;  %v8786_v52 = vor.u32 %v12336_v48, %v8785_v37  ;;  %v8241_v53 = vld [vmem:[#allocation2 + $0x158] sm:$0xf] }
 0x275   :  { %v9099_v56 = vld [vmem:[#allocation2 + $0x830] sm:$0xf0]  ;;  %v8753_v58 = vld [vmem:[#allocation2 + $0x558] sm:$0xf]  ;;  %v8242_v62 = vor.u32 %v12200_v54, %v8241_v53 }
 0x276   :  { %v12475_v59 = vld [vmem:[#allocation2 + $0xa14] sm:$0xf]  ;;  %v9102_v25 = vor.u32 %v12411_v55, %v9099_v56  ;;  %3807 = vmatpush.bf16.msrb.mxu3 %v9902_v10  ;;  %v8497_v55 = vld [vmem:[#allocation2 + $0x358] sm:$0xf]  ;;  %v9042_v56 = vor.u32 %v12400_v50, %v9041_v49 }
 0x277   :  { %v9355_v60 = vld [vmem:[#allocation2 + $0xa30] sm:$0xf0]  ;;  %v8498_v10 = vor.u32 %v12264_v57, %v8497_v55  ;;  %v8721_v24 = vld [vmem:[#allocation2 + $0x518] sm:$0xf] }
 0x278   :  { %v12539_v61 = vld [vmem:[#allocation2 + $0xc14] sm:$0xf]  ;;  %v9358_v31 = vor.u32 %v12475_v59, %v9355_v60  ;;  %3769 = vmatpush.bf16.msrb.mxu0 %v9102_v25  ;;  %v12328_v59 = vld [vmem:[#allocation2 + $0x574] sm:$0xf0] }
 0x279   :  { %v9611_v11 = vld [vmem:[#allocation2 + $0xc30] sm:$0xf0]  ;;  %v9009_v60 = vld [vmem:[#allocation2 + $0x758] sm:$0xf] }
 0x27a   :  { %v12603_v12 = vld [vmem:[#allocation2 + $0xe14] sm:$0xf]  ;;  %v9614_v33 = vor.u32 %v12539_v61, %v9611_v11  ;;  %3782 = vmatpush.bf16.msrb.mxu1 %v9358_v31  ;;  %v12392_v61 = vld [vmem:[#allocation2 + $0x774] sm:$0xf0]  ;;  %v8754_v11 = vor.u32 %v12328_v59, %v8753_v58  ;;  %v3563_v31 = vpop.f32.mrf.mxu0  ;;  %v3602_v59 = vpop.f32.mrf.mxu3 }
 0x27b   :  { %v9867_v13 = vld [vmem:[#allocation2 + $0xe30] sm:$0xf0]  ;;  %3770 = vmatmul.bf16.vlgmr.msrb.gmra.mxu0 %v13395_v15  ;;  %v9010_v18 = vor.u32 %v12392_v61, %v9009_v60  ;;  %v12320_v25 = vld [vmem:[#allocation2 + $0x534] sm:$0xf0]  ;;  %v3564_v35 = vadd.f32 %v3563_v31, %v13464_v42 }
 0x27c   :  { %v9870_v36 = vor.u32 %v12603_v12, %v9867_v13  ;;  %3795 = vmatpush.bf16.msrb.mxu2 %v9614_v33  ;;  %3814 = vmatpush.bf16.msra.mxu0 %v8306_v38  ;;  %v8209_v12 = vld [vmem:[#allocation2 + $0x118] sm:$0xf]  ;;  %v8466_v33 = vor.u32 %v12256_v23, %v8465_v14  ;;  %v8722_v34 = vor.u32 %v12320_v25, %v8721_v24 }
 0x27d   :  { %3783 = vmatmul.bf16.vlgmr.msrb.gmra.mxu1 %v13403_v21  ;;  %v12192_v13 = vld [vmem:[#allocation2 + $0x134] sm:$0xf0] }
 0x27e   :  { %3808 = vmatpush.bf16.msrb.mxu3 %v9870_v36  ;;  %3827 = vmatpush.bf16.msra.mxu1 %v8562_v40  ;;  %v8977_v26 = vld [vmem:[#allocation2 + $0x718] sm:$0xf]  ;;  %v8210_v30 = vor.u32 %v12192_v13, %v8209_v12 }
 0x27f   :  { %3796 = vmatmul.bf16.vlgmr.msrb.gmra.mxu2 %v13391_v63  ;;  %v8177_v36 = vld [vmem:[#allocation2 + $0xd8] sm:$0xf]  ;;  %v8978_v43 = vor.u32 %v12384_v29, %v8977_v26 }
 0x280   :  { %3840 = vmatpush.bf16.msra.mxu2 %v8818_v41  ;;  %3815 = vmatpush.bf16.msra.mxu0 %v8274_v51  ;;  %v12184_v38 = vld [vmem:[#allocation2 + $0xf4] sm:$0xf0]  ;;  %v3576_v41 = vpop.f32.mrf.mxu1 }
 0x281   :  { %3809 = vmatmul.bf16.vlgmr.msrb.gmra.mxu3 %v13399_v17  ;;  %v8433_v40 = vld [vmem:[#allocation2 + $0x2d8] sm:$0xf]  ;;  %v3577_v48 = vadd.f32 %v3576_v41, %v3564_v35  ;;  %v8178_v49 = vor.u32 %v12184_v38, %v8177_v36 }
 0x282   :  { %3853 = vmatpush.bf16.msra.mxu3 %v9074_v47  ;;  %3828 = vmatpush.bf16.msra.mxu1 %v8530_v46  ;;  %v12248_v44 = vld [vmem:[#allocation2 + $0x2f4] sm:$0xf0]  ;;  %v3589_v46 = vpop.f32.mrf.mxu2  ;;  %v3565_v13 = vpop.f32.mrf.mxu0 }
 0x283   :  { %v8689_v45 = vld [vmem:[#allocation2 + $0x4d8] sm:$0xf]  ;;  %v8434_v50 = vor.u32 %v12248_v44, %v8433_v40  ;;  %v3590_v55 = vadd.f32 %v3589_v46, %v3577_v48 }
 0x284   :  { %3841 = vmatpush.bf16.msra.mxu2 %v8786_v52  ;;  %3816 = vmatpush.bf16.msra.mxu0 %v8242_v62  ;;  %v12312_v47 = vld [vmem:[#allocation2 + $0x4f4] sm:$0xf0] }
 0x285   :  { %v8945_v39 = vld [vmem:[#allocation2 + $0x6d8] sm:$0xf]  ;;  %v8690_v51 = vor.u32 %v12312_v47, %v8689_v45 }
 0x286   :  { %3854 = vmatpush.bf16.msra.mxu3 %v9042_v56  ;;  %3829 = vmatpush.bf16.msra.mxu1 %v8498_v10  ;;  %v12376_v37 = vld [vmem:[#allocation2 + $0x6f4] sm:$0xf0]  ;;  %v3603_v10 = vadd.f32 %v3602_v59, %v3590_v55 }
 0x287   :  { %v8145_v42 = vld [vmem:[#allocation2 + $0x98] sm:$0xf]  ;;  %v8946_v54 = vor.u32 %v12376_v37, %v8945_v39 }
 0x288   :  { %3842 = vmatpush.bf16.msra.mxu2 %v8754_v11  ;;  %3817 = vmatpush.bf16.msra.mxu0 %v8210_v30  ;;  %v12176_v52 = vld [vmem:[#allocation2 + $0xb4] sm:$0xf0]  ;;  %v3578_v26 = vpop.f32.mrf.mxu1  ;;  %vm4025_vm3 = vcmp.ge.f32.partialorder %v3603_v10, 0.0  ;;  %v4033_v30 = vmul.f32 0.01, %v3603_v10 }
 0x289   :  { %v8401_v53 = vld [vmem:[#allocation2 + $0x298] sm:$0xf]  ;;  %v8146_v62 = vor.u32 %v12176_v52, %v8145_v42 }
 0x28a   :  { %3855 = vmatpush.bf16.msra.mxu3 %v9010_v18  ;;  %3830 = vmatpush.bf16.msra.mxu1 %v8466_v33  ;;  %v12240_v56 = vld [vmem:[#allocation2 + $0x2b4] sm:$0xf0]  ;;  %v13471_v35 = vsel %vm4025_vm3, %v3603_v10, %v4033_v30  ;;  %v3591_v39 = vpop.f32.mrf.mxu2 }
 0x28b   :  { %v8657_v57 = vld [vmem:[#allocation2 + $0x498] sm:$0xf]  ;;  %v8402_v14 = vor.u32 %v12240_v56, %v8401_v53 }
 0x28c   :  { %3843 = vmatpush.bf16.msra.mxu2 %v8722_v34  ;;  %v12304_v58 = vld [vmem:[#allocation2 + $0x4b4] sm:$0xf0]  ;;  %3818 = vmatpush.bf16.msra.mxu0 %v8178_v49 }
 0x28d   :  { %v8913_v60 = vld [vmem:[#allocation2 + $0x698] sm:$0xf]  ;;  %v8658_v18 = vor.u32 %v12304_v58, %v8657_v57 }
 0x28e   :  { %3856 = vmatpush.bf16.msra.mxu3 %v8978_v43  ;;  %v12368_v61 = vld [vmem:[#allocation2 + $0x6b4] sm:$0xf0]  ;;  %3831 = vmatpush.bf16.msra.mxu1 %v8434_v50 }
 0x28f   :  { %v8113_v11 = vld [vmem:[#allocation2 + $0x58] sm:$0xf]  ;;  %v8914_v29 = vor.u32 %v12368_v61, %v8913_v60 }
 0x290   :  { %v12168_v12 = vld [vmem:[#allocation2 + $0x74] sm:$0xf0]  ;;  %3844 = vmatpush.bf16.msra.mxu2 %v8690_v51  ;;  %3819 = vmatpush.bf16.msra.mxu0 %v8146_v62  ;;  %v3604_v51 = vpop.f32.mrf.mxu3 }
 0x291   :  { %v8369_v23 = vld [vmem:[#allocation2 + $0x258] sm:$0xf]  ;;  %v8114_v36 = vor.u32 %v12168_v12, %v8113_v11 }
 0x292   :  { %v12232_v24 = vld [vmem:[#allocation2 + $0x274] sm:$0xf0]  ;;  %3857 = vmatpush.bf16.msra.mxu3 %v8946_v54  ;;  %3832 = vmatpush.bf16.msra.mxu1 %v8402_v14 }
 0x293   :  { %v8625_v25 = vld [vmem:[#allocation2 + $0x458] sm:$0xf]  ;;  %v8370_v41 = vor.u32 %v12232_v24, %v8369_v23 }
 0x294   :  { %v12296_v31 = vld [vmem:[#allocation2 + $0x474] sm:$0xf0]  ;;  %3845 = vmatpush.bf16.msra.mxu2 %v8658_v18  ;;  %3820 = vmatpush.bf16.msra.mxu0 %v8114_v36 }
 0x295   :  { %v8881_v33 = vld [vmem:[#allocation2 + $0x658] sm:$0xf]  ;;  %v8626_v43 = vor.u32 %v12296_v31, %v8625_v25 }
 0x296   :  { %v12360_v34 = vld [vmem:[#allocation2 + $0x674] sm:$0xf0]  ;;  %3858 = vmatpush.bf16.msra.mxu3 %v8914_v29  ;;  %3833 = vmatpush.bf16.msra.mxu1 %v8370_v41 }
 0x297   :  { %v8081_v38 = vld [vmem:[#allocation2 + $0x18] sm:$0xf]  ;;  %v8882_v37 = vor.u32 %v12360_v34, %v8881_v33 }
 0x298   :  { %v12160_v40 = vld [vmem:[#allocation2 + $0x34] sm:$0xf0]  ;;  %3846 = vmatpush.bf16.msra.mxu2 %v8626_v43 }
 0x299   :  { %v8337_v44 = vld [vmem:[#allocation2 + $0x218] sm:$0xf]  ;;  %v8082_v53 = vor.u32 %v12160_v40, %v8081_v38  ;;  %v610_v40 = vperm.slane %v13367_v9, 0 }
 0x29a   :  { %v12224_v45 = vld [vmem:[#allocation2 + $0x234] sm:$0xf0]  ;;  %3859 = vmatpush.bf16.msra.mxu3 %v8882_v37 }
 0x29b   :  { %v8593_v47 = vld [vmem:[#allocation2 + $0x418] sm:$0xf]  ;;  %v8338_v57 = vor.u32 %v12224_v45, %v8337_v44  ;;  %3821 = vmatpush.bf16.msra.mxu0 %v8082_v53 }
 0x29c   :  { %v12288_v48 = vld [vmem:[#allocation2 + $0x434] sm:$0xf0] }
 0x29d   :  { %v8849_v49 = vld [vmem:[#allocation2 + $0x618] sm:$0xf]  ;;  %v8594_v58 = vor.u32 %v12288_v48, %v8593_v47  ;;  %3834 = vmatpush.bf16.msra.mxu1 %v8338_v57 }
 0x29e   :  { %v12352_v50 = vld [vmem:[#allocation2 + $0x634] sm:$0xf0]  ;;  %3822 = vmatmul.bf16.vlgmr.msra.gmra.mxu0 %v13375_v19 }
 0x29f   :  { %v9329_v46 = vld [vmem:[#allocation2 + $0x9d8] sm:$0xf]  ;;  %v8850_v61 = vor.u32 %v12352_v50, %v8849_v49  ;;  %3847 = vmatpush.bf16.msra.mxu2 %v8594_v58 }
 0x2a0   :  { %v12472_v42 = vld [vmem:[#allocation2 + $0x9f4] sm:$0xf0]  ;;  %3835 = vmatmul.bf16.vlgmr.msra.gmra.mxu1 %v13383_v22 }
 0x2a1   :  { %v9585_v52 = vld [vmem:[#allocation2 + $0xbd8] sm:$0xf]  ;;  %v9330_v62 = vor.u32 %v12472_v42, %v9329_v46  ;;  %3860 = vmatpush.bf16.msra.mxu3 %v8850_v61  ;;  %v626_v42 = vperm.slane %v610_v40, 0  ;;  %v3641_v40 = vpop.f32.mrf.mxu2 }
 0x2a2   :  { %v12536_v54 = vld [vmem:[#allocation2 + $0xbf4] sm:$0xf0]  ;;  %3848 = vmatmul.bf16.vlgmr.msra.gmra.mxu2 %v13371_v16 }
 0x2a3   :  { %v9841_v55 = vld [vmem:[#allocation2 + $0xdd8] sm:$0xf]  ;;  %v9586_v10 = vor.u32 %v12536_v54, %v9585_v52  ;;  %3866 = vmatpush.bf16.msrb.mxu0 %v9330_v62 }
 0x2a4   :  { %v12600_v56 = vld [vmem:[#allocation2 + $0xdf4] sm:$0xf0]  ;;  %3861 = vmatmul.bf16.vlgmr.msra.gmra.mxu3 %v13379_v20 }
 0x2a5   :  { %v10097_v59 = vld [vmem:[#allocation2 + $0xfd8] sm:$0xf]  ;;  %v9842_v11 = vor.u32 %v12600_v56, %v9841_v55  ;;  %3879 = vmatpush.bf16.msrb.mxu1 %v9586_v10 }
 0x2a6   :  { %v12664_v60 = vld [vmem:[#allocation2 + $0xff4] sm:$0xf0] }
 0x2a7   :  { %v9297_v12 = vld [vmem:[#allocation2 + $0x998] sm:$0xf]  ;;  %v10098_v18 = vor.u32 %v12664_v60, %v10097_v59  ;;  %3892 = vmatpush.bf16.msrb.mxu2 %v9842_v11  ;;  %v3615_v59 = vpop.f32.mrf.mxu0 }
 0x2a8   :  { %v12464_v13 = vld [vmem:[#allocation2 + $0x9b4] sm:$0xf0] }
 0x2a9   :  { %v9553_v14 = vld [vmem:[#allocation2 + $0xb98] sm:$0xf]  ;;  %v9298_v30 = vor.u32 %v12464_v13, %v9297_v12  ;;  %3905 = vmatpush.bf16.msrb.mxu3 %v10098_v18  ;;  %v3616_v12 = vadd.f32 %v3615_v59, %v626_v42  ;;  %v3628_v13 = vpop.f32.mrf.mxu1 }
 0x2aa   :  { %v12528_v23 = vld [vmem:[#allocation2 + $0xbb4] sm:$0xf0] }
 0x2ab   :  { %v9809_v24 = vld [vmem:[#allocation2 + $0xd98] sm:$0xf]  ;;  %v9554_v33 = vor.u32 %v12528_v23, %v9553_v14  ;;  %3867 = vmatpush.bf16.msrb.mxu0 %v9298_v30 }
 0x2ac   :  { %v12592_v25 = vld [vmem:[#allocation2 + $0xdb4] sm:$0xf0] }
 0x2ad   :  { %v10065_v26 = vld [vmem:[#allocation2 + $0xf98] sm:$0xf]  ;;  %v9810_v34 = vor.u32 %v12592_v25, %v9809_v24  ;;  %3880 = vmatpush.bf16.msrb.mxu1 %v9554_v33 }
 0x2ae   :  { %v12656_v29 = vld [vmem:[#allocation2 + $0xfb4] sm:$0xf0] }
 0x2af   :  { %v9265_v31 = vld [vmem:[#allocation2 + $0x958] sm:$0xf]  ;;  %v10066_v41 = vor.u32 %v12656_v29, %v10065_v26  ;;  %3893 = vmatpush.bf16.msrb.mxu2 %v9810_v34  ;;  %v3629_v29 = vadd.f32 %v3628_v13, %v3616_v12 }
 0x2b0   :  { %v12456_v36 = vld [vmem:[#allocation2 + $0x974] sm:$0xf0] }
 0x2b1   :  { %v9521_v38 = vld [vmem:[#allocation2 + $0xb58] sm:$0xf]  ;;  %v9266_v37 = vor.u32 %v12456_v36, %v9265_v31  ;;  %3906 = vmatpush.bf16.msrb.mxu3 %v10066_v41 }
 0x2b2   :  { %v12520_v43 = vld [vmem:[#allocation2 + $0xb74] sm:$0xf0] }
 0x2b3   :  { %v9777_v44 = vld [vmem:[#allocation2 + $0xd58] sm:$0xf]  ;;  %v9522_v49 = vor.u32 %v12520_v43, %v9521_v38  ;;  %3868 = vmatpush.bf16.msrb.mxu0 %v9266_v37 }
 0x2b4   :  { %v12584_v45 = vld [vmem:[#allocation2 + $0xd74] sm:$0xf0] }
 0x2b5   :  { %v10033_v47 = vld [vmem:[#allocation2 + $0xf58] sm:$0xf]  ;;  %v9778_v50 = vor.u32 %v12584_v45, %v9777_v44  ;;  %3881 = vmatpush.bf16.msrb.mxu1 %v9522_v49 }
 0x2b6   :  { %v12648_v39 = vld [vmem:[#allocation2 + $0xf74] sm:$0xf0] }
 0x2b7   :  { %v9233_v48 = vld [vmem:[#allocation2 + $0x918] sm:$0xf]  ;;  %v10034_v52 = vor.u32 %v12648_v39, %v10033_v47  ;;  %3894 = vmatpush.bf16.msrb.mxu2 %v9778_v50  ;;  %v3642_v47 = vadd.f32 %v3641_v40, %v3629_v29  ;;  %v3654_v39 = vpop.f32.mrf.mxu3  ;;  %v8563_v40 = vld [vmem:[#allocation2 + $0x3f8] sm:$0xf0] }
 0x2b8   :  { %v12448_v51 = vld [vmem:[#allocation2 + $0x934] sm:$0xf0] }
 0x2b9   :  { %v9489_v46 = vld [vmem:[#allocation2 + $0xb18] sm:$0xf]  ;;  %v9234_v58 = vor.u32 %v12448_v51, %v9233_v48  ;;  %3907 = vmatpush.bf16.msrb.mxu3 %v10034_v52  ;;  %v13478_v50 = vadd.f32 %v3654_v39, %v3642_v47  ;;  %v3617_v51 = vpop.f32.mrf.mxu0  ;;  %v12404_v47 = vld [vmem:[#allocation2 + $0x7dc] sm:$0xf] }
 0x2ba   :  { %v12512_v53 = vld [vmem:[#allocation2 + $0xb34] sm:$0xf0]  ;;  %v9075_v39 = vld [vmem:[#allocation2 + $0x7f8] sm:$0xf0] }
 0x2bb   :  { %v9745_v54 = vld [vmem:[#allocation2 + $0xd18] sm:$0xf]  ;;  %v9490_v60 = vor.u32 %v12512_v53, %v9489_v46  ;;  %3869 = vmatpush.bf16.msrb.mxu0 %v9234_v58 }
 0x2bc   :  { %v12576_v55 = vld [vmem:[#allocation2 + $0xd34] sm:$0xf0] }
 0x2bd   :  { %v10001_v56 = vld [vmem:[#allocation2 + $0xf18] sm:$0xf]  ;;  %v9746_v61 = vor.u32 %v12576_v55, %v9745_v54  ;;  %3882 = vmatpush.bf16.msrb.mxu1 %v9490_v60  ;;  %v3630_v55 = vpop.f32.mrf.mxu1 }
 0x2be   :  { %v12640_v57 = vld [vmem:[#allocation2 + $0xf34] sm:$0xf0]  ;;  %v12332_v55 = vld [vmem:[#allocation2 + $0x59c] sm:$0xf] }
 0x2bf   :  { %v9201_v62 = vld [vmem:[#allocation2 + $0x8d8] sm:$0xf]  ;;  %v10002_v14 = vor.u32 %v12640_v57, %v10001_v56  ;;  %3895 = vmatpush.bf16.msrb.mxu2 %v9746_v61 }
 0x2c0   :  { %v12440_v10 = vld [vmem:[#allocation2 + $0x8f4] sm:$0xf0] }
 0x2c1   :  { %v9457_v11 = vld [vmem:[#allocation2 + $0xad8] sm:$0xf]  ;;  %v9202_v30 = vor.u32 %v12440_v10, %v9201_v62  ;;  %3908 = vmatpush.bf16.msrb.mxu3 %v10002_v14 }
 0x2c2   :  { %v12504_v18 = vld [vmem:[#allocation2 + $0xaf4] sm:$0xf0] }
 0x2c3   :  { %v9713_v23 = vld [vmem:[#allocation2 + $0xcd8] sm:$0xf]  ;;  %v9458_v31 = vor.u32 %v12504_v18, %v9457_v11  ;;  %3870 = vmatpush.bf16.msrb.mxu0 %v9202_v30 }
 0x2c4   :  { %v12568_v24 = vld [vmem:[#allocation2 + $0xcf4] sm:$0xf0] }
 0x2c5   :  { %v9969_v25 = vld [vmem:[#allocation2 + $0xed8] sm:$0xf]  ;;  %v9714_v33 = vor.u32 %v12568_v24, %v9713_v23  ;;  %3883 = vmatpush.bf16.msrb.mxu1 %v9458_v31  ;;  %v3643_v24 = vpop.f32.mrf.mxu2  ;;  %v3656_v31 = vpop.f32.mrf.mxu3 }
 0x2c6   :  { %v12632_v26 = vld [vmem:[#allocation2 + $0xef4] sm:$0xf0]  ;;  %v9011_v24 = vld [vmem:[#allocation2 + $0x778] sm:$0xf0] }
 0x2c7   :  { %v9169_v34 = vld [vmem:[#allocation2 + $0x898] sm:$0xf]  ;;  %v9970_v41 = vor.u32 %v12632_v26, %v9969_v25  ;;  %3896 = vmatpush.bf16.msrb.mxu2 %v9714_v33  ;;  %v12212_v33 = vld [vmem:[#allocation2 + $0x1dc] sm:$0xf] }
 0x2c8   :  { %v12432_v36 = vld [vmem:[#allocation2 + $0x8b4] sm:$0xf0]  ;;  %v8211_v31 = vld [vmem:[#allocation2 + $0x138] sm:$0xf0] }
 0x2c9   :  { %v9425_v38 = vld [vmem:[#allocation2 + $0xa98] sm:$0xf]  ;;  %v9170_v49 = vor.u32 %v12432_v36, %v9169_v34  ;;  %3909 = vmatpush.bf16.msrb.mxu3 %v9970_v41  ;;  %v8307_v34 = vld [vmem:[#allocation2 + $0x1f8] sm:$0xf0] }
 0x2ca   :  { %v12496_v43 = vld [vmem:[#allocation2 + $0xab4] sm:$0xf0]  ;;  %v12276_v36 = vld [vmem:[#allocation2 + $0x3dc] sm:$0xf] }
 0x2cb   :  { %v9681_v44 = vld [vmem:[#allocation2 + $0xc98] sm:$0xf]  ;;  %v9426_v46 = vor.u32 %v12496_v43, %v9425_v38  ;;  %3871 = vmatpush.bf16.msrb.mxu0 %v9170_v49  ;;  %v12340_v41 = vld [vmem:[#allocation2 + $0x5dc] sm:$0xf]  ;;  %v8566_v49 = vor.u32 %v12276_v36, %v8563_v40 }
 0x2cc   :  { %v12560_v45 = vld [vmem:[#allocation2 + $0xcb4] sm:$0xf0]  ;;  %v8819_v43 = vld [vmem:[#allocation2 + $0x5f8] sm:$0xf0] }
 0x2cd   :  { %v9937_v37 = vld [vmem:[#allocation2 + $0xe98] sm:$0xf]  ;;  %v9682_v42 = vor.u32 %v12560_v45, %v9681_v44  ;;  %3884 = vmatpush.bf16.msrb.mxu1 %v9426_v46  ;;  %v8822_v51 = vor.u32 %v12340_v41, %v8819_v43  ;;  %v12204_v46 = vld [vmem:[#allocation2 + $0x19c] sm:$0xf] }
 0x2ce   :  { %v12624_v48 = vld [vmem:[#allocation2 + $0xeb4] sm:$0xf0]  ;;  %v8467_v36 = vld [vmem:[#allocation2 + $0x338] sm:$0xf0] }
 0x2cf   :  { %v9137_v52 = vld [vmem:[#allocation2 + $0x858] sm:$0xf]  ;;  %v9938_v56 = vor.u32 %v12624_v48, %v9937_v37  ;;  %3897 = vmatpush.bf16.msrb.mxu2 %v9682_v42  ;;  %v8310_v48 = vor.u32 %v12212_v33, %v8307_v34  ;;  %v8275_v42 = vld [vmem:[#allocation2 + $0x1b8] sm:$0xf0] }
 0x2d0   :  { %v12424_v53 = vld [vmem:[#allocation2 + $0x874] sm:$0xf0]  ;;  %v12252_v33 = vld [vmem:[#allocation2 + $0x31c] sm:$0xf] }
 0x2d1   :  { %v9393_v54 = vld [vmem:[#allocation2 + $0xa58] sm:$0xf]  ;;  %v9138_v62 = vor.u32 %v12424_v53, %v9137_v52  ;;  %3910 = vmatpush.bf16.msrb.mxu3 %v9938_v56  ;;  %v12268_v52 = vld [vmem:[#allocation2 + $0x39c] sm:$0xf]  ;;  %v9078_v53 = vor.u32 %v12404_v47, %v9075_v39  ;;  %v8470_v47 = vor.u32 %v12252_v33, %v8467_v36 }
 0x2d2   :  { %v12488_v57 = vld [vmem:[#allocation2 + $0xa74] sm:$0xf0]  ;;  %v8787_v56 = vld [vmem:[#allocation2 + $0x5b8] sm:$0xf0] }
 0x2d3   :  { %v9649_v58 = vld [vmem:[#allocation2 + $0xc58] sm:$0xf]  ;;  %v9394_v12 = vor.u32 %v12488_v57, %v9393_v54  ;;  %3872 = vmatpush.bf16.msrb.mxu0 %v9138_v62  ;;  %v8531_v54 = vld [vmem:[#allocation2 + $0x3b8] sm:$0xf0] }
 0x2d4   :  { %v12552_v59 = vld [vmem:[#allocation2 + $0xc74] sm:$0xf0]  ;;  %v12396_v57 = vld [vmem:[#allocation2 + $0x79c] sm:$0xf] }
 0x2d5   :  { %v9905_v60 = vld [vmem:[#allocation2 + $0xe58] sm:$0xf]  ;;  %v9650_v13 = vor.u32 %v12552_v59, %v9649_v58  ;;  %3885 = vmatpush.bf16.msrb.mxu1 %v9394_v12  ;;  %v9043_v58 = vld [vmem:[#allocation2 + $0x7b8] sm:$0xf0]  ;;  %v8278_v59 = vor.u32 %v12204_v46, %v8275_v42  ;;  %v3680_v46 = vpop.f32.mrf.mxu1 }
 0x2d6   :  { %v12616_v61 = vld [vmem:[#allocation2 + $0xe74] sm:$0xf0]  ;;  %v12196_v62 = vld [vmem:[#allocation2 + $0x15c] sm:$0xf]  ;;  %v9046_v12 = vor.u32 %v12396_v57, %v9043_v58 }
 0x2d7   :  { %v9105_v10 = vld [vmem:[#allocation2 + $0x818] sm:$0xf]  ;;  %v9906_v25 = vor.u32 %v12616_v61, %v9905_v60  ;;  %3898 = vmatpush.bf16.msrb.mxu2 %v9650_v13  ;;  %v8534_v60 = vor.u32 %v12268_v52, %v8531_v54  ;;  %v8790_v61 = vor.u32 %v12332_v55, %v8787_v56  ;;  %v8499_v13 = vld [vmem:[#allocation2 + $0x378] sm:$0xf0] }
 0x2d8   :  { %v12416_v11 = vld [vmem:[#allocation2 + $0x834] sm:$0xf0]  ;;  %v8723_v40 = vld [vmem:[#allocation2 + $0x538] sm:$0xf0] }
 0x2d9   :  { %v9361_v14 = vld [vmem:[#allocation2 + $0xa18] sm:$0xf]  ;;  %v9106_v38 = vor.u32 %v12416_v11, %v9105_v10  ;;  %3911 = vmatpush.bf16.msrb.mxu3 %v9906_v25  ;;  %v8243_v10 = vld [vmem:[#allocation2 + $0x178] sm:$0xf0] }
 0x2da   :  { %v12480_v18 = vld [vmem:[#allocation2 + $0xa34] sm:$0xf0]  ;;  %v12260_v11 = vld [vmem:[#allocation2 + $0x35c] sm:$0xf]  ;;  %v8246_v25 = vor.u32 %v12196_v62, %v8243_v10 }
 0x2db   :  { %v9617_v23 = vld [vmem:[#allocation2 + $0xc18] sm:$0xf]  ;;  %v9362_v44 = vor.u32 %v12480_v18, %v9361_v14  ;;  %3873 = vmatpush.bf16.msrb.mxu0 %v9106_v38  ;;  %v12324_v14 = vld [vmem:[#allocation2 + $0x55c] sm:$0xf] }
 0x2dc   :  { %v12544_v26 = vld [vmem:[#allocation2 + $0xc34] sm:$0xf0]  ;;  %v8755_v18 = vld [vmem:[#allocation2 + $0x578] sm:$0xf0] }
 0x2dd   :  { %v9873_v29 = vld [vmem:[#allocation2 + $0xe18] sm:$0xf]  ;;  %v9618_v45 = vor.u32 %v12544_v26, %v9617_v23  ;;  %3886 = vmatpush.bf16.msrb.mxu1 %v9362_v44  ;;  %v12388_v23 = vld [vmem:[#allocation2 + $0x75c] sm:$0xf]  ;;  %v8502_v26 = vor.u32 %v12260_v11, %v8499_v13 }
 0x2de   :  { %v12608_v30 = vld [vmem:[#allocation2 + $0xe34] sm:$0xf0]  ;;  %3874 = vmatmul.bf16.vlgmr.msrb.gmra.mxu0 %v13395_v15  ;;  %v9014_v34 = vor.u32 %v12388_v23, %v9011_v24  ;;  %v12316_v38 = vld [vmem:[#allocation2 + $0x51c] sm:$0xf]  ;;  %v3706_v23 = vpop.f32.mrf.mxu3 }
 0x2df   :  { %v9874_v37 = vor.u32 %v12608_v30, %v9873_v29  ;;  %3899 = vmatpush.bf16.msrb.mxu2 %v9618_v45  ;;  %3918 = vmatpush.bf16.msra.mxu0 %v8310_v48  ;;  %v8758_v29 = vor.u32 %v12324_v14, %v8755_v18  ;;  %v12188_v30 = vld [vmem:[#allocation2 + $0x11c] sm:$0xf]  ;;  %v3667_v45 = vpop.f32.mrf.mxu0  ;;  %v8726_v39 = vor.u32 %v12316_v38, %v8723_v40 }
 0x2e0   :  { %3887 = vmatmul.bf16.vlgmr.msrb.gmra.mxu1 %v13403_v21  ;;  %v12380_v41 = vld [vmem:[#allocation2 + $0x71c] sm:$0xf]  ;;  %v8214_v44 = vor.u32 %v12188_v30, %v8211_v31 }
 0x2e1   :  { %3912 = vmatpush.bf16.msrb.mxu3 %v9874_v37  ;;  %3931 = vmatpush.bf16.msra.mxu1 %v8566_v49  ;;  %v8979_v43 = vld [vmem:[#allocation2 + $0x738] sm:$0xf0]  ;;  %v3668_v37 = vadd.f32 %v3667_v45, %v13478_v50 }
 0x2e2   :  { %3900 = vmatmul.bf16.vlgmr.msrb.gmra.mxu2 %v13391_v63  ;;  %v12180_v48 = vld [vmem:[#allocation2 + $0xdc] sm:$0xf]  ;;  %v8982_v42 = vor.u32 %v12380_v41, %v8979_v43  ;;  %v3682_v43 = vpop.f32.mrf.mxu1 }
 0x2e3   :  { %3944 = vmatpush.bf16.msra.mxu2 %v8822_v51  ;;  %3919 = vmatpush.bf16.msra.mxu0 %v8278_v59  ;;  %v8179_v49 = vld [vmem:[#allocation2 + $0xf8] sm:$0xf0]  ;;  %v3681_v57 = vadd.f32 %v3680_v46, %v3668_v37 }
 0x2e4   :  { %3913 = vmatmul.bf16.vlgmr.msrb.gmra.mxu3 %v13399_v17  ;;  %v12244_v51 = vld [vmem:[#allocation2 + $0x2dc] sm:$0xf]  ;;  %v8182_v58 = vor.u32 %v12180_v48, %v8179_v49 }
 0x2e5   :  { %3957 = vmatpush.bf16.msra.mxu3 %v9078_v53  ;;  %3932 = vmatpush.bf16.msra.mxu1 %v8534_v60  ;;  %v8435_v52 = vld [vmem:[#allocation2 + $0x2f8] sm:$0xf0] }
 0x2e6   :  { %v12308_v53 = vld [vmem:[#allocation2 + $0x4dc] sm:$0xf]  ;;  %v8438_v59 = vor.u32 %v12244_v51, %v8435_v52 }
 0x2e7   :  { %3945 = vmatpush.bf16.msra.mxu2 %v8790_v61  ;;  %3920 = vmatpush.bf16.msra.mxu0 %v8246_v25  ;;  %v8691_v54 = vld [vmem:[#allocation2 + $0x4f8] sm:$0xf0]  ;;  %v3693_v61 = vpop.f32.mrf.mxu2  ;;  %v3669_v33 = vpop.f32.mrf.mxu0 }
 0x2e8   :  { %v12372_v55 = vld [vmem:[#allocation2 + $0x6dc] sm:$0xf]  ;;  %v8694_v60 = vor.u32 %v12308_v53, %v8691_v54 }
 0x2e9   :  { %3958 = vmatpush.bf16.msra.mxu3 %v9046_v12  ;;  %3933 = vmatpush.bf16.msra.mxu1 %v8502_v26  ;;  %v8947_v56 = vld [vmem:[#allocation2 + $0x6f8] sm:$0xf0]  ;;  %v3694_v12 = vadd.f32 %v3693_v61, %v3681_v57  ;;  %v3708_v61 = vpop.f32.mrf.mxu3 }
 0x2ea   :  { %v12172_v50 = vld [vmem:[#allocation2 + $0x9c] sm:$0xf]  ;;  %v8950_v11 = vor.u32 %v12372_v55, %v8947_v56 }
 0x2eb   :  { %3946 = vmatpush.bf16.msra.mxu2 %v8758_v29  ;;  %3921 = vmatpush.bf16.msra.mxu0 %v8214_v44  ;;  %v8147_v62 = vld [vmem:[#allocation2 + $0xb8] sm:$0xf0]  ;;  %v3707_v29 = vadd.f32 %v3706_v23, %v3694_v12 }
 0x2ec   :  { %v12236_v10 = vld [vmem:[#allocation2 + $0x29c] sm:$0xf]  ;;  %v8150_v26 = vor.u32 %v12172_v50, %v8147_v62 }
 0x2ed   :  { %3959 = vmatpush.bf16.msra.mxu3 %v9014_v34  ;;  %3934 = vmatpush.bf16.msra.mxu1 %v8470_v47  ;;  %v8403_v13 = vld [vmem:[#allocation2 + $0x2b8] sm:$0xf0]  ;;  %vm4026_vm4 = vcmp.ge.f32.partialorder %v3707_v29, 0.0  ;;  %v4034_v45 = vmul.f32 0.01, %v3707_v29 }
 0x2ee   :  { %v12300_v14 = vld [vmem:[#allocation2 + $0x49c] sm:$0xf]  ;;  %v8406_v34 = vor.u32 %v12236_v10, %v8403_v13 }
 0x2ef   :  { %3947 = vmatpush.bf16.msra.mxu2 %v8726_v39  ;;  %v8659_v18 = vld [vmem:[#allocation2 + $0x4b8] sm:$0xf0]  ;;  %3922 = vmatpush.bf16.msra.mxu0 %v8182_v58  ;;  %v13485_v48 = vsel %vm4026_vm4, %v3707_v29, %v4034_v45  ;;  %v3695_v56 = vpop.f32.mrf.mxu2 }
 0x2f0   :  { %v12364_v24 = vld [vmem:[#allocation2 + $0x69c] sm:$0xf]  ;;  %v8662_v36 = vor.u32 %v12300_v14, %v8659_v18 }
 0x2f1   :  { %3960 = vmatpush.bf16.msra.mxu3 %v8982_v42  ;;  %v8915_v25 = vld [vmem:[#allocation2 + $0x6b8] sm:$0xf0]  ;;  %3935 = vmatpush.bf16.msra.mxu1 %v8438_v59 }
 0x2f2   :  { %v12164_v30 = vld [vmem:[#allocation2 + $0x5c] sm:$0xf]  ;;  %v8918_v44 = vor.u32 %v12364_v24, %v8915_v25 }
 0x2f3   :  { %v8115_v31 = vld [vmem:[#allocation2 + $0x78] sm:$0xf0]  ;;  %3948 = vmatpush.bf16.msra.mxu2 %v8694_v60  ;;  %3923 = vmatpush.bf16.msra.mxu0 %v8150_v26 }
 0x2f4   :  { %v12228_v38 = vld [vmem:[#allocation2 + $0x25c] sm:$0xf]  ;;  %v8118_v49 = vor.u32 %v12164_v30, %v8115_v31 }
 0x2f5   :  { %v8371_v40 = vld [vmem:[#allocation2 + $0x278] sm:$0xf0]  ;;  %3961 = vmatpush.bf16.msra.mxu3 %v8950_v11  ;;  %3936 = vmatpush.bf16.msra.mxu1 %v8406_v34 }
 0x2f6   :  { %v12292_v41 = vld [vmem:[#allocation2 + $0x45c] sm:$0xf]  ;;  %v8374_v42 = vor.u32 %v12228_v38, %v8371_v40 }
 0x2f7   :  { %v8627_v47 = vld [vmem:[#allocation2 + $0x478] sm:$0xf0]  ;;  %3949 = vmatpush.bf16.msra.mxu2 %v8662_v36  ;;  %3924 = vmatpush.bf16.msra.mxu0 %v8118_v49 }
 0x2f8   :  { %v12356_v39 = vld [vmem:[#allocation2 + $0x65c] sm:$0xf]  ;;  %v8630_v52 = vor.u32 %v12292_v41, %v8627_v47 }
 0x2f9   :  { %v8883_v37 = vld [vmem:[#allocation2 + $0x678] sm:$0xf0]  ;;  %3962 = vmatpush.bf16.msra.mxu3 %v8918_v44  ;;  %3937 = vmatpush.bf16.msra.mxu1 %v8374_v42  ;;  %v611_v42 = vperm.slane %v13367_v9, 2 }
 0x2fa   :  { %v12156_v51 = vld [vmem:[#allocation2 + $0x1c] sm:$0xf]  ;;  %v8886_v57 = vor.u32 %v12356_v39, %v8883_v37 }
 0x2fb   :  { %v8083_v46 = vld [vmem:[#allocation2 + $0x38] sm:$0xf0]  ;;  %3950 = vmatpush.bf16.msra.mxu2 %v8630_v52 }
 0x2fc   :  { %v12220_v53 = vld [vmem:[#allocation2 + $0x21c] sm:$0xf]  ;;  %v8086_v11 = vor.u32 %v12156_v51, %v8083_v46 }
 0x2fd   :  { %v8339_v54 = vld [vmem:[#allocation2 + $0x238] sm:$0xf0]  ;;  %3963 = vmatpush.bf16.msra.mxu3 %v8886_v57 }
 0x2fe   :  { %v12284_v55 = vld [vmem:[#allocation2 + $0x41c] sm:$0xf]  ;;  %v8342_v18 = vor.u32 %v12220_v53, %v8339_v54  ;;  %3925 = vmatpush.bf16.msra.mxu0 %v8086_v11 }
 0x2ff   :  { %v8595_v58 = vld [vmem:[#allocation2 + $0x438] sm:$0xf0] }
 0x300   :  { %v12348_v59 = vld [vmem:[#allocation2 + $0x61c] sm:$0xf]  ;;  %v8598_v23 = vor.u32 %v12284_v55, %v8595_v58  ;;  %3938 = vmatpush.bf16.msra.mxu1 %v8342_v18  ;;  %v3719_v18 = vpop.f32.mrf.mxu0 }
 0x301   :  { %v8851_v60 = vld [vmem:[#allocation2 + $0x638] sm:$0xf0]  ;;  %3926 = vmatmul.bf16.vlgmr.msra.gmra.mxu0 %v13375_v19 }
 0x302   :  { %v12468_v50 = vld [vmem:[#allocation2 + $0x9dc] sm:$0xf]  ;;  %v8854_v26 = vor.u32 %v12348_v59, %v8851_v60  ;;  %3951 = vmatpush.bf16.msra.mxu2 %v8598_v23 }
 0x303   :  { %v9331_v62 = vld [vmem:[#allocation2 + $0x9f8] sm:$0xf0]  ;;  %3939 = vmatmul.bf16.vlgmr.msra.gmra.mxu1 %v13383_v22 }
 0x304   :  { %v12532_v10 = vld [vmem:[#allocation2 + $0xbdc] sm:$0xf]  ;;  %v9334_v29 = vor.u32 %v12468_v50, %v9331_v62  ;;  %3964 = vmatpush.bf16.msra.mxu3 %v8854_v26  ;;  %v627_v62 = vperm.slane %v611_v42, 0 }
 0x305   :  { %v9587_v12 = vld [vmem:[#allocation2 + $0xbf8] sm:$0xf0]  ;;  %3952 = vmatmul.bf16.vlgmr.msra.gmra.mxu2 %v13371_v16 }
 0x306   :  { %v12596_v13 = vld [vmem:[#allocation2 + $0xddc] sm:$0xf]  ;;  %v9590_v30 = vor.u32 %v12532_v10, %v9587_v12  ;;  %3970 = vmatpush.bf16.msrb.mxu0 %v9334_v29  ;;  %v3720_v29 = vadd.f32 %v3719_v18, %v627_v62 }
 0x307   :  { %v9843_v14 = vld [vmem:[#allocation2 + $0xdf8] sm:$0xf0]  ;;  %3965 = vmatmul.bf16.vlgmr.msra.gmra.mxu3 %v13379_v20 }
 0x308   :  { %v12660_v24 = vld [vmem:[#allocation2 + $0xfdc] sm:$0xf]  ;;  %v9846_v31 = vor.u32 %v12596_v13, %v9843_v14  ;;  %3983 = vmatpush.bf16.msrb.mxu1 %v9590_v30  ;;  %v3732_v30 = vpop.f32.mrf.mxu1 }
 0x309   :  { %v10099_v25 = vld [vmem:[#allocation2 + $0xff8] sm:$0xf0] }
 0x30a   :  { %v12460_v33 = vld [vmem:[#allocation2 + $0x99c] sm:$0xf]  ;;  %v10102_v38 = vor.u32 %v12660_v24, %v10099_v25  ;;  %3996 = vmatpush.bf16.msrb.mxu2 %v9846_v31 }
 0x30b   :  { %v9299_v34 = vld [vmem:[#allocation2 + $0x9b8] sm:$0xf0] }
 0x30c   :  { %v12524_v36 = vld [vmem:[#allocation2 + $0xb9c] sm:$0xf]  ;;  %v9302_v47 = vor.u32 %v12460_v33, %v9299_v34  ;;  %4009 = vmatpush.bf16.msrb.mxu3 %v10102_v38 }
 0x30d   :  { %v9555_v40 = vld [vmem:[#allocation2 + $0xbb8] sm:$0xf0] }
 0x30e   :  { %v12588_v41 = vld [vmem:[#allocation2 + $0xd9c] sm:$0xf]  ;;  %v9558_v37 = vor.u32 %v12524_v36, %v9555_v40  ;;  %3971 = vmatpush.bf16.msrb.mxu0 %v9302_v47 }
 0x30f   :  { %v9811_v43 = vld [vmem:[#allocation2 + $0xdb8] sm:$0xf0] }
 0x310   :  { %v12652_v44 = vld [vmem:[#allocation2 + $0xf9c] sm:$0xf]  ;;  %v9814_v49 = vor.u32 %v12588_v41, %v9811_v43  ;;  %3984 = vmatpush.bf16.msrb.mxu1 %v9558_v37  ;;  %v3733_v41 = vadd.f32 %v3732_v30, %v3720_v29 }
 0x311   :  { %v10067_v45 = vld [vmem:[#allocation2 + $0xfb8] sm:$0xf0] }
 0x312   :  { %v12452_v39 = vld [vmem:[#allocation2 + $0x95c] sm:$0xf]  ;;  %v10070_v52 = vor.u32 %v12652_v44, %v10067_v45  ;;  %3997 = vmatpush.bf16.msrb.mxu2 %v9814_v49  ;;  %v3745_v49 = vpop.f32.mrf.mxu2 }
 0x313   :  { %v9267_v51 = vld [vmem:[#allocation2 + $0x978] sm:$0xf0] }
 0x314   :  { %v12516_v46 = vld [vmem:[#allocation2 + $0xb5c] sm:$0xf]  ;;  %v9270_v58 = vor.u32 %v12452_v39, %v9267_v51  ;;  %4010 = vmatpush.bf16.msrb.mxu3 %v10070_v52 }
 0x315   :  { %v9523_v53 = vld [vmem:[#allocation2 + $0xb78] sm:$0xf0] }
 0x316   :  { %v12580_v54 = vld [vmem:[#allocation2 + $0xd5c] sm:$0xf]  ;;  %v9526_v60 = vor.u32 %v12516_v46, %v9523_v53  ;;  %3972 = vmatpush.bf16.msrb.mxu0 %v9270_v58  ;;  %v3746_v53 = vadd.f32 %v3745_v49, %v3733_v41 }
 0x317   :  { %v9779_v55 = vld [vmem:[#allocation2 + $0xd78] sm:$0xf0] }
 0x318   :  { %v12644_v56 = vld [vmem:[#allocation2 + $0xf5c] sm:$0xf]  ;;  %v9782_v61 = vor.u32 %v12580_v54, %v9779_v55  ;;  %3985 = vmatpush.bf16.msrb.mxu1 %v9526_v60  ;;  %v3758_v54 = vpop.f32.mrf.mxu3 }
 0x319   :  { %v10035_v57 = vld [vmem:[#allocation2 + $0xf78] sm:$0xf0]  ;;  %v3759_v58 = vadd.f32 %v3758_v54, %v3746_v53 }
 0x31a   :  { %v12444_v59 = vld [vmem:[#allocation2 + $0x91c] sm:$0xf]  ;;  %v10038_v10 = vor.u32 %v12644_v56, %v10035_v57  ;;  %3998 = vmatpush.bf16.msrb.mxu2 %v9782_v61  ;;  %v3747_v29 = vpop.f32.mrf.mxu2 }
 0x31b   :  { %v9235_v50 = vld [vmem:[#allocation2 + $0x938] sm:$0xf0] }
 0x31c   :  { %v12508_v16 = vld [vmem:[#allocation2 + $0xb1c] sm:$0xf]  ;;  %v9238_v19 = vor.u32 %v12444_v59, %v9235_v50  ;;  %4011 = vmatpush.bf16.msrb.mxu3 %v10038_v10  ;;  %v3721_v59 = vpop.f32.mrf.mxu0  ;;  %v3734_v10 = vpop.f32.mrf.mxu1 }
 0x31d   :  { %v9491_v11 = vld [vmem:[#allocation2 + $0xb38] sm:$0xf0] }
 0x31e   :  { %v12572_v20 = vld [vmem:[#allocation2 + $0xd1c] sm:$0xf]  ;;  %v9494_v22 = vor.u32 %v12508_v16, %v9491_v11  ;;  %3973 = vmatpush.bf16.msrb.mxu0 %v9238_v19 }
 0x31f   :  { %v9747_v12 = vld [vmem:[#allocation2 + $0xd38] sm:$0xf0] }
 0x320   :  { %v12636_v13 = vld [vmem:[#allocation2 + $0xf1c] sm:$0xf]  ;;  %v9750_v23 = vor.u32 %v12572_v20, %v9747_v12  ;;  %3986 = vmatpush.bf16.msrb.mxu1 %v9494_v22 }
 0x321   :  { %v10003_v14 = vld [vmem:[#allocation2 + $0xf38] sm:$0xf0] }
 0x322   :  { %v12436_v24 = vld [vmem:[#allocation2 + $0x8dc] sm:$0xf]  ;;  %v10006_v31 = vor.u32 %v12636_v13, %v10003_v14  ;;  %3999 = vmatpush.bf16.msrb.mxu2 %v9750_v23 }
 0x323   :  { %v9203_v25 = vld [vmem:[#allocation2 + $0x8f8] sm:$0xf0] }
 0x324   :  { %v12500_v26 = vld [vmem:[#allocation2 + $0xadc] sm:$0xf]  ;;  %v9206_v43 = vor.u32 %v12436_v24, %v9203_v25  ;;  %4012 = vmatpush.bf16.msrb.mxu3 %v10006_v31 }
 0x325   :  { %v9459_v33 = vld [vmem:[#allocation2 + $0xaf8] sm:$0xf0] }
 0x326   :  { %v12564_v34 = vld [vmem:[#allocation2 + $0xcdc] sm:$0xf]  ;;  %v9462_v44 = vor.u32 %v12500_v26, %v9459_v33  ;;  %3974 = vmatpush.bf16.msrb.mxu0 %v9206_v43 }
 0x327   :  { %v9715_v36 = vld [vmem:[#allocation2 + $0xcf8] sm:$0xf0] }
 0x328   :  { %v12628_v38 = vld [vmem:[#allocation2 + $0xedc] sm:$0xf]  ;;  %v9718_v45 = vor.u32 %v12564_v34, %v9715_v36  ;;  %3987 = vmatpush.bf16.msrb.mxu1 %v9462_v44  ;;  %v3760_v36 = vpop.f32.mrf.mxu3 }
 0x329   :  { %v9971_v40 = vld [vmem:[#allocation2 + $0xef8] sm:$0xf0] }
 0x32a   :  { %v12428_v47 = vld [vmem:[#allocation2 + $0x89c] sm:$0xf]  ;;  %v9974_v51 = vor.u32 %v12628_v38, %v9971_v40  ;;  %4000 = vmatpush.bf16.msrb.mxu2 %v9718_v45 }
 0x32b   :  { %v9171_v39 = vld [vmem:[#allocation2 + $0x8b8] sm:$0xf0] }
 0x32c   :  { %v12492_v37 = vld [vmem:[#allocation2 + $0xa9c] sm:$0xf]  ;;  %v9174_v57 = vor.u32 %v12428_v47, %v9171_v39  ;;  %4013 = vmatpush.bf16.msrb.mxu3 %v9974_v51  ;;  %v3771_v47 = vpop.f32.mrf.mxu0  ;;  %v3797_v51 = vpop.f32.mrf.mxu2 }
 0x32d   :  { %v9427_v46 = vld [vmem:[#allocation2 + $0xab8] sm:$0xf0]  ;;  %v3772_v39 = vadd.f32 %v3771_v47, %v3759_v58 }
 0x32e   :  { %v12556_v42 = vld [vmem:[#allocation2 + $0xc9c] sm:$0xf]  ;;  %v9430_v60 = vor.u32 %v12492_v37, %v9427_v46  ;;  %3975 = vmatpush.bf16.msrb.mxu0 %v9174_v57  ;;  %v3784_v37 = vpop.f32.mrf.mxu1 }
 0x32f   :  { %v9683_v52 = vld [vmem:[#allocation2 + $0xcb8] sm:$0xf0]  ;;  %v3785_v49 = vadd.f32 %v3784_v37, %v3772_v39 }
 0x330   :  { %v12620_v55 = vld [vmem:[#allocation2 + $0xe9c] sm:$0xf]  ;;  %v9686_v61 = vor.u32 %v12556_v42, %v9683_v52  ;;  %3988 = vmatpush.bf16.msrb.mxu1 %v9430_v60  ;;  %v3810_v42 = vpop.f32.mrf.mxu3 }
 0x331   :  { %v9939_v56 = vld [vmem:[#allocation2 + $0xeb8] sm:$0xf0]  ;;  %v3798_v46 = vadd.f32 %v3797_v51, %v3785_v49 }
 0x332   :  { %v12420_v50 = vld [vmem:[#allocation2 + $0x85c] sm:$0xf]  ;;  %v9942_v11 = vor.u32 %v12620_v55, %v9939_v56  ;;  %4001 = vmatpush.bf16.msrb.mxu2 %v9686_v61 }
 0x333   :  { %v9139_v16 = vld [vmem:[#allocation2 + $0x878] sm:$0xf0]  ;;  %v3811_v52 = vadd.f32 %v3810_v42, %v3798_v46 }
 0x334   :  { %v12484_v62 = vld [vmem:[#allocation2 + $0xa5c] sm:$0xf]  ;;  %v9142_v18 = vor.u32 %v12420_v50, %v9139_v16  ;;  %4014 = vmatpush.bf16.msrb.mxu3 %v9942_v11  ;;  %v3773_v53 = vpop.f32.mrf.mxu0 }
 0x335   :  { %v9395_v20 = vld [vmem:[#allocation2 + $0xa78] sm:$0xf0]  ;;  %vm4027_vm5 = vcmp.ge.f32.partialorder %v3811_v52, 0.0  ;;  %v4035_v55 = vmul.f32 0.01, %v3811_v52 }
 0x336   :  { %v12548_v12 = vld [vmem:[#allocation2 + $0xc5c] sm:$0xf]  ;;  %v9398_v22 = vor.u32 %v12484_v62, %v9395_v20  ;;  %3976 = vmatpush.bf16.msrb.mxu0 %v9142_v18  ;;  %v3786_v54 = vpop.f32.mrf.mxu1 }
 0x337   :  { %v9651_v13 = vld [vmem:[#allocation2 + $0xc78] sm:$0xf0]  ;;  %v13496_v56 = vsel %vm4027_vm5, %v3811_v52, %v4035_v55 }
 0x338   :  { %v12612_v14 = vld [vmem:[#allocation2 + $0xe5c] sm:$0xf]  ;;  %v9654_v23 = vor.u32 %v12548_v12, %v9651_v13  ;;  %3989 = vmatpush.bf16.msrb.mxu1 %v9398_v22 }
 0x339   :  { %v9907_v19 = vld [vmem:[#allocation2 + $0xe78] sm:$0xf0] }
 0x33a   :  { %v12412_v24 = vld [vmem:[#allocation2 + $0x81c] sm:$0xf]  ;;  %v9910_v30 = vor.u32 %v12612_v14, %v9907_v19  ;;  %4002 = vmatpush.bf16.msrb.mxu2 %v9654_v23 }
 0x33b   :  { %v9107_v25 = vld [vmem:[#allocation2 + $0x838] sm:$0xf0] }
 0x33c   :  { %v12476_v26 = vld [vmem:[#allocation2 + $0xa1c] sm:$0xf]  ;;  %v9110_v41 = vor.u32 %v12412_v24, %v9107_v25  ;;  %4015 = vmatpush.bf16.msrb.mxu3 %v9910_v30 }
 0x33d   :  { %v9363_v31 = vld [vmem:[#allocation2 + $0xa38] sm:$0xf0] }
 0x33e   :  { %v12540_v33 = vld [vmem:[#allocation2 + $0xc1c] sm:$0xf]  ;;  %v9366_v43 = vor.u32 %v12476_v26, %v9363_v31  ;;  %3977 = vmatpush.bf16.msrb.mxu0 %v9110_v41  ;;  %v3836_v58 = vpop.f32.mrf.mxu1 }
 0x33f   :  { %v9619_v34 = vld [vmem:[#allocation2 + $0xc38] sm:$0xf0] }
 0x340   :  { %v12604_v38 = vld [vmem:[#allocation2 + $0xe1c] sm:$0xf]  ;;  %v9622_v44 = vor.u32 %v12540_v33, %v9619_v34  ;;  %3990 = vmatpush.bf16.msrb.mxu1 %v9366_v43  ;;  %v613_v43 = vperm.slane %v13367_v9, 6 }
 0x341   :  { %v9875_v40 = vld [vmem:[#allocation2 + $0xe38] sm:$0xf0]  ;;  %3978 = vmatmul.bf16.vlgmr.msrb.gmra.mxu0 %v13395_v15  ;;  %v3799_v15 = vpop.f32.mrf.mxu2 }
 0x342   :  { %v9878_v45 = vor.u32 %v12604_v38, %v9875_v40  ;;  %4003 = vmatpush.bf16.msrb.mxu2 %v9622_v44  ;;  %v629_v47 = vperm.slane %v613_v43, 0 }
 0x343   :  { %3991 = vmatmul.bf16.vlgmr.msrb.gmra.mxu1 %v13403_v21  ;;  %v3812_v21 = vpop.f32.mrf.mxu3 }
 0x344   :  { %4016 = vmatpush.bf16.msrb.mxu3 %v9878_v45 }
 0x345   :  { %4004 = vmatmul.bf16.vlgmr.msrb.gmra.mxu2 %v13391_v63  ;;  %v612_v63 = vperm.slane %v13367_v9, 4 }
 0x346   :  { %v3838_v11 = vpop.f32.mrf.mxu1 }
 0x347   :  { %4017 = vmatmul.bf16.vlgmr.msrb.gmra.mxu3 %v13399_v17  ;;  %v628_v57 = vperm.slane %v612_v63, 0  ;;  %v3823_v17 = vpop.f32.mrf.mxu0 }
 0x349   :  { %v3824_v59 = vadd.f32 %v3823_v17, %v628_v57  ;;  %v3849_v61 = vpop.f32.mrf.mxu2 }
 0x34b   :  { %v3837_v60 = vadd.f32 %v3836_v58, %v3824_v59  ;;  %v3862_v16 = vpop.f32.mrf.mxu3 }
 0x34d   :  { %v3850_v50 = vadd.f32 %v3849_v61, %v3837_v60 }
 0x34f   :  { %v3863_v62 = vadd.f32 %v3862_v16, %v3850_v50  ;;  %v3825_v10 = vpop.f32.mrf.mxu0 }
 0x351   :  { %v3851_v20 = vpop.f32.mrf.mxu2 }
 0x353   :  { %v3864_v12 = vpop.f32.mrf.mxu3 }
 0x35b   :  { %v3875_v13 = vpop.f32.mrf.mxu0 }
 0x35c   :  { %v3876_v14 = vadd.f32 %v3875_v13, %v3863_v62 }
 0x35d   :  { %v3888_v19 = vpop.f32.mrf.mxu1 }
 0x35e   :  { %v3889_v18 = vadd.f32 %v3888_v19, %v3876_v14 }
 0x363   :  { %v3877_v26 = vpop.f32.mrf.mxu0 }
 0x365   :  { %v3901_v22 = vpop.f32.mrf.mxu2  ;;  %v3890_v29 = vpop.f32.mrf.mxu1 }
 0x366   :  { %v3902_v23 = vadd.f32 %v3901_v22, %v3889_v18 }
 0x367   :  { %v3914_v24 = vpop.f32.mrf.mxu3 }
 0x368   :  { %v3915_v25 = vadd.f32 %v3914_v24, %v3902_v23 }
 0x36a   :  { %vm4028_vm6 = vcmp.ge.f32.partialorder %v3915_v25, 0.0  ;;  %v4036_v30 = vmul.f32 0.01, %v3915_v25 }
 0x36c   :  { %v13499_v31 = vsel %vm4028_vm6, %v3915_v25, %v4036_v30 }
 0x36d   :  { %v3903_v33 = vpop.f32.mrf.mxu2 }
 0x36f   :  { %v3916_v34 = vpop.f32.mrf.mxu3 }
 0x37e   :  { %v3927_v36 = vpop.f32.mrf.mxu0 }
 0x37f   :  { %v3928_v49 = vadd.f32 %v3927_v36, %v629_v47 }
 0x380   :  { %v3940_v38 = vpop.f32.mrf.mxu1 }
 0x381   :  { %v3941_v51 = vadd.f32 %v3940_v38, %v3928_v49 }
 0x386   :  { %v3929_v44 = vpop.f32.mrf.mxu0 }
 0x388   :  { %v3953_v40 = vpop.f32.mrf.mxu2  ;;  %v3942_v45 = vpop.f32.mrf.mxu1 }
 0x389   :  { %v3954_v46 = vadd.f32 %v3953_v40, %v3941_v51 }
 0x38a   :  { %v3966_v41 = vpop.f32.mrf.mxu3 }
 0x38b   :  { %v3967_v42 = vadd.f32 %v3966_v41, %v3954_v46 }
 0x390   :  { %v3955_v39 = vpop.f32.mrf.mxu2 }
 0x392   :  { %v3968_v37 = vpop.f32.mrf.mxu3 }
 0x3be   :  { %v3979_v52 = vpop.f32.mrf.mxu0 }
 0x3bf   :  { %v3980_v54 = vadd.f32 %v3979_v52, %v3967_v42 }
 0x3c0   :  { %v3992_v53 = vpop.f32.mrf.mxu1 }
 0x3c1   :  { %v3993_v55 = vadd.f32 %v3992_v53, %v3980_v54 }
 0x3c6   :  { %v3981_v57 = vpop.f32.mrf.mxu0 }
 0x3c8   :  { %v4005_v15 = vpop.f32.mrf.mxu2  ;;  %v3994_v17 = vpop.f32.mrf.mxu1 }
 0x3c9   :  { %v4006_v21 = vadd.f32 %v4005_v15, %v3993_v55 }
 0x3ca   :  { %v4018_v63 = vpop.f32.mrf.mxu3 }
 0x3cb   :  { %v4019_v59 = vadd.f32 %v4018_v63, %v4006_v21 }
 0x3cd   :  { %vm4029_vm7 = vcmp.ge.f32.partialorder %v4019_v59, 0.0  ;;  %v4037_v58 = vmul.f32 0.01, %v4019_v59 }
 0x3cf   :  { %v13502_v60 = vsel %vm4029_vm7, %v4019_v59, %v4037_v58 }
 0x3d0   :  { %v4007_v61 = vpop.f32.mrf.mxu2 }
 0x3d2   :  { %v4020_v50 = vpop.f32.mrf.mxu3 }
 0x3d3   :  { %13308 = dma.done.wait [#allocation3 + $0x1], 65536 }
 0x3d4   :  { %13309 = vsyncadd [#allocation3 + $0x1], 4294901760  ;;  %v10329_v16 = vld [vmem:[#allocation2 + $0x11c0] sm:$0xf]  ;;  %s13316_s1 = smov [#allocation9]   ;;  %s8031_s7 = sshll.u32 %s13688_s3, 4  ;;  %s8032_s7 = int_to_ptr.hbm [resolvable:$true] %s8031_s7 }
 0x3d5   :  { %v12725_v62 = vld [vmem:[#allocation2 + $0x11dc] sm:$0xf0]  ;;  %s8029_s4 = sshll.u32 %s13316_s1, 4  ;;  %s8030_s4 = int_to_ptr.vmem [resolvable:$true] %s8029_s4 }
 0x3d6   :  { %v10585_v10 = vld [vmem:[#allocation2 + $0x13c0] sm:$0xf]  ;;  %v10330_v11 = vor.u32 %v12725_v62, %v10329_v16 }
 0x3d7   :  { %v12789_v20 = vld [vmem:[#allocation2 + $0x13dc] sm:$0xf0] }
 0x3d8   :  { %v10841_v12 = vld [vmem:[#allocation2 + $0x15c0] sm:$0xf]  ;;  %v10586_v14 = vor.u32 %v12789_v20, %v10585_v10  ;;  %7152 = vmatpush.bf16.msra.mxu0 %v10330_v11 }
 0x3d9   :  { %v12853_v13 = vld [vmem:[#allocation2 + $0x15dc] sm:$0xf0] }
 0x3da   :  { %v10842_v19 = vor.u32 %v12853_v13, %v10841_v12  ;;  %v11097_v18 = vld [vmem:[#allocation2 + $0x17c0] sm:$0xf]  ;;  %7165 = vmatpush.bf16.msra.mxu1 %v10586_v14 }
 0x3db   :  { %v12917_v22 = vld [vmem:[#allocation2 + $0x17dc] sm:$0xf0] }
 0x3dc   :  { %v10297_v23 = vld [vmem:[#allocation2 + $0x1180] sm:$0xf]  ;;  %v11098_v24 = vor.u32 %v12917_v22, %v11097_v18  ;;  %7178 = vmatpush.bf16.msra.mxu2 %v10842_v19 }
 0x3dd   :  { %v12717_v25 = vld [vmem:[#allocation2 + $0x119c] sm:$0xf0] }
 0x3de   :  { %v10553_v26 = vld [vmem:[#allocation2 + $0x1380] sm:$0xf]  ;;  %v10298_v30 = vor.u32 %v12717_v25, %v10297_v23  ;;  %7191 = vmatpush.bf16.msra.mxu3 %v11098_v24 }
 0x3df   :  { %v12781_v29 = vld [vmem:[#allocation2 + $0x139c] sm:$0xf0] }
 0x3e0   :  { %v10554_v33 = vor.u32 %v12781_v29, %v10553_v26  ;;  %v10809_v34 = vld [vmem:[#allocation2 + $0x1580] sm:$0xf]  ;;  %7153 = vmatpush.bf16.msra.mxu0 %v10298_v30 }
 0x3e1   :  { %v12845_v36 = vld [vmem:[#allocation2 + $0x159c] sm:$0xf0] }
 0x3e2   :  { %v11065_v38 = vld [vmem:[#allocation2 + $0x1780] sm:$0xf]  ;;  %v10810_v40 = vor.u32 %v12845_v36, %v10809_v34  ;;  %7166 = vmatpush.bf16.msra.mxu1 %v10554_v33 }
 0x3e3   :  { %v12909_v41 = vld [vmem:[#allocation2 + $0x179c] sm:$0xf0] }
 0x3e4   :  { %v10265_v43 = vld [vmem:[#allocation2 + $0x1140] sm:$0xf]  ;;  %v11066_v45 = vor.u32 %v12909_v41, %v11065_v38  ;;  %7179 = vmatpush.bf16.msra.mxu2 %v10810_v40 }
 0x3e5   :  { %v12709_v44 = vld [vmem:[#allocation2 + $0x115c] sm:$0xf0] }
 0x3e6   :  { %v10521_v47 = vld [vmem:[#allocation2 + $0x1340] sm:$0xf]  ;;  %v10266_v49 = vor.u32 %v12709_v44, %v10265_v43  ;;  %7192 = vmatpush.bf16.msra.mxu3 %v11066_v45 }
 0x3e7   :  { %v12773_v39 = vld [vmem:[#allocation2 + $0x135c] sm:$0xf0] }
 0x3e8   :  { %v10777_v37 = vld [vmem:[#allocation2 + $0x1540] sm:$0xf]  ;;  %v10522_v52 = vor.u32 %v12773_v39, %v10521_v47  ;;  %7154 = vmatpush.bf16.msra.mxu0 %v10266_v49 }
 0x3e9   :  { %v12837_v51 = vld [vmem:[#allocation2 + $0x155c] sm:$0xf0] }
 0x3ea   :  { %v11033_v46 = vld [vmem:[#allocation2 + $0x1740] sm:$0xf]  ;;  %v10778_v53 = vor.u32 %v12837_v51, %v10777_v37  ;;  %7167 = vmatpush.bf16.msra.mxu1 %v10522_v52 }
 0x3eb   :  { %v12901_v42 = vld [vmem:[#allocation2 + $0x175c] sm:$0xf0] }
 0x3ec   :  { %v10233_v54 = vld [vmem:[#allocation2 + $0x1100] sm:$0xf]  ;;  %v11034_v21 = vor.u32 %v12901_v42, %v11033_v46  ;;  %7180 = vmatpush.bf16.msra.mxu2 %v10778_v53 }
 0x3ed   :  { %v12701_v55 = vld [vmem:[#allocation2 + $0x111c] sm:$0xf0] }
 0x3ee   :  { %v10489_v15 = vld [vmem:[#allocation2 + $0x1300] sm:$0xf]  ;;  %v10234_v61 = vor.u32 %v12701_v55, %v10233_v54  ;;  %7193 = vmatpush.bf16.msra.mxu3 %v11034_v21 }
 0x3ef   :  { %v12765_v63 = vld [vmem:[#allocation2 + $0x131c] sm:$0xf0] }
 0x3f0   :  { %v10745_v57 = vld [vmem:[#allocation2 + $0x1500] sm:$0xf]  ;;  %v10490_v50 = vor.u32 %v12765_v63, %v10489_v15  ;;  %7155 = vmatpush.bf16.msra.mxu0 %v10234_v61 }
 0x3f1   :  { %v12829_v17 = vld [vmem:[#allocation2 + $0x151c] sm:$0xf0] }
 0x3f2   :  { %v11001_v59 = vld [vmem:[#allocation2 + $0x1700] sm:$0xf]  ;;  %v10746_v16 = vor.u32 %v12829_v17, %v10745_v57  ;;  %7168 = vmatpush.bf16.msra.mxu1 %v10490_v50 }
 0x3f3   :  { %v12893_v58 = vld [vmem:[#allocation2 + $0x171c] sm:$0xf0] }
 0x3f4   :  { %v10201_v62 = vld [vmem:[#allocation2 + $0x10c0] sm:$0xf]  ;;  %v11002_v20 = vor.u32 %v12893_v58, %v11001_v59  ;;  %7181 = vmatpush.bf16.msra.mxu2 %v10746_v16 }
 0x3f5   :  { %v12693_v10 = vld [vmem:[#allocation2 + $0x10dc] sm:$0xf0] }
 0x3f6   :  { %v10457_v11 = vld [vmem:[#allocation2 + $0x12c0] sm:$0xf]  ;;  %v10202_v22 = vor.u32 %v12693_v10, %v10201_v62  ;;  %7194 = vmatpush.bf16.msra.mxu3 %v11002_v20 }
 0x3f7   :  { %v12757_v12 = vld [vmem:[#allocation2 + $0x12dc] sm:$0xf0] }
 0x3f8   :  { %v10713_v13 = vld [vmem:[#allocation2 + $0x14c0] sm:$0xf]  ;;  %v10458_v23 = vor.u32 %v12757_v12, %v10457_v11  ;;  %7156 = vmatpush.bf16.msra.mxu0 %v10202_v22 }
 0x3f9   :  { %v12821_v14 = vld [vmem:[#allocation2 + $0x14dc] sm:$0xf0] }
 0x3fa   :  { %v10969_v19 = vld [vmem:[#allocation2 + $0x16c0] sm:$0xf]  ;;  %v10714_v24 = vor.u32 %v12821_v14, %v10713_v13  ;;  %7169 = vmatpush.bf16.msra.mxu1 %v10458_v23 }
 0x3fb   :  { %v12885_v18 = vld [vmem:[#allocation2 + $0x16dc] sm:$0xf0] }
 0x3fc   :  { %v10169_v25 = vld [vmem:[#allocation2 + $0x1080] sm:$0xf]  ;;  %v10970_v30 = vor.u32 %v12885_v18, %v10969_v19  ;;  %7182 = vmatpush.bf16.msra.mxu2 %v10714_v24 }
 0x3fd   :  { %v12685_v26 = vld [vmem:[#allocation2 + $0x109c] sm:$0xf0] }
 0x3fe   :  { %v10425_v29 = vld [vmem:[#allocation2 + $0x1280] sm:$0xf]  ;;  %v10170_v41 = vor.u32 %v12685_v26, %v10169_v25  ;;  %7195 = vmatpush.bf16.msra.mxu3 %v10970_v30 }
 0x3ff   :  { %v12749_v33 = vld [vmem:[#allocation2 + $0x129c] sm:$0xf0] }
 0x400   :  { %v10681_v34 = vld [vmem:[#allocation2 + $0x1480] sm:$0xf]  ;;  %v10426_v43 = vor.u32 %v12749_v33, %v10425_v29  ;;  %7157 = vmatpush.bf16.msra.mxu0 %v10170_v41  ;;  %v13506_v41 = vpack.c.bf16 %v13457_v28, %v13457_v28 }
 0x401   :  { %v12813_v36 = vld [vmem:[#allocation2 + $0x149c] sm:$0xf0] }
 0x402   :  { %v10937_v38 = vld [vmem:[#allocation2 + $0x1680] sm:$0xf]  ;;  %v10682_v44 = vor.u32 %v12813_v36, %v10681_v34  ;;  %7170 = vmatpush.bf16.msra.mxu1 %v10426_v43 }
 0x403   :  { %v12877_v40 = vld [vmem:[#allocation2 + $0x169c] sm:$0xf0] }
 0x404   :  { %v10137_v45 = vld [vmem:[#allocation2 + $0x1040] sm:$0xf]  ;;  %v10938_v37 = vor.u32 %v12877_v40, %v10937_v38  ;;  %7183 = vmatpush.bf16.msra.mxu2 %v10682_v44 }
 0x405   :  { %v12677_v47 = vld [vmem:[#allocation2 + $0x105c] sm:$0xf0] }
 0x406   :  { %v10393_v39 = vld [vmem:[#allocation2 + $0x1240] sm:$0xf]  ;;  %v10138_v53 = vor.u32 %v12677_v47, %v10137_v45  ;;  %7196 = vmatpush.bf16.msra.mxu3 %v10938_v37  ;;  %v13510_v45 = vpack.c.bf16 %v13429_v32, %v13429_v32  ;;  %v13514_v47 = vpack.c.bf16 %v13471_v35, %v13471_v35  ;;  %v13518_v37 = vpack.c.bf16 %v13443_v27, %v13443_v27 }
 0x407   :  { %v12741_v49 = vld [vmem:[#allocation2 + $0x125c] sm:$0xf0] }
 0x408   :  { %v10649_v51 = vld [vmem:[#allocation2 + $0x1440] sm:$0xf]  ;;  %v10394_v15 = vor.u32 %v12741_v49, %v10393_v39  ;;  %7158 = vmatpush.bf16.msra.mxu0 %v10138_v53 }
 0x409   :  { %v12805_v46 = vld [vmem:[#allocation2 + $0x145c] sm:$0xf0] }
 0x40a   :  { %v10905_v42 = vld [vmem:[#allocation2 + $0x1640] sm:$0xf]  ;;  %v10650_v21 = vor.u32 %v12805_v46, %v10649_v51  ;;  %7171 = vmatpush.bf16.msra.mxu1 %v10394_v15 }
 0x40b   :  { %v12869_v52 = vld [vmem:[#allocation2 + $0x165c] sm:$0xf0] }
 0x40c   :  { %v10105_v54 = vld [vmem:[#allocation2 + $0x1000] sm:$0xf]  ;;  %v10906_v59 = vor.u32 %v12869_v52, %v10905_v42  ;;  %7184 = vmatpush.bf16.msra.mxu2 %v10650_v21 }
 0x40d   :  { %v12669_v55 = vld [vmem:[#allocation2 + $0x101c] sm:$0xf0] }
 0x40e   :  { %v10361_v63 = vld [vmem:[#allocation2 + $0x1200] sm:$0xf]  ;;  %v10106_v11 = vor.u32 %v12669_v55, %v10105_v54  ;;  %7197 = vmatpush.bf16.msra.mxu3 %v10906_v59 }
 0x40f   :  { %v12733_v57 = vld [vmem:[#allocation2 + $0x121c] sm:$0xf0] }
 0x410   :  { %v10617_v17 = vld [vmem:[#allocation2 + $0x1400] sm:$0xf]  ;;  %v10362_v14 = vor.u32 %v12733_v57, %v10361_v63  ;;  %7159 = vmatpush.bf16.msra.mxu0 %v10106_v11 }
 0x411   :  { %v12797_v58 = vld [vmem:[#allocation2 + $0x141c] sm:$0xf0] }
 0x412   :  { %v10873_v61 = vld [vmem:[#allocation2 + $0x1600] sm:$0xf]  ;;  %v10618_v19 = vor.u32 %v12797_v58, %v10617_v17  ;;  %7172 = vmatpush.bf16.msra.mxu1 %v10362_v14 }
 0x413   :  { %v12861_v50 = vld [vmem:[#allocation2 + $0x161c] sm:$0xf0]  ;;  %7160 = vmatmul.bf16.vlgmr.msra.gmra.mxu0 %v13510_v45 }
 0x414   :  { %v11353_v16 = vld [vmem:[#allocation2 + $0x19c0] sm:$0xf]  ;;  %v10874_v23 = vor.u32 %v12861_v50, %v10873_v61  ;;  %7185 = vmatpush.bf16.msra.mxu2 %v10618_v19 }
 0x415   :  { %v12981_v62 = vld [vmem:[#allocation2 + $0x19dc] sm:$0xf0]  ;;  %7173 = vmatmul.bf16.vlgmr.msra.gmra.mxu1 %v13518_v37 }
 0x416   :  { %v11609_v10 = vld [vmem:[#allocation2 + $0x1bc0] sm:$0xf]  ;;  %v11354_v24 = vor.u32 %v12981_v62, %v11353_v16  ;;  %7198 = vmatpush.bf16.msra.mxu3 %v10874_v23 }
 0x417   :  { %v13045_v20 = vld [vmem:[#allocation2 + $0x1bdc] sm:$0xf0]  ;;  %7186 = vmatmul.bf16.vlgmr.msra.gmra.mxu2 %v13506_v41 }
 0x418   :  { %v11865_v12 = vld [vmem:[#allocation2 + $0x1dc0] sm:$0xf]  ;;  %v11610_v25 = vor.u32 %v13045_v20, %v11609_v10  ;;  %7204 = vmatpush.bf16.msrb.mxu0 %v11354_v24 }
 0x419   :  { %v13109_v13 = vld [vmem:[#allocation2 + $0x1ddc] sm:$0xf0]  ;;  %7199 = vmatmul.bf16.vlgmr.msra.gmra.mxu3 %v13514_v47 }
 0x41a   :  { %v12121_v18 = vld [vmem:[#allocation2 + $0x1fc0] sm:$0xf]  ;;  %v11866_v26 = vor.u32 %v13109_v13, %v11865_v12  ;;  %7217 = vmatpush.bf16.msrb.mxu1 %v11610_v25 }
 0x41b   :  { %v13173_v22 = vld [vmem:[#allocation2 + $0x1fdc] sm:$0xf0] }
 0x41c   :  { %v11321_v29 = vld [vmem:[#allocation2 + $0x1980] sm:$0xf]  ;;  %v12122_v34 = vor.u32 %v13173_v22, %v12121_v18  ;;  %7230 = vmatpush.bf16.msrb.mxu2 %v11866_v26 }
 0x41d   :  { %v12973_v30 = vld [vmem:[#allocation2 + $0x199c] sm:$0xf0] }
 0x41e   :  { %v11577_v33 = vld [vmem:[#allocation2 + $0x1b80] sm:$0xf]  ;;  %v11322_v39 = vor.u32 %v12973_v30, %v11321_v29  ;;  %7243 = vmatpush.bf16.msrb.mxu3 %v12122_v34 }
 0x41f   :  { %v13037_v36 = vld [vmem:[#allocation2 + $0x1b9c] sm:$0xf0] }
 0x420   :  { %v11833_v38 = vld [vmem:[#allocation2 + $0x1d80] sm:$0xf]  ;;  %v11578_v28 = vor.u32 %v13037_v36, %v11577_v33  ;;  %7205 = vmatpush.bf16.msrb.mxu0 %v11322_v39 }
 0x421   :  { %v13101_v40 = vld [vmem:[#allocation2 + $0x1d9c] sm:$0xf0] }
 0x422   :  { %v12089_v43 = vld [vmem:[#allocation2 + $0x1f80] sm:$0xf]  ;;  %v11834_v49 = vor.u32 %v13101_v40, %v11833_v38  ;;  %7218 = vmatpush.bf16.msrb.mxu1 %v11578_v28 }
 0x423   :  { %v13165_v44 = vld [vmem:[#allocation2 + $0x1f9c] sm:$0xf0] }
 0x424   :  { %v11289_v51 = vld [vmem:[#allocation2 + $0x1940] sm:$0xf]  ;;  %v12090_v32 = vor.u32 %v13165_v44, %v12089_v43  ;;  %7231 = vmatpush.bf16.msrb.mxu2 %v11834_v49 }
 0x425   :  { %v12965_v46 = vld [vmem:[#allocation2 + $0x195c] sm:$0xf0] }
 0x426   :  { %v11545_v42 = vld [vmem:[#allocation2 + $0x1b40] sm:$0xf]  ;;  %v11290_v27 = vor.u32 %v12965_v46, %v11289_v51  ;;  %7244 = vmatpush.bf16.msrb.mxu3 %v12090_v32 }
 0x427   :  { %v13029_v52 = vld [vmem:[#allocation2 + $0x1b5c] sm:$0xf0] }
 0x428   :  { %v11801_v53 = vld [vmem:[#allocation2 + $0x1d40] sm:$0xf]  ;;  %v11546_v15 = vor.u32 %v13029_v52, %v11545_v42  ;;  %7206 = vmatpush.bf16.msrb.mxu0 %v11290_v27 }
 0x429   :  { %v13093_v35 = vld [vmem:[#allocation2 + $0x1d5c] sm:$0xf0] }
 0x42a   :  { %v12057_v54 = vld [vmem:[#allocation2 + $0x1f40] sm:$0xf]  ;;  %v11802_v21 = vor.u32 %v13093_v35, %v11801_v53  ;;  %7219 = vmatpush.bf16.msrb.mxu1 %v11546_v15 }
 0x42b   :  { %v13157_v55 = vld [vmem:[#allocation2 + $0x1f5c] sm:$0xf0] }
 0x42c   :  { %v11257_v63 = vld [vmem:[#allocation2 + $0x1900] sm:$0xf]  ;;  %v12058_v59 = vor.u32 %v13157_v55, %v12057_v54  ;;  %7232 = vmatpush.bf16.msrb.mxu2 %v11802_v21 }
 0x42d   :  { %v12957_v57 = vld [vmem:[#allocation2 + $0x191c] sm:$0xf0] }
 0x42e   :  { %v11513_v17 = vld [vmem:[#allocation2 + $0x1b00] sm:$0xf]  ;;  %v11258_v10 = vor.u32 %v12957_v57, %v11257_v63  ;;  %7245 = vmatpush.bf16.msrb.mxu3 %v12058_v59 }
 0x42f   :  { %v13021_v58 = vld [vmem:[#allocation2 + $0x1b1c] sm:$0xf0] }
 0x430   :  { %v11769_v61 = vld [vmem:[#allocation2 + $0x1d00] sm:$0xf]  ;;  %v11514_v11 = vor.u32 %v13021_v58, %v11513_v17  ;;  %7207 = vmatpush.bf16.msrb.mxu0 %v11258_v10 }
 0x431   :  { %v13085_v50 = vld [vmem:[#allocation2 + $0x1d1c] sm:$0xf0] }
 0x432   :  { %v12025_v16 = vld [vmem:[#allocation2 + $0x1f00] sm:$0xf]  ;;  %v11770_v20 = vor.u32 %v13085_v50, %v11769_v61  ;;  %7220 = vmatpush.bf16.msrb.mxu1 %v11514_v11 }
 0x433   :  { %v13149_v62 = vld [vmem:[#allocation2 + $0x1f1c] sm:$0xf0] }
 0x434   :  { %v11225_v12 = vld [vmem:[#allocation2 + $0x18c0] sm:$0xf]  ;;  %v12026_v19 = vor.u32 %v13149_v62, %v12025_v16  ;;  %7233 = vmatpush.bf16.msrb.mxu2 %v11770_v20  ;;  %v12721_v20 = vld [vmem:[#allocation2 + $0x11c4] sm:$0xf] }
 0x435   :  { %v12949_v13 = vld [vmem:[#allocation2 + $0x18dc] sm:$0xf0] }
 0x436   :  { %v11481_v14 = vld [vmem:[#allocation2 + $0x1ac0] sm:$0xf]  ;;  %v11226_v26 = vor.u32 %v12949_v13, %v11225_v12  ;;  %7246 = vmatpush.bf16.msrb.mxu3 %v12026_v19  ;;  %v10331_v12 = vld [vmem:[#allocation2 + $0x11e0] sm:$0xf0] }
 0x437   :  { %v13013_v18 = vld [vmem:[#allocation2 + $0x1adc] sm:$0xf0]  ;;  %v12785_v13 = vld [vmem:[#allocation2 + $0x13c4] sm:$0xf] }
 0x438   :  { %v11737_v22 = vld [vmem:[#allocation2 + $0x1cc0] sm:$0xf]  ;;  %v11482_v29 = vor.u32 %v13013_v18, %v11481_v14  ;;  %7208 = vmatpush.bf16.msrb.mxu0 %v11226_v26  ;;  %v10587_v19 = vld [vmem:[#allocation2 + $0x13e0] sm:$0xf0] }
 0x439   :  { %v13077_v23 = vld [vmem:[#allocation2 + $0x1cdc] sm:$0xf0]  ;;  %v12849_v18 = vld [vmem:[#allocation2 + $0x15c4] sm:$0xf] }
 0x43a   :  { %v11993_v24 = vld [vmem:[#allocation2 + $0x1ec0] sm:$0xf]  ;;  %v11738_v30 = vor.u32 %v13077_v23, %v11737_v22  ;;  %7221 = vmatpush.bf16.msrb.mxu1 %v11482_v29  ;;  %v10843_v22 = vld [vmem:[#allocation2 + $0x15e0] sm:$0xf0] }
 0x43b   :  { %v13141_v25 = vld [vmem:[#allocation2 + $0x1edc] sm:$0xf0]  ;;  %v11099_v26 = vld [vmem:[#allocation2 + $0x17e0] sm:$0xf0] }
 0x43c   :  { %v11193_v33 = vld [vmem:[#allocation2 + $0x1880] sm:$0xf]  ;;  %v11994_v38 = vor.u32 %v13141_v25, %v11993_v24  ;;  %7234 = vmatpush.bf16.msrb.mxu2 %v11738_v30  ;;  %v12913_v25 = vld [vmem:[#allocation2 + $0x17c4] sm:$0xf]  ;;  %v10334_v30 = vor.u32 %v12721_v20, %v10331_v12 }
 0x43d   :  { %v12941_v34 = vld [vmem:[#allocation2 + $0x189c] sm:$0xf0]  ;;  %v12889_v20 = vld [vmem:[#allocation2 + $0x1704] sm:$0xf] }
 0x43e   :  { %v11449_v36 = vld [vmem:[#allocation2 + $0x1a80] sm:$0xf]  ;;  %v11194_v49 = vor.u32 %v12941_v34, %v11193_v33  ;;  %7247 = vmatpush.bf16.msrb.mxu3 %v11994_v38  ;;  %v10590_v33 = vor.u32 %v12785_v13, %v10587_v19  ;;  %v10846_v34 = vor.u32 %v12849_v18, %v10843_v22  ;;  %v10299_v38 = vld [vmem:[#allocation2 + $0x11a0] sm:$0xf0] }
 0x43f   :  { %v13005_v40 = vld [vmem:[#allocation2 + $0x1a9c] sm:$0xf0]  ;;  %v11003_v12 = vld [vmem:[#allocation2 + $0x1720] sm:$0xf0] }
 0x440   :  { %v11705_v43 = vld [vmem:[#allocation2 + $0x1c80] sm:$0xf]  ;;  %v11450_v51 = vor.u32 %v13005_v40, %v11449_v36  ;;  %7209 = vmatpush.bf16.msrb.mxu0 %v11194_v49  ;;  %v12713_v36 = vld [vmem:[#allocation2 + $0x1184] sm:$0xf]  ;;  %v13526_v49 = vpack.c.bf16 %v13499_v31, %v13499_v31 }
 0x441   :  { %v13069_v44 = vld [vmem:[#allocation2 + $0x1c9c] sm:$0xf0]  ;;  %v12777_v40 = vld [vmem:[#allocation2 + $0x1384] sm:$0xf] }
 0x442   :  { %v11961_v39 = vld [vmem:[#allocation2 + $0x1e80] sm:$0xf]  ;;  %v11706_v46 = vor.u32 %v13069_v44, %v11705_v43  ;;  %7222 = vmatpush.bf16.msrb.mxu1 %v11450_v51  ;;  %v11102_v43 = vor.u32 %v12913_v25, %v11099_v26  ;;  %v10555_v44 = vld [vmem:[#allocation2 + $0x13a0] sm:$0xf0] }
 0x443   :  { %v13133_v28 = vld [vmem:[#allocation2 + $0x1e9c] sm:$0xf0]  ;;  %v12905_v51 = vld [vmem:[#allocation2 + $0x1784] sm:$0xf]  ;;  %v10558_v31 = vor.u32 %v12777_v40, %v10555_v44 }
 0x444   :  { %v11161_v42 = vld [vmem:[#allocation2 + $0x1840] sm:$0xf]  ;;  %v11962_v53 = vor.u32 %v13133_v28, %v11961_v39  ;;  %7235 = vmatpush.bf16.msrb.mxu2 %v11706_v46  ;;  %v12841_v39 = vld [vmem:[#allocation2 + $0x1584] sm:$0xf] }
 0x445   :  { %v12933_v32 = vld [vmem:[#allocation2 + $0x185c] sm:$0xf0]  ;;  %v10811_v28 = vld [vmem:[#allocation2 + $0x15a0] sm:$0xf0] }
 0x446   :  { %v11417_v52 = vld [vmem:[#allocation2 + $0x1a40] sm:$0xf]  ;;  %v11162_v21 = vor.u32 %v12933_v32, %v11161_v42  ;;  %7248 = vmatpush.bf16.msrb.mxu3 %v11962_v53  ;;  %v11067_v46 = vld [vmem:[#allocation2 + $0x17a0] sm:$0xf0]  ;;  %v13530_v42 = vpack.c.bf16 %v13485_v48, %v13485_v48  ;;  %v13534_v32 = vpack.c.bf16 %v13502_v60, %v13502_v60  ;;  %v13538_v53 = vpack.c.bf16 %v13496_v56, %v13496_v56 }
 0x447   :  { %v12997_v35 = vld [vmem:[#allocation2 + $0x1a5c] sm:$0xf0]  ;;  %v11070_v48 = vor.u32 %v12905_v51, %v11067_v46  ;;  %v10523_v60 = vld [vmem:[#allocation2 + $0x1360] sm:$0xf0] }
 0x448   :  { %v11673_v54 = vld [vmem:[#allocation2 + $0x1c40] sm:$0xf]  ;;  %v11418_v17 = vor.u32 %v12997_v35, %v11417_v52  ;;  %7210 = vmatpush.bf16.msrb.mxu0 %v11162_v21  ;;  %v10302_v52 = vor.u32 %v12713_v36, %v10299_v38  ;;  %v10814_v35 = vor.u32 %v12841_v39, %v10811_v28  ;;  %v10779_v21 = vld [vmem:[#allocation2 + $0x1560] sm:$0xf0] }
 0x449   :  { %v13061_v55 = vld [vmem:[#allocation2 + $0x1c5c] sm:$0xf0]  ;;  %v12897_v56 = vld [vmem:[#allocation2 + $0x1744] sm:$0xf] }
 0x44a   :  { %v11929_v27 = vld [vmem:[#allocation2 + $0x1e40] sm:$0xf]  ;;  %v11674_v59 = vor.u32 %v13061_v55, %v11673_v54  ;;  %7223 = vmatpush.bf16.msrb.mxu1 %v11418_v17  ;;  %v12705_v54 = vld [vmem:[#allocation2 + $0x1144] sm:$0xf] }
 0x44b   :  { %v13125_v15 = vld [vmem:[#allocation2 + $0x1e5c] sm:$0xf0]  ;;  %v10267_v55 = vld [vmem:[#allocation2 + $0x1160] sm:$0xf0] }
 0x44c   :  { %v11129_v63 = vld [vmem:[#allocation2 + $0x1800] sm:$0xf]  ;;  %v11930_v16 = vor.u32 %v13125_v15, %v11929_v27  ;;  %7236 = vmatpush.bf16.msrb.mxu2 %v11674_v59  ;;  %v12769_v27 = vld [vmem:[#allocation2 + $0x1344] sm:$0xf] }
 0x44d   :  { %v12925_v57 = vld [vmem:[#allocation2 + $0x181c] sm:$0xf0]  ;;  %v12833_v15 = vld [vmem:[#allocation2 + $0x1544] sm:$0xf]  ;;  %v10526_v17 = vor.u32 %v12769_v27, %v10523_v60 }
 0x44e   :  { %v11385_v58 = vld [vmem:[#allocation2 + $0x1a00] sm:$0xf]  ;;  %v11130_v14 = vor.u32 %v12925_v57, %v11129_v63  ;;  %7249 = vmatpush.bf16.msrb.mxu3 %v11930_v16  ;;  %v11035_v63 = vld [vmem:[#allocation2 + $0x1760] sm:$0xf0]  ;;  %v10270_v57 = vor.u32 %v12705_v54, %v10267_v55  ;;  %v10782_v59 = vor.u32 %v12833_v15, %v10779_v21 }
 0x44f   :  { %v12989_v61 = vld [vmem:[#allocation2 + $0x1a1c] sm:$0xf0]  ;;  %v11038_v16 = vor.u32 %v12897_v56, %v11035_v63  ;;  %v12689_v18 = vld [vmem:[#allocation2 + $0x10c4] sm:$0xf] }
 0x450   :  { %v11641_v50 = vld [vmem:[#allocation2 + $0x1c00] sm:$0xf]  ;;  %v11386_v23 = vor.u32 %v12989_v61, %v11385_v58  ;;  %7211 = vmatpush.bf16.msrb.mxu0 %v11130_v14  ;;  %v12697_v58 = vld [vmem:[#allocation2 + $0x1104] sm:$0xf] }
 0x451   :  { %v13053_v62 = vld [vmem:[#allocation2 + $0x1c1c] sm:$0xf0]  ;;  %v10235_v61 = vld [vmem:[#allocation2 + $0x1120] sm:$0xf0] }
 0x452   :  { %v11897_v10 = vld [vmem:[#allocation2 + $0x1e00] sm:$0xf]  ;;  %v11642_v24 = vor.u32 %v13053_v62, %v11641_v50  ;;  %7224 = vmatpush.bf16.msrb.mxu1 %v11386_v23  ;;  %v12761_v50 = vld [vmem:[#allocation2 + $0x1304] sm:$0xf]  ;;  %v10238_v13 = vor.u32 %v12697_v58, %v10235_v61 }
 0x453   :  { %v13117_v11 = vld [vmem:[#allocation2 + $0x1e1c] sm:$0xf0]  ;;  %7212 = vmatmul.bf16.vlgmr.msrb.gmra.mxu0 %v13530_v42  ;;  %v10491_v62 = vld [vmem:[#allocation2 + $0x1320] sm:$0xf0] }
 0x454   :  { %v11898_v29 = vor.u32 %v13117_v11, %v11897_v10  ;;  %7237 = vmatpush.bf16.msrb.mxu2 %v11642_v24  ;;  %7256 = vmatpush.bf16.msra.mxu0 %v10334_v30  ;;  %v12825_v10 = vld [vmem:[#allocation2 + $0x1504] sm:$0xf]  ;;  %v10494_v14 = vor.u32 %v12761_v50, %v10491_v62  ;;  %v11006_v24 = vor.u32 %v12889_v20, %v11003_v12 }
 0x455   :  { %7225 = vmatmul.bf16.vlgmr.msrb.gmra.mxu1 %v13538_v53  ;;  %v10747_v11 = vld [vmem:[#allocation2 + $0x1520] sm:$0xf0] }
 0x456   :  { %7250 = vmatpush.bf16.msrb.mxu3 %v11898_v29  ;;  %7269 = vmatpush.bf16.msra.mxu1 %v10590_v33  ;;  %v10750_v19 = vor.u32 %v12825_v10, %v10747_v11  ;;  %v10203_v22 = vld [vmem:[#allocation2 + $0x10e0] sm:$0xf0] }
 0x457   :  { %7238 = vmatmul.bf16.vlgmr.msrb.gmra.mxu2 %v13526_v49  ;;  %v12753_v23 = vld [vmem:[#allocation2 + $0x12c4] sm:$0xf] }
 0x458   :  { %7282 = vmatpush.bf16.msra.mxu2 %v10846_v34  ;;  %7257 = vmatpush.bf16.msra.mxu0 %v10302_v52  ;;  %v10459_v25 = vld [vmem:[#allocation2 + $0x12e0] sm:$0xf0]  ;;  %v10206_v34 = vor.u32 %v12689_v18, %v10203_v22 }
 0x459   :  { %7251 = vmatmul.bf16.vlgmr.msrb.gmra.mxu3 %v13534_v32  ;;  %v12817_v26 = vld [vmem:[#allocation2 + $0x14c4] sm:$0xf]  ;;  %v10462_v36 = vor.u32 %v12753_v23, %v10459_v25 }
 0x45a   :  { %7295 = vmatpush.bf16.msra.mxu3 %v11102_v43  ;;  %7270 = vmatpush.bf16.msra.mxu1 %v10558_v31  ;;  %v10715_v29 = vld [vmem:[#allocation2 + $0x14e0] sm:$0xf0] }
 0x45b   :  { %v12881_v30 = vld [vmem:[#allocation2 + $0x16c4] sm:$0xf]  ;;  %v10718_v38 = vor.u32 %v12817_v26, %v10715_v29 }
 0x45c   :  { %7283 = vmatpush.bf16.msra.mxu2 %v10814_v35  ;;  %7258 = vmatpush.bf16.msra.mxu0 %v10270_v57  ;;  %v10971_v33 = vld [vmem:[#allocation2 + $0x16e0] sm:$0xf0] }
 0x45d   :  { %v12681_v40 = vld [vmem:[#allocation2 + $0x1084] sm:$0xf]  ;;  %v10974_v39 = vor.u32 %v12881_v30, %v10971_v33 }
 0x45e   :  { %7296 = vmatpush.bf16.msra.mxu3 %v11070_v48  ;;  %7271 = vmatpush.bf16.msra.mxu1 %v10526_v17  ;;  %v10171_v43 = vld [vmem:[#allocation2 + $0x10a0] sm:$0xf0] }
 0x45f   :  { %v12745_v44 = vld [vmem:[#allocation2 + $0x1284] sm:$0xf]  ;;  %v10174_v35 = vor.u32 %v12681_v40, %v10171_v43 }
 0x460   :  { %7284 = vmatpush.bf16.msra.mxu2 %v10782_v59  ;;  %7259 = vmatpush.bf16.msra.mxu0 %v10238_v13  ;;  %v10427_v28 = vld [vmem:[#allocation2 + $0x12a0] sm:$0xf0] }
 0x461   :  { %v12809_v51 = vld [vmem:[#allocation2 + $0x1484] sm:$0xf]  ;;  %v10430_v54 = vor.u32 %v12745_v44, %v10427_v28 }
 0x462   :  { %7297 = vmatpush.bf16.msra.mxu3 %v11038_v16  ;;  %7272 = vmatpush.bf16.msra.mxu1 %v10494_v14  ;;  %v10683_v46 = vld [vmem:[#allocation2 + $0x14a0] sm:$0xf0] }
 0x463   :  { %v12873_v52 = vld [vmem:[#allocation2 + $0x1684] sm:$0xf]  ;;  %v10686_v55 = vor.u32 %v12809_v51, %v10683_v46 }
 0x464   :  { %7285 = vmatpush.bf16.msra.mxu2 %v10750_v19  ;;  %v10939_v31 = vld [vmem:[#allocation2 + $0x16a0] sm:$0xf0]  ;;  %7260 = vmatpush.bf16.msra.mxu0 %v10206_v34 }
 0x465   :  { %v12673_v27 = vld [vmem:[#allocation2 + $0x1044] sm:$0xf]  ;;  %v10942_v15 = vor.u32 %v12873_v52, %v10939_v31 }
 0x466   :  { %7298 = vmatpush.bf16.msra.mxu3 %v11006_v24  ;;  %7273 = vmatpush.bf16.msra.mxu1 %v10462_v36  ;;  %v10139_v48 = vld [vmem:[#allocation2 + $0x1060] sm:$0xf0] }
 0x467   :  { %v12737_v60 = vld [vmem:[#allocation2 + $0x1244] sm:$0xf]  ;;  %v10142_v59 = vor.u32 %v12673_v27, %v10139_v48 }
 0x468   :  { %7286 = vmatpush.bf16.msra.mxu2 %v10718_v38  ;;  %v10395_v21 = vld [vmem:[#allocation2 + $0x1260] sm:$0xf0]  ;;  %7261 = vmatpush.bf16.msra.mxu0 %v10174_v35 }
 0x469   :  { %v12801_v56 = vld [vmem:[#allocation2 + $0x1444] sm:$0xf]  ;;  %v10398_v50 = vor.u32 %v12737_v60, %v10395_v21 }
 0x46a   :  { %7299 = vmatpush.bf16.msra.mxu3 %v10974_v39  ;;  %v10651_v63 = vld [vmem:[#allocation2 + $0x1460] sm:$0xf0]  ;;  %7274 = vmatpush.bf16.msra.mxu1 %v10430_v54 }
 0x46b   :  { %v12865_v57 = vld [vmem:[#allocation2 + $0x1644] sm:$0xf]  ;;  %v10654_v16 = vor.u32 %v12801_v56, %v10651_v63 }
 0x46c   :  { %v10907_v17 = vld [vmem:[#allocation2 + $0x1660] sm:$0xf0]  ;;  %7287 = vmatpush.bf16.msra.mxu2 %v10686_v55  ;;  %7262 = vmatpush.bf16.msra.mxu0 %v10142_v59 }
 0x46d   :  { %v12665_v58 = vld [vmem:[#allocation2 + $0x1004] sm:$0xf]  ;;  %v10910_v20 = vor.u32 %v12865_v57, %v10907_v17 }
 0x46e   :  { %v10107_v61 = vld [vmem:[#allocation2 + $0x1020] sm:$0xf0]  ;;  %7300 = vmatpush.bf16.msra.mxu3 %v10942_v15  ;;  %7275 = vmatpush.bf16.msra.mxu1 %v10398_v50 }
 0x46f   :  { %v12729_v62 = vld [vmem:[#allocation2 + $0x1204] sm:$0xf]  ;;  %v10110_v23 = vor.u32 %v12665_v58, %v10107_v61 }
 0x470   :  { %v10363_v10 = vld [vmem:[#allocation2 + $0x1220] sm:$0xf0]  ;;  %7288 = vmatpush.bf16.msra.mxu2 %v10654_v16 }
 0x471   :  { %v12793_v11 = vld [vmem:[#allocation2 + $0x1404] sm:$0xf]  ;;  %v10366_v29 = vor.u32 %v12729_v62, %v10363_v10  ;;  %7263 = vmatpush.bf16.msra.mxu0 %v10110_v23 }
 0x472   :  { %v10619_v12 = vld [vmem:[#allocation2 + $0x1420] sm:$0xf0]  ;;  %7301 = vmatpush.bf16.msra.mxu3 %v10910_v20 }
 0x473   :  { %v12857_v13 = vld [vmem:[#allocation2 + $0x1604] sm:$0xf]  ;;  %v10622_v30 = vor.u32 %v12793_v11, %v10619_v12  ;;  %7276 = vmatpush.bf16.msra.mxu1 %v10366_v29 }
 0x474   :  { %v10875_v14 = vld [vmem:[#allocation2 + $0x1620] sm:$0xf0]  ;;  %7264 = vmatmul.bf16.vlgmr.msra.gmra.mxu0 %v13510_v45 }
 0x475   :  { %v12977_v19 = vld [vmem:[#allocation2 + $0x19c4] sm:$0xf]  ;;  %v10878_v36 = vor.u32 %v12857_v13, %v10875_v14  ;;  %7289 = vmatpush.bf16.msra.mxu2 %v10622_v30 }
 0x476   :  { %v11355_v18 = vld [vmem:[#allocation2 + $0x19e0] sm:$0xf0]  ;;  %7277 = vmatmul.bf16.vlgmr.msra.gmra.mxu1 %v13518_v37 }
 0x477   :  { %v13041_v22 = vld [vmem:[#allocation2 + $0x1bc4] sm:$0xf]  ;;  %v11358_v38 = vor.u32 %v12977_v19, %v11355_v18  ;;  %7302 = vmatpush.bf16.msra.mxu3 %v10878_v36 }
 0x478   :  { %v11611_v24 = vld [vmem:[#allocation2 + $0x1be0] sm:$0xf0]  ;;  %7290 = vmatmul.bf16.vlgmr.msra.gmra.mxu2 %v13506_v41 }
 0x479   :  { %v13105_v25 = vld [vmem:[#allocation2 + $0x1dc4] sm:$0xf]  ;;  %v11614_v40 = vor.u32 %v13041_v22, %v11611_v24  ;;  %7308 = vmatpush.bf16.msrb.mxu0 %v11358_v38 }
 0x47a   :  { %v11867_v26 = vld [vmem:[#allocation2 + $0x1de0] sm:$0xf0]  ;;  %7303 = vmatmul.bf16.vlgmr.msra.gmra.mxu3 %v13514_v47 }
 0x47b   :  { %v13169_v33 = vld [vmem:[#allocation2 + $0x1fc4] sm:$0xf]  ;;  %v11870_v43 = vor.u32 %v13105_v25, %v11867_v26  ;;  %7321 = vmatpush.bf16.msrb.mxu1 %v11614_v40 }
 0x47c   :  { %v12123_v34 = vld [vmem:[#allocation2 + $0x1fe0] sm:$0xf0] }
 0x47d   :  { %v12969_v44 = vld [vmem:[#allocation2 + $0x1984] sm:$0xf]  ;;  %v12126_v51 = vor.u32 %v13169_v33, %v12123_v34  ;;  %7334 = vmatpush.bf16.msrb.mxu2 %v11870_v43 }
 0x47e   :  { %v11323_v39 = vld [vmem:[#allocation2 + $0x19a0] sm:$0xf0] }
 0x47f   :  { %v13033_v28 = vld [vmem:[#allocation2 + $0x1b84] sm:$0xf]  ;;  %v11326_v55 = vor.u32 %v12969_v44, %v11323_v39  ;;  %7347 = vmatpush.bf16.msrb.mxu3 %v12126_v51 }
 0x480   :  { %v11579_v46 = vld [vmem:[#allocation2 + $0x1ba0] sm:$0xf0] }
 0x481   :  { %v13097_v52 = vld [vmem:[#allocation2 + $0x1d84] sm:$0xf]  ;;  %v11582_v27 = vor.u32 %v13033_v28, %v11579_v46  ;;  %7309 = vmatpush.bf16.msrb.mxu0 %v11326_v55 }
 0x482   :  { %v11835_v31 = vld [vmem:[#allocation2 + $0x1da0] sm:$0xf0] }
 0x483   :  { %v13161_v35 = vld [vmem:[#allocation2 + $0x1f84] sm:$0xf]  ;;  %v11838_v48 = vor.u32 %v13097_v52, %v11835_v31  ;;  %7322 = vmatpush.bf16.msrb.mxu1 %v11582_v27 }
 0x484   :  { %v12091_v54 = vld [vmem:[#allocation2 + $0x1fa0] sm:$0xf0] }
 0x485   :  { %v12961_v60 = vld [vmem:[#allocation2 + $0x1944] sm:$0xf]  ;;  %v12094_v56 = vor.u32 %v13161_v35, %v12091_v54  ;;  %7335 = vmatpush.bf16.msrb.mxu2 %v11838_v48 }
 0x486   :  { %v11291_v15 = vld [vmem:[#allocation2 + $0x1960] sm:$0xf0] }
 0x487   :  { %v13025_v21 = vld [vmem:[#allocation2 + $0x1b44] sm:$0xf]  ;;  %v11294_v61 = vor.u32 %v12961_v60, %v11291_v15  ;;  %7348 = vmatpush.bf16.msrb.mxu3 %v12094_v56 }
 0x488   :  { %v11547_v63 = vld [vmem:[#allocation2 + $0x1b60] sm:$0xf0] }
 0x489   :  { %v13089_v57 = vld [vmem:[#allocation2 + $0x1d44] sm:$0xf]  ;;  %v11550_v50 = vor.u32 %v13025_v21, %v11547_v63  ;;  %7310 = vmatpush.bf16.msrb.mxu0 %v11294_v61 }
 0x48a   :  { %v11803_v17 = vld [vmem:[#allocation2 + $0x1d60] sm:$0xf0] }
 0x48b   :  { %v13153_v59 = vld [vmem:[#allocation2 + $0x1f44] sm:$0xf]  ;;  %v11806_v16 = vor.u32 %v13089_v57, %v11803_v17  ;;  %7323 = vmatpush.bf16.msrb.mxu1 %v11550_v50 }
 0x48c   :  { %v12059_v58 = vld [vmem:[#allocation2 + $0x1f60] sm:$0xf0] }
 0x48d   :  { %v12953_v62 = vld [vmem:[#allocation2 + $0x1904] sm:$0xf]  ;;  %v12062_v20 = vor.u32 %v13153_v59, %v12059_v58  ;;  %7336 = vmatpush.bf16.msrb.mxu2 %v11806_v16 }
 0x48e   :  { %v11259_v10 = vld [vmem:[#allocation2 + $0x1920] sm:$0xf0] }
 0x48f   :  { %v13017_v11 = vld [vmem:[#allocation2 + $0x1b04] sm:$0xf]  ;;  %v11262_v22 = vor.u32 %v12953_v62, %v11259_v10  ;;  %7349 = vmatpush.bf16.msrb.mxu3 %v12062_v20 }
 0x490   :  { %v11515_v12 = vld [vmem:[#allocation2 + $0x1b20] sm:$0xf0] }
 0x491   :  { %v13081_v13 = vld [vmem:[#allocation2 + $0x1d04] sm:$0xf]  ;;  %v11518_v23 = vor.u32 %v13017_v11, %v11515_v12  ;;  %7311 = vmatpush.bf16.msrb.mxu0 %v11262_v22 }
 0x492   :  { %v11771_v14 = vld [vmem:[#allocation2 + $0x1d20] sm:$0xf0] }
 0x493   :  { %v13145_v19 = vld [vmem:[#allocation2 + $0x1f04] sm:$0xf]  ;;  %v11774_v24 = vor.u32 %v13081_v13, %v11771_v14  ;;  %7324 = vmatpush.bf16.msrb.mxu1 %v11518_v23 }
 0x494   :  { %v12027_v18 = vld [vmem:[#allocation2 + $0x1f20] sm:$0xf0] }
 0x495   :  { %v12945_v25 = vld [vmem:[#allocation2 + $0x18c4] sm:$0xf]  ;;  %v12030_v30 = vor.u32 %v13145_v19, %v12027_v18  ;;  %7337 = vmatpush.bf16.msrb.mxu2 %v11774_v24  ;;  %v10337_v24 = vld [vmem:[#allocation2 + $0x11c8] sm:$0xf] }
 0x496   :  { %v11227_v26 = vld [vmem:[#allocation2 + $0x18e0] sm:$0xf0] }
 0x497   :  { %v13009_v29 = vld [vmem:[#allocation2 + $0x1ac4] sm:$0xf]  ;;  %v11230_v43 = vor.u32 %v12945_v25, %v11227_v26  ;;  %7350 = vmatpush.bf16.msrb.mxu3 %v12030_v30  ;;  %v12726_v25 = vld [vmem:[#allocation2 + $0x11e4] sm:$0xf0] }
 0x498   :  { %v11483_v33 = vld [vmem:[#allocation2 + $0x1ae0] sm:$0xf0]  ;;  %v10593_v26 = vld [vmem:[#allocation2 + $0x13c8] sm:$0xf] }
 0x499   :  { %v13073_v34 = vld [vmem:[#allocation2 + $0x1cc4] sm:$0xf]  ;;  %v11486_v44 = vor.u32 %v13009_v29, %v11483_v33  ;;  %7312 = vmatpush.bf16.msrb.mxu0 %v11230_v43  ;;  %v12790_v30 = vld [vmem:[#allocation2 + $0x13e4] sm:$0xf0] }
 0x49a   :  { %v11739_v36 = vld [vmem:[#allocation2 + $0x1ce0] sm:$0xf0]  ;;  %v10849_v33 = vld [vmem:[#allocation2 + $0x15c8] sm:$0xf] }
 0x49b   :  { %v13137_v38 = vld [vmem:[#allocation2 + $0x1ec4] sm:$0xf]  ;;  %v11742_v39 = vor.u32 %v13073_v34, %v11739_v36  ;;  %7325 = vmatpush.bf16.msrb.mxu1 %v11486_v44  ;;  %v12854_v34 = vld [vmem:[#allocation2 + $0x15e4] sm:$0xf0] }
 0x49c   :  { %v11995_v40 = vld [vmem:[#allocation2 + $0x1ee0] sm:$0xf0]  ;;  %v12918_v43 = vld [vmem:[#allocation2 + $0x17e4] sm:$0xf0] }
 0x49d   :  { %v12937_v28 = vld [vmem:[#allocation2 + $0x1884] sm:$0xf]  ;;  %v11998_v52 = vor.u32 %v13137_v38, %v11995_v40  ;;  %7338 = vmatpush.bf16.msrb.mxu2 %v11742_v39  ;;  %v11105_v40 = vld [vmem:[#allocation2 + $0x17c8] sm:$0xf]  ;;  %v10338_v39 = vor.u32 %v12726_v25, %v10337_v24 }
 0x49e   :  { %v11195_v51 = vld [vmem:[#allocation2 + $0x18a0] sm:$0xf0]  ;;  %v11009_v24 = vld [vmem:[#allocation2 + $0x1708] sm:$0xf] }
 0x49f   :  { %v13001_v46 = vld [vmem:[#allocation2 + $0x1a84] sm:$0xf]  ;;  %v11198_v48 = vor.u32 %v12937_v28, %v11195_v51  ;;  %7351 = vmatpush.bf16.msrb.mxu3 %v11998_v52  ;;  %v10594_v28 = vor.u32 %v12790_v30, %v10593_v26  ;;  %v10850_v51 = vor.u32 %v12854_v34, %v10849_v33  ;;  %v12718_v52 = vld [vmem:[#allocation2 + $0x11a4] sm:$0xf0] }
 0x4a0   :  { %v11451_v31 = vld [vmem:[#allocation2 + $0x1aa0] sm:$0xf0]  ;;  %v12894_v25 = vld [vmem:[#allocation2 + $0x1724] sm:$0xf0] }
 0x4a1   :  { %v13065_v35 = vld [vmem:[#allocation2 + $0x1c84] sm:$0xf]  ;;  %v11454_v60 = vor.u32 %v13001_v46, %v11451_v31  ;;  %7313 = vmatpush.bf16.msrb.mxu0 %v11198_v48  ;;  %v10305_v46 = vld [vmem:[#allocation2 + $0x1188] sm:$0xf] }
 0x4a2   :  { %v11707_v54 = vld [vmem:[#allocation2 + $0x1ca0] sm:$0xf0]  ;;  %v10561_v31 = vld [vmem:[#allocation2 + $0x1388] sm:$0xf] }
 0x4a3   :  { %v13129_v55 = vld [vmem:[#allocation2 + $0x1e84] sm:$0xf]  ;;  %v11710_v15 = vor.u32 %v13065_v35, %v11707_v54  ;;  %7326 = vmatpush.bf16.msrb.mxu1 %v11454_v60  ;;  %v11106_v35 = vor.u32 %v12918_v43, %v11105_v40  ;;  %v12782_v54 = vld [vmem:[#allocation2 + $0x13a4] sm:$0xf0] }
 0x4a4   :  { %v11963_v27 = vld [vmem:[#allocation2 + $0x1ea0] sm:$0xf0]  ;;  %v11073_v48 = vld [vmem:[#allocation2 + $0x1788] sm:$0xf] }
 0x4a5   :  { %v12929_v21 = vld [vmem:[#allocation2 + $0x1844] sm:$0xf]  ;;  %v11966_v57 = vor.u32 %v13129_v55, %v11963_v27  ;;  %7339 = vmatpush.bf16.msrb.mxu2 %v11710_v15  ;;  %v10817_v55 = vld [vmem:[#allocation2 + $0x1588] sm:$0xf]  ;;  %v10306_v15 = vor.u32 %v12718_v52, %v10305_v46 }
 0x4a6   :  { %v11163_v56 = vld [vmem:[#allocation2 + $0x1860] sm:$0xf0]  ;;  %v12846_v27 = vld [vmem:[#allocation2 + $0x15a4] sm:$0xf0] }
 0x4a7   :  { %v12993_v63 = vld [vmem:[#allocation2 + $0x1a44] sm:$0xf]  ;;  %v11166_v16 = vor.u32 %v12929_v21, %v11163_v56  ;;  %7352 = vmatpush.bf16.msrb.mxu3 %v11966_v57  ;;  %v12910_v60 = vld [vmem:[#allocation2 + $0x17a4] sm:$0xf0]  ;;  %v10562_v21 = vor.u32 %v12782_v54, %v10561_v31  ;;  %v10818_v56 = vor.u32 %v12846_v27, %v10817_v55 }
 0x4a8   :  { %v11419_v17 = vld [vmem:[#allocation2 + $0x1a60] sm:$0xf0]  ;;  %v12710_v57 = vld [vmem:[#allocation2 + $0x1164] sm:$0xf0] }
 0x4a9   :  { %v13057_v59 = vld [vmem:[#allocation2 + $0x1c44] sm:$0xf]  ;;  %v11422_v11 = vor.u32 %v12993_v63, %v11419_v17  ;;  %7314 = vmatpush.bf16.msrb.mxu0 %v11166_v16  ;;  %v10273_v63 = vld [vmem:[#allocation2 + $0x1148] sm:$0xf] }
 0x4aa   :  { %v11675_v58 = vld [vmem:[#allocation2 + $0x1c60] sm:$0xf0]  ;;  %v10529_v17 = vld [vmem:[#allocation2 + $0x1348] sm:$0xf] }
 0x4ab   :  { %v13121_v61 = vld [vmem:[#allocation2 + $0x1e44] sm:$0xf]  ;;  %v11678_v20 = vor.u32 %v13057_v59, %v11675_v58  ;;  %7327 = vmatpush.bf16.msrb.mxu1 %v11422_v11  ;;  %v11074_v59 = vor.u32 %v12910_v60, %v11073_v48  ;;  %v12774_v58 = vld [vmem:[#allocation2 + $0x1364] sm:$0xf0] }
 0x4ac   :  { %v11931_v50 = vld [vmem:[#allocation2 + $0x1e60] sm:$0xf0]  ;;  %v11041_v16 = vld [vmem:[#allocation2 + $0x1748] sm:$0xf]  ;;  %v10530_v11 = vor.u32 %v12774_v58, %v10529_v17 }
 0x4ad   :  { %v12921_v62 = vld [vmem:[#allocation2 + $0x1804] sm:$0xf]  ;;  %v11934_v19 = vor.u32 %v13121_v61, %v11931_v50  ;;  %7340 = vmatpush.bf16.msrb.mxu2 %v11678_v20  ;;  %v10785_v61 = vld [vmem:[#allocation2 + $0x1548] sm:$0xf] }
 0x4ae   :  { %v11131_v10 = vld [vmem:[#allocation2 + $0x1820] sm:$0xf0]  ;;  %v12838_v50 = vld [vmem:[#allocation2 + $0x1564] sm:$0xf0] }
 0x4af   :  { %v12985_v12 = vld [vmem:[#allocation2 + $0x1a04] sm:$0xf]  ;;  %v11134_v29 = vor.u32 %v12921_v62, %v11131_v10  ;;  %7353 = vmatpush.bf16.msrb.mxu3 %v11934_v19  ;;  %v12902_v62 = vld [vmem:[#allocation2 + $0x1764] sm:$0xf0]  ;;  %v10274_v10 = vor.u32 %v12710_v57, %v10273_v63  ;;  %v10786_v20 = vor.u32 %v12838_v50, %v10785_v61 }
 0x4b0   :  { %v11387_v13 = vld [vmem:[#allocation2 + $0x1a20] sm:$0xf0]  ;;  %v11042_v19 = vor.u32 %v12902_v62, %v11041_v16  ;;  %v10209_v33 = vld [vmem:[#allocation2 + $0x10c8] sm:$0xf] }
 0x4b1   :  { %v13049_v14 = vld [vmem:[#allocation2 + $0x1c04] sm:$0xf]  ;;  %v11390_v36 = vor.u32 %v12985_v12, %v11387_v13  ;;  %7315 = vmatpush.bf16.msrb.mxu0 %v11134_v29  ;;  %v10241_v12 = vld [vmem:[#allocation2 + $0x1108] sm:$0xf] }
 0x4b2   :  { %v11643_v18 = vld [vmem:[#allocation2 + $0x1c20] sm:$0xf0]  ;;  %v12702_v13 = vld [vmem:[#allocation2 + $0x1124] sm:$0xf0] }
 0x4b3   :  { %v13113_v22 = vld [vmem:[#allocation2 + $0x1e04] sm:$0xf]  ;;  %v11646_v38 = vor.u32 %v13049_v14, %v11643_v18  ;;  %7328 = vmatpush.bf16.msrb.mxu1 %v11390_v36  ;;  %v10497_v14 = vld [vmem:[#allocation2 + $0x1308] sm:$0xf]  ;;  %v10242_v26 = vor.u32 %v12702_v13, %v10241_v12 }
 0x4b4   :  { %v11899_v23 = vld [vmem:[#allocation2 + $0x1e20] sm:$0xf0]  ;;  %7316 = vmatmul.bf16.vlgmr.msrb.gmra.mxu0 %v13530_v42  ;;  %v12766_v18 = vld [vmem:[#allocation2 + $0x1324] sm:$0xf0] }
 0x4b5   :  { %v11902_v44 = vor.u32 %v13113_v22, %v11899_v23  ;;  %7341 = vmatpush.bf16.msrb.mxu2 %v11646_v38  ;;  %7360 = vmatpush.bf16.msra.mxu0 %v10338_v39  ;;  %v10753_v22 = vld [vmem:[#allocation2 + $0x1508] sm:$0xf]  ;;  %v10498_v29 = vor.u32 %v12766_v18, %v10497_v14  ;;  %v11010_v38 = vor.u32 %v12894_v25, %v11009_v24 }
 0x4b6   :  { %7329 = vmatmul.bf16.vlgmr.msrb.gmra.mxu1 %v13538_v53  ;;  %v12830_v23 = vld [vmem:[#allocation2 + $0x1524] sm:$0xf0] }
 0x4b7   :  { %7354 = vmatpush.bf16.msrb.mxu3 %v11902_v44  ;;  %7373 = vmatpush.bf16.msra.mxu1 %v10594_v28  ;;  %v10754_v30 = vor.u32 %v12830_v23, %v10753_v22  ;;  %v12694_v34 = vld [vmem:[#allocation2 + $0x10e4] sm:$0xf0] }
 0x4b8   :  { %7342 = vmatmul.bf16.vlgmr.msrb.gmra.mxu2 %v13526_v49  ;;  %v10465_v36 = vld [vmem:[#allocation2 + $0x12c8] sm:$0xf] }
 0x4b9   :  { %7386 = vmatpush.bf16.msra.mxu2 %v10850_v51  ;;  %7361 = vmatpush.bf16.msra.mxu0 %v10306_v15  ;;  %v12758_v40 = vld [vmem:[#allocation2 + $0x12e4] sm:$0xf0]  ;;  %v10210_v51 = vor.u32 %v12694_v34, %v10209_v33 }
 0x4ba   :  { %7355 = vmatmul.bf16.vlgmr.msrb.gmra.mxu3 %v13534_v32  ;;  %v10721_v43 = vld [vmem:[#allocation2 + $0x14c8] sm:$0xf]  ;;  %v10466_v46 = vor.u32 %v12758_v40, %v10465_v36 }
 0x4bb   :  { %7399 = vmatpush.bf16.msra.mxu3 %v11106_v35  ;;  %7374 = vmatpush.bf16.msra.mxu1 %v10562_v21  ;;  %v12822_v44 = vld [vmem:[#allocation2 + $0x14e4] sm:$0xf0] }
 0x4bc   :  { %v10977_v39 = vld [vmem:[#allocation2 + $0x16c8] sm:$0xf]  ;;  %v10722_v52 = vor.u32 %v12822_v44, %v10721_v43 }
 0x4bd   :  { %7387 = vmatpush.bf16.msra.mxu2 %v10818_v56  ;;  %7362 = vmatpush.bf16.msra.mxu0 %v10274_v10  ;;  %v12886_v28 = vld [vmem:[#allocation2 + $0x16e4] sm:$0xf0] }
 0x4be   :  { %v10177_v31 = vld [vmem:[#allocation2 + $0x1088] sm:$0xf]  ;;  %v10978_v55 = vor.u32 %v12886_v28, %v10977_v39 }
 0x4bf   :  { %7400 = vmatpush.bf16.msra.mxu3 %v11074_v59  ;;  %7375 = vmatpush.bf16.msra.mxu1 %v10530_v11  ;;  %v12686_v35 = vld [vmem:[#allocation2 + $0x10a4] sm:$0xf0] }
 0x4c0   :  { %v10433_v54 = vld [vmem:[#allocation2 + $0x1288] sm:$0xf]  ;;  %v10178_v56 = vor.u32 %v12686_v35, %v10177_v31 }
 0x4c1   :  { %7388 = vmatpush.bf16.msra.mxu2 %v10786_v20  ;;  %7363 = vmatpush.bf16.msra.mxu0 %v10242_v26  ;;  %v12750_v27 = vld [vmem:[#allocation2 + $0x12a4] sm:$0xf0] }
 0x4c2   :  { %v10689_v48 = vld [vmem:[#allocation2 + $0x1488] sm:$0xf]  ;;  %v10434_v63 = vor.u32 %v12750_v27, %v10433_v54 }
 0x4c3   :  { %7401 = vmatpush.bf16.msra.mxu3 %v11042_v19  ;;  %7376 = vmatpush.bf16.msra.mxu1 %v10498_v29  ;;  %v12814_v60 = vld [vmem:[#allocation2 + $0x14a4] sm:$0xf0] }
 0x4c4   :  { %v10945_v15 = vld [vmem:[#allocation2 + $0x1688] sm:$0xf]  ;;  %v10690_v57 = vor.u32 %v12814_v60, %v10689_v48 }
 0x4c5   :  { %7389 = vmatpush.bf16.msra.mxu2 %v10754_v30  ;;  %v12878_v21 = vld [vmem:[#allocation2 + $0x16a4] sm:$0xf0]  ;;  %7364 = vmatpush.bf16.msra.mxu0 %v10210_v51 }
 0x4c6   :  { %v10145_v17 = vld [vmem:[#allocation2 + $0x1048] sm:$0xf]  ;;  %v10946_v61 = vor.u32 %v12878_v21, %v10945_v15 }
 0x4c7   :  { %7402 = vmatpush.bf16.msra.mxu3 %v11010_v38  ;;  %7377 = vmatpush.bf16.msra.mxu1 %v10466_v46  ;;  %v12678_v59 = vld [vmem:[#allocation2 + $0x1064] sm:$0xf0] }
 0x4c8   :  { %v10401_v58 = vld [vmem:[#allocation2 + $0x1248] sm:$0xf]  ;;  %v10146_v20 = vor.u32 %v12678_v59, %v10145_v17 }
 0x4c9   :  { %7390 = vmatpush.bf16.msra.mxu2 %v10722_v52  ;;  %v12742_v50 = vld [vmem:[#allocation2 + $0x1264] sm:$0xf0]  ;;  %7365 = vmatpush.bf16.msra.mxu0 %v10178_v56 }
 0x4ca   :  { %v10657_v16 = vld [vmem:[#allocation2 + $0x1448] sm:$0xf]  ;;  %v10402_v14 = vor.u32 %v12742_v50, %v10401_v58 }
 0x4cb   :  { %7403 = vmatpush.bf16.msra.mxu3 %v10978_v55  ;;  %v12806_v62 = vld [vmem:[#allocation2 + $0x1464] sm:$0xf0]  ;;  %7378 = vmatpush.bf16.msra.mxu1 %v10434_v63 }
 0x4cc   :  { %v10913_v10 = vld [vmem:[#allocation2 + $0x1648] sm:$0xf]  ;;  %v10658_v19 = vor.u32 %v12806_v62, %v10657_v16 }
 0x4cd   :  { %v12870_v11 = vld [vmem:[#allocation2 + $0x1664] sm:$0xf0]  ;;  %7391 = vmatpush.bf16.msra.mxu2 %v10690_v57  ;;  %7366 = vmatpush.bf16.msra.mxu0 %v10146_v20 }
 0x4ce   :  { %v10113_v12 = vld [vmem:[#allocation2 + $0x1008] sm:$0xf]  ;;  %v10914_v24 = vor.u32 %v12870_v11, %v10913_v10 }
 0x4cf   :  { %v12670_v13 = vld [vmem:[#allocation2 + $0x1024] sm:$0xf0]  ;;  %7404 = vmatpush.bf16.msra.mxu3 %v10946_v61  ;;  %7379 = vmatpush.bf16.msra.mxu1 %v10402_v14 }
 0x4d0   :  { %v10369_v18 = vld [vmem:[#allocation2 + $0x1208] sm:$0xf]  ;;  %v10114_v36 = vor.u32 %v12670_v13, %v10113_v12 }
 0x4d1   :  { %v12734_v22 = vld [vmem:[#allocation2 + $0x1224] sm:$0xf0]  ;;  %7392 = vmatpush.bf16.msra.mxu2 %v10658_v19 }
 0x4d2   :  { %v10625_v23 = vld [vmem:[#allocation2 + $0x1408] sm:$0xf]  ;;  %v10370_v44 = vor.u32 %v12734_v22, %v10369_v18  ;;  %7367 = vmatpush.bf16.msra.mxu0 %v10114_v36  ;;  %v13556_v36 = vpop.f32.mrf.mxu0 }
 0x4d3   :  { %v12798_v25 = vld [vmem:[#allocation2 + $0x1424] sm:$0xf0]  ;;  %7405 = vmatpush.bf16.msra.mxu3 %v10914_v24 }
 0x4d4   :  { %v10881_v26 = vld [vmem:[#allocation2 + $0x1608] sm:$0xf]  ;;  %v10626_v39 = vor.u32 %v12798_v25, %v10625_v23  ;;  %7380 = vmatpush.bf16.msra.mxu1 %v10370_v44 }
 0x4d5   :  { %v12862_v29 = vld [vmem:[#allocation2 + $0x1624] sm:$0xf0]  ;;  %7368 = vmatmul.bf16.vlgmr.msra.gmra.mxu0 %v13510_v45 }
 0x4d6   :  { %v11361_v30 = vld [vmem:[#allocation2 + $0x19c8] sm:$0xf]  ;;  %v10882_v46 = vor.u32 %v12862_v29, %v10881_v26  ;;  %7393 = vmatpush.bf16.msra.mxu2 %v10626_v39 }
 0x4d7   :  { %v12982_v33 = vld [vmem:[#allocation2 + $0x19e4] sm:$0xf0]  ;;  %7381 = vmatmul.bf16.vlgmr.msra.gmra.mxu1 %v13518_v37 }
 0x4d8   :  { %v11617_v34 = vld [vmem:[#allocation2 + $0x1bc8] sm:$0xf]  ;;  %v11362_v52 = vor.u32 %v12982_v33, %v11361_v30  ;;  %7406 = vmatpush.bf16.msra.mxu3 %v10882_v46 }
 0x4d9   :  { %v13046_v38 = vld [vmem:[#allocation2 + $0x1be4] sm:$0xf0]  ;;  %7394 = vmatmul.bf16.vlgmr.msra.gmra.mxu2 %v13506_v41 }
 0x4da   :  { %v11873_v40 = vld [vmem:[#allocation2 + $0x1dc8] sm:$0xf]  ;;  %v11618_v31 = vor.u32 %v13046_v38, %v11617_v34  ;;  %7412 = vmatpush.bf16.msrb.mxu0 %v11362_v52 }
 0x4db   :  { %v13110_v43 = vld [vmem:[#allocation2 + $0x1de4] sm:$0xf0]  ;;  %7407 = vmatmul.bf16.vlgmr.msra.gmra.mxu3 %v13514_v47 }
 0x4dc   :  { %v12129_v28 = vld [vmem:[#allocation2 + $0x1fc8] sm:$0xf]  ;;  %v11874_v35 = vor.u32 %v13110_v43, %v11873_v40  ;;  %7425 = vmatpush.bf16.msrb.mxu1 %v11618_v31 }
 0x4dd   :  { %v13174_v51 = vld [vmem:[#allocation2 + $0x1fe4] sm:$0xf0] }
 0x4de   :  { %v11329_v54 = vld [vmem:[#allocation2 + $0x1988] sm:$0xf]  ;;  %v12130_v48 = vor.u32 %v13174_v51, %v12129_v28  ;;  %7438 = vmatpush.bf16.msrb.mxu2 %v11874_v35  ;;  %v13558_v28 = vpop.f32.mrf.mxu1 }
 0x4df   :  { %v12974_v55 = vld [vmem:[#allocation2 + $0x19a4] sm:$0xf0] }
 0x4e0   :  { %v11585_v27 = vld [vmem:[#allocation2 + $0x1b88] sm:$0xf]  ;;  %v11330_v57 = vor.u32 %v12974_v55, %v11329_v54  ;;  %7451 = vmatpush.bf16.msrb.mxu3 %v12130_v48 }
 0x4e1   :  { %v13038_v60 = vld [vmem:[#allocation2 + $0x1ba4] sm:$0xf0] }
 0x4e2   :  { %v11841_v15 = vld [vmem:[#allocation2 + $0x1d88] sm:$0xf]  ;;  %v11586_v17 = vor.u32 %v13038_v60, %v11585_v27  ;;  %7413 = vmatpush.bf16.msrb.mxu0 %v11330_v57 }
 0x4e3   :  { %v13102_v21 = vld [vmem:[#allocation2 + $0x1da4] sm:$0xf0] }
 0x4e4   :  { %v12097_v56 = vld [vmem:[#allocation2 + $0x1f88] sm:$0xf]  ;;  %v11842_v59 = vor.u32 %v13102_v21, %v11841_v15  ;;  %7426 = vmatpush.bf16.msrb.mxu1 %v11586_v17 }
 0x4e5   :  { %v13166_v63 = vld [vmem:[#allocation2 + $0x1fa4] sm:$0xf0] }
 0x4e6   :  { %v11297_v58 = vld [vmem:[#allocation2 + $0x1948] sm:$0xf]  ;;  %v12098_v16 = vor.u32 %v13166_v63, %v12097_v56  ;;  %7439 = vmatpush.bf16.msrb.mxu2 %v11842_v59  ;;  %v13560_v56 = vpop.f32.mrf.mxu2 }
 0x4e7   :  { %v12966_v61 = vld [vmem:[#allocation2 + $0x1964] sm:$0xf0] }
 0x4e8   :  { %v11553_v50 = vld [vmem:[#allocation2 + $0x1b48] sm:$0xf]  ;;  %v11298_v13 = vor.u32 %v12966_v61, %v11297_v58  ;;  %7452 = vmatpush.bf16.msrb.mxu3 %v12098_v16  ;;  %v13562_v58 = vpop.f32.mrf.mxu3  ;;  %v4568_v16 = vperm.slane %v13365_v8, 1 }
 0x4e9   :  { %v13030_v62 = vld [vmem:[#allocation2 + $0x1b64] sm:$0xf0] }
 0x4ea   :  { %v11809_v10 = vld [vmem:[#allocation2 + $0x1d48] sm:$0xf]  ;;  %v11554_v14 = vor.u32 %v13030_v62, %v11553_v50  ;;  %7414 = vmatpush.bf16.msrb.mxu0 %v11298_v13 }
 0x4eb   :  { %v13094_v11 = vld [vmem:[#allocation2 + $0x1d64] sm:$0xf0] }
 0x4ec   :  { %v12065_v20 = vld [vmem:[#allocation2 + $0x1f48] sm:$0xf]  ;;  %v11810_v19 = vor.u32 %v13094_v11, %v11809_v10  ;;  %7427 = vmatpush.bf16.msrb.mxu1 %v11554_v14  ;;  %v7163_v10 = vpop.f32.mrf.mxu0 }
 0x4ed   :  { %v13158_v12 = vld [vmem:[#allocation2 + $0x1f64] sm:$0xf0] }
 0x4ee   :  { %v11265_v18 = vld [vmem:[#allocation2 + $0x1908] sm:$0xf]  ;;  %v12066_v24 = vor.u32 %v13158_v12, %v12065_v20  ;;  %7440 = vmatpush.bf16.msrb.mxu2 %v11810_v19  ;;  %v7176_v19 = vpop.f32.mrf.mxu1 }
 0x4ef   :  { %v12958_v22 = vld [vmem:[#allocation2 + $0x1924] sm:$0xf0]  ;;  %v10563_v19 = vld [vmem:[#allocation2 + $0x13a8] sm:$0xf0] }
 0x4f0   :  { %v11521_v23 = vld [vmem:[#allocation2 + $0x1b08] sm:$0xf]  ;;  %v11266_v34 = vor.u32 %v12958_v22, %v11265_v18  ;;  %7453 = vmatpush.bf16.msrb.mxu3 %v12066_v24 }
 0x4f1   :  { %v13022_v25 = vld [vmem:[#allocation2 + $0x1b24] sm:$0xf0] }
 0x4f2   :  { %v11777_v26 = vld [vmem:[#allocation2 + $0x1d08] sm:$0xf]  ;;  %v11522_v38 = vor.u32 %v13022_v25, %v11521_v23  ;;  %7415 = vmatpush.bf16.msrb.mxu0 %v11266_v34 }
 0x4f3   :  { %v13086_v29 = vld [vmem:[#allocation2 + $0x1d24] sm:$0xf0] }
 0x4f4   :  { %v12033_v30 = vld [vmem:[#allocation2 + $0x1f08] sm:$0xf]  ;;  %v11778_v40 = vor.u32 %v13086_v29, %v11777_v26  ;;  %7428 = vmatpush.bf16.msrb.mxu1 %v11522_v38  ;;  %v4584_v29 = vperm.slane %v4568_v16, 1 }
 0x4f5   :  { %v13150_v33 = vld [vmem:[#allocation2 + $0x1f24] sm:$0xf0] }
 0x4f6   :  { %v11233_v43 = vld [vmem:[#allocation2 + $0x18c8] sm:$0xf]  ;;  %v12034_v51 = vor.u32 %v13150_v33, %v12033_v30  ;;  %7441 = vmatpush.bf16.msrb.mxu2 %v11778_v40 }
 0x4f7   :  { %v12950_v44 = vld [vmem:[#allocation2 + $0x18e4] sm:$0xf0] }
 0x4f8   :  { %v11489_v39 = vld [vmem:[#allocation2 + $0x1ac8] sm:$0xf]  ;;  %v11234_v55 = vor.u32 %v12950_v44, %v11233_v43  ;;  %7454 = vmatpush.bf16.msrb.mxu3 %v12034_v51  ;;  %v7189_v51 = vpop.f32.mrf.mxu2 }
 0x4f9   :  { %v13014_v46 = vld [vmem:[#allocation2 + $0x1ae4] sm:$0xf0]  ;;  %v11043_v51 = vld [vmem:[#allocation2 + $0x1768] sm:$0xf0] }
 0x4fa   :  { %v11745_v52 = vld [vmem:[#allocation2 + $0x1cc8] sm:$0xf]  ;;  %v11490_v27 = vor.u32 %v13014_v46, %v11489_v39  ;;  %7416 = vmatpush.bf16.msrb.mxu0 %v11234_v55  ;;  %v12722_v55 = vld [vmem:[#allocation2 + $0x11cc] sm:$0xf] }
 0x4fb   :  { %v13078_v31 = vld [vmem:[#allocation2 + $0x1ce4] sm:$0xf0] }
 0x4fc   :  { %v12001_v35 = vld [vmem:[#allocation2 + $0x1ec8] sm:$0xf]  ;;  %v11746_v48 = vor.u32 %v13078_v31, %v11745_v52  ;;  %7429 = vmatpush.bf16.msrb.mxu1 %v11490_v27  ;;  %v10339_v27 = vld [vmem:[#allocation2 + $0x11e8] sm:$0xf0] }
 0x4fd   :  { %v13142_v54 = vld [vmem:[#allocation2 + $0x1ee4] sm:$0xf0] }
 0x4fe   :  { %v11201_v60 = vld [vmem:[#allocation2 + $0x1888] sm:$0xf]  ;;  %v12002_v63 = vor.u32 %v13142_v54, %v12001_v35  ;;  %7442 = vmatpush.bf16.msrb.mxu2 %v11746_v48  ;;  %v7202_v54 = vpop.f32.mrf.mxu3  ;;  %v12786_v48 = vld [vmem:[#allocation2 + $0x13cc] sm:$0xf] }
 0x4ff   :  { %v12942_v15 = vld [vmem:[#allocation2 + $0x18a4] sm:$0xf0]  ;;  %v10243_v54 = vld [vmem:[#allocation2 + $0x1128] sm:$0xf0] }
 0x500   :  { %v11457_v21 = vld [vmem:[#allocation2 + $0x1a88] sm:$0xf]  ;;  %v11202_v62 = vor.u32 %v12942_v15, %v11201_v60  ;;  %7455 = vmatpush.bf16.msrb.mxu3 %v12002_v63  ;;  %v7162_v60 = vadd.f32 %v13556_v36, %v4584_v29  ;;  %v12850_v63 = vld [vmem:[#allocation2 + $0x15cc] sm:$0xf] }
 0x501   :  { %v13006_v57 = vld [vmem:[#allocation2 + $0x1aa4] sm:$0xf0]  ;;  %v10307_v36 = vld [vmem:[#allocation2 + $0x11a8] sm:$0xf0] }
 0x502   :  { %v11713_v17 = vld [vmem:[#allocation2 + $0x1c88] sm:$0xf]  ;;  %v11458_v11 = vor.u32 %v13006_v57, %v11457_v21  ;;  %7417 = vmatpush.bf16.msrb.mxu0 %v11202_v62  ;;  %v10595_v21 = vld [vmem:[#allocation2 + $0x13e8] sm:$0xf0]  ;;  %v10342_v62 = vor.u32 %v12722_v55, %v10339_v27 }
 0x503   :  { %v13070_v59 = vld [vmem:[#allocation2 + $0x1ca4] sm:$0xf0]  ;;  %v10851_v57 = vld [vmem:[#allocation2 + $0x15e8] sm:$0xf0]  ;;  %v10598_v10 = vor.u32 %v12786_v48, %v10595_v21 }
 0x504   :  { %v11969_v61 = vld [vmem:[#allocation2 + $0x1e88] sm:$0xf]  ;;  %v11714_v20 = vor.u32 %v13070_v59, %v11713_v17  ;;  %7430 = vmatpush.bf16.msrb.mxu1 %v11458_v11  ;;  %v10854_v11 = vor.u32 %v12850_v63, %v10851_v57  ;;  %v12762_v55 = vld [vmem:[#allocation2 + $0x130c] sm:$0xf] }
 0x505   :  { %v13134_v50 = vld [vmem:[#allocation2 + $0x1ea4] sm:$0xf0]  ;;  %v10499_v48 = vld [vmem:[#allocation2 + $0x1328] sm:$0xf0] }
 0x506   :  { %v11169_v12 = vld [vmem:[#allocation2 + $0x1848] sm:$0xf]  ;;  %v11970_v18 = vor.u32 %v13134_v50, %v11969_v61  ;;  %7443 = vmatpush.bf16.msrb.mxu2 %v11714_v20  ;;  %v12914_v61 = vld [vmem:[#allocation2 + $0x17cc] sm:$0xf]  ;;  %v7175_v20 = vadd.f32 %v13558_v28, %v7162_v60 }
 0x507   :  { %v12934_v13 = vld [vmem:[#allocation2 + $0x1864] sm:$0xf0]  ;;  %v11107_v50 = vld [vmem:[#allocation2 + $0x17e8] sm:$0xf0] }
 0x508   :  { %v11425_v14 = vld [vmem:[#allocation2 + $0x1a48] sm:$0xf]  ;;  %v11170_v30 = vor.u32 %v12934_v13, %v11169_v12  ;;  %7456 = vmatpush.bf16.msrb.mxu3 %v11970_v18  ;;  %v12714_v12 = vld [vmem:[#allocation2 + $0x118c] sm:$0xf]  ;;  %v7188_v28 = vadd.f32 %v13560_v56, %v7175_v20 }
 0x509   :  { %v12998_v22 = vld [vmem:[#allocation2 + $0x1a64] sm:$0xf0]  ;;  %v12778_v13 = vld [vmem:[#allocation2 + $0x138c] sm:$0xf] }
 0x50a   :  { %v11681_v23 = vld [vmem:[#allocation2 + $0x1c48] sm:$0xf]  ;;  %v11426_v38 = vor.u32 %v12998_v22, %v11425_v14  ;;  %7418 = vmatpush.bf16.msrb.mxu0 %v11170_v30  ;;  %v11110_v14 = vor.u32 %v12914_v61, %v11107_v50  ;;  %v12842_v18 = vld [vmem:[#allocation2 + $0x158c] sm:$0xf]  ;;  %v7201_v56 = vadd.f32 %v13562_v58, %v7188_v28 }
 0x50b   :  { %v13062_v24 = vld [vmem:[#allocation2 + $0x1c64] sm:$0xf0]  ;;  %v10819_v22 = vld [vmem:[#allocation2 + $0x15a8] sm:$0xf0] }
 0x50c   :  { %v11937_v25 = vld [vmem:[#allocation2 + $0x1e48] sm:$0xf]  ;;  %v11682_v40 = vor.u32 %v13062_v24, %v11681_v23  ;;  %7431 = vmatpush.bf16.msrb.mxu1 %v11426_v38  ;;  %v12906_v23 = vld [vmem:[#allocation2 + $0x178c] sm:$0xf]  ;;  %v10822_v29 = vor.u32 %v12842_v18, %v10819_v22 }
 0x50d   :  { %v13126_v26 = vld [vmem:[#allocation2 + $0x1e64] sm:$0xf0]  ;;  %v11075_v24 = vld [vmem:[#allocation2 + $0x17a8] sm:$0xf0] }
 0x50e   :  { %v11137_v33 = vld [vmem:[#allocation2 + $0x1808] sm:$0xf]  ;;  %v11938_v46 = vor.u32 %v13126_v26, %v11937_v25  ;;  %7444 = vmatpush.bf16.msrb.mxu2 %v11682_v40  ;;  %v10310_v25 = vor.u32 %v12714_v12, %v10307_v36  ;;  %v10566_v26 = vor.u32 %v12778_v13, %v10563_v19  ;;  %v12706_v30 = vld [vmem:[#allocation2 + $0x114c] sm:$0xf]  ;;  %v11078_v38 = vor.u32 %v12906_v23, %v11075_v24 }
 0x50f   :  { %v12926_v34 = vld [vmem:[#allocation2 + $0x1824] sm:$0xf0]  ;;  %v10531_v40 = vld [vmem:[#allocation2 + $0x1368] sm:$0xf0] }
 0x510   :  { %v11393_v43 = vld [vmem:[#allocation2 + $0x1a08] sm:$0xf]  ;;  %v11138_v15 = vor.u32 %v12926_v34, %v11137_v33  ;;  %7457 = vmatpush.bf16.msrb.mxu3 %v11938_v46  ;;  %v10275_v33 = vld [vmem:[#allocation2 + $0x1168] sm:$0xf0] }
 0x511   :  { %v12990_v44 = vld [vmem:[#allocation2 + $0x1a24] sm:$0xf0]  ;;  %v12770_v34 = vld [vmem:[#allocation2 + $0x134c] sm:$0xf]  ;;  %v10278_v46 = vor.u32 %v12706_v30, %v10275_v33 }
 0x512   :  { %v11649_v39 = vld [vmem:[#allocation2 + $0x1c08] sm:$0xf]  ;;  %v11394_v17 = vor.u32 %v12990_v44, %v11393_v43  ;;  %7419 = vmatpush.bf16.msrb.mxu0 %v11138_v15  ;;  %v12834_v43 = vld [vmem:[#allocation2 + $0x154c] sm:$0xf] }
 0x513   :  { %v13054_v52 = vld [vmem:[#allocation2 + $0x1c24] sm:$0xf0]  ;;  %v10787_v44 = vld [vmem:[#allocation2 + $0x1568] sm:$0xf0] }
 0x514   :  { %v11905_v31 = vld [vmem:[#allocation2 + $0x1e08] sm:$0xf]  ;;  %v11650_v59 = vor.u32 %v13054_v52, %v11649_v39  ;;  %7432 = vmatpush.bf16.msrb.mxu1 %v11394_v17  ;;  %v12898_v39 = vld [vmem:[#allocation2 + $0x174c] sm:$0xf]  ;;  %v10534_v52 = vor.u32 %v12770_v34, %v10531_v40  ;;  %v7213_v17 = vpop.f32.mrf.mxu0  ;;  %v7252_v40 = vpop.f32.mrf.mxu3 }
 0x515   :  { %v13118_v35 = vld [vmem:[#allocation2 + $0x1e24] sm:$0xf0]  ;;  %7420 = vmatmul.bf16.vlgmr.msrb.gmra.mxu0 %v13530_v42  ;;  %v11046_v27 = vor.u32 %v12898_v39, %v11043_v51  ;;  %v12826_v60 = vld [vmem:[#allocation2 + $0x150c] sm:$0xf] }
 0x516   :  { %v11906_v16 = vor.u32 %v13118_v35, %v11905_v31  ;;  %7445 = vmatpush.bf16.msrb.mxu2 %v11650_v59  ;;  %7464 = vmatpush.bf16.msra.mxu0 %v10342_v62  ;;  %v10790_v31 = vor.u32 %v12834_v43, %v10787_v44  ;;  %v12698_v35 = vld [vmem:[#allocation2 + $0x110c] sm:$0xf]  ;;  %v10502_v59 = vor.u32 %v12762_v55, %v10499_v48 }
 0x517   :  { %7433 = vmatmul.bf16.vlgmr.msrb.gmra.mxu1 %v13538_v53  ;;  %v10755_v15 = vld [vmem:[#allocation2 + $0x1528] sm:$0xf0]  ;;  %v10246_v57 = vor.u32 %v12698_v35, %v10243_v54  ;;  %v7214_v62 = vadd.f32 %v7213_v17, %v7201_v56 }
 0x518   :  { %7458 = vmatpush.bf16.msrb.mxu3 %v11906_v16  ;;  %7477 = vmatpush.bf16.msra.mxu1 %v10598_v10  ;;  %v12890_v21 = vld [vmem:[#allocation2 + $0x170c] sm:$0xf]  ;;  %v10758_v61 = vor.u32 %v12826_v60, %v10755_v15  ;;  %v7226_v10 = vpop.f32.mrf.mxu1 }
 0x519   :  { %7446 = vmatmul.bf16.vlgmr.msrb.gmra.mxu2 %v13526_v49  ;;  %v11011_v63 = vld [vmem:[#allocation2 + $0x1728] sm:$0xf0]  ;;  %v7227_v19 = vadd.f32 %v7226_v10, %v7214_v62 }
 0x51a   :  { %7490 = vmatpush.bf16.msra.mxu2 %v10854_v11  ;;  %7465 = vmatpush.bf16.msra.mxu0 %v10310_v25  ;;  %v12690_v58 = vld [vmem:[#allocation2 + $0x10cc] sm:$0xf]  ;;  %v11014_v11 = vor.u32 %v12890_v21, %v11011_v63 }
 0x51b   :  { %7459 = vmatmul.bf16.vlgmr.msrb.gmra.mxu3 %v13534_v32  ;;  %v10211_v50 = vld [vmem:[#allocation2 + $0x10e8] sm:$0xf0] }
 0x51c   :  { %7503 = vmatpush.bf16.msra.mxu3 %v11110_v14  ;;  %7478 = vmatpush.bf16.msra.mxu1 %v10566_v26  ;;  %v12754_v16 = vld [vmem:[#allocation2 + $0x12cc] sm:$0xf]  ;;  %v10214_v18 = vor.u32 %v12690_v58, %v10211_v50 }
 0x51d   :  { %v10467_v20 = vld [vmem:[#allocation2 + $0x12e8] sm:$0xf0] }
 0x51e   :  { %7491 = vmatpush.bf16.msra.mxu2 %v10822_v29  ;;  %7466 = vmatpush.bf16.msra.mxu0 %v10278_v46  ;;  %v12818_v12 = vld [vmem:[#allocation2 + $0x14cc] sm:$0xf]  ;;  %v10470_v22 = vor.u32 %v12754_v16, %v10467_v20  ;;  %v7239_v29 = vpop.f32.mrf.mxu2 }
 0x51f   :  { %v10723_v36 = vld [vmem:[#allocation2 + $0x14e8] sm:$0xf0] }
 0x520   :  { %7504 = vmatpush.bf16.msra.mxu3 %v11078_v38  ;;  %7479 = vmatpush.bf16.msra.mxu1 %v10534_v52  ;;  %v12882_v13 = vld [vmem:[#allocation2 + $0x16cc] sm:$0xf]  ;;  %v10726_v23 = vor.u32 %v12818_v12, %v10723_v36  ;;  %v7240_v38 = vadd.f32 %v7239_v29, %v7227_v19  ;;  %v7215_v52 = vpop.f32.mrf.mxu0  ;;  %v7228_v48 = vpop.f32.mrf.mxu1 }
 0x521   :  { %v10979_v14 = vld [vmem:[#allocation2 + $0x16e8] sm:$0xf0] }
 0x522   :  { %7492 = vmatpush.bf16.msra.mxu2 %v10790_v31  ;;  %7467 = vmatpush.bf16.msra.mxu0 %v10246_v57  ;;  %v12682_v24 = vld [vmem:[#allocation2 + $0x108c] sm:$0xf]  ;;  %v10982_v28 = vor.u32 %v12882_v13, %v10979_v14  ;;  %v7253_v51 = vadd.f32 %v7252_v40, %v7240_v38 }
 0x523   :  { %v10179_v25 = vld [vmem:[#allocation2 + $0x10a8] sm:$0xf0] }
 0x524   :  { %7505 = vmatpush.bf16.msra.mxu3 %v11046_v27  ;;  %7480 = vmatpush.bf16.msra.mxu1 %v10502_v59  ;;  %v12746_v26 = vld [vmem:[#allocation2 + $0x128c] sm:$0xf]  ;;  %v10182_v39 = vor.u32 %v12682_v24, %v10179_v25  ;;  %vm7984_vm8 = vcmp.ge.f32.partialorder %v7253_v51, 0.0  ;;  %v7992_v15 = vmul.f32 0.01, %v7253_v51 }
 0x525   :  { %v10435_v30 = vld [vmem:[#allocation2 + $0x12a8] sm:$0xf0] }
 0x526   :  { %7493 = vmatpush.bf16.msra.mxu2 %v10758_v61  ;;  %v12810_v33 = vld [vmem:[#allocation2 + $0x148c] sm:$0xf]  ;;  %7468 = vmatpush.bf16.msra.mxu0 %v10214_v18  ;;  %v10438_v31 = vor.u32 %v12746_v26, %v10435_v30  ;;  %v8000_v17 = vsel %vm7984_vm8, %v7253_v51, %v7992_v15  ;;  %v7241_v36 = vpop.f32.mrf.mxu2 }
 0x527   :  { %v10691_v34 = vld [vmem:[#allocation2 + $0x14a8] sm:$0xf0]  ;;  %v8008_v16 = vadd.f32 %v8000_v17, %v13349_v0 }
 0x528   :  { %7506 = vmatpush.bf16.msra.mxu3 %v11014_v11  ;;  %v12874_v43 = vld [vmem:[#allocation2 + $0x168c] sm:$0xf]  ;;  %7481 = vmatpush.bf16.msra.mxu1 %v10470_v22  ;;  %v10694_v35 = vor.u32 %v12810_v33, %v10691_v34  ;;  %v7254_v22 = vpop.f32.mrf.mxu3 }
 0x529   :  { %v10947_v44 = vld [vmem:[#allocation2 + $0x16a8] sm:$0xf0]  ;;  %8016 = vst [vmem:[#allocation9] sm:$0xff] %v8008_v16 }
 0x52a   :  { %v12674_v46 = vld [vmem:[#allocation2 + $0x104c] sm:$0xf]  ;;  %7494 = vmatpush.bf16.msra.mxu2 %v10726_v23  ;;  %v10950_v60 = vor.u32 %v12874_v43, %v10947_v44  ;;  %7469 = vmatpush.bf16.msra.mxu0 %v10182_v39 }
 0x52b   :  { %v10147_v56 = vld [vmem:[#allocation2 + $0x1068] sm:$0xf0] }
 0x52c   :  { %v12738_v54 = vld [vmem:[#allocation2 + $0x124c] sm:$0xf]  ;;  %7507 = vmatpush.bf16.msra.mxu3 %v10982_v28  ;;  %v10150_v59 = vor.u32 %v12674_v46, %v10147_v56  ;;  %7482 = vmatpush.bf16.msra.mxu1 %v10438_v31 }
 0x52d   :  { %v10403_v55 = vld [vmem:[#allocation2 + $0x1268] sm:$0xf0] }
 0x52e   :  { %v12802_v27 = vld [vmem:[#allocation2 + $0x144c] sm:$0xf]  ;;  %7495 = vmatpush.bf16.msra.mxu2 %v10694_v35  ;;  %v10406_v62 = vor.u32 %v12738_v54, %v10403_v55  ;;  %7470 = vmatpush.bf16.msra.mxu0 %v10150_v59 }
 0x52f   :  { %v10659_v21 = vld [vmem:[#allocation2 + $0x1468] sm:$0xf0] }
 0x530   :  { %v12866_v63 = vld [vmem:[#allocation2 + $0x164c] sm:$0xf]  ;;  %v10662_v10 = vor.u32 %v12802_v27, %v10659_v21  ;;  %7508 = vmatpush.bf16.msra.mxu3 %v10950_v60  ;;  %7483 = vmatpush.bf16.msra.mxu1 %v10406_v62 }
 0x531   :  { %v10915_v57 = vld [vmem:[#allocation2 + $0x1668] sm:$0xf0] }
 0x532   :  { %v12666_v61 = vld [vmem:[#allocation2 + $0x100c] sm:$0xf]  ;;  %v10918_v13 = vor.u32 %v12866_v63, %v10915_v57  ;;  %7496 = vmatpush.bf16.msra.mxu2 %v10662_v10 }
 0x533   :  { %v10115_v58 = vld [vmem:[#allocation2 + $0x1028] sm:$0xf0] }
 0x534   :  { %v12730_v50 = vld [vmem:[#allocation2 + $0x120c] sm:$0xf]  ;;  %v10118_v25 = vor.u32 %v12666_v61, %v10115_v58  ;;  %7509 = vmatpush.bf16.msra.mxu3 %v10918_v13 }
 0x535   :  { %v10371_v11 = vld [vmem:[#allocation2 + $0x1228] sm:$0xf0] }
 0x536   :  { %v12794_v20 = vld [vmem:[#allocation2 + $0x140c] sm:$0xf]  ;;  %v10374_v28 = vor.u32 %v12730_v50, %v10371_v11  ;;  %7471 = vmatpush.bf16.msra.mxu0 %v10118_v25 }
 0x537   :  { %v10627_v12 = vld [vmem:[#allocation2 + $0x1428] sm:$0xf0] }
 0x538   :  { %v12858_v14 = vld [vmem:[#allocation2 + $0x160c] sm:$0xf]  ;;  %v10630_v30 = vor.u32 %v12794_v20, %v10627_v12  ;;  %7484 = vmatpush.bf16.msra.mxu1 %v10374_v28 }
 0x539   :  { %v10883_v19 = vld [vmem:[#allocation2 + $0x1628] sm:$0xf0]  ;;  %7472 = vmatmul.bf16.vlgmr.msra.gmra.mxu0 %v13510_v45 }
 0x53a   :  { %v12978_v18 = vld [vmem:[#allocation2 + $0x19cc] sm:$0xf]  ;;  %v10886_v38 = vor.u32 %v12858_v14, %v10883_v19  ;;  %7497 = vmatpush.bf16.msra.mxu2 %v10630_v30  ;;  %v13580_v30 = vpop.f32.mrf.mxu1 }
 0x53b   :  { %v11363_v23 = vld [vmem:[#allocation2 + $0x19e8] sm:$0xf0]  ;;  %7485 = vmatmul.bf16.vlgmr.msra.gmra.mxu1 %v13518_v37 }
 0x53c   :  { %v13042_v24 = vld [vmem:[#allocation2 + $0x1bcc] sm:$0xf]  ;;  %v11366_v40 = vor.u32 %v12978_v18, %v11363_v23  ;;  %7510 = vmatpush.bf16.msra.mxu3 %v10886_v38 }
 0x53d   :  { %v11619_v26 = vld [vmem:[#allocation2 + $0x1be8] sm:$0xf0]  ;;  %7498 = vmatmul.bf16.vlgmr.msra.gmra.mxu2 %v13506_v41 }
 0x53e   :  { %v13106_v29 = vld [vmem:[#allocation2 + $0x1dcc] sm:$0xf]  ;;  %v11622_v43 = vor.u32 %v13042_v24, %v11619_v26  ;;  %7516 = vmatpush.bf16.msrb.mxu0 %v11366_v40  ;;  %v13578_v24 = vpop.f32.mrf.mxu0 }
 0x53f   :  { %v11875_v0 = vld [vmem:[#allocation2 + $0x1de8] sm:$0xf0]  ;;  %7511 = vmatmul.bf16.vlgmr.msra.gmra.mxu3 %v13514_v47 }
 0x540   :  { %v13170_v33 = vld [vmem:[#allocation2 + $0x1fcc] sm:$0xf]  ;;  %v11878_v44 = vor.u32 %v13106_v29, %v11875_v0  ;;  %7529 = vmatpush.bf16.msrb.mxu1 %v11622_v43 }
 0x541   :  { %v12131_v34 = vld [vmem:[#allocation2 + $0x1fe8] sm:$0xf0] }
 0x542   :  { %v12970_v39 = vld [vmem:[#allocation2 + $0x198c] sm:$0xf]  ;;  %v12134_v56 = vor.u32 %v13170_v33, %v12131_v34  ;;  %7542 = vmatpush.bf16.msrb.mxu2 %v11878_v44 }
 0x543   :  { %v11331_v51 = vld [vmem:[#allocation2 + $0x19a8] sm:$0xf0] }
 0x544   :  { %v13034_v46 = vld [vmem:[#allocation2 + $0x1b8c] sm:$0xf]  ;;  %v11334_v27 = vor.u32 %v12970_v39, %v11331_v51  ;;  %7555 = vmatpush.bf16.msrb.mxu3 %v12134_v56 }
 0x545   :  { %v11587_v52 = vld [vmem:[#allocation2 + $0x1ba8] sm:$0xf0] }
 0x546   :  { %v13098_v31 = vld [vmem:[#allocation2 + $0x1d8c] sm:$0xf]  ;;  %v11590_v48 = vor.u32 %v13034_v46, %v11587_v52  ;;  %7517 = vmatpush.bf16.msrb.mxu0 %v11334_v27 }
 0x547   :  { %v11843_v35 = vld [vmem:[#allocation2 + $0x1da8] sm:$0xf0] }
 0x548   :  { %v13162_v54 = vld [vmem:[#allocation2 + $0x1f8c] sm:$0xf]  ;;  %v11846_v60 = vor.u32 %v13098_v31, %v11843_v35  ;;  %7530 = vmatpush.bf16.msrb.mxu1 %v11590_v48  ;;  %v13582_v35 = vpop.f32.mrf.mxu2 }
 0x549   :  { %v12099_v55 = vld [vmem:[#allocation2 + $0x1fa8] sm:$0xf0] }
 0x54a   :  { %v12962_v15 = vld [vmem:[#allocation2 + $0x194c] sm:$0xf]  ;;  %v12102_v57 = vor.u32 %v13162_v54, %v12099_v55  ;;  %7543 = vmatpush.bf16.msrb.mxu2 %v11846_v60  ;;  %v13584_v60 = vpop.f32.mrf.mxu3 }
 0x54b   :  { %v11299_v21 = vld [vmem:[#allocation2 + $0x1968] sm:$0xf0] }
 0x54c   :  { %v13026_v63 = vld [vmem:[#allocation2 + $0x1b4c] sm:$0xf]  ;;  %v11302_v16 = vor.u32 %v12962_v15, %v11299_v21  ;;  %7556 = vmatpush.bf16.msrb.mxu3 %v12102_v57 }
 0x54d   :  { %v11555_v17 = vld [vmem:[#allocation2 + $0x1b68] sm:$0xf0] }
 0x54e   :  { %v13090_v59 = vld [vmem:[#allocation2 + $0x1d4c] sm:$0xf]  ;;  %v11558_v62 = vor.u32 %v13026_v63, %v11555_v17  ;;  %7518 = vmatpush.bf16.msrb.mxu0 %v11302_v16  ;;  %v4569_v63 = vperm.slane %v13365_v8, 3  ;;  %v7267_v17 = vpop.f32.mrf.mxu0 }
 0x54f   :  { %v11811_v61 = vld [vmem:[#allocation2 + $0x1d68] sm:$0xf0] }
 0x550   :  { %v13154_v58 = vld [vmem:[#allocation2 + $0x1f4c] sm:$0xf]  ;;  %v11814_v10 = vor.u32 %v13090_v59, %v11811_v61  ;;  %7531 = vmatpush.bf16.msrb.mxu1 %v11558_v62  ;;  %v7280_v62 = vpop.f32.mrf.mxu1 }
 0x551   :  { %v12067_v50 = vld [vmem:[#allocation2 + $0x1f68] sm:$0xf0]  ;;  %v10825_v62 = vld [vmem:[#allocation2 + $0x1590] sm:$0xf] }
 0x552   :  { %v12954_v11 = vld [vmem:[#allocation2 + $0x190c] sm:$0xf]  ;;  %v12070_v36 = vor.u32 %v13154_v58, %v12067_v50  ;;  %7544 = vmatpush.bf16.msrb.mxu2 %v11814_v10 }
 0x553   :  { %v11267_v20 = vld [vmem:[#allocation2 + $0x1928] sm:$0xf0] }
 0x554   :  { %v13018_v12 = vld [vmem:[#allocation2 + $0x1b0c] sm:$0xf]  ;;  %v11270_v23 = vor.u32 %v12954_v11, %v11267_v20  ;;  %7557 = vmatpush.bf16.msrb.mxu3 %v12070_v36 }
 0x555   :  { %v11523_v13 = vld [vmem:[#allocation2 + $0x1b28] sm:$0xf0] }
 0x556   :  { %v13082_v14 = vld [vmem:[#allocation2 + $0x1d0c] sm:$0xf]  ;;  %v11526_v25 = vor.u32 %v13018_v12, %v11523_v13  ;;  %7519 = vmatpush.bf16.msrb.mxu0 %v11270_v23 }
 0x557   :  { %v11779_v19 = vld [vmem:[#allocation2 + $0x1d28] sm:$0xf0] }
 0x558   :  { %v13146_v18 = vld [vmem:[#allocation2 + $0x1f0c] sm:$0xf]  ;;  %v11782_v26 = vor.u32 %v13082_v14, %v11779_v19  ;;  %7532 = vmatpush.bf16.msrb.mxu1 %v11526_v25  ;;  %v4585_v14 = vperm.slane %v4569_v63, 1 }
 0x559   :  { %v12035_v22 = vld [vmem:[#allocation2 + $0x1f28] sm:$0xf0] }
 0x55a   :  { %v12946_v29 = vld [vmem:[#allocation2 + $0x18cc] sm:$0xf]  ;;  %v12038_v33 = vor.u32 %v13146_v18, %v12035_v22  ;;  %7545 = vmatpush.bf16.msrb.mxu2 %v11782_v26 }
 0x55b   :  { %v11235_v0 = vld [vmem:[#allocation2 + $0x18e8] sm:$0xf0] }
 0x55c   :  { %v13010_v28 = vld [vmem:[#allocation2 + $0x1acc] sm:$0xf]  ;;  %v11238_v39 = vor.u32 %v12946_v29, %v11235_v0  ;;  %7558 = vmatpush.bf16.msrb.mxu3 %v12038_v33 }
 0x55d   :  { %v11491_v34 = vld [vmem:[#allocation2 + $0x1ae8] sm:$0xf0] }
 0x55e   :  { %v13074_v38 = vld [vmem:[#allocation2 + $0x1ccc] sm:$0xf]  ;;  %v11494_v51 = vor.u32 %v13010_v28, %v11491_v34  ;;  %7520 = vmatpush.bf16.msrb.mxu0 %v11238_v39  ;;  %v7293_v28 = vpop.f32.mrf.mxu2  ;;  %v12727_v39 = vld [vmem:[#allocation2 + $0x11ec] sm:$0xf0] }
 0x55f   :  { %v11747_v40 = vld [vmem:[#allocation2 + $0x1ce8] sm:$0xf0] }
 0x560   :  { %v13138_v43 = vld [vmem:[#allocation2 + $0x1ecc] sm:$0xf]  ;;  %v11750_v46 = vor.u32 %v13074_v38, %v11747_v40  ;;  %7533 = vmatpush.bf16.msrb.mxu1 %v11494_v51  ;;  %v10601_v51 = vld [vmem:[#allocation2 + $0x13d0] sm:$0xf] }
 0x561   :  { %v12003_v44 = vld [vmem:[#allocation2 + $0x1ee8] sm:$0xf0] }
 0x562   :  { %v12938_v56 = vld [vmem:[#allocation2 + $0x188c] sm:$0xf]  ;;  %v12006_v54 = vor.u32 %v13138_v43, %v12003_v44  ;;  %7546 = vmatpush.bf16.msrb.mxu2 %v11750_v46  ;;  %v7306_v43 = vpop.f32.mrf.mxu3  ;;  %v10345_v44 = vld [vmem:[#allocation2 + $0x11d0] sm:$0xf]  ;;  %v7266_v46 = vadd.f32 %v13578_v24, %v4585_v14 }
 0x563   :  { %v11203_v52 = vld [vmem:[#allocation2 + $0x18a8] sm:$0xf0]  ;;  %v10346_v63 = vor.u32 %v12727_v39, %v10345_v44  ;;  %v12719_v24 = vld [vmem:[#allocation2 + $0x11ac] sm:$0xf0] }
 0x564   :  { %v13002_v31 = vld [vmem:[#allocation2 + $0x1a8c] sm:$0xf]  ;;  %v11206_v57 = vor.u32 %v12938_v56, %v11203_v52  ;;  %7559 = vmatpush.bf16.msrb.mxu3 %v12006_v54  ;;  %v12791_v52 = vld [vmem:[#allocation2 + $0x13ec] sm:$0xf0] }
 0x565   :  { %v11459_v55 = vld [vmem:[#allocation2 + $0x1aa8] sm:$0xf0]  ;;  %v12855_v54 = vld [vmem:[#allocation2 + $0x15ec] sm:$0xf0] }
 0x566   :  { %v13066_v27 = vld [vmem:[#allocation2 + $0x1c8c] sm:$0xf]  ;;  %v11462_v59 = vor.u32 %v13002_v31, %v11459_v55  ;;  %7521 = vmatpush.bf16.msrb.mxu0 %v11206_v57  ;;  %v10857_v31 = vld [vmem:[#allocation2 + $0x15d0] sm:$0xf]  ;;  %v10602_v57 = vor.u32 %v12791_v52, %v10601_v51 }
 0x567   :  { %v11715_v48 = vld [vmem:[#allocation2 + $0x1ca8] sm:$0xf0]  ;;  %v10858_v17 = vor.u32 %v12855_v54, %v10857_v31  ;;  %v10281_v14 = vld [vmem:[#allocation2 + $0x1150] sm:$0xf]  ;;  %v7317_v54 = vpop.f32.mrf.mxu0 }
 0x568   :  { %v13130_v15 = vld [vmem:[#allocation2 + $0x1e8c] sm:$0xf]  ;;  %v11718_v61 = vor.u32 %v13066_v27, %v11715_v48  ;;  %7534 = vmatpush.bf16.msrb.mxu1 %v11462_v59  ;;  %v11113_v48 = vld [vmem:[#allocation2 + $0x17d0] sm:$0xf]  ;;  %v7279_v59 = vadd.f32 %v13580_v30, %v7266_v46 }
 0x569   :  { %v11971_v21 = vld [vmem:[#allocation2 + $0x1ea8] sm:$0xf0]  ;;  %v10505_v43 = vld [vmem:[#allocation2 + $0x1310] sm:$0xf] }
 0x56a   :  { %v12930_v58 = vld [vmem:[#allocation2 + $0x184c] sm:$0xf]  ;;  %v11974_v10 = vor.u32 %v13130_v15, %v11971_v21  ;;  %7547 = vmatpush.bf16.msrb.mxu2 %v11718_v61  ;;  %v12919_v15 = vld [vmem:[#allocation2 + $0x17ec] sm:$0xf0]  ;;  %v7292_v30 = vadd.f32 %v13582_v35, %v7279_v59 }
 0x56b   :  { %v11171_v50 = vld [vmem:[#allocation2 + $0x1868] sm:$0xf0]  ;;  %v10313_v61 = vld [vmem:[#allocation2 + $0x1190] sm:$0xf] }
 0x56c   :  { %v12994_v16 = vld [vmem:[#allocation2 + $0x1a4c] sm:$0xf]  ;;  %v11174_v19 = vor.u32 %v12930_v58, %v11171_v50  ;;  %7560 = vmatpush.bf16.msrb.mxu3 %v11974_v10  ;;  %v10569_v58 = vld [vmem:[#allocation2 + $0x1390] sm:$0xf]  ;;  %v11114_v50 = vor.u32 %v12919_v15, %v11113_v48  ;;  %v7305_v35 = vadd.f32 %v13584_v60, %v7292_v30 }
 0x56d   :  { %v11427_v11 = vld [vmem:[#allocation2 + $0x1a68] sm:$0xf0]  ;;  %v12847_v10 = vld [vmem:[#allocation2 + $0x15ac] sm:$0xf0] }
 0x56e   :  { %v13058_v20 = vld [vmem:[#allocation2 + $0x1c4c] sm:$0xf]  ;;  %v11430_v23 = vor.u32 %v12994_v16, %v11427_v11  ;;  %7522 = vmatpush.bf16.msrb.mxu0 %v11174_v19  ;;  %v12783_v16 = vld [vmem:[#allocation2 + $0x13ac] sm:$0xf0] }
 0x56f   :  { %v11683_v12 = vld [vmem:[#allocation2 + $0x1c68] sm:$0xf0]  ;;  %v11081_v11 = vld [vmem:[#allocation2 + $0x1790] sm:$0xf] }
 0x570   :  { %v13122_v36 = vld [vmem:[#allocation2 + $0x1e4c] sm:$0xf]  ;;  %v11686_v25 = vor.u32 %v13058_v20, %v11683_v12  ;;  %7535 = vmatpush.bf16.msrb.mxu1 %v11430_v23  ;;  %v12911_v20 = vld [vmem:[#allocation2 + $0x17ac] sm:$0xf0]  ;;  %v10314_v12 = vor.u32 %v12719_v24, %v10313_v61 }
 0x571   :  { %v11939_v13 = vld [vmem:[#allocation2 + $0x1e68] sm:$0xf0]  ;;  %v12711_v19 = vld [vmem:[#allocation2 + $0x116c] sm:$0xf0] }
 0x572   :  { %v12922_v18 = vld [vmem:[#allocation2 + $0x180c] sm:$0xf]  ;;  %v11942_v33 = vor.u32 %v13122_v36, %v11939_v13  ;;  %7548 = vmatpush.bf16.msrb.mxu2 %v11686_v25  ;;  %v10570_v36 = vor.u32 %v12783_v16, %v10569_v58  ;;  %v10826_v13 = vor.u32 %v12847_v10, %v10825_v62  ;;  %v12775_v23 = vld [vmem:[#allocation2 + $0x136c] sm:$0xf0]  ;;  %v10282_v28 = vor.u32 %v12711_v19, %v10281_v14 }
 0x573   :  { %v11139_v22 = vld [vmem:[#allocation2 + $0x1828] sm:$0xf0]  ;;  %v10793_v25 = vld [vmem:[#allocation2 + $0x1550] sm:$0xf] }
 0x574   :  { %v12986_v26 = vld [vmem:[#allocation2 + $0x1a0c] sm:$0xf]  ;;  %v11142_v56 = vor.u32 %v12922_v18, %v11139_v22  ;;  %7561 = vmatpush.bf16.msrb.mxu3 %v11942_v33  ;;  %v10537_v18 = vld [vmem:[#allocation2 + $0x1350] sm:$0xf]  ;;  %v11082_v22 = vor.u32 %v12911_v20, %v11081_v11 }
 0x575   :  { %v11395_v29 = vld [vmem:[#allocation2 + $0x1a28] sm:$0xf0]  ;;  %v10538_v33 = vor.u32 %v12775_v23, %v10537_v18  ;;  %v12767_v39 = vld [vmem:[#allocation2 + $0x132c] sm:$0xf0] }
 0x576   :  { %v13050_v0 = vld [vmem:[#allocation2 + $0x1c0c] sm:$0xf]  ;;  %v11398_v55 = vor.u32 %v12986_v26, %v11395_v29  ;;  %7523 = vmatpush.bf16.msrb.mxu0 %v11142_v56  ;;  %v12839_v26 = vld [vmem:[#allocation2 + $0x156c] sm:$0xf0] }
 0x577   :  { %v11651_v34 = vld [vmem:[#allocation2 + $0x1c28] sm:$0xf0]  ;;  %v11049_v29 = vld [vmem:[#allocation2 + $0x1750] sm:$0xf] }
 0x578   :  { %v13114_v38 = vld [vmem:[#allocation2 + $0x1e0c] sm:$0xf]  ;;  %v11654_v27 = vor.u32 %v13050_v0, %v11651_v34  ;;  %7536 = vmatpush.bf16.msrb.mxu1 %v11398_v55  ;;  %v12903_v0 = vld [vmem:[#allocation2 + $0x176c] sm:$0xf0]  ;;  %v10794_v34 = vor.u32 %v12839_v26, %v10793_v25  ;;  %v10506_v55 = vor.u32 %v12767_v39, %v10505_v43 }
 0x579   :  { %v11907_v40 = vld [vmem:[#allocation2 + $0x1e28] sm:$0xf0]  ;;  %7524 = vmatmul.bf16.vlgmr.msrb.gmra.mxu0 %v13530_v42  ;;  %v11050_v44 = vor.u32 %v12903_v0, %v11049_v29  ;;  %v10761_v51 = vld [vmem:[#allocation2 + $0x1510] sm:$0xf] }
 0x57a   :  { %v11910_v21 = vor.u32 %v13114_v38, %v11907_v40  ;;  %7549 = vmatpush.bf16.msrb.mxu2 %v11654_v27  ;;  %7568 = vmatpush.bf16.msra.mxu0 %v10346_v63  ;;  %v10249_v38 = vld [vmem:[#allocation2 + $0x1110] sm:$0xf]  ;;  %v7330_v63 = vpop.f32.mrf.mxu1 }
 0x57b   :  { %7537 = vmatmul.bf16.vlgmr.msrb.gmra.mxu1 %v13538_v53  ;;  %v12703_v40 = vld [vmem:[#allocation2 + $0x112c] sm:$0xf0] }
 0x57c   :  { %7562 = vmatpush.bf16.msrb.mxu3 %v11910_v21  ;;  %7581 = vmatpush.bf16.msra.mxu1 %v10602_v57  ;;  %v12831_v46 = vld [vmem:[#allocation2 + $0x152c] sm:$0xf0]  ;;  %v10250_v31 = vor.u32 %v12703_v40, %v10249_v38  ;;  %v7318_v21 = vadd.f32 %v7317_v54, %v7305_v35  ;;  %v7319_v35 = vpop.f32.mrf.mxu0 }
 0x57d   :  { %7550 = vmatmul.bf16.vlgmr.msrb.gmra.mxu2 %v13526_v49  ;;  %v11017_v56 = vld [vmem:[#allocation2 + $0x1710] sm:$0xf]  ;;  %v10762_v27 = vor.u32 %v12831_v46, %v10761_v51 }
 0x57e   :  { %7594 = vmatpush.bf16.msra.mxu2 %v10858_v17  ;;  %7569 = vmatpush.bf16.msra.mxu0 %v10314_v12  ;;  %v12895_v52 = vld [vmem:[#allocation2 + $0x172c] sm:$0xf0] }
 0x57f   :  { %7563 = vmatmul.bf16.vlgmr.msrb.gmra.mxu3 %v13534_v32  ;;  %v10217_v60 = vld [vmem:[#allocation2 + $0x10d0] sm:$0xf]  ;;  %v11018_v57 = vor.u32 %v12895_v52, %v11017_v56 }
 0x580   :  { %7607 = vmatpush.bf16.msra.mxu3 %v11114_v50  ;;  %7582 = vmatpush.bf16.msra.mxu1 %v10570_v36  ;;  %v12695_v48 = vld [vmem:[#allocation2 + $0x10ec] sm:$0xf0]  ;;  %v7331_v50 = vadd.f32 %v7330_v63, %v7318_v21  ;;  %v7343_v36 = vpop.f32.mrf.mxu2 }
 0x581   :  { %v10473_v15 = vld [vmem:[#allocation2 + $0x12d0] sm:$0xf]  ;;  %v10218_v16 = vor.u32 %v12695_v48, %v10217_v60 }
 0x582   :  { %7595 = vmatpush.bf16.msra.mxu2 %v10826_v13  ;;  %7570 = vmatpush.bf16.msra.mxu0 %v10282_v28  ;;  %v12759_v17 = vld [vmem:[#allocation2 + $0x12ec] sm:$0xf0]  ;;  %v7344_v18 = vadd.f32 %v7343_v36, %v7331_v50 }
 0x583   :  { %v10729_v59 = vld [vmem:[#allocation2 + $0x14d0] sm:$0xf]  ;;  %v10474_v62 = vor.u32 %v12759_v17, %v10473_v15 }
 0x584   :  { %7608 = vmatpush.bf16.msra.mxu3 %v11082_v22  ;;  %7583 = vmatpush.bf16.msra.mxu1 %v10538_v33  ;;  %v12823_v61 = vld [vmem:[#allocation2 + $0x14ec] sm:$0xf0]  ;;  %v7356_v22 = vpop.f32.mrf.mxu3 }
 0x585   :  { %v10985_v24 = vld [vmem:[#allocation2 + $0x16d0] sm:$0xf]  ;;  %v10730_v10 = vor.u32 %v12823_v61, %v10729_v59  ;;  %v7357_v29 = vadd.f32 %v7356_v22, %v7344_v18 }
 0x586   :  { %7596 = vmatpush.bf16.msra.mxu2 %v10794_v34  ;;  %v12887_v58 = vld [vmem:[#allocation2 + $0x16ec] sm:$0xf0]  ;;  %7571 = vmatpush.bf16.msra.mxu0 %v10250_v31 }
 0x587   :  { %v10185_v11 = vld [vmem:[#allocation2 + $0x1090] sm:$0xf]  ;;  %v10986_v13 = vor.u32 %v12887_v58, %v10985_v24  ;;  %vm7985_vm9 = vcmp.ge.f32.partialorder %v7357_v29, 0.0  ;;  %v7993_v51 = vmul.f32 0.01, %v7357_v29 }
 0x588   :  { %7609 = vmatpush.bf16.msra.mxu3 %v11050_v44  ;;  %7584 = vmatpush.bf16.msra.mxu1 %v10506_v55  ;;  %v12687_v20 = vld [vmem:[#allocation2 + $0x10ac] sm:$0xf0]  ;;  %v7332_v44 = vpop.f32.mrf.mxu1  ;;  %v7345_v59 = vpop.f32.mrf.mxu2 }
 0x589   :  { %v10441_v12 = vld [vmem:[#allocation2 + $0x1290] sm:$0xf]  ;;  %v10186_v26 = vor.u32 %v12687_v20, %v10185_v11  ;;  %v8001_v31 = vsel %vm7985_vm9, %v7357_v29, %v7993_v51 }
 0x58a   :  { %7597 = vmatpush.bf16.msra.mxu2 %v10762_v27  ;;  %v12751_v30 = vld [vmem:[#allocation2 + $0x12ac] sm:$0xf0]  ;;  %7572 = vmatpush.bf16.msra.mxu0 %v10218_v16  ;;  %v8009_v48 = vadd.f32 %v8001_v31, %v13351_v1 }
 0x58b   :  { %v10697_v14 = vld [vmem:[#allocation2 + $0x1490] sm:$0xf]  ;;  %v10442_v33 = vor.u32 %v12751_v30, %v10441_v12 }
 0x58c   :  { %7610 = vmatpush.bf16.msra.mxu3 %v11018_v57  ;;  %v12815_v19 = vld [vmem:[#allocation2 + $0x14ac] sm:$0xf0]  ;;  %7585 = vmatpush.bf16.msra.mxu1 %v10474_v62  ;;  %v7358_v16 = vpop.f32.mrf.mxu3  ;;  %8017 = vst [vmem:[#allocation9 + $0x8] sm:$0xff] %v8009_v48 }
 0x58d   :  { %v10953_v23 = vld [vmem:[#allocation2 + $0x1690] sm:$0xf]  ;;  %v10698_v34 = vor.u32 %v12815_v19, %v10697_v14 }
 0x58e   :  { %v12879_v25 = vld [vmem:[#allocation2 + $0x16ac] sm:$0xf0]  ;;  %7598 = vmatpush.bf16.msra.mxu2 %v10730_v10  ;;  %7573 = vmatpush.bf16.msra.mxu0 %v10186_v26 }
 0x58f   :  { %v10153_v0 = vld [vmem:[#allocation2 + $0x1050] sm:$0xf]  ;;  %v10954_v39 = vor.u32 %v12879_v25, %v10953_v23 }
 0x590   :  { %v12679_v28 = vld [vmem:[#allocation2 + $0x106c] sm:$0xf0]  ;;  %7611 = vmatpush.bf16.msra.mxu3 %v10986_v13  ;;  %7586 = vmatpush.bf16.msra.mxu1 %v10442_v33 }
 0x591   :  { %v10409_v38 = vld [vmem:[#allocation2 + $0x1250] sm:$0xf]  ;;  %v10154_v54 = vor.u32 %v12679_v28, %v10153_v0 }
 0x592   :  { %v12743_v40 = vld [vmem:[#allocation2 + $0x126c] sm:$0xf0]  ;;  %7599 = vmatpush.bf16.msra.mxu2 %v10698_v34 }
 0x593   :  { %v10665_v43 = vld [vmem:[#allocation2 + $0x1450] sm:$0xf]  ;;  %v10410_v15 = vor.u32 %v12743_v40, %v10409_v38  ;;  %7574 = vmatpush.bf16.msra.mxu0 %v10154_v54 }
 0x594   :  { %v12807_v46 = vld [vmem:[#allocation2 + $0x146c] sm:$0xf0]  ;;  %7612 = vmatpush.bf16.msra.mxu3 %v10954_v39 }
 0x595   :  { %v10921_v56 = vld [vmem:[#allocation2 + $0x1650] sm:$0xf]  ;;  %v10666_v21 = vor.u32 %v12807_v46, %v10665_v43  ;;  %7587 = vmatpush.bf16.msra.mxu1 %v10410_v15 }
 0x596   :  { %v12871_v52 = vld [vmem:[#allocation2 + $0x166c] sm:$0xf0] }
 0x597   :  { %v10121_v55 = vld [vmem:[#allocation2 + $0x1010] sm:$0xf]  ;;  %v10922_v61 = vor.u32 %v12871_v52, %v10921_v56  ;;  %7600 = vmatpush.bf16.msra.mxu2 %v10666_v21 }
 0x598   :  { %v12671_v27 = vld [vmem:[#allocation2 + $0x102c] sm:$0xf0] }
 0x599   :  { %v10377_v60 = vld [vmem:[#allocation2 + $0x1210] sm:$0xf]  ;;  %v10122_v11 = vor.u32 %v12671_v27, %v10121_v55  ;;  %7613 = vmatpush.bf16.msra.mxu3 %v10922_v61 }
 0x59a   :  { %v12735_v63 = vld [vmem:[#allocation2 + $0x122c] sm:$0xf0] }
 0x59b   :  { %v10633_v57 = vld [vmem:[#allocation2 + $0x1410] sm:$0xf]  ;;  %v10378_v36 = vor.u32 %v12735_v63, %v10377_v60  ;;  %7575 = vmatpush.bf16.msra.mxu0 %v10122_v11 }
 0x59c   :  { %v12799_v17 = vld [vmem:[#allocation2 + $0x142c] sm:$0xf0] }
 0x59d   :  { %v10889_v24 = vld [vmem:[#allocation2 + $0x1610] sm:$0xf]  ;;  %v10634_v13 = vor.u32 %v12799_v17, %v10633_v57  ;;  %7588 = vmatpush.bf16.msra.mxu1 %v10378_v36  ;;  %v13602_v36 = vpop.f32.mrf.mxu1 }
 0x59e   :  { %v12863_v58 = vld [vmem:[#allocation2 + $0x162c] sm:$0xf0]  ;;  %7576 = vmatmul.bf16.vlgmr.msra.gmra.mxu0 %v13510_v45 }
 0x59f   :  { %v11369_v50 = vld [vmem:[#allocation2 + $0x19d0] sm:$0xf]  ;;  %v10890_v19 = vor.u32 %v12863_v58, %v10889_v24  ;;  %7601 = vmatpush.bf16.msra.mxu2 %v10634_v13 }
 0x5a0   :  { %v12983_v62 = vld [vmem:[#allocation2 + $0x19ec] sm:$0xf0]  ;;  %7589 = vmatmul.bf16.vlgmr.msra.gmra.mxu1 %v13518_v37 }
 0x5a1   :  { %v11625_v10 = vld [vmem:[#allocation2 + $0x1bd0] sm:$0xf]  ;;  %v11370_v18 = vor.u32 %v12983_v62, %v11369_v50  ;;  %7614 = vmatpush.bf16.msra.mxu3 %v10890_v19  ;;  %v13600_v62 = vpop.f32.mrf.mxu0 }
 0x5a2   :  { %v13047_v20 = vld [vmem:[#allocation2 + $0x1bec] sm:$0xf0]  ;;  %7602 = vmatmul.bf16.vlgmr.msra.gmra.mxu2 %v13506_v41 }
 0x5a3   :  { %v11881_v12 = vld [vmem:[#allocation2 + $0x1dd0] sm:$0xf]  ;;  %v11626_v22 = vor.u32 %v13047_v20, %v11625_v10  ;;  %7620 = vmatpush.bf16.msrb.mxu0 %v11370_v18 }
 0x5a4   :  { %v13111_v1 = vld [vmem:[#allocation2 + $0x1dec] sm:$0xf0]  ;;  %7615 = vmatmul.bf16.vlgmr.msra.gmra.mxu3 %v13514_v47 }
 0x5a5   :  { %v12137_v30 = vld [vmem:[#allocation2 + $0x1fd0] sm:$0xf]  ;;  %v11882_v23 = vor.u32 %v13111_v1, %v11881_v12  ;;  %7633 = vmatpush.bf16.msrb.mxu1 %v11626_v22 }
 0x5a6   :  { %v13175_v14 = vld [vmem:[#allocation2 + $0x1fec] sm:$0xf0] }
 0x5a7   :  { %v11337_v25 = vld [vmem:[#allocation2 + $0x1990] sm:$0xf]  ;;  %v12138_v0 = vor.u32 %v13175_v14, %v12137_v30  ;;  %7646 = vmatpush.bf16.msrb.mxu2 %v11882_v23 }
 0x5a8   :  { %v12975_v26 = vld [vmem:[#allocation2 + $0x19ac] sm:$0xf0] }
 0x5a9   :  { %v11593_v29 = vld [vmem:[#allocation2 + $0x1b90] sm:$0xf]  ;;  %v11338_v40 = vor.u32 %v12975_v26, %v11337_v25  ;;  %7659 = vmatpush.bf16.msrb.mxu3 %v12138_v0 }
 0x5aa   :  { %v13039_v28 = vld [vmem:[#allocation2 + $0x1bac] sm:$0xf0] }
 0x5ab   :  { %v11849_v35 = vld [vmem:[#allocation2 + $0x1d90] sm:$0xf]  ;;  %v11594_v43 = vor.u32 %v13039_v28, %v11593_v29  ;;  %7621 = vmatpush.bf16.msrb.mxu0 %v11338_v40 }
 0x5ac   :  { %v13103_v33 = vld [vmem:[#allocation2 + $0x1dac] sm:$0xf0] }
 0x5ad   :  { %v12105_v34 = vld [vmem:[#allocation2 + $0x1f90] sm:$0xf]  ;;  %v11850_v44 = vor.u32 %v13103_v33, %v11849_v35  ;;  %7634 = vmatpush.bf16.msrb.mxu1 %v11594_v43  ;;  %v13604_v35 = vpop.f32.mrf.mxu2  ;;  %v13606_v43 = vpop.f32.mrf.mxu3 }
 0x5ae   :  { %v13167_v38 = vld [vmem:[#allocation2 + $0x1fac] sm:$0xf0] }
 0x5af   :  { %v11305_v39 = vld [vmem:[#allocation2 + $0x1950] sm:$0xf]  ;;  %v12106_v56 = vor.u32 %v13167_v38, %v12105_v34  ;;  %7647 = vmatpush.bf16.msrb.mxu2 %v11850_v44 }
 0x5b0   :  { %v12967_v51 = vld [vmem:[#allocation2 + $0x196c] sm:$0xf0] }
 0x5b1   :  { %v11561_v46 = vld [vmem:[#allocation2 + $0x1b50] sm:$0xf]  ;;  %v11306_v60 = vor.u32 %v12967_v51, %v11305_v39  ;;  %7660 = vmatpush.bf16.msrb.mxu3 %v12106_v56  ;;  %v4570_v51 = vperm.slane %v13365_v8, 5  ;;  %v7371_v56 = vpop.f32.mrf.mxu0 }
 0x5b2   :  { %v13031_v52 = vld [vmem:[#allocation2 + $0x1b6c] sm:$0xf0] }
 0x5b3   :  { %v11817_v31 = vld [vmem:[#allocation2 + $0x1d50] sm:$0xf]  ;;  %v11562_v48 = vor.u32 %v13031_v52, %v11561_v46  ;;  %7622 = vmatpush.bf16.msrb.mxu0 %v11306_v60  ;;  %v7384_v60 = vpop.f32.mrf.mxu1 }
 0x5b4   :  { %v13095_v54 = vld [vmem:[#allocation2 + $0x1d6c] sm:$0xf0]  ;;  %v10827_v60 = vld [vmem:[#allocation2 + $0x15b0] sm:$0xf0] }
 0x5b5   :  { %v12073_v55 = vld [vmem:[#allocation2 + $0x1f50] sm:$0xf]  ;;  %v11818_v15 = vor.u32 %v13095_v54, %v11817_v31  ;;  %7635 = vmatpush.bf16.msrb.mxu1 %v11562_v48 }
 0x5b6   :  { %v13159_v27 = vld [vmem:[#allocation2 + $0x1f6c] sm:$0xf0] }
 0x5b7   :  { %v11273_v21 = vld [vmem:[#allocation2 + $0x1910] sm:$0xf]  ;;  %v12074_v17 = vor.u32 %v13159_v27, %v12073_v55  ;;  %7648 = vmatpush.bf16.msrb.mxu2 %v11818_v15 }
 0x5b8   :  { %v12959_v63 = vld [vmem:[#allocation2 + $0x192c] sm:$0xf0] }
 0x5b9   :  { %v11529_v57 = vld [vmem:[#allocation2 + $0x1b10] sm:$0xf]  ;;  %v11274_v16 = vor.u32 %v12959_v63, %v11273_v21  ;;  %7661 = vmatpush.bf16.msrb.mxu3 %v12074_v17 }
 0x5ba   :  { %v13023_v59 = vld [vmem:[#allocation2 + $0x1b2c] sm:$0xf0] }
 0x5bb   :  { %v11785_v61 = vld [vmem:[#allocation2 + $0x1d10] sm:$0xf]  ;;  %v11530_v10 = vor.u32 %v13023_v59, %v11529_v57  ;;  %7623 = vmatpush.bf16.msrb.mxu0 %v11274_v16  ;;  %v4586_v59 = vperm.slane %v4570_v51, 1 }
 0x5bc   :  { %v13087_v24 = vld [vmem:[#allocation2 + $0x1d2c] sm:$0xf0] }
 0x5bd   :  { %v12041_v58 = vld [vmem:[#allocation2 + $0x1f10] sm:$0xf]  ;;  %v11786_v11 = vor.u32 %v13087_v24, %v11785_v61  ;;  %7636 = vmatpush.bf16.msrb.mxu1 %v11530_v10 }
 0x5be   :  { %v13151_v50 = vld [vmem:[#allocation2 + $0x1f2c] sm:$0xf0] }
 0x5bf   :  { %v11241_v20 = vld [vmem:[#allocation2 + $0x18d0] sm:$0xf]  ;;  %v12042_v13 = vor.u32 %v13151_v50, %v12041_v58  ;;  %7649 = vmatpush.bf16.msrb.mxu2 %v11786_v11 }
 0x5c0   :  { %v12951_v12 = vld [vmem:[#allocation2 + $0x18ec] sm:$0xf0] }
 0x5c1   :  { %v11497_v1 = vld [vmem:[#allocation2 + $0x1ad0] sm:$0xf]  ;;  %v11242_v23 = vor.u32 %v12951_v12, %v11241_v20  ;;  %7662 = vmatpush.bf16.msrb.mxu3 %v12042_v13  ;;  %v7397_v12 = vpop.f32.mrf.mxu2 }
 0x5c2   :  { %v13015_v30 = vld [vmem:[#allocation2 + $0x1aec] sm:$0xf0] }
 0x5c3   :  { %v11753_v14 = vld [vmem:[#allocation2 + $0x1cd0] sm:$0xf]  ;;  %v11498_v25 = vor.u32 %v13015_v30, %v11497_v1  ;;  %7624 = vmatpush.bf16.msrb.mxu0 %v11242_v23  ;;  %v12787_v23 = vld [vmem:[#allocation2 + $0x13d4] sm:$0xf] }
 0x5c4   :  { %v13079_v19 = vld [vmem:[#allocation2 + $0x1cec] sm:$0xf0] }
 0x5c5   :  { %v12009_v18 = vld [vmem:[#allocation2 + $0x1ed0] sm:$0xf]  ;;  %v11754_v26 = vor.u32 %v13079_v19, %v11753_v14  ;;  %7637 = vmatpush.bf16.msrb.mxu1 %v11498_v25  ;;  %v7410_v19 = vpop.f32.mrf.mxu3  ;;  %v7370_v25 = vadd.f32 %v13600_v62, %v4586_v59  ;;  %v10315_v62 = vld [vmem:[#allocation2 + $0x11b0] sm:$0xf0] }
 0x5c6   :  { %v13143_v22 = vld [vmem:[#allocation2 + $0x1eec] sm:$0xf0]  ;;  %v10283_v59 = vld [vmem:[#allocation2 + $0x1170] sm:$0xf0] }
 0x5c7   :  { %v11209_v29 = vld [vmem:[#allocation2 + $0x1890] sm:$0xf]  ;;  %v12010_v33 = vor.u32 %v13143_v22, %v12009_v18  ;;  %7650 = vmatpush.bf16.msrb.mxu2 %v11754_v26  ;;  %v12723_v18 = vld [vmem:[#allocation2 + $0x11d4] sm:$0xf]  ;;  %v7383_v56 = vadd.f32 %v13602_v36, %v7370_v25 }
 0x5c8   :  { %v12943_v0 = vld [vmem:[#allocation2 + $0x18ac] sm:$0xf0]  ;;  %v10347_v22 = vld [vmem:[#allocation2 + $0x11f0] sm:$0xf0] }
 0x5c9   :  { %v11465_v28 = vld [vmem:[#allocation2 + $0x1a90] sm:$0xf]  ;;  %v11210_v46 = vor.u32 %v12943_v0, %v11209_v29  ;;  %7663 = vmatpush.bf16.msrb.mxu3 %v12010_v33  ;;  %v10603_v29 = vld [vmem:[#allocation2 + $0x13f0] sm:$0xf0]  ;;  %v7396_v36 = vadd.f32 %v13604_v35, %v7383_v56 }
 0x5ca   :  { %v13007_v34 = vld [vmem:[#allocation2 + $0x1aac] sm:$0xf0]  ;;  %v12851_v0 = vld [vmem:[#allocation2 + $0x15d4] sm:$0xf]  ;;  %v10606_v51 = vor.u32 %v12787_v23, %v10603_v29 }
 0x5cb   :  { %v11721_v38 = vld [vmem:[#allocation2 + $0x1c90] sm:$0xf]  ;;  %v11466_v52 = vor.u32 %v13007_v34, %v11465_v28  ;;  %7625 = vmatpush.bf16.msrb.mxu0 %v11210_v46  ;;  %v10859_v28 = vld [vmem:[#allocation2 + $0x15f0] sm:$0xf0]  ;;  %v7409_v35 = vadd.f32 %v13606_v43, %v7396_v36 }
 0x5cc   :  { %v13071_v40 = vld [vmem:[#allocation2 + $0x1cac] sm:$0xf0]  ;;  %v10862_v46 = vor.u32 %v12851_v0, %v10859_v28  ;;  %v10763_v23 = vld [vmem:[#allocation2 + $0x1530] sm:$0xf0]  ;;  %v7421_v0 = vpop.f32.mrf.mxu0 }
 0x5cd   :  { %v11977_v44 = vld [vmem:[#allocation2 + $0x1e90] sm:$0xf]  ;;  %v11722_v31 = vor.u32 %v13071_v40, %v11721_v38  ;;  %7638 = vmatpush.bf16.msrb.mxu1 %v11466_v52  ;;  %v12915_v38 = vld [vmem:[#allocation2 + $0x17d4] sm:$0xf] }
 0x5ce   :  { %v13135_v39 = vld [vmem:[#allocation2 + $0x1eac] sm:$0xf0]  ;;  %v11115_v40 = vld [vmem:[#allocation2 + $0x17f0] sm:$0xf0] }
 0x5cf   :  { %v11177_v54 = vld [vmem:[#allocation2 + $0x1850] sm:$0xf]  ;;  %v11978_v48 = vor.u32 %v13135_v39, %v11977_v44  ;;  %7651 = vmatpush.bf16.msrb.mxu2 %v11722_v31  ;;  %v10350_v39 = vor.u32 %v12723_v18, %v10347_v22  ;;  %v12715_v52 = vld [vmem:[#allocation2 + $0x1194] sm:$0xf] }
 0x5d0   :  { %v12935_v55 = vld [vmem:[#allocation2 + $0x186c] sm:$0xf0]  ;;  %v12779_v31 = vld [vmem:[#allocation2 + $0x1394] sm:$0xf] }
 0x5d1   :  { %v11433_v27 = vld [vmem:[#allocation2 + $0x1a50] sm:$0xf]  ;;  %v11178_v61 = vor.u32 %v12935_v55, %v11177_v54  ;;  %7664 = vmatpush.bf16.msrb.mxu3 %v11978_v48  ;;  %v11118_v54 = vor.u32 %v12915_v38, %v11115_v40  ;;  %v10571_v55 = vld [vmem:[#allocation2 + $0x13b0] sm:$0xf0]  ;;  %v7422_v40 = vadd.f32 %v7421_v0, %v7409_v35 }
 0x5d2   :  { %v12999_v15 = vld [vmem:[#allocation2 + $0x1a6c] sm:$0xf0]  ;;  %v12907_v48 = vld [vmem:[#allocation2 + $0x1794] sm:$0xf] }
 0x5d3   :  { %v11689_v21 = vld [vmem:[#allocation2 + $0x1c50] sm:$0xf]  ;;  %v11434_v50 = vor.u32 %v12999_v15, %v11433_v27  ;;  %7626 = vmatpush.bf16.msrb.mxu0 %v11178_v61  ;;  %v12843_v27 = vld [vmem:[#allocation2 + $0x1594] sm:$0xf] }
 0x5d4   :  { %v13063_v63 = vld [vmem:[#allocation2 + $0x1c6c] sm:$0xf0]  ;;  %v11083_v15 = vld [vmem:[#allocation2 + $0x17b0] sm:$0xf0] }
 0x5d5   :  { %v11945_v57 = vld [vmem:[#allocation2 + $0x1e50] sm:$0xf]  ;;  %v11690_v16 = vor.u32 %v13063_v63, %v11689_v21  ;;  %7639 = vmatpush.bf16.msrb.mxu1 %v11434_v50  ;;  %v10318_v21 = vor.u32 %v12715_v52, %v10315_v62  ;;  %v10574_v63 = vor.u32 %v12779_v31, %v10571_v55  ;;  %v12771_v61 = vld [vmem:[#allocation2 + $0x1354] sm:$0xf] }
 0x5d6   :  { %v13127_v17 = vld [vmem:[#allocation2 + $0x1e6c] sm:$0xf0]  ;;  %v12835_v50 = vld [vmem:[#allocation2 + $0x1554] sm:$0xf] }
 0x5d7   :  { %v11145_v24 = vld [vmem:[#allocation2 + $0x1810] sm:$0xf]  ;;  %v11946_v1 = vor.u32 %v13127_v17, %v11945_v57  ;;  %7652 = vmatpush.bf16.msrb.mxu2 %v11690_v16  ;;  %v10830_v57 = vor.u32 %v12843_v27, %v10827_v60  ;;  %v12707_v17 = vld [vmem:[#allocation2 + $0x1154] sm:$0xf] }
 0x5d8   :  { %v12927_v58 = vld [vmem:[#allocation2 + $0x182c] sm:$0xf0]  ;;  %v10795_v16 = vld [vmem:[#allocation2 + $0x1570] sm:$0xf0] }
 0x5d9   :  { %v11401_v10 = vld [vmem:[#allocation2 + $0x1a10] sm:$0xf]  ;;  %v11146_v26 = vor.u32 %v12927_v58, %v11145_v24  ;;  %7665 = vmatpush.bf16.msrb.mxu3 %v11946_v1  ;;  %v11086_v24 = vor.u32 %v12907_v48, %v11083_v15  ;;  %v10539_v58 = vld [vmem:[#allocation2 + $0x1370] sm:$0xf0]  ;;  %v10798_v1 = vor.u32 %v12835_v50, %v10795_v16 }
 0x5da   :  { %v12991_v11 = vld [vmem:[#allocation2 + $0x1a2c] sm:$0xf0]  ;;  %v10542_v12 = vor.u32 %v12771_v61, %v10539_v58  ;;  %v10507_v18 = vld [vmem:[#allocation2 + $0x1330] sm:$0xf0]  ;;  %v7460_v61 = vpop.f32.mrf.mxu3 }
 0x5db   :  { %v11657_v20 = vld [vmem:[#allocation2 + $0x1c10] sm:$0xf]  ;;  %v11402_v33 = vor.u32 %v12991_v11, %v11401_v10  ;;  %7627 = vmatpush.bf16.msrb.mxu0 %v11146_v26  ;;  %v12899_v10 = vld [vmem:[#allocation2 + $0x1754] sm:$0xf] }
 0x5dc   :  { %v13055_v13 = vld [vmem:[#allocation2 + $0x1c2c] sm:$0xf0]  ;;  %v11051_v11 = vld [vmem:[#allocation2 + $0x1770] sm:$0xf0] }
 0x5dd   :  { %v11913_v30 = vld [vmem:[#allocation2 + $0x1e10] sm:$0xf]  ;;  %v11658_v34 = vor.u32 %v13055_v13, %v11657_v20  ;;  %7640 = vmatpush.bf16.msrb.mxu1 %v11402_v33  ;;  %v10286_v20 = vor.u32 %v12707_v17, %v10283_v59  ;;  %v12699_v13 = vld [vmem:[#allocation2 + $0x1114] sm:$0xf]  ;;  %v11054_v19 = vor.u32 %v12899_v10, %v11051_v11 }
 0x5de   :  { %v13119_v14 = vld [vmem:[#allocation2 + $0x1e2c] sm:$0xf0]  ;;  %7628 = vmatmul.bf16.vlgmr.msrb.gmra.mxu0 %v13530_v42  ;;  %v12827_v22 = vld [vmem:[#allocation2 + $0x1514] sm:$0xf] }
 0x5df   :  { %v11914_v44 = vor.u32 %v13119_v14, %v11913_v30  ;;  %7653 = vmatpush.bf16.msrb.mxu2 %v11658_v34  ;;  %7672 = vmatpush.bf16.msra.mxu0 %v10350_v39  ;;  %v10251_v30 = vld [vmem:[#allocation2 + $0x1130] sm:$0xf0]  ;;  %v10766_v33 = vor.u32 %v12827_v22, %v10763_v23 }
 0x5e0   :  { %7641 = vmatmul.bf16.vlgmr.msrb.gmra.mxu1 %v13538_v53  ;;  %v12763_v14 = vld [vmem:[#allocation2 + $0x1314] sm:$0xf]  ;;  %v10254_v29 = vor.u32 %v12699_v13, %v10251_v30 }
 0x5e1   :  { %7666 = vmatpush.bf16.msrb.mxu3 %v11914_v44  ;;  %7685 = vmatpush.bf16.msra.mxu1 %v10606_v51  ;;  %v12891_v25 = vld [vmem:[#allocation2 + $0x1714] sm:$0xf]  ;;  %v10510_v28 = vor.u32 %v12763_v14, %v10507_v18  ;;  %v7434_v44 = vpop.f32.mrf.mxu1 }
 0x5e2   :  { %7654 = vmatmul.bf16.vlgmr.msrb.gmra.mxu2 %v13526_v49  ;;  %v11019_v26 = vld [vmem:[#allocation2 + $0x1730] sm:$0xf0]  ;;  %v7435_v31 = vadd.f32 %v7434_v44, %v7422_v40 }
 0x5e3   :  { %7698 = vmatpush.bf16.msra.mxu2 %v10862_v46  ;;  %7673 = vmatpush.bf16.msra.mxu0 %v10318_v21  ;;  %v12691_v43 = vld [vmem:[#allocation2 + $0x10d4] sm:$0xf]  ;;  %v11022_v39 = vor.u32 %v12891_v25, %v11019_v26  ;;  %v7447_v21 = vpop.f32.mrf.mxu2 }
 0x5e4   :  { %7667 = vmatmul.bf16.vlgmr.msrb.gmra.mxu3 %v13534_v32  ;;  %v10219_v34 = vld [vmem:[#allocation2 + $0x10f0] sm:$0xf0]  ;;  %v7448_v59 = vadd.f32 %v7447_v21, %v7435_v31  ;;  %v7462_v31 = vpop.f32.mrf.mxu3 }
 0x5e5   :  { %7711 = vmatpush.bf16.msra.mxu3 %v11118_v54  ;;  %7686 = vmatpush.bf16.msra.mxu1 %v10574_v63  ;;  %v12755_v38 = vld [vmem:[#allocation2 + $0x12d4] sm:$0xf]  ;;  %v10222_v54 = vor.u32 %v12691_v43, %v10219_v34 }
 0x5e6   :  { %v10475_v51 = vld [vmem:[#allocation2 + $0x12f0] sm:$0xf0]  ;;  %v7461_v16 = vadd.f32 %v7460_v61, %v7448_v59 }
 0x5e7   :  { %7699 = vmatpush.bf16.msra.mxu2 %v10830_v57  ;;  %7674 = vmatpush.bf16.msra.mxu0 %v10286_v20  ;;  %v12819_v46 = vld [vmem:[#allocation2 + $0x14d4] sm:$0xf]  ;;  %v10478_v55 = vor.u32 %v12755_v38, %v10475_v51  ;;  %v7423_v20 = vpop.f32.mrf.mxu0 }
 0x5e8   :  { %v10731_v56 = vld [vmem:[#allocation2 + $0x14f0] sm:$0xf0]  ;;  %vm7986_vm10 = vcmp.ge.f32.partialorder %v7461_v16, 0.0  ;;  %v7994_v18 = vmul.f32 0.01, %v7461_v16 }
 0x5e9   :  { %7712 = vmatpush.bf16.msra.mxu3 %v11086_v24  ;;  %7687 = vmatpush.bf16.msra.mxu1 %v10542_v12  ;;  %v12883_v52 = vld [vmem:[#allocation2 + $0x16d4] sm:$0xf]  ;;  %v10734_v27 = vor.u32 %v12819_v46, %v10731_v56  ;;  %v7436_v14 = vpop.f32.mrf.mxu1 }
 0x5ea   :  { %v10987_v62 = vld [vmem:[#allocation2 + $0x16f0] sm:$0xf0]  ;;  %v8002_v26 = vsel %vm7986_vm10, %v7461_v16, %v7994_v18 }
 0x5eb   :  { %7700 = vmatpush.bf16.msra.mxu2 %v10798_v1  ;;  %7675 = vmatpush.bf16.msra.mxu0 %v10254_v29  ;;  %v12683_v60 = vld [vmem:[#allocation2 + $0x1094] sm:$0xf]  ;;  %v10990_v63 = vor.u32 %v12883_v52, %v10987_v62  ;;  %v8010_v43 = vadd.f32 %v8002_v26, %v13353_v2  ;;  %v7449_v51 = vpop.f32.mrf.mxu2 }
 0x5ec   :  { %v10187_v48 = vld [vmem:[#allocation2 + $0x10b0] sm:$0xf0] }
 0x5ed   :  { %7713 = vmatpush.bf16.msra.mxu3 %v11054_v19  ;;  %7688 = vmatpush.bf16.msra.mxu1 %v10510_v28  ;;  %v12747_v15 = vld [vmem:[#allocation2 + $0x1294] sm:$0xf]  ;;  %v10190_v50 = vor.u32 %v12683_v60, %v10187_v48  ;;  %8018 = vst [vmem:[#allocation9 + $0x10] sm:$0xff] %v8010_v43 }
 0x5ee   :  { %v10443_v57 = vld [vmem:[#allocation2 + $0x12b0] sm:$0xf0] }
 0x5ef   :  { %7701 = vmatpush.bf16.msra.mxu2 %v10766_v33  ;;  %v12811_v36 = vld [vmem:[#allocation2 + $0x1494] sm:$0xf]  ;;  %7676 = vmatpush.bf16.msra.mxu0 %v10222_v54  ;;  %v10446_v35 = vor.u32 %v12747_v15, %v10443_v57  ;;  %v13622_v31 = vpop.f32.mrf.mxu0 }
 0x5f0   :  { %v10699_v17 = vld [vmem:[#allocation2 + $0x14b0] sm:$0xf0] }
 0x5f1   :  { %7714 = vmatpush.bf16.msra.mxu3 %v11022_v39  ;;  %v12875_v24 = vld [vmem:[#allocation2 + $0x1694] sm:$0xf]  ;;  %7689 = vmatpush.bf16.msra.mxu1 %v10478_v55  ;;  %v10702_v12 = vor.u32 %v12811_v36, %v10699_v17 }
 0x5f2   :  { %v10955_v58 = vld [vmem:[#allocation2 + $0x16b0] sm:$0xf0] }
 0x5f3   :  { %v12675_v10 = vld [vmem:[#allocation2 + $0x1054] sm:$0xf]  ;;  %7702 = vmatpush.bf16.msra.mxu2 %v10734_v27  ;;  %v10958_v19 = vor.u32 %v12875_v24, %v10955_v58  ;;  %7677 = vmatpush.bf16.msra.mxu0 %v10190_v50 }
 0x5f4   :  { %v10155_v11 = vld [vmem:[#allocation2 + $0x1070] sm:$0xf0] }
 0x5f5   :  { %v12739_v1 = vld [vmem:[#allocation2 + $0x1254] sm:$0xf]  ;;  %7715 = vmatpush.bf16.msra.mxu3 %v10990_v63  ;;  %v10158_v29 = vor.u32 %v12675_v10, %v10155_v11  ;;  %7690 = vmatpush.bf16.msra.mxu1 %v10446_v35 }
 0x5f6   :  { %v10411_v13 = vld [vmem:[#allocation2 + $0x1270] sm:$0xf0] }
 0x5f7   :  { %v12803_v30 = vld [vmem:[#allocation2 + $0x1454] sm:$0xf]  ;;  %7703 = vmatpush.bf16.msra.mxu2 %v10702_v12  ;;  %v10414_v34 = vor.u32 %v12739_v1, %v10411_v13  ;;  %7678 = vmatpush.bf16.msra.mxu0 %v10158_v29 }
 0x5f8   :  { %v10667_v22 = vld [vmem:[#allocation2 + $0x1470] sm:$0xf0] }
 0x5f9   :  { %v12867_v23 = vld [vmem:[#allocation2 + $0x1654] sm:$0xf]  ;;  %v10670_v38 = vor.u32 %v12803_v30, %v10667_v22  ;;  %7716 = vmatpush.bf16.msra.mxu3 %v10958_v19  ;;  %7691 = vmatpush.bf16.msra.mxu1 %v10414_v34 }
 0x5fa   :  { %v10923_v25 = vld [vmem:[#allocation2 + $0x1670] sm:$0xf0] }
 0x5fb   :  { %v12667_v0 = vld [vmem:[#allocation2 + $0x1014] sm:$0xf]  ;;  %v10926_v46 = vor.u32 %v12867_v23, %v10923_v25  ;;  %7704 = vmatpush.bf16.msra.mxu2 %v10670_v38 }
 0x5fc   :  { %v10123_v28 = vld [vmem:[#allocation2 + $0x1030] sm:$0xf0] }
 0x5fd   :  { %v12731_v33 = vld [vmem:[#allocation2 + $0x1214] sm:$0xf]  ;;  %v10126_v27 = vor.u32 %v12667_v0, %v10123_v28  ;;  %7717 = vmatpush.bf16.msra.mxu3 %v10926_v46 }
 0x5fe   :  { %v10379_v40 = vld [vmem:[#allocation2 + $0x1230] sm:$0xf0] }
 0x5ff   :  { %v12795_v44 = vld [vmem:[#allocation2 + $0x1414] sm:$0xf]  ;;  %v10382_v15 = vor.u32 %v12731_v33, %v10379_v40  ;;  %7679 = vmatpush.bf16.msra.mxu0 %v10126_v27 }
 0x600   :  { %v10635_v39 = vld [vmem:[#allocation2 + $0x1430] sm:$0xf0] }
 0x601   :  { %v12859_v56 = vld [vmem:[#allocation2 + $0x1614] sm:$0xf]  ;;  %v10638_v21 = vor.u32 %v12795_v44, %v10635_v39  ;;  %7692 = vmatpush.bf16.msra.mxu1 %v10382_v15 }
 0x602   :  { %v10891_v52 = vld [vmem:[#allocation2 + $0x1630] sm:$0xf0]  ;;  %7680 = vmatmul.bf16.vlgmr.msra.gmra.mxu0 %v13510_v45 }
 0x603   :  { %v12979_v62 = vld [vmem:[#allocation2 + $0x19d4] sm:$0xf]  ;;  %v10894_v36 = vor.u32 %v12859_v56, %v10891_v52  ;;  %7705 = vmatpush.bf16.msra.mxu2 %v10638_v21 }
 0x604   :  { %v11371_v54 = vld [vmem:[#allocation2 + $0x19f0] sm:$0xf0]  ;;  %7693 = vmatmul.bf16.vlgmr.msra.gmra.mxu1 %v13518_v37 }
 0x605   :  { %v13043_v55 = vld [vmem:[#allocation2 + $0x1bd4] sm:$0xf]  ;;  %v11374_v17 = vor.u32 %v12979_v62, %v11371_v54  ;;  %7718 = vmatpush.bf16.msra.mxu3 %v10894_v36 }
 0x606   :  { %v11627_v60 = vld [vmem:[#allocation2 + $0x1bf0] sm:$0xf0]  ;;  %7706 = vmatmul.bf16.vlgmr.msra.gmra.mxu2 %v13506_v41 }
 0x607   :  { %v13107_v48 = vld [vmem:[#allocation2 + $0x1dd4] sm:$0xf]  ;;  %v11630_v59 = vor.u32 %v13043_v55, %v11627_v60  ;;  %7724 = vmatpush.bf16.msrb.mxu0 %v11374_v17 }
 0x608   :  { %v11883_v2 = vld [vmem:[#allocation2 + $0x1df0] sm:$0xf0]  ;;  %7719 = vmatmul.bf16.vlgmr.msra.gmra.mxu3 %v13514_v47 }
 0x609   :  { %v13171_v63 = vld [vmem:[#allocation2 + $0x1fd4] sm:$0xf]  ;;  %v11886_v61 = vor.u32 %v13107_v48, %v11883_v2  ;;  %7737 = vmatpush.bf16.msrb.mxu1 %v11630_v59  ;;  %v13624_v2 = vpop.f32.mrf.mxu1 }
 0x60a   :  { %v12139_v57 = vld [vmem:[#allocation2 + $0x1ff0] sm:$0xf0] }
 0x60b   :  { %v12971_v24 = vld [vmem:[#allocation2 + $0x1994] sm:$0xf]  ;;  %v12142_v16 = vor.u32 %v13171_v63, %v12139_v57  ;;  %7750 = vmatpush.bf16.msrb.mxu2 %v11886_v61 }
 0x60c   :  { %v11339_v58 = vld [vmem:[#allocation2 + $0x19b0] sm:$0xf0] }
 0x60d   :  { %v13035_v50 = vld [vmem:[#allocation2 + $0x1b94] sm:$0xf]  ;;  %v11342_v1 = vor.u32 %v12971_v24, %v11339_v58  ;;  %7763 = vmatpush.bf16.msrb.mxu3 %v12142_v16 }
 0x60e   :  { %v11595_v10 = vld [vmem:[#allocation2 + $0x1bb0] sm:$0xf0] }
 0x60f   :  { %v13099_v11 = vld [vmem:[#allocation2 + $0x1d94] sm:$0xf]  ;;  %v11598_v13 = vor.u32 %v13035_v50, %v11595_v10  ;;  %7725 = vmatpush.bf16.msrb.mxu0 %v11342_v1  ;;  %v13626_v10 = vpop.f32.mrf.mxu2  ;;  %v13628_v1 = vpop.f32.mrf.mxu3 }
 0x610   :  { %v11851_v20 = vld [vmem:[#allocation2 + $0x1db0] sm:$0xf0] }
 0x611   :  { %v13163_v35 = vld [vmem:[#allocation2 + $0x1f94] sm:$0xf]  ;;  %v11854_v30 = vor.u32 %v13099_v11, %v11851_v20  ;;  %7738 = vmatpush.bf16.msrb.mxu1 %v11598_v13 }
 0x612   :  { %v12107_v12 = vld [vmem:[#allocation2 + $0x1fb0] sm:$0xf0] }
 0x613   :  { %v12963_v14 = vld [vmem:[#allocation2 + $0x1954] sm:$0xf]  ;;  %v12110_v22 = vor.u32 %v13163_v35, %v12107_v12  ;;  %7751 = vmatpush.bf16.msrb.mxu2 %v11854_v30 }
 0x614   :  { %v11307_v19 = vld [vmem:[#allocation2 + $0x1970] sm:$0xf0] }
 0x615   :  { %v13027_v18 = vld [vmem:[#allocation2 + $0x1b54] sm:$0xf]  ;;  %v11310_v28 = vor.u32 %v12963_v14, %v11307_v19  ;;  %7764 = vmatpush.bf16.msrb.mxu3 %v12110_v22  ;;  %v4571_v14 = vperm.slane %v13365_v8, 7 }
 0x616   :  { %v11563_v23 = vld [vmem:[#allocation2 + $0x1b70] sm:$0xf0] }
 0x617   :  { %v13091_v25 = vld [vmem:[#allocation2 + $0x1d54] sm:$0xf]  ;;  %v11566_v33 = vor.u32 %v13027_v18, %v11563_v23  ;;  %7726 = vmatpush.bf16.msrb.mxu0 %v11310_v28  ;;  %v7475_v18 = vpop.f32.mrf.mxu0 }
 0x618   :  { %v11819_v26 = vld [vmem:[#allocation2 + $0x1d70] sm:$0xf0]  ;;  %v10577_v18 = vld [vmem:[#allocation2 + $0x1398] sm:$0xf] }
 0x619   :  { %v13155_v29 = vld [vmem:[#allocation2 + $0x1f54] sm:$0xf]  ;;  %v11822_v43 = vor.u32 %v13091_v25, %v11819_v26  ;;  %7739 = vmatpush.bf16.msrb.mxu1 %v11566_v33 }
 0x61a   :  { %v12075_v0 = vld [vmem:[#allocation2 + $0x1f70] sm:$0xf0] }
 0x61b   :  { %v12955_v34 = vld [vmem:[#allocation2 + $0x1914] sm:$0xf]  ;;  %v12078_v44 = vor.u32 %v13155_v29, %v12075_v0  ;;  %7752 = vmatpush.bf16.msrb.mxu2 %v11822_v43  ;;  %v7488_v0 = vpop.f32.mrf.mxu1 }
 0x61c   :  { %v11275_v38 = vld [vmem:[#allocation2 + $0x1930] sm:$0xf0]  ;;  %v12912_v0 = vld [vmem:[#allocation2 + $0x17b4] sm:$0xf0] }
 0x61d   :  { %v13019_v40 = vld [vmem:[#allocation2 + $0x1b14] sm:$0xf]  ;;  %v11278_v62 = vor.u32 %v12955_v34, %v11275_v38  ;;  %7765 = vmatpush.bf16.msrb.mxu3 %v12078_v44  ;;  %v4587_v44 = vperm.slane %v4571_v14, 1 }
 0x61e   :  { %v11531_v39 = vld [vmem:[#allocation2 + $0x1b30] sm:$0xf0] }
 0x61f   :  { %v13083_v51 = vld [vmem:[#allocation2 + $0x1d14] sm:$0xf]  ;;  %v11534_v54 = vor.u32 %v13019_v40, %v11531_v39  ;;  %7727 = vmatpush.bf16.msrb.mxu0 %v11278_v62 }
 0x620   :  { %v11787_v46 = vld [vmem:[#allocation2 + $0x1d30] sm:$0xf0] }
 0x621   :  { %v13147_v56 = vld [vmem:[#allocation2 + $0x1f14] sm:$0xf]  ;;  %v11790_v55 = vor.u32 %v13083_v51, %v11787_v46  ;;  %7740 = vmatpush.bf16.msrb.mxu1 %v11534_v54 }
 0x622   :  { %v12043_v52 = vld [vmem:[#allocation2 + $0x1f30] sm:$0xf0] }
 0x623   :  { %v12947_v27 = vld [vmem:[#allocation2 + $0x18d4] sm:$0xf]  ;;  %v12046_v15 = vor.u32 %v13147_v56, %v12043_v52  ;;  %7753 = vmatpush.bf16.msrb.mxu2 %v11790_v55  ;;  %v7501_v55 = vpop.f32.mrf.mxu2 }
 0x624   :  { %v11243_v60 = vld [vmem:[#allocation2 + $0x18f0] sm:$0xf0]  ;;  %v10257_v55 = vld [vmem:[#allocation2 + $0x1118] sm:$0xf] }
 0x625   :  { %v13011_v48 = vld [vmem:[#allocation2 + $0x1ad4] sm:$0xf]  ;;  %v11246_v59 = vor.u32 %v12947_v27, %v11243_v60  ;;  %7766 = vmatpush.bf16.msrb.mxu3 %v12046_v15 }
 0x626   :  { %v11499_v21 = vld [vmem:[#allocation2 + $0x1af0] sm:$0xf0] }
 0x627   :  { %v13075_v63 = vld [vmem:[#allocation2 + $0x1cd4] sm:$0xf]  ;;  %v11502_v61 = vor.u32 %v13011_v48, %v11499_v21  ;;  %7728 = vmatpush.bf16.msrb.mxu0 %v11246_v59  ;;  %v7514_v21 = vpop.f32.mrf.mxu3 }
 0x628   :  { %v11755_v57 = vld [vmem:[#allocation2 + $0x1cf0] sm:$0xf0]  ;;  %v10769_v21 = vld [vmem:[#allocation2 + $0x1518] sm:$0xf] }
 0x629   :  { %v13139_v36 = vld [vmem:[#allocation2 + $0x1ed4] sm:$0xf]  ;;  %v11758_v24 = vor.u32 %v13075_v63, %v11755_v57  ;;  %7741 = vmatpush.bf16.msrb.mxu1 %v11502_v61  ;;  %v10353_v63 = vld [vmem:[#allocation2 + $0x11d8] sm:$0xf] }
 0x62a   :  { %v12011_v17 = vld [vmem:[#allocation2 + $0x1ef0] sm:$0xf0]  ;;  %v12728_v57 = vld [vmem:[#allocation2 + $0x11f4] sm:$0xf0] }
 0x62b   :  { %v12939_v58 = vld [vmem:[#allocation2 + $0x1894] sm:$0xf]  ;;  %v12014_v11 = vor.u32 %v13139_v36, %v12011_v17  ;;  %7754 = vmatpush.bf16.msrb.mxu2 %v11758_v24  ;;  %v10609_v36 = vld [vmem:[#allocation2 + $0x13d8] sm:$0xf]  ;;  %v7474_v17 = vadd.f32 %v13622_v31, %v4587_v44 }
 0x62c   :  { %v11211_v50 = vld [vmem:[#allocation2 + $0x18b0] sm:$0xf0]  ;;  %v12792_v61 = vld [vmem:[#allocation2 + $0x13f4] sm:$0xf0] }
 0x62d   :  { %v13003_v16 = vld [vmem:[#allocation2 + $0x1a94] sm:$0xf]  ;;  %v11214_v19 = vor.u32 %v12939_v58, %v11211_v50  ;;  %7767 = vmatpush.bf16.msrb.mxu3 %v12014_v11  ;;  %v10865_v24 = vld [vmem:[#allocation2 + $0x15d8] sm:$0xf]  ;;  %v7487_v14 = vadd.f32 %v13624_v2, %v7474_v17 }
 0x62e   :  { %v11467_v20 = vld [vmem:[#allocation2 + $0x1ab0] sm:$0xf0]  ;;  %v12856_v58 = vld [vmem:[#allocation2 + $0x15f4] sm:$0xf0] }
 0x62f   :  { %v13067_v35 = vld [vmem:[#allocation2 + $0x1c94] sm:$0xf]  ;;  %v11470_v22 = vor.u32 %v13003_v16, %v11467_v20  ;;  %7729 = vmatpush.bf16.msrb.mxu0 %v11214_v19  ;;  %v11121_v11 = vld [vmem:[#allocation2 + $0x17d8] sm:$0xf]  ;;  %v7500_v2 = vadd.f32 %v13626_v10, %v7487_v14 }
 0x630   :  { %v11723_v12 = vld [vmem:[#allocation2 + $0x1cb0] sm:$0xf0]  ;;  %v12920_v20 = vld [vmem:[#allocation2 + $0x17f4] sm:$0xf0] }
 0x631   :  { %v13131_v13 = vld [vmem:[#allocation2 + $0x1e94] sm:$0xf]  ;;  %v11726_v23 = vor.u32 %v13067_v35, %v11723_v12  ;;  %7742 = vmatpush.bf16.msrb.mxu1 %v11470_v22  ;;  %v10354_v12 = vor.u32 %v12728_v57, %v10353_v63  ;;  %v10321_v19 = vld [vmem:[#allocation2 + $0x1198] sm:$0xf]  ;;  %v11122_v22 = vor.u32 %v12920_v20, %v11121_v11  ;;  %v7513_v10 = vadd.f32 %v13628_v1, %v7500_v2  ;;  %v7538_v11 = vpop.f32.mrf.mxu1 }
 0x632   :  { %v11979_v30 = vld [vmem:[#allocation2 + $0x1eb0] sm:$0xf0]  ;;  %v12720_v31 = vld [vmem:[#allocation2 + $0x11b4] sm:$0xf0] }
 0x633   :  { %v12931_v25 = vld [vmem:[#allocation2 + $0x1854] sm:$0xf]  ;;  %v11982_v28 = vor.u32 %v13131_v13, %v11979_v30  ;;  %7755 = vmatpush.bf16.msrb.mxu2 %v11726_v23  ;;  %v10610_v13 = vor.u32 %v12792_v61, %v10609_v36  ;;  %v10866_v30 = vor.u32 %v12856_v58, %v10865_v24  ;;  %v12784_v23 = vld [vmem:[#allocation2 + $0x13b4] sm:$0xf0] }
 0x634   :  { %v11179_v26 = vld [vmem:[#allocation2 + $0x1870] sm:$0xf0]  ;;  %v12832_v63 = vld [vmem:[#allocation2 + $0x1534] sm:$0xf0] }
 0x635   :  { %v12995_v29 = vld [vmem:[#allocation2 + $0x1a54] sm:$0xf]  ;;  %v11182_v8 = vor.u32 %v12931_v25, %v11179_v26  ;;  %7768 = vmatpush.bf16.msrb.mxu3 %v11982_v28  ;;  %v10833_v25 = vld [vmem:[#allocation2 + $0x1598] sm:$0xf]  ;;  %v10322_v28 = vor.u32 %v12720_v31, %v10321_v19  ;;  %v10770_v24 = vor.u32 %v12832_v63, %v10769_v21 }
 0x636   :  { %v11435_v33 = vld [vmem:[#allocation2 + $0x1a70] sm:$0xf0]  ;;  %v12848_v26 = vld [vmem:[#allocation2 + $0x15b4] sm:$0xf0] }
 0x637   :  { %v13059_v43 = vld [vmem:[#allocation2 + $0x1c54] sm:$0xf]  ;;  %v11438_v46 = vor.u32 %v12995_v29, %v11435_v33  ;;  %7730 = vmatpush.bf16.msrb.mxu0 %v11182_v8  ;;  %v11089_v29 = vld [vmem:[#allocation2 + $0x1798] sm:$0xf]  ;;  %v10578_v33 = vor.u32 %v12784_v23, %v10577_v18 }
 0x638   :  { %v11691_v34 = vld [vmem:[#allocation2 + $0x1c70] sm:$0xf0]  ;;  %v11090_v44 = vor.u32 %v12912_v0, %v11089_v29  ;;  %v12776_v8 = vld [vmem:[#allocation2 + $0x1374] sm:$0xf0]  ;;  %v7551_v29 = vpop.f32.mrf.mxu2 }
 0x639   :  { %v13123_v38 = vld [vmem:[#allocation2 + $0x1e54] sm:$0xf]  ;;  %v11694_v56 = vor.u32 %v13059_v43, %v11691_v34  ;;  %7743 = vmatpush.bf16.msrb.mxu1 %v11438_v46  ;;  %v10834_v43 = vor.u32 %v12848_v26, %v10833_v25  ;;  %v10289_v34 = vld [vmem:[#allocation2 + $0x1158] sm:$0xf] }
 0x63a   :  { %v11947_v40 = vld [vmem:[#allocation2 + $0x1e70] sm:$0xf0]  ;;  %v11057_v46 = vld [vmem:[#allocation2 + $0x1758] sm:$0xf] }
 0x63b   :  { %v12923_v39 = vld [vmem:[#allocation2 + $0x1814] sm:$0xf]  ;;  %v11950_v27 = vor.u32 %v13123_v38, %v11947_v40  ;;  %7756 = vmatpush.bf16.msrb.mxu2 %v11694_v56  ;;  %v12712_v38 = vld [vmem:[#allocation2 + $0x1174] sm:$0xf0] }
 0x63c   :  { %v11147_v51 = vld [vmem:[#allocation2 + $0x1830] sm:$0xf0]  ;;  %v10545_v40 = vld [vmem:[#allocation2 + $0x1358] sm:$0xf] }
 0x63d   :  { %v12987_v52 = vld [vmem:[#allocation2 + $0x1a14] sm:$0xf]  ;;  %v11150_v59 = vor.u32 %v12923_v39, %v11147_v51  ;;  %7769 = vmatpush.bf16.msrb.mxu3 %v11950_v27  ;;  %v10801_v39 = vld [vmem:[#allocation2 + $0x1558] sm:$0xf] }
 0x63e   :  { %v11403_v62 = vld [vmem:[#allocation2 + $0x1a30] sm:$0xf0]  ;;  %v12840_v51 = vld [vmem:[#allocation2 + $0x1574] sm:$0xf0] }
 0x63f   :  { %v13051_v54 = vld [vmem:[#allocation2 + $0x1c14] sm:$0xf]  ;;  %v11406_v50 = vor.u32 %v12987_v52, %v11403_v62  ;;  %7731 = vmatpush.bf16.msrb.mxu0 %v11150_v59  ;;  %v12904_v56 = vld [vmem:[#allocation2 + $0x1774] sm:$0xf0]  ;;  %v10290_v52 = vor.u32 %v12712_v38, %v10289_v34  ;;  %v10546_v62 = vor.u32 %v12776_v8, %v10545_v40  ;;  %v7525_v59 = vpop.f32.mrf.mxu0  ;;  %v7564_v34 = vpop.f32.mrf.mxu3 }
 0x640   :  { %v11659_v60 = vld [vmem:[#allocation2 + $0x1c30] sm:$0xf0]  ;;  %v12704_v27 = vld [vmem:[#allocation2 + $0x1134] sm:$0xf0] }
 0x641   :  { %v13115_v48 = vld [vmem:[#allocation2 + $0x1e14] sm:$0xf]  ;;  %v11662_v16 = vor.u32 %v13051_v54, %v11659_v60  ;;  %7744 = vmatpush.bf16.msrb.mxu1 %v11406_v50  ;;  %v10802_v54 = vor.u32 %v12840_v51, %v10801_v39  ;;  %v10513_v60 = vld [vmem:[#allocation2 + $0x1318] sm:$0xf]  ;;  %v10258_v17 = vor.u32 %v12704_v27, %v10257_v55  ;;  %v7540_v55 = vpop.f32.mrf.mxu1 }
 0x642   :  { %v11915_v15 = vld [vmem:[#allocation2 + $0x1e30] sm:$0xf0]  ;;  %7732 = vmatmul.bf16.vlgmr.msrb.gmra.mxu0 %v13530_v42  ;;  %v11025_v57 = vld [vmem:[#allocation2 + $0x1718] sm:$0xf] }
 0x643   :  { %v11918_v35 = vor.u32 %v13115_v48, %v11915_v15  ;;  %7757 = vmatpush.bf16.msrb.mxu2 %v11662_v16  ;;  %7776 = vmatpush.bf16.msra.mxu0 %v10354_v12  ;;  %v11058_v48 = vor.u32 %v12904_v56, %v11057_v46  ;;  %v12768_v15 = vld [vmem:[#allocation2 + $0x1334] sm:$0xf0]  ;;  %v7526_v16 = vadd.f32 %v7525_v59, %v7513_v10 }
 0x644   :  { %7745 = vmatmul.bf16.vlgmr.msrb.gmra.mxu1 %v13538_v53  ;;  %v12896_v36 = vld [vmem:[#allocation2 + $0x1734] sm:$0xf0]  ;;  %v10514_v61 = vor.u32 %v12768_v15, %v10513_v60 }
 0x645   :  { %7770 = vmatpush.bf16.msrb.mxu3 %v11918_v35  ;;  %7789 = vmatpush.bf16.msra.mxu1 %v10610_v13  ;;  %v10225_v1 = vld [vmem:[#allocation2 + $0x10d8] sm:$0xf]  ;;  %v11026_v20 = vor.u32 %v12896_v36, %v11025_v57  ;;  %v7539_v19 = vadd.f32 %v7538_v11, %v7526_v16  ;;  %v7553_v11 = vpop.f32.mrf.mxu2 }
 0x646   :  { %7758 = vmatmul.bf16.vlgmr.msrb.gmra.mxu2 %v13526_v49  ;;  %v12696_v58 = vld [vmem:[#allocation2 + $0x10f4] sm:$0xf0] }
 0x647   :  { %7802 = vmatpush.bf16.msra.mxu2 %v10866_v30  ;;  %7777 = vmatpush.bf16.msra.mxu0 %v10322_v28  ;;  %v10481_v50 = vld [vmem:[#allocation2 + $0x12d8] sm:$0xf]  ;;  %v10226_v31 = vor.u32 %v12696_v58, %v10225_v1  ;;  %v7552_v2 = vadd.f32 %v7551_v29, %v7539_v19  ;;  %v7527_v46 = vpop.f32.mrf.mxu0 }
 0x648   :  { %7771 = vmatmul.bf16.vlgmr.msrb.gmra.mxu3 %v13534_v32  ;;  %v12760_v35 = vld [vmem:[#allocation2 + $0x12f4] sm:$0xf0] }
 0x649   :  { %7815 = vmatpush.bf16.msra.mxu3 %v11122_v22  ;;  %7790 = vmatpush.bf16.msra.mxu1 %v10578_v33  ;;  %v10737_v12 = vld [vmem:[#allocation2 + $0x14d8] sm:$0xf]  ;;  %v10482_v18 = vor.u32 %v12760_v35, %v10481_v50  ;;  %v7565_v8 = vadd.f32 %v7564_v34, %v7552_v2 }
 0x64a   :  { %v12824_v13 = vld [vmem:[#allocation2 + $0x14f4] sm:$0xf0] }
 0x64b   :  { %7803 = vmatpush.bf16.msra.mxu2 %v10834_v43  ;;  %7778 = vmatpush.bf16.msra.mxu0 %v10290_v52  ;;  %v10993_v30 = vld [vmem:[#allocation2 + $0x16d8] sm:$0xf]  ;;  %v10738_v22 = vor.u32 %v12824_v13, %v10737_v12  ;;  %vm7987_vm11 = vcmp.ge.f32.partialorder %v7565_v8, 0.0  ;;  %v7995_v60 = vmul.f32 0.01, %v7565_v8 }
 0x64c   :  { %v12888_v14 = vld [vmem:[#allocation2 + $0x16f4] sm:$0xf0] }
 0x64d   :  { %7816 = vmatpush.bf16.msra.mxu3 %v11090_v44  ;;  %7791 = vmatpush.bf16.msra.mxu1 %v10546_v62  ;;  %v10193_v23 = vld [vmem:[#allocation2 + $0x1098] sm:$0xf]  ;;  %v10994_v0 = vor.u32 %v12888_v14, %v10993_v30  ;;  %v8003_v63 = vsel %vm7987_vm11, %v7565_v8, %v7995_v60  ;;  %v7566_v30 = vpop.f32.mrf.mxu3 }
 0x64e   :  { %v12688_v25 = vld [vmem:[#allocation2 + $0x10b4] sm:$0xf0] }
 0x64f   :  { %7804 = vmatpush.bf16.msra.mxu2 %v10802_v54  ;;  %7779 = vmatpush.bf16.msra.mxu0 %v10258_v17  ;;  %v10449_v26 = vld [vmem:[#allocation2 + $0x1298] sm:$0xf]  ;;  %v10194_v44 = vor.u32 %v12688_v25, %v10193_v23 }
 0x650   :  { %v12752_v28 = vld [vmem:[#allocation2 + $0x12b4] sm:$0xf0] }
 0x651   :  { %7817 = vmatpush.bf16.msra.mxu3 %v11058_v48  ;;  %7792 = vmatpush.bf16.msra.mxu1 %v10514_v61  ;;  %v10705_v33 = vld [vmem:[#allocation2 + $0x1498] sm:$0xf]  ;;  %v10450_v56 = vor.u32 %v12752_v28, %v10449_v26  ;;  %v8011_v61 = vadd.f32 %v8003_v63, %v13355_v3 }
 0x652   :  { %v12816_v43 = vld [vmem:[#allocation2 + $0x14b4] sm:$0xf0] }
 0x653   :  { %7805 = vmatpush.bf16.msra.mxu2 %v10770_v24  ;;  %v10961_v38 = vld [vmem:[#allocation2 + $0x1698] sm:$0xf]  ;;  %7780 = vmatpush.bf16.msra.mxu0 %v10226_v31  ;;  %v10706_v52 = vor.u32 %v12816_v43, %v10705_v33  ;;  %8019 = vst [vmem:[#allocation9 + $0x18] sm:$0xff] %v8011_v61 }
 0x654   :  { %v12880_v40 = vld [vmem:[#allocation2 + $0x16b4] sm:$0xf0] }
 0x655   :  { %7818 = vmatpush.bf16.msra.mxu3 %v11026_v20  ;;  %v10161_v39 = vld [vmem:[#allocation2 + $0x1058] sm:$0xf]  ;;  %7793 = vmatpush.bf16.msra.mxu1 %v10482_v18  ;;  %v10962_v27 = vor.u32 %v12880_v40, %v10961_v38 }
 0x656   :  { %v12680_v51 = vld [vmem:[#allocation2 + $0x1074] sm:$0xf0] }
 0x657   :  { %7806 = vmatpush.bf16.msra.mxu2 %v10738_v22  ;;  %v10417_v10 = vld [vmem:[#allocation2 + $0x1258] sm:$0xf]  ;;  %7781 = vmatpush.bf16.msra.mxu0 %v10194_v44  ;;  %v10162_v57 = vor.u32 %v12680_v51, %v10161_v39 }
 0x658   :  { %v12744_v62 = vld [vmem:[#allocation2 + $0x1274] sm:$0xf0] }
 0x659   :  { %v10673_v54 = vld [vmem:[#allocation2 + $0x1458] sm:$0xf]  ;;  %7819 = vmatpush.bf16.msra.mxu3 %v10994_v0  ;;  %7794 = vmatpush.bf16.msra.mxu1 %v10450_v56  ;;  %v10418_v24 = vor.u32 %v12744_v62, %v10417_v10 }
 0x65a   :  { %v12808_v48 = vld [vmem:[#allocation2 + $0x1474] sm:$0xf0] }
 0x65b   :  { %v10929_v15 = vld [vmem:[#allocation2 + $0x1658] sm:$0xf]  ;;  %7807 = vmatpush.bf16.msra.mxu2 %v10706_v52  ;;  %v10674_v1 = vor.u32 %v12808_v48, %v10673_v54  ;;  %7782 = vmatpush.bf16.msra.mxu0 %v10162_v57 }
 0x65c   :  { %v12872_v21 = vld [vmem:[#allocation2 + $0x1674] sm:$0xf0] }
 0x65d   :  { %v10129_v36 = vld [vmem:[#allocation2 + $0x1018] sm:$0xf]  ;;  %7820 = vmatpush.bf16.msra.mxu3 %v10962_v27  ;;  %v10930_v20 = vor.u32 %v12872_v21, %v10929_v15  ;;  %7795 = vmatpush.bf16.msra.mxu1 %v10418_v24 }
 0x65e   :  { %v12672_v17 = vld [vmem:[#allocation2 + $0x1034] sm:$0xf0] }
 0x65f   :  { %v10385_v59 = vld [vmem:[#allocation2 + $0x1218] sm:$0xf]  ;;  %v10130_v31 = vor.u32 %v12672_v17, %v10129_v36  ;;  %7808 = vmatpush.bf16.msra.mxu2 %v10674_v1 }
 0x660   :  { %v12736_v58 = vld [vmem:[#allocation2 + $0x1234] sm:$0xf0] }
 0x661   :  { %v10641_v50 = vld [vmem:[#allocation2 + $0x1418] sm:$0xf]  ;;  %v10386_v23 = vor.u32 %v12736_v58, %v10385_v59  ;;  %7821 = vmatpush.bf16.msra.mxu3 %v10930_v20  ;;  %7783 = vmatpush.bf16.msra.mxu0 %v10130_v31 }
 0x662   :  { %v12800_v16 = vld [vmem:[#allocation2 + $0x1434] sm:$0xf0] }
 0x663   :  { %v10897_v35 = vld [vmem:[#allocation2 + $0x1618] sm:$0xf]  ;;  %v10642_v25 = vor.u32 %v12800_v16, %v10641_v50  ;;  %7796 = vmatpush.bf16.msra.mxu1 %v10386_v23 }
 0x664   :  { %v12864_v12 = vld [vmem:[#allocation2 + $0x1634] sm:$0xf0]  ;;  %7784 = vmatmul.bf16.vlgmr.msra.gmra.mxu0 %v13510_v45 }
 0x665   :  { %v11377_v13 = vld [vmem:[#allocation2 + $0x19d8] sm:$0xf]  ;;  %v10898_v0 = vor.u32 %v12864_v12, %v10897_v35  ;;  %7809 = vmatpush.bf16.msra.mxu2 %v10642_v25  ;;  %v13644_v12 = vpop.f32.mrf.mxu0 }
 0x666   :  { %v12984_v14 = vld [vmem:[#allocation2 + $0x19f4] sm:$0xf0]  ;;  %7797 = vmatmul.bf16.vlgmr.msra.gmra.mxu1 %v13518_v37 }
 0x667   :  { %v11633_v19 = vld [vmem:[#allocation2 + $0x1bd8] sm:$0xf]  ;;  %v11378_v28 = vor.u32 %v12984_v14, %v11377_v13  ;;  %7822 = vmatpush.bf16.msra.mxu3 %v10898_v0 }
 0x668   :  { %v13048_v18 = vld [vmem:[#allocation2 + $0x1bf4] sm:$0xf0]  ;;  %7810 = vmatmul.bf16.vlgmr.msra.gmra.mxu2 %v13506_v41 }
 0x669   :  { %v11889_v22 = vld [vmem:[#allocation2 + $0x1dd8] sm:$0xf]  ;;  %v11634_v33 = vor.u32 %v13048_v18, %v11633_v19  ;;  %7828 = vmatpush.bf16.msrb.mxu0 %v11378_v28  ;;  %v13646_v18 = vpop.f32.mrf.mxu1 }
 0x66a   :  { %v13112_v3 = vld [vmem:[#allocation2 + $0x1df4] sm:$0xf0]  ;;  %7823 = vmatmul.bf16.vlgmr.msra.gmra.mxu3 %v13514_v47 }
 0x66b   :  { %v12145_v26 = vld [vmem:[#allocation2 + $0x1fd8] sm:$0xf]  ;;  %v11890_v43 = vor.u32 %v13112_v3, %v11889_v22  ;;  %7841 = vmatpush.bf16.msrb.mxu1 %v11634_v33 }
 0x66c   :  { %v13176_v29 = vld [vmem:[#allocation2 + $0x1ff4] sm:$0xf0] }
 0x66d   :  { %v11345_v2 = vld [vmem:[#allocation2 + $0x1998] sm:$0xf]  ;;  %v12146_v40 = vor.u32 %v13176_v29, %v12145_v26  ;;  %7854 = vmatpush.bf16.msrb.mxu2 %v11890_v43 }
 0x66e   :  { %v12976_v34 = vld [vmem:[#allocation2 + $0x19b4] sm:$0xf0] }
 0x66f   :  { %v11601_v38 = vld [vmem:[#allocation2 + $0x1b98] sm:$0xf]  ;;  %v11346_v56 = vor.u32 %v12976_v34, %v11345_v2  ;;  %7867 = vmatpush.bf16.msrb.mxu3 %v12146_v40 }
 0x670   :  { %v13040_v44 = vld [vmem:[#allocation2 + $0x1bb4] sm:$0xf0] }
 0x671   :  { %v11857_v8 = vld [vmem:[#allocation2 + $0x1d98] sm:$0xf]  ;;  %v11602_v52 = vor.u32 %v13040_v44, %v11601_v38  ;;  %7829 = vmatpush.bf16.msrb.mxu0 %v11346_v56  ;;  %v13648_v38 = vpop.f32.mrf.mxu2 }
 0x672   :  { %v13104_v39 = vld [vmem:[#allocation2 + $0x1db4] sm:$0xf0] }
 0x673   :  { %v12113_v51 = vld [vmem:[#allocation2 + $0x1f98] sm:$0xf]  ;;  %v11858_v10 = vor.u32 %v13104_v39, %v11857_v8  ;;  %7842 = vmatpush.bf16.msrb.mxu1 %v11602_v52  ;;  %v4572_v52 = vperm.slane %v13367_v9, 1 }
 0x674   :  { %v13168_v46 = vld [vmem:[#allocation2 + $0x1fb4] sm:$0xf0] }
 0x675   :  { %v11313_v62 = vld [vmem:[#allocation2 + $0x1958] sm:$0xf]  ;;  %v12114_v27 = vor.u32 %v13168_v46, %v12113_v51  ;;  %7855 = vmatpush.bf16.msrb.mxu2 %v11858_v10  ;;  %v13650_v51 = vpop.f32.mrf.mxu3 }
 0x676   :  { %v12968_v54 = vld [vmem:[#allocation2 + $0x1974] sm:$0xf0] }
 0x677   :  { %v11569_v55 = vld [vmem:[#allocation2 + $0x1b58] sm:$0xf]  ;;  %v11314_v57 = vor.u32 %v12968_v54, %v11313_v62  ;;  %7868 = vmatpush.bf16.msrb.mxu3 %v12114_v27  ;;  %v7579_v62 = vpop.f32.mrf.mxu0 }
 0x678   :  { %v13032_v60 = vld [vmem:[#allocation2 + $0x1b74] sm:$0xf0] }
 0x679   :  { %v11825_v48 = vld [vmem:[#allocation2 + $0x1d58] sm:$0xf]  ;;  %v11570_v36 = vor.u32 %v13032_v60, %v11569_v55  ;;  %7830 = vmatpush.bf16.msrb.mxu0 %v11314_v57 }
 0x67a   :  { %v13096_v15 = vld [vmem:[#allocation2 + $0x1d74] sm:$0xf0] }
 0x67b   :  { %v12081_v21 = vld [vmem:[#allocation2 + $0x1f58] sm:$0xf]  ;;  %v11826_v17 = vor.u32 %v13096_v15, %v11825_v48  ;;  %7843 = vmatpush.bf16.msrb.mxu1 %v11570_v36  ;;  %v7592_v15 = vpop.f32.mrf.mxu1 }
 0x67c   :  { %v13160_v63 = vld [vmem:[#allocation2 + $0x1f74] sm:$0xf0] }
 0x67d   :  { %v11281_v59 = vld [vmem:[#allocation2 + $0x1918] sm:$0xf]  ;;  %v12082_v1 = vor.u32 %v13160_v63, %v12081_v21  ;;  %7856 = vmatpush.bf16.msrb.mxu2 %v11826_v17 }
 0x67e   :  { %v12960_v61 = vld [vmem:[#allocation2 + $0x1934] sm:$0xf0] }
 0x67f   :  { %v11537_v24 = vld [vmem:[#allocation2 + $0x1b18] sm:$0xf]  ;;  %v11282_v35 = vor.u32 %v12960_v61, %v11281_v59  ;;  %7869 = vmatpush.bf16.msrb.mxu3 %v12082_v1  ;;  %v4588_v61 = vperm.slane %v4572_v52, 1  ;;  %v12716_v52 = vld [vmem:[#allocation2 + $0x119c] sm:$0xf] }
 0x680   :  { %v13024_v58 = vld [vmem:[#allocation2 + $0x1b34] sm:$0xf0] }
 0x681   :  { %v11793_v50 = vld [vmem:[#allocation2 + $0x1d18] sm:$0xf]  ;;  %v11538_v13 = vor.u32 %v13024_v58, %v11537_v24  ;;  %7831 = vmatpush.bf16.msrb.mxu0 %v11282_v35 }
 0x682   :  { %v13088_v16 = vld [vmem:[#allocation2 + $0x1d34] sm:$0xf0] }
 0x683   :  { %v12049_v11 = vld [vmem:[#allocation2 + $0x1f18] sm:$0xf]  ;;  %v11794_v30 = vor.u32 %v13088_v16, %v11793_v50  ;;  %7844 = vmatpush.bf16.msrb.mxu1 %v11538_v13  ;;  %v7605_v13 = vpop.f32.mrf.mxu2 }
 0x684   :  { %v13152_v20 = vld [vmem:[#allocation2 + $0x1f34] sm:$0xf0]  ;;  %v10259_v13 = vld [vmem:[#allocation2 + $0x1138] sm:$0xf0] }
 0x685   :  { %v11249_v14 = vld [vmem:[#allocation2 + $0x18d8] sm:$0xf]  ;;  %v12050_v22 = vor.u32 %v13152_v20, %v12049_v11  ;;  %7857 = vmatpush.bf16.msrb.mxu2 %v11794_v30 }
 0x686   :  { %v12952_v19 = vld [vmem:[#allocation2 + $0x18f4] sm:$0xf0] }
 0x687   :  { %v11505_v31 = vld [vmem:[#allocation2 + $0x1ad8] sm:$0xf]  ;;  %v11250_v0 = vor.u32 %v12952_v19, %v11249_v14  ;;  %7870 = vmatpush.bf16.msrb.mxu3 %v12050_v22  ;;  %v7618_v22 = vpop.f32.mrf.mxu3 }
 0x688   :  { %v13016_v3 = vld [vmem:[#allocation2 + $0x1af4] sm:$0xf0]  ;;  %v10771_v22 = vld [vmem:[#allocation2 + $0x1538] sm:$0xf0] }
 0x689   :  { %v11761_v23 = vld [vmem:[#allocation2 + $0x1cd8] sm:$0xf]  ;;  %v11506_v28 = vor.u32 %v13016_v3, %v11505_v31  ;;  %7832 = vmatpush.bf16.msrb.mxu0 %v11250_v0  ;;  %v12724_v3 = vld [vmem:[#allocation2 + $0x11dc] sm:$0xf] }
 0x68a   :  { %v13080_v25 = vld [vmem:[#allocation2 + $0x1cf4] sm:$0xf0]  ;;  %v10611_v0 = vld [vmem:[#allocation2 + $0x13f8] sm:$0xf0] }
 0x68b   :  { %v12017_v26 = vld [vmem:[#allocation2 + $0x1ed8] sm:$0xf]  ;;  %v11762_v33 = vor.u32 %v13080_v25, %v11761_v23  ;;  %7845 = vmatpush.bf16.msrb.mxu1 %v11506_v28  ;;  %v10355_v23 = vld [vmem:[#allocation2 + $0x11f8] sm:$0xf0] }
 0x68c   :  { %v13144_v29 = vld [vmem:[#allocation2 + $0x1ef4] sm:$0xf0]  ;;  %v12788_v25 = vld [vmem:[#allocation2 + $0x13dc] sm:$0xf] }
 0x68d   :  { %v11217_v43 = vld [vmem:[#allocation2 + $0x1898] sm:$0xf]  ;;  %v12018_v40 = vor.u32 %v13144_v29, %v12017_v26  ;;  %7858 = vmatpush.bf16.msrb.mxu2 %v11762_v33  ;;  %v7578_v26 = vadd.f32 %v13644_v12, %v4588_v61  ;;  %v12852_v28 = vld [vmem:[#allocation2 + $0x15dc] sm:$0xf] }
 0x68e   :  { %v12944_v2 = vld [vmem:[#allocation2 + $0x18b4] sm:$0xf0]  ;;  %v10867_v33 = vld [vmem:[#allocation2 + $0x15f8] sm:$0xf0] }
 0x68f   :  { %v11473_v34 = vld [vmem:[#allocation2 + $0x1a98] sm:$0xf]  ;;  %v11218_v10 = vor.u32 %v12944_v2, %v11217_v43  ;;  %7871 = vmatpush.bf16.msrb.mxu3 %v12018_v40  ;;  %v11123_v40 = vld [vmem:[#allocation2 + $0x17f8] sm:$0xf0] }
 0x690   :  { %v13008_v44 = vld [vmem:[#allocation2 + $0x1ab4] sm:$0xf0]  ;;  %v10323_v12 = vld [vmem:[#allocation2 + $0x11b8] sm:$0xf0] }
 0x691   :  { %v11729_v8 = vld [vmem:[#allocation2 + $0x1c98] sm:$0xf]  ;;  %v11474_v54 = vor.u32 %v13008_v44, %v11473_v34  ;;  %7833 = vmatpush.bf16.msrb.mxu0 %v11218_v10  ;;  %v12916_v34 = vld [vmem:[#allocation2 + $0x17dc] sm:$0xf]  ;;  %v10326_v15 = vor.u32 %v12716_v52, %v10323_v12 }
 0x692   :  { %v13072_v39 = vld [vmem:[#allocation2 + $0x1cb4] sm:$0xf0]  ;;  %v12780_v10 = vld [vmem:[#allocation2 + $0x139c] sm:$0xf]  ;;  %v11126_v62 = vor.u32 %v12916_v34, %v11123_v40 }
 0x693   :  { %v11985_v46 = vld [vmem:[#allocation2 + $0x1e98] sm:$0xf]  ;;  %v11730_v55 = vor.u32 %v13072_v39, %v11729_v8  ;;  %7846 = vmatpush.bf16.msrb.mxu1 %v11474_v54  ;;  %v10358_v8 = vor.u32 %v12724_v3, %v10355_v23  ;;  %v10614_v39 = vor.u32 %v12788_v25, %v10611_v0  ;;  %v10579_v54 = vld [vmem:[#allocation2 + $0x13b8] sm:$0xf0] }
 0x694   :  { %v13136_v56 = vld [vmem:[#allocation2 + $0x1eb4] sm:$0xf0]  ;;  %v10547_v61 = vld [vmem:[#allocation2 + $0x1378] sm:$0xf0] }
 0x695   :  { %v11185_v27 = vld [vmem:[#allocation2 + $0x1858] sm:$0xf]  ;;  %v11986_v21 = vor.u32 %v13136_v56, %v11985_v46  ;;  %7859 = vmatpush.bf16.msrb.mxu2 %v11730_v55  ;;  %v10870_v46 = vor.u32 %v12852_v28, %v10867_v33  ;;  %v7591_v56 = vadd.f32 %v13646_v18, %v7578_v26  ;;  %v12844_v55 = vld [vmem:[#allocation2 + $0x159c] sm:$0xf]  ;;  %v7629_v26 = vpop.f32.mrf.mxu0 }
 0x696   :  { %v12936_v60 = vld [vmem:[#allocation2 + $0x1874] sm:$0xf0]  ;;  %v12892_v3 = vld [vmem:[#allocation2 + $0x171c] sm:$0xf] }
 0x697   :  { %v11441_v48 = vld [vmem:[#allocation2 + $0x1a58] sm:$0xf]  ;;  %v11186_v24 = vor.u32 %v12936_v60, %v11185_v27  ;;  %7872 = vmatpush.bf16.msrb.mxu3 %v11986_v21  ;;  %v10835_v27 = vld [vmem:[#allocation2 + $0x15b8] sm:$0xf0]  ;;  %v10582_v21 = vor.u32 %v12780_v10, %v10579_v54  ;;  %v7604_v18 = vadd.f32 %v13648_v38, %v7591_v56 }
 0x698   :  { %v13000_v63 = vld [vmem:[#allocation2 + $0x1a74] sm:$0xf0]  ;;  %v12908_v60 = vld [vmem:[#allocation2 + $0x179c] sm:$0xf] }
 0x699   :  { %v11697_v57 = vld [vmem:[#allocation2 + $0x1c58] sm:$0xf]  ;;  %v11442_v50 = vor.u32 %v13000_v63, %v11441_v48  ;;  %7834 = vmatpush.bf16.msrb.mxu0 %v11186_v24  ;;  %v11091_v48 = vld [vmem:[#allocation2 + $0x17b8] sm:$0xf0]  ;;  %v10838_v63 = vor.u32 %v12844_v55, %v10835_v27  ;;  %v7617_v38 = vadd.f32 %v13650_v51, %v7604_v18  ;;  %v7655_v27 = vpop.f32.mrf.mxu2  ;;  %v7668_v18 = vpop.f32.mrf.mxu3 }
 0x69a   :  { %v13064_v36 = vld [vmem:[#allocation2 + $0x1c74] sm:$0xf0]  ;;  %v12836_v24 = vld [vmem:[#allocation2 + $0x155c] sm:$0xf] }
 0x69b   :  { %v11953_v17 = vld [vmem:[#allocation2 + $0x1e58] sm:$0xf]  ;;  %v11698_v16 = vor.u32 %v13064_v36, %v11697_v57  ;;  %7847 = vmatpush.bf16.msrb.mxu1 %v11442_v50  ;;  %v12708_v57 = vld [vmem:[#allocation2 + $0x115c] sm:$0xf] }
 0x69c   :  { %v13128_v59 = vld [vmem:[#allocation2 + $0x1e74] sm:$0xf0]  ;;  %v10291_v36 = vld [vmem:[#allocation2 + $0x1178] sm:$0xf0] }
 0x69d   :  { %v11153_v1 = vld [vmem:[#allocation2 + $0x1818] sm:$0xf]  ;;  %v11954_v30 = vor.u32 %v13128_v59, %v11953_v17  ;;  %7860 = vmatpush.bf16.msrb.mxu2 %v11698_v16  ;;  %v12772_v17 = vld [vmem:[#allocation2 + $0x135c] sm:$0xf]  ;;  %v11094_v59 = vor.u32 %v12908_v60, %v11091_v48  ;;  %v10294_v16 = vor.u32 %v12708_v57, %v10291_v36 }
 0x69e   :  { %v12928_v58 = vld [vmem:[#allocation2 + $0x1834] sm:$0xf0]  ;;  %v11059_v50 = vld [vmem:[#allocation2 + $0x1778] sm:$0xf0] }
 0x69f   :  { %v11409_v11 = vld [vmem:[#allocation2 + $0x1a18] sm:$0xf]  ;;  %v11154_v29 = vor.u32 %v12928_v58, %v11153_v1  ;;  %7873 = vmatpush.bf16.msrb.mxu3 %v11954_v30  ;;  %v10803_v1 = vld [vmem:[#allocation2 + $0x1578] sm:$0xf0] }
 0x6a0   :  { %v12992_v20 = vld [vmem:[#allocation2 + $0x1a34] sm:$0xf0]  ;;  %v12900_v58 = vld [vmem:[#allocation2 + $0x175c] sm:$0xf] }
 0x6a1   :  { %v11665_v35 = vld [vmem:[#allocation2 + $0x1c18] sm:$0xf]  ;;  %v11410_v43 = vor.u32 %v12992_v20, %v11409_v11  ;;  %7835 = vmatpush.bf16.msrb.mxu0 %v11154_v29  ;;  %v10550_v11 = vor.u32 %v12772_v17, %v10547_v61  ;;  %v10806_v20 = vor.u32 %v12836_v24, %v10803_v1  ;;  %v12764_v30 = vld [vmem:[#allocation2 + $0x131c] sm:$0xf]  ;;  %v7631_v1 = vpop.f32.mrf.mxu0 }
 0x6a2   :  { %v13056_v14 = vld [vmem:[#allocation2 + $0x1c34] sm:$0xf0]  ;;  %v11027_v23 = vld [vmem:[#allocation2 + $0x1738] sm:$0xf0] }
 0x6a3   :  { %v11921_v19 = vld [vmem:[#allocation2 + $0x1e18] sm:$0xf]  ;;  %v11666_v2 = vor.u32 %v13056_v14, %v11665_v35  ;;  %7848 = vmatpush.bf16.msrb.mxu1 %v11410_v43  ;;  %v12700_v35 = vld [vmem:[#allocation2 + $0x111c] sm:$0xf]  ;;  %v11062_v14 = vor.u32 %v12900_v58, %v11059_v50  ;;  %v7630_v43 = vadd.f32 %v7629_v26, %v7617_v38  ;;  %v11030_v34 = vor.u32 %v12892_v3, %v11027_v23 }
 0x6a4   :  { %v13120_v31 = vld [vmem:[#allocation2 + $0x1e34] sm:$0xf0]  ;;  %7836 = vmatmul.bf16.vlgmr.msrb.gmra.mxu0 %v13530_v42  ;;  %v10262_v25 = vor.u32 %v12700_v35, %v10259_v13  ;;  %v12692_v51 = vld [vmem:[#allocation2 + $0x10dc] sm:$0xf] }
 0x6a5   :  { %v11922_v44 = vor.u32 %v13120_v31, %v11921_v19  ;;  %7861 = vmatpush.bf16.msrb.mxu2 %v11666_v2  ;;  %7880 = vmatpush.bf16.msra.mxu0 %v10358_v8  ;;  %v10515_v19 = vld [vmem:[#allocation2 + $0x1338] sm:$0xf0]  ;;  %v7642_v2 = vpop.f32.mrf.mxu1 }
 0x6a6   :  { %7849 = vmatmul.bf16.vlgmr.msrb.gmra.mxu1 %v13538_v53  ;;  %v12828_v31 = vld [vmem:[#allocation2 + $0x151c] sm:$0xf]  ;;  %v10518_v29 = vor.u32 %v12764_v30, %v10515_v19  ;;  %v7643_v56 = vadd.f32 %v7642_v2, %v7630_v43  ;;  %v7657_v43 = vpop.f32.mrf.mxu2 }
 0x6a7   :  { %7874 = vmatpush.bf16.msrb.mxu3 %v11922_v44  ;;  %7893 = vmatpush.bf16.msra.mxu1 %v10614_v39  ;;  %v10774_v0 = vor.u32 %v12828_v31, %v10771_v22  ;;  %v10227_v28 = vld [vmem:[#allocation2 + $0x10f8] sm:$0xf0] }
 0x6a8   :  { %7862 = vmatmul.bf16.vlgmr.msrb.gmra.mxu2 %v13526_v49  ;;  %v12756_v33 = vld [vmem:[#allocation2 + $0x12dc] sm:$0xf]  ;;  %v10230_v52 = vor.u32 %v12692_v51, %v10227_v28 }
 0x6a9   :  { %7906 = vmatpush.bf16.msra.mxu2 %v10870_v46  ;;  %7881 = vmatpush.bf16.msra.mxu0 %v10326_v15  ;;  %v10483_v40 = vld [vmem:[#allocation2 + $0x12f8] sm:$0xf0] }
 0x6aa   :  { %7875 = vmatmul.bf16.vlgmr.msrb.gmra.mxu3 %v13534_v32  ;;  %v12820_v44 = vld [vmem:[#allocation2 + $0x14dc] sm:$0xf]  ;;  %v10486_v12 = vor.u32 %v12756_v33, %v10483_v40 }
 0x6ab   :  { %7919 = vmatpush.bf16.msra.mxu3 %v11126_v62  ;;  %7894 = vmatpush.bf16.msra.mxu1 %v10582_v21  ;;  %v10739_v8 = vld [vmem:[#allocation2 + $0x14f8] sm:$0xf0] }
 0x6ac   :  { %v12884_v39 = vld [vmem:[#allocation2 + $0x16dc] sm:$0xf]  ;;  %v10742_v10 = vor.u32 %v12820_v44, %v10739_v8  ;;  %v7670_v8 = vpop.f32.mrf.mxu3 }
 0x6ad   :  { %7907 = vmatpush.bf16.msra.mxu2 %v10838_v63  ;;  %7882 = vmatpush.bf16.msra.mxu0 %v10294_v16  ;;  %v10995_v46 = vld [vmem:[#allocation2 + $0x16f8] sm:$0xf0]  ;;  %v7656_v63 = vadd.f32 %v7655_v27, %v7643_v56 }
 0x6ae   :  { %v12684_v62 = vld [vmem:[#allocation2 + $0x109c] sm:$0xf]  ;;  %v10998_v60 = vor.u32 %v12884_v39, %v10995_v46 }
 0x6af   :  { %7920 = vmatpush.bf16.msra.mxu3 %v11094_v59  ;;  %7895 = vmatpush.bf16.msra.mxu1 %v10550_v11  ;;  %v10195_v54 = vld [vmem:[#allocation2 + $0x10b8] sm:$0xf0]  ;;  %v7669_v59 = vadd.f32 %v7668_v18, %v7656_v63 }
 0x6b0   :  { %v12748_v55 = vld [vmem:[#allocation2 + $0x129c] sm:$0xf]  ;;  %v10198_v17 = vor.u32 %v12684_v62, %v10195_v54 }
 0x6b1   :  { %7908 = vmatpush.bf16.msra.mxu2 %v10806_v20  ;;  %7883 = vmatpush.bf16.msra.mxu0 %v10262_v25  ;;  %v10451_v48 = vld [vmem:[#allocation2 + $0x12b8] sm:$0xf0]  ;;  %v7644_v20 = vpop.f32.mrf.mxu1  ;;  %vm7988_vm12 = vcmp.ge.f32.partialorder %v7669_v59, 0.0  ;;  %v7996_v13 = vmul.f32 0.01, %v7669_v59 }
 0x6b2   :  { %v12812_v15 = vld [vmem:[#allocation2 + $0x149c] sm:$0xf]  ;;  %v10454_v58 = vor.u32 %v12748_v55, %v10451_v48 }
 0x6b3   :  { %7921 = vmatpush.bf16.msra.mxu3 %v11062_v14  ;;  %7896 = vmatpush.bf16.msra.mxu1 %v10518_v29  ;;  %v10707_v21 = vld [vmem:[#allocation2 + $0x14b8] sm:$0xf0]  ;;  %v8004_v31 = vsel %vm7988_vm12, %v7669_v59, %v7996_v13 }
 0x6b4   :  { %v12876_v57 = vld [vmem:[#allocation2 + $0x169c] sm:$0xf]  ;;  %v10710_v50 = vor.u32 %v12812_v15, %v10707_v21  ;;  %v8012_v26 = vadd.f32 %v8004_v31, %v13357_v4 }
 0x6b5   :  { %7909 = vmatpush.bf16.msra.mxu2 %v10774_v0  ;;  %v10963_v36 = vld [vmem:[#allocation2 + $0x16b8] sm:$0xf0]  ;;  %7884 = vmatpush.bf16.msra.mxu0 %v10230_v52 }
 0x6b6   :  { %v12676_v61 = vld [vmem:[#allocation2 + $0x105c] sm:$0xf]  ;;  %v10966_v35 = vor.u32 %v12876_v57, %v10963_v36  ;;  %8020 = vst [vmem:[#allocation9 + $0x20] sm:$0xff] %v8012_v26 }
 0x6b7   :  { %7922 = vmatpush.bf16.msra.mxu3 %v11030_v34  ;;  %v10163_v24 = vld [vmem:[#allocation2 + $0x1078] sm:$0xf0]  ;;  %7897 = vmatpush.bf16.msra.mxu1 %v10486_v12 }
 0x6b8   :  { %v12740_v16 = vld [vmem:[#allocation2 + $0x125c] sm:$0xf]  ;;  %v10166_v22 = vor.u32 %v12676_v61, %v10163_v24 }
 0x6b9   :  { %7910 = vmatpush.bf16.msra.mxu2 %v10742_v10  ;;  %v10419_v38 = vld [vmem:[#allocation2 + $0x1278] sm:$0xf0]  ;;  %7885 = vmatpush.bf16.msra.mxu0 %v10198_v17 }
 0x6ba   :  { %v12804_v11 = vld [vmem:[#allocation2 + $0x145c] sm:$0xf]  ;;  %v10422_v29 = vor.u32 %v12740_v16, %v10419_v38 }
 0x6bb   :  { %7923 = vmatpush.bf16.msra.mxu3 %v10998_v60  ;;  %v10675_v30 = vld [vmem:[#allocation2 + $0x1478] sm:$0xf0]  ;;  %7898 = vmatpush.bf16.msra.mxu1 %v10454_v58 }
 0x6bc   :  { %v12868_v14 = vld [vmem:[#allocation2 + $0x165c] sm:$0xf]  ;;  %v10678_v0 = vor.u32 %v12804_v11, %v10675_v30 }
 0x6bd   :  { %v10931_v19 = vld [vmem:[#allocation2 + $0x1678] sm:$0xf0]  ;;  %7911 = vmatpush.bf16.msra.mxu2 %v10710_v50  ;;  %7886 = vmatpush.bf16.msra.mxu0 %v10166_v22 }
 0x6be   :  { %v12668_v3 = vld [vmem:[#allocation2 + $0x101c] sm:$0xf]  ;;  %v10934_v2 = vor.u32 %v12868_v14, %v10931_v19 }
 0x6bf   :  { %v10131_v23 = vld [vmem:[#allocation2 + $0x1038] sm:$0xf0]  ;;  %7924 = vmatpush.bf16.msra.mxu3 %v10966_v35  ;;  %7899 = vmatpush.bf16.msra.mxu1 %v10422_v29 }
 0x6c0   :  { %v12732_v25 = vld [vmem:[#allocation2 + $0x121c] sm:$0xf]  ;;  %v10134_v56 = vor.u32 %v12668_v3, %v10131_v23 }
 0x6c1   :  { %v10387_v51 = vld [vmem:[#allocation2 + $0x1238] sm:$0xf0]  ;;  %7912 = vmatpush.bf16.msra.mxu2 %v10678_v0 }
 0x6c2   :  { %v12796_v28 = vld [vmem:[#allocation2 + $0x141c] sm:$0xf]  ;;  %v10390_v10 = vor.u32 %v12732_v25, %v10387_v51  ;;  %7887 = vmatpush.bf16.msra.mxu0 %v10134_v56 }
 0x6c3   :  { %v10643_v33 = vld [vmem:[#allocation2 + $0x1438] sm:$0xf0]  ;;  %7925 = vmatpush.bf16.msra.mxu3 %v10934_v2 }
 0x6c4   :  { %v12860_v34 = vld [vmem:[#allocation2 + $0x161c] sm:$0xf]  ;;  %v10646_v62 = vor.u32 %v12796_v28, %v10643_v33  ;;  %7900 = vmatpush.bf16.msra.mxu1 %v10390_v10  ;;  %v13666_v33 = vpop.f32.mrf.mxu0 }
 0x6c5   :  { %v10899_v40 = vld [vmem:[#allocation2 + $0x1638] sm:$0xf0]  ;;  %7888 = vmatmul.bf16.vlgmr.msra.gmra.mxu0 %v13510_v45 }
 0x6c6   :  { %v12980_v44 = vld [vmem:[#allocation2 + $0x19dc] sm:$0xf]  ;;  %v10902_v27 = vor.u32 %v12860_v34, %v10899_v40  ;;  %7913 = vmatpush.bf16.msra.mxu2 %v10646_v62 }
 0x6c7   :  { %v11379_v39 = vld [vmem:[#allocation2 + $0x19f8] sm:$0xf0]  ;;  %7901 = vmatmul.bf16.vlgmr.msra.gmra.mxu1 %v13518_v37 }
 0x6c8   :  { %v13044_v46 = vld [vmem:[#allocation2 + $0x1bdc] sm:$0xf]  ;;  %v11382_v60 = vor.u32 %v12980_v44, %v11379_v39  ;;  %7926 = vmatpush.bf16.msra.mxu3 %v10902_v27  ;;  %v13668_v44 = vpop.f32.mrf.mxu1 }
 0x6c9   :  { %v11635_v52 = vld [vmem:[#allocation2 + $0x1bf8] sm:$0xf0]  ;;  %7914 = vmatmul.bf16.vlgmr.msra.gmra.mxu2 %v13506_v41 }
 0x6ca   :  { %v13108_v12 = vld [vmem:[#allocation2 + $0x1ddc] sm:$0xf]  ;;  %v11638_v48 = vor.u32 %v13044_v46, %v11635_v52  ;;  %7932 = vmatpush.bf16.msrb.mxu0 %v11382_v60  ;;  %v7707_v60 = vpop.f32.mrf.mxu2 }
 0x6cb   :  { %v11891_v4 = vld [vmem:[#allocation2 + $0x1df8] sm:$0xf0]  ;;  %7927 = vmatmul.bf16.vlgmr.msra.gmra.mxu3 %v13514_v47 }
 0x6cc   :  { %v13172_v54 = vld [vmem:[#allocation2 + $0x1fdc] sm:$0xf]  ;;  %v11894_v15 = vor.u32 %v13108_v12, %v11891_v4  ;;  %7945 = vmatpush.bf16.msrb.mxu1 %v11638_v48 }
 0x6cd   :  { %v12147_v55 = vld [vmem:[#allocation2 + $0x1ff8] sm:$0xf0] }
 0x6ce   :  { %v12972_v21 = vld [vmem:[#allocation2 + $0x199c] sm:$0xf]  ;;  %v12150_v57 = vor.u32 %v13172_v54, %v12147_v55  ;;  %7958 = vmatpush.bf16.msrb.mxu2 %v11894_v15 }
 0x6cf   :  { %v11347_v63 = vld [vmem:[#allocation2 + $0x19b8] sm:$0xf0] }
 0x6d0   :  { %v13036_v18 = vld [vmem:[#allocation2 + $0x1b9c] sm:$0xf]  ;;  %v11350_v1 = vor.u32 %v12972_v21, %v11347_v63  ;;  %7971 = vmatpush.bf16.msrb.mxu3 %v12150_v57 }
 0x6d1   :  { %v11603_v36 = vld [vmem:[#allocation2 + $0x1bb8] sm:$0xf0] }
 0x6d2   :  { %v13100_v17 = vld [vmem:[#allocation2 + $0x1d9c] sm:$0xf]  ;;  %v11606_v58 = vor.u32 %v13036_v18, %v11603_v36  ;;  %7933 = vmatpush.bf16.msrb.mxu0 %v11350_v1  ;;  %v7720_v18 = vpop.f32.mrf.mxu3 }
 0x6d3   :  { %v11859_v59 = vld [vmem:[#allocation2 + $0x1db8] sm:$0xf0] }
 0x6d4   :  { %v13164_v61 = vld [vmem:[#allocation2 + $0x1f9c] sm:$0xf]  ;;  %v11862_v50 = vor.u32 %v13100_v17, %v11859_v59  ;;  %7946 = vmatpush.bf16.msrb.mxu1 %v11606_v58  ;;  %v4573_v17 = vperm.slane %v13367_v9, 3 }
 0x6d5   :  { %v12115_v24 = vld [vmem:[#allocation2 + $0x1fb8] sm:$0xf0] }
 0x6d6   :  { %v12964_v16 = vld [vmem:[#allocation2 + $0x195c] sm:$0xf]  ;;  %v12118_v20 = vor.u32 %v13164_v61, %v12115_v24  ;;  %7959 = vmatpush.bf16.msrb.mxu2 %v11862_v50  ;;  %v7683_v61 = vpop.f32.mrf.mxu0 }
 0x6d7   :  { %v11315_v38 = vld [vmem:[#allocation2 + $0x1978] sm:$0xf0] }
 0x6d8   :  { %v13028_v11 = vld [vmem:[#allocation2 + $0x1b5c] sm:$0xf]  ;;  %v11318_v31 = vor.u32 %v12964_v16, %v11315_v38  ;;  %7972 = vmatpush.bf16.msrb.mxu3 %v12118_v20  ;;  %v7696_v38 = vpop.f32.mrf.mxu1 }
 0x6d9   :  { %v11571_v35 = vld [vmem:[#allocation2 + $0x1b78] sm:$0xf0] }
 0x6da   :  { %v13092_v13 = vld [vmem:[#allocation2 + $0x1d5c] sm:$0xf]  ;;  %v11574_v22 = vor.u32 %v13028_v11, %v11571_v35  ;;  %7934 = vmatpush.bf16.msrb.mxu0 %v11318_v31 }
 0x6db   :  { %v11827_v30 = vld [vmem:[#allocation2 + $0x1d78] sm:$0xf0] }
 0x6dc   :  { %v13156_v14 = vld [vmem:[#allocation2 + $0x1f5c] sm:$0xf]  ;;  %v11830_v3 = vor.u32 %v13092_v13, %v11827_v30  ;;  %7947 = vmatpush.bf16.msrb.mxu1 %v11574_v22 }
 0x6dd   :  { %v12083_v19 = vld [vmem:[#allocation2 + $0x1f78] sm:$0xf0] }
 0x6de   :  { %v12956_v23 = vld [vmem:[#allocation2 + $0x191c] sm:$0xf]  ;;  %v12086_v26 = vor.u32 %v13156_v14, %v12083_v19  ;;  %7960 = vmatpush.bf16.msrb.mxu2 %v11830_v3  ;;  %v4589_v19 = vperm.slane %v4573_v17, 1 }
 0x6df   :  { %v11283_v25 = vld [vmem:[#allocation2 + $0x1938] sm:$0xf0] }
 0x6e0   :  { %v13020_v41 = vld [vmem:[#allocation2 + $0x1b1c] sm:$0xf]  ;;  %v11286_v47 = vor.u32 %v12956_v23, %v11283_v25  ;;  %7973 = vmatpush.bf16.msrb.mxu3 %v12086_v26  ;;  %v7709_v26 = vpop.f32.mrf.mxu2 }
 0x6e1   :  { %v11539_v29 = vld [vmem:[#allocation2 + $0x1b38] sm:$0xf0] }
 0x6e2   :  { %v13084_v0 = vld [vmem:[#allocation2 + $0x1d1c] sm:$0xf]  ;;  %v11542_v37 = vor.u32 %v13020_v41, %v11539_v29  ;;  %7935 = vmatpush.bf16.msrb.mxu0 %v11286_v47 }
 0x6e3   :  { %v11795_v51 = vld [vmem:[#allocation2 + $0x1d38] sm:$0xf0] }
 0x6e4   :  { %v13148_v28 = vld [vmem:[#allocation2 + $0x1f1c] sm:$0xf]  ;;  %v11798_v43 = vor.u32 %v13084_v0, %v11795_v51  ;;  %7948 = vmatpush.bf16.msrb.mxu1 %v11542_v37 }
 0x6e5   :  { %v12051_v45 = vld [vmem:[#allocation2 + $0x1f38] sm:$0xf0] }
 0x6e6   :  { %v12948_v2 = vld [vmem:[#allocation2 + $0x18dc] sm:$0xf]  ;;  %v12054_v8 = vor.u32 %v13148_v28, %v12051_v45  ;;  %7961 = vmatpush.bf16.msrb.mxu2 %v11798_v43  ;;  %v7722_v45 = vpop.f32.mrf.mxu3  ;;  %v7682_v43 = vadd.f32 %v13666_v33, %v4589_v19 }
 0x6e7   :  { %v11251_v34 = vld [vmem:[#allocation2 + $0x18f8] sm:$0xf0] }
 0x6e8   :  { %v13012_v40 = vld [vmem:[#allocation2 + $0x1adc] sm:$0xf]  ;;  %v11254_v4 = vor.u32 %v12948_v2, %v11251_v34  ;;  %7974 = vmatpush.bf16.msrb.mxu3 %v12054_v8 }
 0x6e9   :  { %v11507_v39 = vld [vmem:[#allocation2 + $0x1af8] sm:$0xf0] }
 0x6ea   :  { %v13076_v46 = vld [vmem:[#allocation2 + $0x1cdc] sm:$0xf]  ;;  %v11510_v10 = vor.u32 %v13012_v40, %v11507_v39  ;;  %7936 = vmatpush.bf16.msrb.mxu0 %v11254_v4  ;;  %v7695_v39 = vadd.f32 %v13668_v44, %v7682_v43 }
 0x6eb   :  { %v11763_v56 = vld [vmem:[#allocation2 + $0x1cf8] sm:$0xf0] }
 0x6ec   :  { %v13140_v52 = vld [vmem:[#allocation2 + $0x1edc] sm:$0xf]  ;;  %v11766_v62 = vor.u32 %v13076_v46, %v11763_v56  ;;  %7949 = vmatpush.bf16.msrb.mxu1 %v11510_v10  ;;  %v7708_v46 = vadd.f32 %v7707_v60, %v7695_v39  ;;  %v7733_v56 = vpop.f32.mrf.mxu0  ;;  %v7759_v10 = vpop.f32.mrf.mxu2 }
 0x6ed   :  { %v12019_v12 = vld [vmem:[#allocation2 + $0x1ef8] sm:$0xf0] }
 0x6ee   :  { %v12940_v54 = vld [vmem:[#allocation2 + $0x189c] sm:$0xf]  ;;  %v12022_v48 = vor.u32 %v13140_v52, %v12019_v12  ;;  %7962 = vmatpush.bf16.msrb.mxu2 %v11766_v62  ;;  %v7721_v33 = vadd.f32 %v7720_v18, %v7708_v46  ;;  %v7746_v12 = vpop.f32.mrf.mxu1  ;;  %v7772_v62 = vpop.f32.mrf.mxu3  ;;  %v4574_v18 = vperm.slane %v13367_v9, 5 }
 0x6ef   :  { %v11219_v55 = vld [vmem:[#allocation2 + $0x18b8] sm:$0xf0] }
 0x6f0   :  { %v13004_v27 = vld [vmem:[#allocation2 + $0x1a9c] sm:$0xf]  ;;  %v11222_v59 = vor.u32 %v12940_v54, %v11219_v55  ;;  %7975 = vmatpush.bf16.msrb.mxu3 %v12022_v48  ;;  %v7734_v52 = vadd.f32 %v7733_v56, %v7721_v33  ;;  %v4590_v17 = vperm.slane %v4574_v18, 1 }
 0x6f1   :  { %v11475_v15 = vld [vmem:[#allocation2 + $0x1ab8] sm:$0xf0] }
 0x6f2   :  { %v13068_v21 = vld [vmem:[#allocation2 + $0x1c9c] sm:$0xf]  ;;  %v11478_v24 = vor.u32 %v13004_v27, %v11475_v15  ;;  %7937 = vmatpush.bf16.msrb.mxu0 %v11222_v59  ;;  %v7747_v4 = vadd.f32 %v7746_v12, %v7734_v52 }
 0x6f3   :  { %v11731_v63 = vld [vmem:[#allocation2 + $0x1cb8] sm:$0xf0] }
 0x6f4   :  { %v13132_v57 = vld [vmem:[#allocation2 + $0x1e9c] sm:$0xf]  ;;  %v11734_v1 = vor.u32 %v13068_v21, %v11731_v63  ;;  %7950 = vmatpush.bf16.msrb.mxu1 %v11478_v24  ;;  %v7760_v44 = vadd.f32 %v7759_v10, %v7747_v4  ;;  %v7735_v55 = vpop.f32.mrf.mxu0  ;;  %v7761_v48 = vpop.f32.mrf.mxu2 }
 0x6f5   :  { %v11987_v36 = vld [vmem:[#allocation2 + $0x1eb8] sm:$0xf0] }
 0x6f6   :  { %v12932_v58 = vld [vmem:[#allocation2 + $0x185c] sm:$0xf]  ;;  %v11990_v11 = vor.u32 %v13132_v57, %v11987_v36  ;;  %7963 = vmatpush.bf16.msrb.mxu2 %v11734_v1  ;;  %v7773_v54 = vadd.f32 %v7772_v62, %v7760_v44  ;;  %v7748_v27 = vpop.f32.mrf.mxu1 }
 0x6f7   :  { %v11187_v50 = vld [vmem:[#allocation2 + $0x1878] sm:$0xf0] }
 0x6f8   :  { %v12996_v16 = vld [vmem:[#allocation2 + $0x1a5c] sm:$0xf]  ;;  %v11190_v31 = vor.u32 %v12932_v58, %v11187_v50  ;;  %7976 = vmatpush.bf16.msrb.mxu3 %v11990_v11  ;;  %vm7989_vm13 = vcmp.ge.f32.partialorder %v7773_v54, 0.0 }
 0x6f9   :  { %v11443_v20 = vld [vmem:[#allocation2 + $0x1a78] sm:$0xf0] }
 0x6fa   :  { %v13060_v35 = vld [vmem:[#allocation2 + $0x1c5c] sm:$0xf]  ;;  %v11446_v22 = vor.u32 %v12996_v16, %v11443_v20  ;;  %7938 = vmatpush.bf16.msrb.mxu0 %v11190_v31 }
 0x6fb   :  { %v11699_v13 = vld [vmem:[#allocation2 + $0x1c78] sm:$0xf0] }
 0x6fc   :  { %v13124_v30 = vld [vmem:[#allocation2 + $0x1e5c] sm:$0xf]  ;;  %v11702_v3 = vor.u32 %v13060_v35, %v11699_v13  ;;  %7951 = vmatpush.bf16.msrb.mxu1 %v11446_v22  ;;  %v7811_v21 = vpop.f32.mrf.mxu2 }
 0x6fd   :  { %v11955_v14 = vld [vmem:[#allocation2 + $0x1e78] sm:$0xf0] }
 0x6fe   :  { %v12924_v23 = vld [vmem:[#allocation2 + $0x181c] sm:$0xf]  ;;  %v11958_v29 = vor.u32 %v13124_v30, %v11955_v14  ;;  %7964 = vmatpush.bf16.msrb.mxu2 %v11702_v3  ;;  %v7798_v15 = vpop.f32.mrf.mxu1 }
 0x6ff   :  { %v11155_v25 = vld [vmem:[#allocation2 + $0x1838] sm:$0xf0] }
 0x700   :  { %v12988_v41 = vld [vmem:[#allocation2 + $0x1a1c] sm:$0xf]  ;;  %v11158_v2 = vor.u32 %v12924_v23, %v11155_v25  ;;  %7977 = vmatpush.bf16.msrb.mxu3 %v11958_v29 }
 0x701   :  { %v11411_v0 = vld [vmem:[#allocation2 + $0x1a38] sm:$0xf0] }
 0x702   :  { %v13052_v51 = vld [vmem:[#allocation2 + $0x1c1c] sm:$0xf]  ;;  %v11414_v34 = vor.u32 %v12988_v41, %v11411_v0  ;;  %7939 = vmatpush.bf16.msrb.mxu0 %v11158_v2 }
 0x703   :  { %v11667_v28 = vld [vmem:[#allocation2 + $0x1c38] sm:$0xf0] }
 0x704   :  { %v13116_v47 = vld [vmem:[#allocation2 + $0x1e1c] sm:$0xf]  ;;  %v11670_v40 = vor.u32 %v13052_v51, %v11667_v28  ;;  %7952 = vmatpush.bf16.msrb.mxu1 %v11414_v34  ;;  %v7813_v59 = vpop.f32.mrf.mxu2  ;;  %v4575_v51 = vperm.slane %v13367_v9, 7 }
 0x705   :  { %v11923_v37 = vld [vmem:[#allocation2 + $0x1e38] sm:$0xf0]  ;;  %7940 = vmatmul.bf16.vlgmr.msrb.gmra.mxu0 %v13530_v42  ;;  %v7997_v42 = vmul.f32 0.01, %v7773_v54 }
 0x706   :  { %v11926_v8 = vor.u32 %v13116_v47, %v11923_v37  ;;  %7965 = vmatpush.bf16.msrb.mxu2 %v11670_v40  ;;  %v7800_v36 = vpop.f32.mrf.mxu1  ;;  %v4591_v47 = vperm.slane %v4575_v51, 1 }
 0x707   :  { %7953 = vmatmul.bf16.vlgmr.msrb.gmra.mxu1 %v13538_v53  ;;  %v8005_v60 = vsel %vm7989_vm13, %v7773_v54, %v7997_v42 }
 0x708   :  { %7978 = vmatpush.bf16.msrb.mxu3 %v11926_v8  ;;  %v8013_v53 = vadd.f32 %v8005_v60, %v13359_v5 }
 0x709   :  { %7966 = vmatmul.bf16.vlgmr.msrb.gmra.mxu2 %v13526_v49  ;;  %v7774_v49 = vpop.f32.mrf.mxu3 }
 0x70a   :  { %8021 = vst [vmem:[#allocation9 + $0x28] sm:$0xff] %v8013_v53 }
 0x70b   :  { %7979 = vmatmul.bf16.vlgmr.msrb.gmra.mxu3 %v13534_v32  ;;  %v7785_v32 = vpop.f32.mrf.mxu0 }
 0x70c   :  { %v7786_v24 = vadd.f32 %v7785_v32, %v4590_v17 }
 0x70e   :  { %v7799_v1 = vadd.f32 %v7798_v15, %v7786_v24 }
 0x710   :  { %v7812_v58 = vadd.f32 %v7811_v21, %v7799_v1 }
 0x711   :  { %v7824_v63 = vpop.f32.mrf.mxu3 }
 0x712   :  { %v7825_v50 = vadd.f32 %v7824_v63, %v7812_v58 }
 0x713   :  { %v7787_v57 = vpop.f32.mrf.mxu0 }
 0x719   :  { %v7826_v61 = vpop.f32.mrf.mxu3 }
 0x721   :  { %v7837_v16 = vpop.f32.mrf.mxu0 }
 0x722   :  { %v7838_v5 = vadd.f32 %v7837_v16, %v7825_v50 }
 0x723   :  { %v7850_v38 = vpop.f32.mrf.mxu1 }
 0x724   :  { %v7851_v11 = vadd.f32 %v7850_v38, %v7838_v5 }
 0x729   :  { %v7839_v14 = vpop.f32.mrf.mxu0 }
 0x72b   :  { %v7863_v20 = vpop.f32.mrf.mxu2  ;;  %v7852_v19 = vpop.f32.mrf.mxu1 }
 0x72c   :  { %v7864_v35 = vadd.f32 %v7863_v20, %v7851_v11 }
 0x72d   :  { %v7876_v13 = vpop.f32.mrf.mxu3 }
 0x72e   :  { %v7877_v30 = vadd.f32 %v7876_v13, %v7864_v35 }
 0x730   :  { %vm7990_vm14 = vcmp.ge.f32.partialorder %v7877_v30, 0.0  ;;  %v7998_v31 = vmul.f32 0.01, %v7877_v30 }
 0x732   :  { %v8006_v22 = vsel %vm7990_vm14, %v7877_v30, %v7998_v31 }
 0x733   :  { %v8014_v3 = vadd.f32 %v8006_v22, %v13361_v6  ;;  %v7865_v23 = vpop.f32.mrf.mxu2 }
 0x735   :  { %v7878_v25 = vpop.f32.mrf.mxu3  ;;  %8022 = vst [vmem:[#allocation9 + $0x30] sm:$0xff] %v8014_v3 }
 0x742   :  { %v7889_v41 = vpop.f32.mrf.mxu0 }
 0x743   :  { %v7890_v2 = vadd.f32 %v7889_v41, %v4591_v47 }
 0x744   :  { %v7902_v26 = vpop.f32.mrf.mxu1 }
 0x745   :  { %v7903_v34 = vadd.f32 %v7902_v26, %v7890_v2 }
 0x74a   :  { %v7891_v28 = vpop.f32.mrf.mxu0 }
 0x74c   :  { %v7915_v29 = vpop.f32.mrf.mxu2  ;;  %v7904_v45 = vpop.f32.mrf.mxu1 }
 0x74d   :  { %v7916_v40 = vadd.f32 %v7915_v29, %v7903_v34 }
 0x74e   :  { %v7928_v0 = vpop.f32.mrf.mxu3 }
 0x74f   :  { %v7929_v8 = vadd.f32 %v7928_v0, %v7916_v40 }
 0x754   :  { %v7917_v37 = vpop.f32.mrf.mxu2 }
 0x756   :  { %v7930_v43 = vpop.f32.mrf.mxu3 }
 0x782   :  { %v7941_v39 = vpop.f32.mrf.mxu0 }
 0x783   :  { %v7942_v46 = vadd.f32 %v7941_v39, %v7929_v8 }
 0x784   :  { %v7954_v6 = vpop.f32.mrf.mxu1 }
 0x785   :  { %v7955_v33 = vadd.f32 %v7954_v6, %v7942_v46 }
 0x78a   :  { %v7943_v4 = vpop.f32.mrf.mxu0 }
 0x78c   :  { %v7967_v56 = vpop.f32.mrf.mxu2  ;;  %v7956_v10 = vpop.f32.mrf.mxu1 }
 0x78d   :  { %v7968_v52 = vadd.f32 %v7967_v56, %v7955_v33 }
 0x78e   :  { %v7980_v12 = vpop.f32.mrf.mxu3 }
 0x78f   :  { %v7981_v44 = vadd.f32 %v7980_v12, %v7968_v52 }
 0x791   :  { %vm7991_vm15 = vcmp.ge.f32.partialorder %v7981_v44, 0.0  ;;  %v7999_v9 = vmul.f32 0.01, %v7981_v44 }
 0x793   :  { %v8007_v62 = vsel %vm7991_vm15, %v7981_v44, %v7999_v9 }
 0x794   :  { %v8015_v54 = vadd.f32 %v8007_v62, %v13363_v7  ;;  %v7969_v55 = vpop.f32.mrf.mxu2 }
 0x796   :  { %v7982_v27 = vpop.f32.mrf.mxu3  ;;  %8023 = vst [vmem:[#allocation9 + $0x38] sm:$0xff] %v8015_v54 }
 0x797   :  { %8034 = dma.vmem_to_hbm [thread:$0]  %s8030_s4, 1024, %s8032_s7, [#allocation6]  }
 0x798   :  { %13310 = dma.done.wait [#allocation6], 1024  }
 0x799   :  { %13311 = vsyncadd [#allocation6], 4294966272 }
 0x79a   :  { %8039 = vsyncpa [#allocation5], 1 }
 0x79b   :  { %8040 = vsyncpa [#allocation8], 1 }
 0x79c   :  { %8041 = vsyncpa [#allocation6], 1 }
 0x79d   :  { %8042 = vsyncmov [#allocation3] }
 0x7a0   :  { %s8043_s8 = vpop.sfrf %8042 }
 0x7a1   :  { %p12151_p0 = scmp.ne.s32.totalorder %s8043_s8, 0 }
 0x7a3   :  { %8047 = shalt.err (%p12151_p0)  }
 0x7a4   :  { %8049 = vsyncmov [#allocation3 + $0x1] }
 0x7a7   :  { %s8050_s3 = vpop.sfrf %8049 }
 0x7a8   :  { %p12152_p1 = scmp.ne.s32.totalorder %s8050_s3, 0 }
 0x7aa   :  { %8054 = shalt.err (%p12152_p1)  }

</bundles_post_ra>
